<compile_context>
chip_gen: v7x
topology: tpu7x:2x2x1
jax: 0.10.0
libtpu: 0.0.40
codegen_flags: <defaults>
</compile_context>

<pallas_src>
import functools

import jax
import jax.numpy as jnp
from jax.experimental import pallas as pl
from jax.experimental.pallas import tpu as pltpu

LEAKY_SLOPE = 0.2
IN_EPS = 1e-5


# ----------------------------------------------------------------------------
# flat-parameter layout (small conv weights live in SMEM as one 1-D f32 vector)
# ----------------------------------------------------------------------------
def _make_offsets(spec):
    offs, idx = {}, 0
    for name, n in spec:
        offs[name] = idx
        idx += n
    return offs, idx


# conv2 = BasicINConv(4, 4, use_IN=True)  +  conv3 = Conv2d(2, 1, 3, pad=1, no bias)
_ATTN_SPEC = [
    ("c1_w", 4 * 4 * 9), ("c1_b", 4),
    ("c2_w", 4 * 4 * 9), ("c2_b", 4),
    ("id_w", 4 * 4), ("id_b", 4),
    ("gamma", 2), ("beta", 2),
    ("c3_w", 1 * 2 * 9),
]
_ATTN_OFFS, _ATTN_LEN = _make_offsets(_ATTN_SPEC)


def _inconv_spec(c):
    # conv1 = BasicINConv(in_size, in_size, use_IN=False)
    return [
        ("c1_w", c * c * 9), ("c1_b", c),
        ("c2_w", c * c * 9), ("c2_b", c),
        ("id_w", c * c), ("id_b", c),
    ]


# ----------------------------------------------------------------------------
# in-kernel helpers.  Multi-channel tensors are Python lists of per-channel
# (bpg, S1, S2) f32 arrays.
# ----------------------------------------------------------------------------
def _lrelu(x):
    return jnp.where(x > 0, x, LEAKY_SLOPE * x)


def _make_shift_masks(s1, s2):
    """Validity masks for 3x3 'same'-conv shifts on an (..., s1, s2) grid.
    Built once per kernel invocation (hoisted iotas), reused by every conv."""
    shape = (1, s1, s2)
    ih = jax.lax.broadcasted_iota(jnp.int32, shape, 1)
    iw = jax.lax.broadcasted_iota(jnp.int32, shape, 2)
    masks = {}
    for ds in (-1, 0, 1):
        for dl in (-1, 0, 1):
            if ds == 0 and dl == 0:
                continue
            conds = []
            if ds > 0:
                conds.append(ih < s1 - ds)
            if ds < 0:
                conds.append(ih >= -ds)
            if dl > 0:
                conds.append(iw < s2 - dl)
            if dl < 0:
                conds.append(iw >= -dl)
            m = conds[0]
            for c in conds[1:]:
                m = m & c
            masks[(ds, dl)] = m
    return masks


def _shift(x, ds, dl, masks):
    """y[..., i, j] = x[..., i+ds, j+dl]; zero outside bounds.  x: (bpg, s1, s2)."""
    if ds == 0 and dl == 0:
        return x
    s1, s2 = x.shape[-2], x.shape[-1]
    y = x
    if ds != 0:
        y = pltpu.roll(y, shift=(-ds) % s1, axis=x.ndim - 2)
    if dl != 0:
        y = pltpu.roll(y, shift=(-dl) % s2, axis=x.ndim - 1)
    return jnp.where(masks[(ds, dl)], y, 0.0)


def _conv3x3(chans, prm, w_off, b_off, cout, masks, swap_hw=False):
    """3x3 'same' conv (stride 1, pad 1), tap-outer accumulation.

    chans: list of cin (bpg, s1, s2) arrays -> list of cout arrays.
    swap_hw=True: the stored grid (s1, s2) is transposed w.r.t. the PyTorch
    spatial dims, so the kernel-tap index (kh, kw) is swapped accordingly.
    """
    cin = len(chans)
    shape = chans[0].shape
    acc = []
    for co in range(cout):
        if b_off is None:
            acc.append(jnp.zeros(shape, jnp.float32))
        else:
            acc.append(jnp.zeros(shape, jnp.float32) + prm[b_off + co])
    for ds in (-1, 0, 1):
        for dl in (-1, 0, 1):
            kh, kw = (dl + 1, ds + 1) if swap_hw else (ds + 1, dl + 1)
            for ci in range(cin):
                tap = _shift(chans[ci], ds, dl, masks)      # computed once per (tap, ci)
                for co in range(cout):
                    wv = prm[w_off + ((co * cin + ci) * 3 + kh) * 3 + kw]
                    acc[co] = acc[co] + wv * tap
    return acc


def _conv1x1(chans, prm, w_off, b_off, cout):
    cin = len(chans)
    shape = chans[0].shape
    out = []
    for co in range(cout):
        acc = jnp.zeros(shape, jnp.float32) + prm[b_off + co]
        for ci in range(cin):
            acc = acc + prm[w_off + co * cin + ci] * chans[ci]
        out.append(acc)
    return out


def _basic_inconv_no_in(chans, prm, offs, masks):
    """BasicINConv(C, C, use_IN=False)  (== self.conv1)."""
    c = len(chans)
    t = [_lrelu(v) for v in _conv3x3(chans, prm, offs["c1_w"], offs["c1_b"], c, masks)]
    t = [_lrelu(v) for v in _conv3x3(t, prm, offs["c2_w"], offs["c2_b"], c, masks)]
    idn = _conv1x1(chans, prm, offs["id_w"], offs["id_b"], c)
    return [a + b for a, b in zip(t, idn)]


def _attention(mx, mn, prm, o, masks, swap_hw):
    """ChannelPool x2 -> BasicINConv(4,4,IN) -> conv3 on both chunks -> sigmoid.
    Returns s = 0.5 * (sigmoid(a1) + sigmoid(a2)), shape (bpg, s1, s2).
    The two pooled copies in the reference are bit-identical -> built once."""
    mid = [mx, mn, mx, mn]                                  # [max, mean, max, mean]

    # conv2.conv_1 + InstanceNorm2d(2, affine=True) on the first two channels
    t = _conv3x3(mid, prm, o["c1_w"], o["c1_b"], 4, masks, swap_hw)
    red = tuple(range(1, t[0].ndim))                        # per-sample spatial dims
    for ch in range(2):
        xc = t[ch]
        mu = jnp.mean(xc, axis=red, keepdims=True)
        var = jnp.mean((xc - mu) * (xc - mu), axis=red, keepdims=True)
        t[ch] = ((xc - mu) * jax.lax.rsqrt(var + IN_EPS)) * prm[o["gamma"] + ch] \
                + prm[o["beta"] + ch]
    t = [_lrelu(v) for v in t]
    t = [_lrelu(v) for v in _conv3x3(t, prm, o["c2_w"], o["c2_b"], 4, masks, swap_hw)]
    idn = _conv1x1(mid, prm, o["id_w"], o["id_b"], 4)
    t = [a + b for a, b in zip(t, idn)]

    # conv3 on the two channel chunks, sigmoid, 0.5*(s1+s2)
    a1 = _conv3x3(t[0:2], prm, o["c3_w"], None, 1, masks, swap_hw)[0]
    a2 = _conv3x3(t[2:4], prm, o["c3_w"], None, 1, masks, swap_hw)[0]
    s1 = 1.0 / (1.0 + jnp.exp(-a1))
    s2 = 1.0 / (1.0 + jnp.exp(-a2))
    return 0.5 * (s1 + s2)


# ----------------------------------------------------------------------------
# fused kernel: one pallas_call per forward, all three branch types
# ----------------------------------------------------------------------------
def _branch_kernel(x_ref, prm, o_ref, *, is_chw, conv1_offs, attn_offs):
    xv = x_ref[...].astype(jnp.float32)                     # (bpg, C, H, W)
    bpg, C, H, W = xv.shape

    if is_chw == 2:
        # conv1 -> pool over channels -> attention on (H, W) -> gate (bcast over C)
        masks = _make_shift_masks(H, W)                     # shared by conv1 + attention
        xch = [xv[:, ci] for ci in range(C)]
        res = _basic_inconv_no_in(xch, prm, conv1_offs, masks)
        mx = res[0]
        sm = res[0]
        for ci in range(1, C):
            mx = jnp.maximum(mx, res[ci])
            sm = sm + res[ci]
        mn = sm * (1.0 / C)
        s = _attention(mx, mn, prm, attn_offs, masks, swap_hw=False)   # (bpg, H, W)
        for co in range(C):                                 # write channels in place
            o_ref[:, co, :, :] = (res[co] * s).astype(o_ref.dtype)
    elif is_chw == 0:
        # pool over H -> attention on (C, W) grid -> gate (broadcast back over H)
        masks = _make_shift_masks(C, W)
        mx = jnp.max(xv, axis=2)                                        # (bpg, C, W)
        mn = jnp.mean(xv, axis=2)
        s = _attention(mx, mn, prm, attn_offs, masks, swap_hw=False)    # (bpg, C, W)
        o_ref[...] = (xv * s[:, :, None, :]).astype(o_ref.dtype)
    else:  # is_chw == 1
        # pool over W -> attention on (H, C) grid stored as (C, H) -> gate over W
        masks = _make_shift_masks(C, H)
        mx = jnp.max(xv, axis=3)                                        # (bpg, C, H)
        mn = jnp.mean(xv, axis=3)
        s = _attention(mx, mn, prm, attn_offs, masks, swap_hw=True)     # (bpg, C, H)
        o_ref[...] = (xv * s[:, :, :, None]).astype(o_ref.dtype)


def _pick_batch_per_step(b, c, h, w):
    """Largest batch chunk that (a) keeps the per-step VMEM footprint modest and
    (b) leaves >=2 grid steps when B>=2 so both v7x TensorCores get work."""
    bytes_per_img = c * h * w * 4
    budget = 8 * 1024 * 1024            # in/out double-buffered + f32 temps, headroom
    max_bpg = max(1, budget // max(1, 8 * bytes_per_img))
    cap = b if b < 2 else min(max_bpg, b // 2)
    cap = max(1, min(cap, b))
    best = 1
    for cand in range(1, cap + 1):
        if b % cand == 0:
            best = cand
    return best


def dcfe_branch_forward(x, conv1_flat, attn_flat, is_chw):
    """Equivalent of DCFE_Branch(is_chw, in_size).forward(x); x: (B, C, H, W)."""
    b, c, h, w = x.shape
    if is_chw == 2:
        conv1_offs, conv1_len = _make_offsets(_inconv_spec(c))
        attn_offs = {k: v + conv1_len for k, v in _ATTN_OFFS.items()}
        prm = jnp.concatenate([conv1_flat, attn_flat]).astype(jnp.float32)
    else:
        conv1_offs = None
        attn_offs = _ATTN_OFFS
        prm = attn_flat.astype(jnp.float32)

    bpg = _pick_batch_per_step(b, c, h, w)
    kernel = functools.partial(_branch_kernel, is_chw=is_chw,
                               conv1_offs=conv1_offs, attn_offs=attn_offs)
    return pl.pallas_call(
        kernel,
        out_shape=jax.ShapeDtypeStruct((b, c, h, w), jnp.float32),
        grid=(b // bpg,),
        in_specs=[pl.BlockSpec((bpg, c, h, w), lambda i: (i, 0, 0, 0)),
                  pl.BlockSpec(memory_space=pltpu.MemorySpace.SMEM)],
        out_specs=pl.BlockSpec((bpg, c, h, w), lambda i: (i, 0, 0, 0)),
        compiler_params=pltpu.CompilerParams(
            dimension_semantics=("parallel",),
            vmem_limit_bytes=32 * 1024 * 1024),
    )(x, prm)


# ----------------------------------------------------------------------------
# pure-JAX reference (for correctness check only)
# ----------------------------------------------------------------------------
def _ref_conv2d(x, w, b, pad):
    y = jax.lax.conv_general_dilated(
        x, w, window_strides=(1, 1), padding=[(pad, pad), (pad, pad)],
        dimension_numbers=("NCHW", "OIHW", "NCHW"))
    if b is not None:
        y = y + b[None, :, None, None]
    return y


def _ref_basic_in_conv(x, p, use_in):
    t = _ref_conv2d(x, p["conv1_w"], p["conv1_b"], 1)
    if use_in:
        half = t.shape[1] // 2
        t1, t2 = t[:, :half], t[:, half:]
        mu = jnp.mean(t1, axis=(2, 3), keepdims=True)
        var = jnp.mean((t1 - mu) ** 2, axis=(2, 3), keepdims=True)
        t1 = (t1 - mu) * jax.lax.rsqrt(var + IN_EPS)
        t1 = t1 * p["gamma"][None, :, None, None] + p["beta"][None, :, None, None]
        t = jnp.concatenate([t1, t2], axis=1)
    t = _lrelu(t)
    t = _lrelu(_ref_conv2d(t, p["conv2_w"], p["conv2_b"], 1))
    return t + _ref_conv2d(x, p["id_w"][:, :, None, None], p["id_b"], 0)


def _ref_forward(x, c1p, c2p, c3_w, is_chw):
    def pool(t):
        return jnp.concatenate([jnp.max(t, axis=1, keepdims=True),
                                jnp.mean(t, axis=1, keepdims=True)], axis=1)

    def branch(p):
        mid = jnp.concatenate([pool(p), pool(p)], axis=1)
        mid = _ref_basic_in_conv(mid, c2p, True)
        a1 = _ref_conv2d(mid[:, 0:2], c3_w, None, 1)
        a2 = _ref_conv2d(mid[:, 2:4], c3_w, None, 1)
        s1 = 1.0 / (1.0 + jnp.exp(-a1))
        s2 = 1.0 / (1.0 + jnp.exp(-a2))
        return 0.5 * (p * s1 + p * s2)

    if is_chw == 0:
        return jnp.transpose(branch(jnp.transpose(x, (0, 2, 1, 3))), (0, 2, 1, 3))
    elif is_chw == 1:
        return jnp.transpose(branch(jnp.transpose(x, (0, 3, 2, 1))), (0, 3, 2, 1))
    else:
        return branch(_ref_basic_in_conv(x, c1p, False))


# ----------------------------------------------------------------------------
if __name__ == "__main__":
    key = jax.random.PRNGKey(0)
    B, C, H, W = 2, 4, 16, 16          # in_size = 4
    keys = jax.random.split(key, 16)
    x = jax.random.normal(keys[0], (B, C, H, W), jnp.float32)

    def nrm(k, shape, s):
        return (s * jax.random.normal(k, shape)).astype(jnp.float32)

    # conv1 = BasicINConv(C, C, use_IN=False)
    c1p = {
        "conv1_w": nrm(keys[1], (C, C, 3, 3), 0.2), "conv1_b": nrm(keys[2], (C,), 0.1),
        "conv2_w": nrm(keys[3], (C, C, 3, 3), 0.2), "conv2_b": nrm(keys[4], (C,), 0.1),
        "id_w": nrm(keys[5], (C, C), 0.2), "id_b": nrm(keys[6], (C,), 0.1),
    }
    # conv2 = BasicINConv(4, 4, use_IN=True)
    c2p = {
        "conv1_w": nrm(keys[7], (4, 4, 3, 3), 0.3), "conv1_b": nrm(keys[8], (4,), 0.1),
        "conv2_w": nrm(keys[9], (4, 4, 3, 3), 0.3), "conv2_b": nrm(keys[10], (4,), 0.1),
        "id_w": nrm(keys[11], (4, 4), 0.3), "id_b": nrm(keys[12], (4,), 0.1),
        "gamma": jnp.ones((2,), jnp.float32), "beta": jnp.zeros((2,), jnp.float32),
    }
    # conv3 = BasicConv(2, 1, 3, 1, 1, relu=False, bn=False) -> Conv2d no bias
    c3_w = nrm(keys[13], (1, 2, 3, 3), 0.3)

    conv1_flat = jnp.concatenate([
        c1p["conv1_w"].ravel(), c1p["conv1_b"],
        c1p["conv2_w"].ravel(), c1p["conv2_b"],
        c1p["id_w"].ravel(), c1p["id_b"]]).astype(jnp.float32)
    attn_flat = jnp.concatenate([
        c2p["conv1_w"].ravel(), c2p["conv1_b"],
        c2p["conv2_w"].ravel(), c2p["conv2_b"],
        c2p["id_w"].ravel(), c2p["id_b"],
        c2p["gamma"], c2p["beta"], c3_w.ravel()]).astype(jnp.float32)
    assert attn_flat.shape[0] == _ATTN_LEN

    for is_chw in (0, 1, 2):
        out = dcfe_branch_forward(x, conv1_flat, attn_flat, is_chw)
        out = jax.block_until_ready(out)
        assert out.shape == x.shape and out.dtype == jnp.float32
        ref = _ref_forward(x, c1p, c2p, c3_w, is_chw)
        if not jnp.allclose(out, ref, atol=1e-4, rtol=1e-4):
            raise AssertionError(
                f"mismatch is_chw={is_chw}, max err={float(jnp.max(jnp.abs(out - ref)))}")
    print("KERNEL_OK")
</pallas_src>

<mosaic_0001>
module attributes {stable_mosaic.version = 11 : i64} {
  func.func @_branch_kernel(%arg0: i32, %arg1: memref<1x4x16x16xf32, #tpu.memory_space<vmem>>, %arg2: memref<338xf32, #tpu.memory_space<smem>>, %arg3: memref<1x4x16x16xf32, #tpu.memory_space<vmem>>) attributes {dimension_semantics = [#tpu.dimension_semantics<parallel>], iteration_bounds = array<i64: 2>, scalar_prefetch = 0 : i64, scratch_operands = 0 : i64, tpu.core_type = #tpu.core_type<tc>, window_params = [{transform_indices = @transform_0, window_bounds = array<i64: 1, 4, 16, 16>}, {transform_indices = @transform_1, window_bounds = array<i64: 338>}, {transform_indices = @transform_2, window_bounds = array<i64: 1, 4, 16, 16>}]} {
    %c0 = arith.constant 0 : index
    %c0_0 = arith.constant 0 : index
    %c0_1 = arith.constant 0 : index
    %c0_2 = arith.constant 0 : index
    %0 = vector.load %arg1[%c0, %c0_0, %c0_1, %c0_2] : memref<1x4x16x16xf32, #tpu.memory_space<vmem>>, vector<1x4x16x16xf32>
    %1 = tpu.iota {dimensions = array<i32: 1>} : vector<1x4x16xi32>
    %2 = tpu.iota {dimensions = array<i32: 2>} : vector<1x4x16xi32>
    %c1_i32 = arith.constant 1 : i32
    %3 = vector.broadcast %c1_i32 : i32 to vector<1x4x16xi32>
    %4 = arith.cmpi sge, %1, %3 : vector<1x4x16xi32>
    %c1_i32_3 = arith.constant 1 : i32
    %5 = vector.broadcast %c1_i32_3 : i32 to vector<1x4x16xi32>
    %6 = arith.cmpi sge, %2, %5 : vector<1x4x16xi32>
    %7 = arith.andi %4, %6 : vector<1x4x16xi1>
    %c1_i32_4 = arith.constant 1 : i32
    %8 = vector.broadcast %c1_i32_4 : i32 to vector<1x4x16xi32>
    %9 = arith.cmpi sge, %1, %8 : vector<1x4x16xi32>
    %c1_i32_5 = arith.constant 1 : i32
    %10 = vector.broadcast %c1_i32_5 : i32 to vector<1x4x16xi32>
    %11 = arith.cmpi sge, %1, %10 : vector<1x4x16xi32>
    %c15_i32 = arith.constant 15 : i32
    %12 = vector.broadcast %c15_i32 : i32 to vector<1x4x16xi32>
    %13 = arith.cmpi slt, %2, %12 : vector<1x4x16xi32>
    %14 = arith.andi %11, %13 : vector<1x4x16xi1>
    %c1_i32_6 = arith.constant 1 : i32
    %15 = vector.broadcast %c1_i32_6 : i32 to vector<1x4x16xi32>
    %16 = arith.cmpi sge, %2, %15 : vector<1x4x16xi32>
    %c15_i32_7 = arith.constant 15 : i32
    %17 = vector.broadcast %c15_i32_7 : i32 to vector<1x4x16xi32>
    %18 = arith.cmpi slt, %2, %17 : vector<1x4x16xi32>
    %c3_i32 = arith.constant 3 : i32
    %19 = vector.broadcast %c3_i32 : i32 to vector<1x4x16xi32>
    %20 = arith.cmpi slt, %1, %19 : vector<1x4x16xi32>
    %c1_i32_8 = arith.constant 1 : i32
    %21 = vector.broadcast %c1_i32_8 : i32 to vector<1x4x16xi32>
    %22 = arith.cmpi sge, %2, %21 : vector<1x4x16xi32>
    %23 = arith.andi %20, %22 : vector<1x4x16xi1>
    %c3_i32_9 = arith.constant 3 : i32
    %24 = vector.broadcast %c3_i32_9 : i32 to vector<1x4x16xi32>
    %25 = arith.cmpi slt, %1, %24 : vector<1x4x16xi32>
    %c3_i32_10 = arith.constant 3 : i32
    %26 = vector.broadcast %c3_i32_10 : i32 to vector<1x4x16xi32>
    %27 = arith.cmpi slt, %1, %26 : vector<1x4x16xi32>
    %c15_i32_11 = arith.constant 15 : i32
    %28 = vector.broadcast %c15_i32_11 : i32 to vector<1x4x16xi32>
    %29 = arith.cmpi slt, %2, %28 : vector<1x4x16xi32>
    %30 = arith.andi %27, %29 : vector<1x4x16xi1>
    %cst = arith.constant dense<0xFF800000> : vector<1x4x16xf32>
    %31 = vector.multi_reduction <maximumf>, %0, %cst [2] : vector<1x4x16x16xf32> to vector<1x4x16xf32>
    %cst_12 = arith.constant dense<0.000000e+00> : vector<1x4x16xf32>
    %32 = vector.multi_reduction <add>, %0, %cst_12 [2] : vector<1x4x16x16xf32> to vector<1x4x16xf32>
    %cst_13 = arith.constant 1.600000e+01 : f32
    %33 = vector.broadcast %cst_13 : f32 to vector<1x4x16xf32>
    %34 = arith.divf %32, %33 : vector<1x4x16xf32>
    %cst_14 = arith.constant 0.000000e+00 : f32
    %35 = vector.broadcast %cst_14 : f32 to vector<1x4x16xf32>
    %c144 = arith.constant 144 : index
    %36 = memref.load %arg2[%c144] : memref<338xf32, #tpu.memory_space<smem>>
    %37 = vector.broadcast %36 : f32 to vector<1x4x16xf32>
    %38 = arith.addf %35, %37 : vector<1x4x16xf32>
    %cst_15 = arith.constant 0.000000e+00 : f32
    %39 = vector.broadcast %cst_15 : f32 to vector<1x4x16xf32>
    %c145 = arith.constant 145 : index
    %40 = memref.load %arg2[%c145] : memref<338xf32, #tpu.memory_space<smem>>
    %41 = vector.broadcast %40 : f32 to vector<1x4x16xf32>
    %42 = arith.addf %39, %41 : vector<1x4x16xf32>
    %cst_16 = arith.constant 0.000000e+00 : f32
    %43 = vector.broadcast %cst_16 : f32 to vector<1x4x16xf32>
    %c146 = arith.constant 146 : index
    %44 = memref.load %arg2[%c146] : memref<338xf32, #tpu.memory_space<smem>>
    %45 = vector.broadcast %44 : f32 to vector<1x4x16xf32>
    %46 = arith.addf %43, %45 : vector<1x4x16xf32>
    %cst_17 = arith.constant 0.000000e+00 : f32
    %47 = vector.broadcast %cst_17 : f32 to vector<1x4x16xf32>
    %c147 = arith.constant 147 : index
    %48 = memref.load %arg2[%c147] : memref<338xf32, #tpu.memory_space<smem>>
    %49 = vector.broadcast %48 : f32 to vector<1x4x16xf32>
    %50 = arith.addf %47, %49 : vector<1x4x16xf32>
    %c1_i32_18 = arith.constant 1 : i32
    %51 = tpu.dynamic_rotate %31 by %c1_i32_18 dim 1 : vector<1x4x16xf32>, i32 -> vector<1x4x16xf32>
    %c1_i32_19 = arith.constant 1 : i32
    %52 = tpu.dynamic_rotate %51 by %c1_i32_19 dim 2 : vector<1x4x16xf32>, i32 -> vector<1x4x16xf32>
    %cst_20 = arith.constant 0.000000e+00 : f32
    %53 = vector.broadcast %cst_20 : f32 to vector<1x4x16xf32>
    %54 = arith.select %7, %52, %53 : vector<1x4x16xi1>, vector<1x4x16xf32>
    %c0_21 = arith.constant 0 : index
    %55 = memref.load %arg2[%c0_21] : memref<338xf32, #tpu.memory_space<smem>>
    %56 = vector.broadcast %55 : f32 to vector<1x4x16xf32>
    %57 = arith.mulf %56, %54 : vector<1x4x16xf32>
    %58 = arith.addf %38, %57 : vector<1x4x16xf32>
    %c36 = arith.constant 36 : index
    %59 = memref.load %arg2[%c36] : memref<338xf32, #tpu.memory_space<smem>>
    %60 = vector.broadcast %59 : f32 to vector<1x4x16xf32>
    %61 = arith.mulf %60, %54 : vector<1x4x16xf32>
    %62 = arith.addf %42, %61 : vector<1x4x16xf32>
    %c72 = arith.constant 72 : index
    %63 = memref.load %arg2[%c72] : memref<338xf32, #tpu.memory_space<smem>>
    %64 = vector.broadcast %63 : f32 to vector<1x4x16xf32>
    %65 = arith.mulf %64, %54 : vector<1x4x16xf32>
    %66 = arith.addf %46, %65 : vector<1x4x16xf32>
    %c108 = arith.constant 108 : index
    %67 = memref.load %arg2[%c108] : memref<338xf32, #tpu.memory_space<smem>>
    %68 = vector.broadcast %67 : f32 to vector<1x4x16xf32>
    %69 = arith.mulf %68, %54 : vector<1x4x16xf32>
    %70 = arith.addf %50, %69 : vector<1x4x16xf32>
    %c1_i32_22 = arith.constant 1 : i32
    %71 = tpu.dynamic_rotate %34 by %c1_i32_22 dim 1 : vector<1x4x16xf32>, i32 -> vector<1x4x16xf32>
    %c1_i32_23 = arith.constant 1 : i32
    %72 = tpu.dynamic_rotate %71 by %c1_i32_23 dim 2 : vector<1x4x16xf32>, i32 -> vector<1x4x16xf32>
    %cst_24 = arith.constant 0.000000e+00 : f32
    %73 = vector.broadcast %cst_24 : f32 to vector<1x4x16xf32>
    %74 = arith.select %7, %72, %73 : vector<1x4x16xi1>, vector<1x4x16xf32>
    %c9 = arith.constant 9 : index
    %75 = memref.load %arg2[%c9] : memref<338xf32, #tpu.memory_space<smem>>
    %76 = vector.broadcast %75 : f32 to vector<1x4x16xf32>
    %77 = arith.mulf %76, %74 : vector<1x4x16xf32>
    %78 = arith.addf %58, %77 : vector<1x4x16xf32>
    %c45 = arith.constant 45 : index
    %79 = memref.load %arg2[%c45] : memref<338xf32, #tpu.memory_space<smem>>
    %80 = vector.broadcast %79 : f32 to vector<1x4x16xf32>
    %81 = arith.mulf %80, %74 : vector<1x4x16xf32>
    %82 = arith.addf %62, %81 : vector<1x4x16xf32>
    %c81 = arith.constant 81 : index
    %83 = memref.load %arg2[%c81] : memref<338xf32, #tpu.memory_space<smem>>
    %84 = vector.broadcast %83 : f32 to vector<1x4x16xf32>
    %85 = arith.mulf %84, %74 : vector<1x4x16xf32>
    %86 = arith.addf %66, %85 : vector<1x4x16xf32>
    %c117 = arith.constant 117 : index
    %87 = memref.load %arg2[%c117] : memref<338xf32, #tpu.memory_space<smem>>
    %88 = vector.broadcast %87 : f32 to vector<1x4x16xf32>
    %89 = arith.mulf %88, %74 : vector<1x4x16xf32>
    %90 = arith.addf %70, %89 : vector<1x4x16xf32>
    %c1_i32_25 = arith.constant 1 : i32
    %91 = tpu.dynamic_rotate %31 by %c1_i32_25 dim 1 : vector<1x4x16xf32>, i32 -> vector<1x4x16xf32>
    %c1_i32_26 = arith.constant 1 : i32
    %92 = tpu.dynamic_rotate %91 by %c1_i32_26 dim 2 : vector<1x4x16xf32>, i32 -> vector<1x4x16xf32>
    %cst_27 = arith.constant 0.000000e+00 : f32
    %93 = vector.broadcast %cst_27 : f32 to vector<1x4x16xf32>
    %94 = arith.select %7, %92, %93 : vector<1x4x16xi1>, vector<1x4x16xf32>
    %c18 = arith.constant 18 : index
    %95 = memref.load %arg2[%c18] : memref<338xf32, #tpu.memory_space<smem>>
    %96 = vector.broadcast %95 : f32 to vector<1x4x16xf32>
    %97 = arith.mulf %96, %94 : vector<1x4x16xf32>
    %98 = arith.addf %78, %97 : vector<1x4x16xf32>
    %c54 = arith.constant 54 : index
    %99 = memref.load %arg2[%c54] : memref<338xf32, #tpu.memory_space<smem>>
    %100 = vector.broadcast %99 : f32 to vector<1x4x16xf32>
    %101 = arith.mulf %100, %94 : vector<1x4x16xf32>
    %102 = arith.addf %82, %101 : vector<1x4x16xf32>
    %c90 = arith.constant 90 : index
    %103 = memref.load %arg2[%c90] : memref<338xf32, #tpu.memory_space<smem>>
    %104 = vector.broadcast %103 : f32 to vector<1x4x16xf32>
    %105 = arith.mulf %104, %94 : vector<1x4x16xf32>
    %106 = arith.addf %86, %105 : vector<1x4x16xf32>
    %c126 = arith.constant 126 : index
    %107 = memref.load %arg2[%c126] : memref<338xf32, #tpu.memory_space<smem>>
    %108 = vector.broadcast %107 : f32 to vector<1x4x16xf32>
    %109 = arith.mulf %108, %94 : vector<1x4x16xf32>
    %110 = arith.addf %90, %109 : vector<1x4x16xf32>
    %c1_i32_28 = arith.constant 1 : i32
    %111 = tpu.dynamic_rotate %34 by %c1_i32_28 dim 1 : vector<1x4x16xf32>, i32 -> vector<1x4x16xf32>
    %c1_i32_29 = arith.constant 1 : i32
    %112 = tpu.dynamic_rotate %111 by %c1_i32_29 dim 2 : vector<1x4x16xf32>, i32 -> vector<1x4x16xf32>
    %cst_30 = arith.constant 0.000000e+00 : f32
    %113 = vector.broadcast %cst_30 : f32 to vector<1x4x16xf32>
    %114 = arith.select %7, %112, %113 : vector<1x4x16xi1>, vector<1x4x16xf32>
    %c27 = arith.constant 27 : index
    %115 = memref.load %arg2[%c27] : memref<338xf32, #tpu.memory_space<smem>>
    %116 = vector.broadcast %115 : f32 to vector<1x4x16xf32>
    %117 = arith.mulf %116, %114 : vector<1x4x16xf32>
    %118 = arith.addf %98, %117 : vector<1x4x16xf32>
    %c63 = arith.constant 63 : index
    %119 = memref.load %arg2[%c63] : memref<338xf32, #tpu.memory_space<smem>>
    %120 = vector.broadcast %119 : f32 to vector<1x4x16xf32>
    %121 = arith.mulf %120, %114 : vector<1x4x16xf32>
    %122 = arith.addf %102, %121 : vector<1x4x16xf32>
    %c99 = arith.constant 99 : index
    %123 = memref.load %arg2[%c99] : memref<338xf32, #tpu.memory_space<smem>>
    %124 = vector.broadcast %123 : f32 to vector<1x4x16xf32>
    %125 = arith.mulf %124, %114 : vector<1x4x16xf32>
    %126 = arith.addf %106, %125 : vector<1x4x16xf32>
    %c135 = arith.constant 135 : index
    %127 = memref.load %arg2[%c135] : memref<338xf32, #tpu.memory_space<smem>>
    %128 = vector.broadcast %127 : f32 to vector<1x4x16xf32>
    %129 = arith.mulf %128, %114 : vector<1x4x16xf32>
    %130 = arith.addf %110, %129 : vector<1x4x16xf32>
    %c1_i32_31 = arith.constant 1 : i32
    %131 = tpu.dynamic_rotate %31 by %c1_i32_31 dim 1 : vector<1x4x16xf32>, i32 -> vector<1x4x16xf32>
    %cst_32 = arith.constant 0.000000e+00 : f32
    %132 = vector.broadcast %cst_32 : f32 to vector<1x4x16xf32>
    %133 = arith.select %9, %131, %132 : vector<1x4x16xi1>, vector<1x4x16xf32>
    %c1 = arith.constant 1 : index
    %134 = memref.load %arg2[%c1] : memref<338xf32, #tpu.memory_space<smem>>
    %135 = vector.broadcast %134 : f32 to vector<1x4x16xf32>
    %136 = arith.mulf %135, %133 : vector<1x4x16xf32>
    %137 = arith.addf %118, %136 : vector<1x4x16xf32>
    %c37 = arith.constant 37 : index
    %138 = memref.load %arg2[%c37] : memref<338xf32, #tpu.memory_space<smem>>
    %139 = vector.broadcast %138 : f32 to vector<1x4x16xf32>
    %140 = arith.mulf %139, %133 : vector<1x4x16xf32>
    %141 = arith.addf %122, %140 : vector<1x4x16xf32>
    %c73 = arith.constant 73 : index
    %142 = memref.load %arg2[%c73] : memref<338xf32, #tpu.memory_space<smem>>
    %143 = vector.broadcast %142 : f32 to vector<1x4x16xf32>
    %144 = arith.mulf %143, %133 : vector<1x4x16xf32>
    %145 = arith.addf %126, %144 : vector<1x4x16xf32>
    %c109 = arith.constant 109 : index
    %146 = memref.load %arg2[%c109] : memref<338xf32, #tpu.memory_space<smem>>
    %147 = vector.broadcast %146 : f32 to vector<1x4x16xf32>
    %148 = arith.mulf %147, %133 : vector<1x4x16xf32>
    %149 = arith.addf %130, %148 : vector<1x4x16xf32>
    %c1_i32_33 = arith.constant 1 : i32
    %150 = tpu.dynamic_rotate %34 by %c1_i32_33 dim 1 : vector<1x4x16xf32>, i32 -> vector<1x4x16xf32>
    %cst_34 = arith.constant 0.000000e+00 : f32
    %151 = vector.broadcast %cst_34 : f32 to vector<1x4x16xf32>
    %152 = arith.select %9, %150, %151 : vector<1x4x16xi1>, vector<1x4x16xf32>
    %c10 = arith.constant 10 : index
    %153 = memref.load %arg2[%c10] : memref<338xf32, #tpu.memory_space<smem>>
    %154 = vector.broadcast %153 : f32 to vector<1x4x16xf32>
    %155 = arith.mulf %154, %152 : vector<1x4x16xf32>
    %156 = arith.addf %137, %155 : vector<1x4x16xf32>
    %c46 = arith.constant 46 : index
    %157 = memref.load %arg2[%c46] : memref<338xf32, #tpu.memory_space<smem>>
    %158 = vector.broadcast %157 : f32 to vector<1x4x16xf32>
    %159 = arith.mulf %158, %152 : vector<1x4x16xf32>
    %160 = arith.addf %141, %159 : vector<1x4x16xf32>
    %c82 = arith.constant 82 : index
    %161 = memref.load %arg2[%c82] : memref<338xf32, #tpu.memory_space<smem>>
    %162 = vector.broadcast %161 : f32 to vector<1x4x16xf32>
    %163 = arith.mulf %162, %152 : vector<1x4x16xf32>
    %164 = arith.addf %145, %163 : vector<1x4x16xf32>
    %c118 = arith.constant 118 : index
    %165 = memref.load %arg2[%c118] : memref<338xf32, #tpu.memory_space<smem>>
    %166 = vector.broadcast %165 : f32 to vector<1x4x16xf32>
    %167 = arith.mulf %166, %152 : vector<1x4x16xf32>
    %168 = arith.addf %149, %167 : vector<1x4x16xf32>
    %c1_i32_35 = arith.constant 1 : i32
    %169 = tpu.dynamic_rotate %31 by %c1_i32_35 dim 1 : vector<1x4x16xf32>, i32 -> vector<1x4x16xf32>
    %cst_36 = arith.constant 0.000000e+00 : f32
    %170 = vector.broadcast %cst_36 : f32 to vector<1x4x16xf32>
    %171 = arith.select %9, %169, %170 : vector<1x4x16xi1>, vector<1x4x16xf32>
    %c19 = arith.constant 19 : index
    %172 = memref.load %arg2[%c19] : memref<338xf32, #tpu.memory_space<smem>>
    %173 = vector.broadcast %172 : f32 to vector<1x4x16xf32>
    %174 = arith.mulf %173, %171 : vector<1x4x16xf32>
    %175 = arith.addf %156, %174 : vector<1x4x16xf32>
    %c55 = arith.constant 55 : index
    %176 = memref.load %arg2[%c55] : memref<338xf32, #tpu.memory_space<smem>>
    %177 = vector.broadcast %176 : f32 to vector<1x4x16xf32>
    %178 = arith.mulf %177, %171 : vector<1x4x16xf32>
    %179 = arith.addf %160, %178 : vector<1x4x16xf32>
    %c91 = arith.constant 91 : index
    %180 = memref.load %arg2[%c91] : memref<338xf32, #tpu.memory_space<smem>>
    %181 = vector.broadcast %180 : f32 to vector<1x4x16xf32>
    %182 = arith.mulf %181, %171 : vector<1x4x16xf32>
    %183 = arith.addf %164, %182 : vector<1x4x16xf32>
    %c127 = arith.constant 127 : index
    %184 = memref.load %arg2[%c127] : memref<338xf32, #tpu.memory_space<smem>>
    %185 = vector.broadcast %184 : f32 to vector<1x4x16xf32>
    %186 = arith.mulf %185, %171 : vector<1x4x16xf32>
    %187 = arith.addf %168, %186 : vector<1x4x16xf32>
    %c1_i32_37 = arith.constant 1 : i32
    %188 = tpu.dynamic_rotate %34 by %c1_i32_37 dim 1 : vector<1x4x16xf32>, i32 -> vector<1x4x16xf32>
    %cst_38 = arith.constant 0.000000e+00 : f32
    %189 = vector.broadcast %cst_38 : f32 to vector<1x4x16xf32>
    %190 = arith.select %9, %188, %189 : vector<1x4x16xi1>, vector<1x4x16xf32>
    %c28 = arith.constant 28 : index
    %191 = memref.load %arg2[%c28] : memref<338xf32, #tpu.memory_space<smem>>
    %192 = vector.broadcast %191 : f32 to vector<1x4x16xf32>
    %193 = arith.mulf %192, %190 : vector<1x4x16xf32>
    %194 = arith.addf %175, %193 : vector<1x4x16xf32>
    %c64 = arith.constant 64 : index
    %195 = memref.load %arg2[%c64] : memref<338xf32, #tpu.memory_space<smem>>
    %196 = vector.broadcast %195 : f32 to vector<1x4x16xf32>
    %197 = arith.mulf %196, %190 : vector<1x4x16xf32>
    %198 = arith.addf %179, %197 : vector<1x4x16xf32>
    %c100 = arith.constant 100 : index
    %199 = memref.load %arg2[%c100] : memref<338xf32, #tpu.memory_space<smem>>
    %200 = vector.broadcast %199 : f32 to vector<1x4x16xf32>
    %201 = arith.mulf %200, %190 : vector<1x4x16xf32>
    %202 = arith.addf %183, %201 : vector<1x4x16xf32>
    %c136 = arith.constant 136 : index
    %203 = memref.load %arg2[%c136] : memref<338xf32, #tpu.memory_space<smem>>
    %204 = vector.broadcast %203 : f32 to vector<1x4x16xf32>
    %205 = arith.mulf %204, %190 : vector<1x4x16xf32>
    %206 = arith.addf %187, %205 : vector<1x4x16xf32>
    %c1_i32_39 = arith.constant 1 : i32
    %207 = tpu.dynamic_rotate %31 by %c1_i32_39 dim 1 : vector<1x4x16xf32>, i32 -> vector<1x4x16xf32>
    %c15_i32_40 = arith.constant 15 : i32
    %208 = tpu.dynamic_rotate %207 by %c15_i32_40 dim 2 : vector<1x4x16xf32>, i32 -> vector<1x4x16xf32>
    %cst_41 = arith.constant 0.000000e+00 : f32
    %209 = vector.broadcast %cst_41 : f32 to vector<1x4x16xf32>
    %210 = arith.select %14, %208, %209 : vector<1x4x16xi1>, vector<1x4x16xf32>
    %c2 = arith.constant 2 : index
    %211 = memref.load %arg2[%c2] : memref<338xf32, #tpu.memory_space<smem>>
    %212 = vector.broadcast %211 : f32 to vector<1x4x16xf32>
    %213 = arith.mulf %212, %210 : vector<1x4x16xf32>
    %214 = arith.addf %194, %213 : vector<1x4x16xf32>
    %c38 = arith.constant 38 : index
    %215 = memref.load %arg2[%c38] : memref<338xf32, #tpu.memory_space<smem>>
    %216 = vector.broadcast %215 : f32 to vector<1x4x16xf32>
    %217 = arith.mulf %216, %210 : vector<1x4x16xf32>
    %218 = arith.addf %198, %217 : vector<1x4x16xf32>
    %c74 = arith.constant 74 : index
    %219 = memref.load %arg2[%c74] : memref<338xf32, #tpu.memory_space<smem>>
    %220 = vector.broadcast %219 : f32 to vector<1x4x16xf32>
    %221 = arith.mulf %220, %210 : vector<1x4x16xf32>
    %222 = arith.addf %202, %221 : vector<1x4x16xf32>
    %c110 = arith.constant 110 : index
    %223 = memref.load %arg2[%c110] : memref<338xf32, #tpu.memory_space<smem>>
    %224 = vector.broadcast %223 : f32 to vector<1x4x16xf32>
    %225 = arith.mulf %224, %210 : vector<1x4x16xf32>
    %226 = arith.addf %206, %225 : vector<1x4x16xf32>
    %c1_i32_42 = arith.constant 1 : i32
    %227 = tpu.dynamic_rotate %34 by %c1_i32_42 dim 1 : vector<1x4x16xf32>, i32 -> vector<1x4x16xf32>
    %c15_i32_43 = arith.constant 15 : i32
    %228 = tpu.dynamic_rotate %227 by %c15_i32_43 dim 2 : vector<1x4x16xf32>, i32 -> vector<1x4x16xf32>
    %cst_44 = arith.constant 0.000000e+00 : f32
    %229 = vector.broadcast %cst_44 : f32 to vector<1x4x16xf32>
    %230 = arith.select %14, %228, %229 : vector<1x4x16xi1>, vector<1x4x16xf32>
    %c11 = arith.constant 11 : index
    %231 = memref.load %arg2[%c11] : memref<338xf32, #tpu.memory_space<smem>>
    %232 = vector.broadcast %231 : f32 to vector<1x4x16xf32>
    %233 = arith.mulf %232, %230 : vector<1x4x16xf32>
    %234 = arith.addf %214, %233 : vector<1x4x16xf32>
    %c47 = arith.constant 47 : index
    %235 = memref.load %arg2[%c47] : memref<338xf32, #tpu.memory_space<smem>>
    %236 = vector.broadcast %235 : f32 to vector<1x4x16xf32>
    %237 = arith.mulf %236, %230 : vector<1x4x16xf32>
    %238 = arith.addf %218, %237 : vector<1x4x16xf32>
    %c83 = arith.constant 83 : index
    %239 = memref.load %arg2[%c83] : memref<338xf32, #tpu.memory_space<smem>>
    %240 = vector.broadcast %239 : f32 to vector<1x4x16xf32>
    %241 = arith.mulf %240, %230 : vector<1x4x16xf32>
    %242 = arith.addf %222, %241 : vector<1x4x16xf32>
    %c119 = arith.constant 119 : index
    %243 = memref.load %arg2[%c119] : memref<338xf32, #tpu.memory_space<smem>>
    %244 = vector.broadcast %243 : f32 to vector<1x4x16xf32>
    %245 = arith.mulf %244, %230 : vector<1x4x16xf32>
    %246 = arith.addf %226, %245 : vector<1x4x16xf32>
    %c1_i32_45 = arith.constant 1 : i32
    %247 = tpu.dynamic_rotate %31 by %c1_i32_45 dim 1 : vector<1x4x16xf32>, i32 -> vector<1x4x16xf32>
    %c15_i32_46 = arith.constant 15 : i32
    %248 = tpu.dynamic_rotate %247 by %c15_i32_46 dim 2 : vector<1x4x16xf32>, i32 -> vector<1x4x16xf32>
    %cst_47 = arith.constant 0.000000e+00 : f32
    %249 = vector.broadcast %cst_47 : f32 to vector<1x4x16xf32>
    %250 = arith.select %14, %248, %249 : vector<1x4x16xi1>, vector<1x4x16xf32>
    %c20 = arith.constant 20 : index
    %251 = memref.load %arg2[%c20] : memref<338xf32, #tpu.memory_space<smem>>
    %252 = vector.broadcast %251 : f32 to vector<1x4x16xf32>
    %253 = arith.mulf %252, %250 : vector<1x4x16xf32>
    %254 = arith.addf %234, %253 : vector<1x4x16xf32>
    %c56 = arith.constant 56 : index
    %255 = memref.load %arg2[%c56] : memref<338xf32, #tpu.memory_space<smem>>
    %256 = vector.broadcast %255 : f32 to vector<1x4x16xf32>
    %257 = arith.mulf %256, %250 : vector<1x4x16xf32>
    %258 = arith.addf %238, %257 : vector<1x4x16xf32>
    %c92 = arith.constant 92 : index
    %259 = memref.load %arg2[%c92] : memref<338xf32, #tpu.memory_space<smem>>
    %260 = vector.broadcast %259 : f32 to vector<1x4x16xf32>
    %261 = arith.mulf %260, %250 : vector<1x4x16xf32>
    %262 = arith.addf %242, %261 : vector<1x4x16xf32>
    %c128 = arith.constant 128 : index
    %263 = memref.load %arg2[%c128] : memref<338xf32, #tpu.memory_space<smem>>
    %264 = vector.broadcast %263 : f32 to vector<1x4x16xf32>
    %265 = arith.mulf %264, %250 : vector<1x4x16xf32>
    %266 = arith.addf %246, %265 : vector<1x4x16xf32>
    %c1_i32_48 = arith.constant 1 : i32
    %267 = tpu.dynamic_rotate %34 by %c1_i32_48 dim 1 : vector<1x4x16xf32>, i32 -> vector<1x4x16xf32>
    %c15_i32_49 = arith.constant 15 : i32
    %268 = tpu.dynamic_rotate %267 by %c15_i32_49 dim 2 : vector<1x4x16xf32>, i32 -> vector<1x4x16xf32>
    %cst_50 = arith.constant 0.000000e+00 : f32
    %269 = vector.broadcast %cst_50 : f32 to vector<1x4x16xf32>
    %270 = arith.select %14, %268, %269 : vector<1x4x16xi1>, vector<1x4x16xf32>
    %c29 = arith.constant 29 : index
    %271 = memref.load %arg2[%c29] : memref<338xf32, #tpu.memory_space<smem>>
    %272 = vector.broadcast %271 : f32 to vector<1x4x16xf32>
    %273 = arith.mulf %272, %270 : vector<1x4x16xf32>
    %274 = arith.addf %254, %273 : vector<1x4x16xf32>
    %c65 = arith.constant 65 : index
    %275 = memref.load %arg2[%c65] : memref<338xf32, #tpu.memory_space<smem>>
    %276 = vector.broadcast %275 : f32 to vector<1x4x16xf32>
    %277 = arith.mulf %276, %270 : vector<1x4x16xf32>
    %278 = arith.addf %258, %277 : vector<1x4x16xf32>
    %c101 = arith.constant 101 : index
    %279 = memref.load %arg2[%c101] : memref<338xf32, #tpu.memory_space<smem>>
    %280 = vector.broadcast %279 : f32 to vector<1x4x16xf32>
    %281 = arith.mulf %280, %270 : vector<1x4x16xf32>
    %282 = arith.addf %262, %281 : vector<1x4x16xf32>
    %c137 = arith.constant 137 : index
    %283 = memref.load %arg2[%c137] : memref<338xf32, #tpu.memory_space<smem>>
    %284 = vector.broadcast %283 : f32 to vector<1x4x16xf32>
    %285 = arith.mulf %284, %270 : vector<1x4x16xf32>
    %286 = arith.addf %266, %285 : vector<1x4x16xf32>
    %c1_i32_51 = arith.constant 1 : i32
    %287 = tpu.dynamic_rotate %31 by %c1_i32_51 dim 2 : vector<1x4x16xf32>, i32 -> vector<1x4x16xf32>
    %cst_52 = arith.constant 0.000000e+00 : f32
    %288 = vector.broadcast %cst_52 : f32 to vector<1x4x16xf32>
    %289 = arith.select %16, %287, %288 : vector<1x4x16xi1>, vector<1x4x16xf32>
    %c3 = arith.constant 3 : index
    %290 = memref.load %arg2[%c3] : memref<338xf32, #tpu.memory_space<smem>>
    %291 = vector.broadcast %290 : f32 to vector<1x4x16xf32>
    %292 = arith.mulf %291, %289 : vector<1x4x16xf32>
    %293 = arith.addf %274, %292 : vector<1x4x16xf32>
    %c39 = arith.constant 39 : index
    %294 = memref.load %arg2[%c39] : memref<338xf32, #tpu.memory_space<smem>>
    %295 = vector.broadcast %294 : f32 to vector<1x4x16xf32>
    %296 = arith.mulf %295, %289 : vector<1x4x16xf32>
    %297 = arith.addf %278, %296 : vector<1x4x16xf32>
    %c75 = arith.constant 75 : index
    %298 = memref.load %arg2[%c75] : memref<338xf32, #tpu.memory_space<smem>>
    %299 = vector.broadcast %298 : f32 to vector<1x4x16xf32>
    %300 = arith.mulf %299, %289 : vector<1x4x16xf32>
    %301 = arith.addf %282, %300 : vector<1x4x16xf32>
    %c111 = arith.constant 111 : index
    %302 = memref.load %arg2[%c111] : memref<338xf32, #tpu.memory_space<smem>>
    %303 = vector.broadcast %302 : f32 to vector<1x4x16xf32>
    %304 = arith.mulf %303, %289 : vector<1x4x16xf32>
    %305 = arith.addf %286, %304 : vector<1x4x16xf32>
    %c1_i32_53 = arith.constant 1 : i32
    %306 = tpu.dynamic_rotate %34 by %c1_i32_53 dim 2 : vector<1x4x16xf32>, i32 -> vector<1x4x16xf32>
    %cst_54 = arith.constant 0.000000e+00 : f32
    %307 = vector.broadcast %cst_54 : f32 to vector<1x4x16xf32>
    %308 = arith.select %16, %306, %307 : vector<1x4x16xi1>, vector<1x4x16xf32>
    %c12 = arith.constant 12 : index
    %309 = memref.load %arg2[%c12] : memref<338xf32, #tpu.memory_space<smem>>
    %310 = vector.broadcast %309 : f32 to vector<1x4x16xf32>
    %311 = arith.mulf %310, %308 : vector<1x4x16xf32>
    %312 = arith.addf %293, %311 : vector<1x4x16xf32>
    %c48 = arith.constant 48 : index
    %313 = memref.load %arg2[%c48] : memref<338xf32, #tpu.memory_space<smem>>
    %314 = vector.broadcast %313 : f32 to vector<1x4x16xf32>
    %315 = arith.mulf %314, %308 : vector<1x4x16xf32>
    %316 = arith.addf %297, %315 : vector<1x4x16xf32>
    %c84 = arith.constant 84 : index
    %317 = memref.load %arg2[%c84] : memref<338xf32, #tpu.memory_space<smem>>
    %318 = vector.broadcast %317 : f32 to vector<1x4x16xf32>
    %319 = arith.mulf %318, %308 : vector<1x4x16xf32>
    %320 = arith.addf %301, %319 : vector<1x4x16xf32>
    %c120 = arith.constant 120 : index
    %321 = memref.load %arg2[%c120] : memref<338xf32, #tpu.memory_space<smem>>
    %322 = vector.broadcast %321 : f32 to vector<1x4x16xf32>
    %323 = arith.mulf %322, %308 : vector<1x4x16xf32>
    %324 = arith.addf %305, %323 : vector<1x4x16xf32>
    %c1_i32_55 = arith.constant 1 : i32
    %325 = tpu.dynamic_rotate %31 by %c1_i32_55 dim 2 : vector<1x4x16xf32>, i32 -> vector<1x4x16xf32>
    %cst_56 = arith.constant 0.000000e+00 : f32
    %326 = vector.broadcast %cst_56 : f32 to vector<1x4x16xf32>
    %327 = arith.select %16, %325, %326 : vector<1x4x16xi1>, vector<1x4x16xf32>
    %c21 = arith.constant 21 : index
    %328 = memref.load %arg2[%c21] : memref<338xf32, #tpu.memory_space<smem>>
    %329 = vector.broadcast %328 : f32 to vector<1x4x16xf32>
    %330 = arith.mulf %329, %327 : vector<1x4x16xf32>
    %331 = arith.addf %312, %330 : vector<1x4x16xf32>
    %c57 = arith.constant 57 : index
    %332 = memref.load %arg2[%c57] : memref<338xf32, #tpu.memory_space<smem>>
    %333 = vector.broadcast %332 : f32 to vector<1x4x16xf32>
    %334 = arith.mulf %333, %327 : vector<1x4x16xf32>
    %335 = arith.addf %316, %334 : vector<1x4x16xf32>
    %c93 = arith.constant 93 : index
    %336 = memref.load %arg2[%c93] : memref<338xf32, #tpu.memory_space<smem>>
    %337 = vector.broadcast %336 : f32 to vector<1x4x16xf32>
    %338 = arith.mulf %337, %327 : vector<1x4x16xf32>
    %339 = arith.addf %320, %338 : vector<1x4x16xf32>
    %c129 = arith.constant 129 : index
    %340 = memref.load %arg2[%c129] : memref<338xf32, #tpu.memory_space<smem>>
    %341 = vector.broadcast %340 : f32 to vector<1x4x16xf32>
    %342 = arith.mulf %341, %327 : vector<1x4x16xf32>
    %343 = arith.addf %324, %342 : vector<1x4x16xf32>
    %c1_i32_57 = arith.constant 1 : i32
    %344 = tpu.dynamic_rotate %34 by %c1_i32_57 dim 2 : vector<1x4x16xf32>, i32 -> vector<1x4x16xf32>
    %cst_58 = arith.constant 0.000000e+00 : f32
    %345 = vector.broadcast %cst_58 : f32 to vector<1x4x16xf32>
    %346 = arith.select %16, %344, %345 : vector<1x4x16xi1>, vector<1x4x16xf32>
    %c30 = arith.constant 30 : index
    %347 = memref.load %arg2[%c30] : memref<338xf32, #tpu.memory_space<smem>>
    %348 = vector.broadcast %347 : f32 to vector<1x4x16xf32>
    %349 = arith.mulf %348, %346 : vector<1x4x16xf32>
    %350 = arith.addf %331, %349 : vector<1x4x16xf32>
    %c66 = arith.constant 66 : index
    %351 = memref.load %arg2[%c66] : memref<338xf32, #tpu.memory_space<smem>>
    %352 = vector.broadcast %351 : f32 to vector<1x4x16xf32>
    %353 = arith.mulf %352, %346 : vector<1x4x16xf32>
    %354 = arith.addf %335, %353 : vector<1x4x16xf32>
    %c102 = arith.constant 102 : index
    %355 = memref.load %arg2[%c102] : memref<338xf32, #tpu.memory_space<smem>>
    %356 = vector.broadcast %355 : f32 to vector<1x4x16xf32>
    %357 = arith.mulf %356, %346 : vector<1x4x16xf32>
    %358 = arith.addf %339, %357 : vector<1x4x16xf32>
    %c138 = arith.constant 138 : index
    %359 = memref.load %arg2[%c138] : memref<338xf32, #tpu.memory_space<smem>>
    %360 = vector.broadcast %359 : f32 to vector<1x4x16xf32>
    %361 = arith.mulf %360, %346 : vector<1x4x16xf32>
    %362 = arith.addf %343, %361 : vector<1x4x16xf32>
    %c4 = arith.constant 4 : index
    %363 = memref.load %arg2[%c4] : memref<338xf32, #tpu.memory_space<smem>>
    %364 = vector.broadcast %363 : f32 to vector<1x4x16xf32>
    %365 = arith.mulf %364, %31 : vector<1x4x16xf32>
    %366 = arith.addf %350, %365 : vector<1x4x16xf32>
    %c40 = arith.constant 40 : index
    %367 = memref.load %arg2[%c40] : memref<338xf32, #tpu.memory_space<smem>>
    %368 = vector.broadcast %367 : f32 to vector<1x4x16xf32>
    %369 = arith.mulf %368, %31 : vector<1x4x16xf32>
    %370 = arith.addf %354, %369 : vector<1x4x16xf32>
    %c76 = arith.constant 76 : index
    %371 = memref.load %arg2[%c76] : memref<338xf32, #tpu.memory_space<smem>>
    %372 = vector.broadcast %371 : f32 to vector<1x4x16xf32>
    %373 = arith.mulf %372, %31 : vector<1x4x16xf32>
    %374 = arith.addf %358, %373 : vector<1x4x16xf32>
    %c112 = arith.constant 112 : index
    %375 = memref.load %arg2[%c112] : memref<338xf32, #tpu.memory_space<smem>>
    %376 = vector.broadcast %375 : f32 to vector<1x4x16xf32>
    %377 = arith.mulf %376, %31 : vector<1x4x16xf32>
    %378 = arith.addf %362, %377 : vector<1x4x16xf32>
    %c13 = arith.constant 13 : index
    %379 = memref.load %arg2[%c13] : memref<338xf32, #tpu.memory_space<smem>>
    %380 = vector.broadcast %379 : f32 to vector<1x4x16xf32>
    %381 = arith.mulf %380, %34 : vector<1x4x16xf32>
    %382 = arith.addf %366, %381 : vector<1x4x16xf32>
    %c49 = arith.constant 49 : index
    %383 = memref.load %arg2[%c49] : memref<338xf32, #tpu.memory_space<smem>>
    %384 = vector.broadcast %383 : f32 to vector<1x4x16xf32>
    %385 = arith.mulf %384, %34 : vector<1x4x16xf32>
    %386 = arith.addf %370, %385 : vector<1x4x16xf32>
    %c85 = arith.constant 85 : index
    %387 = memref.load %arg2[%c85] : memref<338xf32, #tpu.memory_space<smem>>
    %388 = vector.broadcast %387 : f32 to vector<1x4x16xf32>
    %389 = arith.mulf %388, %34 : vector<1x4x16xf32>
    %390 = arith.addf %374, %389 : vector<1x4x16xf32>
    %c121 = arith.constant 121 : index
    %391 = memref.load %arg2[%c121] : memref<338xf32, #tpu.memory_space<smem>>
    %392 = vector.broadcast %391 : f32 to vector<1x4x16xf32>
    %393 = arith.mulf %392, %34 : vector<1x4x16xf32>
    %394 = arith.addf %378, %393 : vector<1x4x16xf32>
    %c22 = arith.constant 22 : index
    %395 = memref.load %arg2[%c22] : memref<338xf32, #tpu.memory_space<smem>>
    %396 = vector.broadcast %395 : f32 to vector<1x4x16xf32>
    %397 = arith.mulf %396, %31 : vector<1x4x16xf32>
    %398 = arith.addf %382, %397 : vector<1x4x16xf32>
    %c58 = arith.constant 58 : index
    %399 = memref.load %arg2[%c58] : memref<338xf32, #tpu.memory_space<smem>>
    %400 = vector.broadcast %399 : f32 to vector<1x4x16xf32>
    %401 = arith.mulf %400, %31 : vector<1x4x16xf32>
    %402 = arith.addf %386, %401 : vector<1x4x16xf32>
    %c94 = arith.constant 94 : index
    %403 = memref.load %arg2[%c94] : memref<338xf32, #tpu.memory_space<smem>>
    %404 = vector.broadcast %403 : f32 to vector<1x4x16xf32>
    %405 = arith.mulf %404, %31 : vector<1x4x16xf32>
    %406 = arith.addf %390, %405 : vector<1x4x16xf32>
    %c130 = arith.constant 130 : index
    %407 = memref.load %arg2[%c130] : memref<338xf32, #tpu.memory_space<smem>>
    %408 = vector.broadcast %407 : f32 to vector<1x4x16xf32>
    %409 = arith.mulf %408, %31 : vector<1x4x16xf32>
    %410 = arith.addf %394, %409 : vector<1x4x16xf32>
    %c31 = arith.constant 31 : index
    %411 = memref.load %arg2[%c31] : memref<338xf32, #tpu.memory_space<smem>>
    %412 = vector.broadcast %411 : f32 to vector<1x4x16xf32>
    %413 = arith.mulf %412, %34 : vector<1x4x16xf32>
    %414 = arith.addf %398, %413 : vector<1x4x16xf32>
    %c67 = arith.constant 67 : index
    %415 = memref.load %arg2[%c67] : memref<338xf32, #tpu.memory_space<smem>>
    %416 = vector.broadcast %415 : f32 to vector<1x4x16xf32>
    %417 = arith.mulf %416, %34 : vector<1x4x16xf32>
    %418 = arith.addf %402, %417 : vector<1x4x16xf32>
    %c103 = arith.constant 103 : index
    %419 = memref.load %arg2[%c103] : memref<338xf32, #tpu.memory_space<smem>>
    %420 = vector.broadcast %419 : f32 to vector<1x4x16xf32>
    %421 = arith.mulf %420, %34 : vector<1x4x16xf32>
    %422 = arith.addf %406, %421 : vector<1x4x16xf32>
    %c139 = arith.constant 139 : index
    %423 = memref.load %arg2[%c139] : memref<338xf32, #tpu.memory_space<smem>>
    %424 = vector.broadcast %423 : f32 to vector<1x4x16xf32>
    %425 = arith.mulf %424, %34 : vector<1x4x16xf32>
    %426 = arith.addf %410, %425 : vector<1x4x16xf32>
    %c15_i32_59 = arith.constant 15 : i32
    %427 = tpu.dynamic_rotate %31 by %c15_i32_59 dim 2 : vector<1x4x16xf32>, i32 -> vector<1x4x16xf32>
    %cst_60 = arith.constant 0.000000e+00 : f32
    %428 = vector.broadcast %cst_60 : f32 to vector<1x4x16xf32>
    %429 = arith.select %18, %427, %428 : vector<1x4x16xi1>, vector<1x4x16xf32>
    %c5 = arith.constant 5 : index
    %430 = memref.load %arg2[%c5] : memref<338xf32, #tpu.memory_space<smem>>
    %431 = vector.broadcast %430 : f32 to vector<1x4x16xf32>
    %432 = arith.mulf %431, %429 : vector<1x4x16xf32>
    %433 = arith.addf %414, %432 : vector<1x4x16xf32>
    %c41 = arith.constant 41 : index
    %434 = memref.load %arg2[%c41] : memref<338xf32, #tpu.memory_space<smem>>
    %435 = vector.broadcast %434 : f32 to vector<1x4x16xf32>
    %436 = arith.mulf %435, %429 : vector<1x4x16xf32>
    %437 = arith.addf %418, %436 : vector<1x4x16xf32>
    %c77 = arith.constant 77 : index
    %438 = memref.load %arg2[%c77] : memref<338xf32, #tpu.memory_space<smem>>
    %439 = vector.broadcast %438 : f32 to vector<1x4x16xf32>
    %440 = arith.mulf %439, %429 : vector<1x4x16xf32>
    %441 = arith.addf %422, %440 : vector<1x4x16xf32>
    %c113 = arith.constant 113 : index
    %442 = memref.load %arg2[%c113] : memref<338xf32, #tpu.memory_space<smem>>
    %443 = vector.broadcast %442 : f32 to vector<1x4x16xf32>
    %444 = arith.mulf %443, %429 : vector<1x4x16xf32>
    %445 = arith.addf %426, %444 : vector<1x4x16xf32>
    %c15_i32_61 = arith.constant 15 : i32
    %446 = tpu.dynamic_rotate %34 by %c15_i32_61 dim 2 : vector<1x4x16xf32>, i32 -> vector<1x4x16xf32>
    %cst_62 = arith.constant 0.000000e+00 : f32
    %447 = vector.broadcast %cst_62 : f32 to vector<1x4x16xf32>
    %448 = arith.select %18, %446, %447 : vector<1x4x16xi1>, vector<1x4x16xf32>
    %c14 = arith.constant 14 : index
    %449 = memref.load %arg2[%c14] : memref<338xf32, #tpu.memory_space<smem>>
    %450 = vector.broadcast %449 : f32 to vector<1x4x16xf32>
    %451 = arith.mulf %450, %448 : vector<1x4x16xf32>
    %452 = arith.addf %433, %451 : vector<1x4x16xf32>
    %c50 = arith.constant 50 : index
    %453 = memref.load %arg2[%c50] : memref<338xf32, #tpu.memory_space<smem>>
    %454 = vector.broadcast %453 : f32 to vector<1x4x16xf32>
    %455 = arith.mulf %454, %448 : vector<1x4x16xf32>
    %456 = arith.addf %437, %455 : vector<1x4x16xf32>
    %c86 = arith.constant 86 : index
    %457 = memref.load %arg2[%c86] : memref<338xf32, #tpu.memory_space<smem>>
    %458 = vector.broadcast %457 : f32 to vector<1x4x16xf32>
    %459 = arith.mulf %458, %448 : vector<1x4x16xf32>
    %460 = arith.addf %441, %459 : vector<1x4x16xf32>
    %c122 = arith.constant 122 : index
    %461 = memref.load %arg2[%c122] : memref<338xf32, #tpu.memory_space<smem>>
    %462 = vector.broadcast %461 : f32 to vector<1x4x16xf32>
    %463 = arith.mulf %462, %448 : vector<1x4x16xf32>
    %464 = arith.addf %445, %463 : vector<1x4x16xf32>
    %c15_i32_63 = arith.constant 15 : i32
    %465 = tpu.dynamic_rotate %31 by %c15_i32_63 dim 2 : vector<1x4x16xf32>, i32 -> vector<1x4x16xf32>
    %cst_64 = arith.constant 0.000000e+00 : f32
    %466 = vector.broadcast %cst_64 : f32 to vector<1x4x16xf32>
    %467 = arith.select %18, %465, %466 : vector<1x4x16xi1>, vector<1x4x16xf32>
    %c23 = arith.constant 23 : index
    %468 = memref.load %arg2[%c23] : memref<338xf32, #tpu.memory_space<smem>>
    %469 = vector.broadcast %468 : f32 to vector<1x4x16xf32>
    %470 = arith.mulf %469, %467 : vector<1x4x16xf32>
    %471 = arith.addf %452, %470 : vector<1x4x16xf32>
    %c59 = arith.constant 59 : index
    %472 = memref.load %arg2[%c59] : memref<338xf32, #tpu.memory_space<smem>>
    %473 = vector.broadcast %472 : f32 to vector<1x4x16xf32>
    %474 = arith.mulf %473, %467 : vector<1x4x16xf32>
    %475 = arith.addf %456, %474 : vector<1x4x16xf32>
    %c95 = arith.constant 95 : index
    %476 = memref.load %arg2[%c95] : memref<338xf32, #tpu.memory_space<smem>>
    %477 = vector.broadcast %476 : f32 to vector<1x4x16xf32>
    %478 = arith.mulf %477, %467 : vector<1x4x16xf32>
    %479 = arith.addf %460, %478 : vector<1x4x16xf32>
    %c131 = arith.constant 131 : index
    %480 = memref.load %arg2[%c131] : memref<338xf32, #tpu.memory_space<smem>>
    %481 = vector.broadcast %480 : f32 to vector<1x4x16xf32>
    %482 = arith.mulf %481, %467 : vector<1x4x16xf32>
    %483 = arith.addf %464, %482 : vector<1x4x16xf32>
    %c15_i32_65 = arith.constant 15 : i32
    %484 = tpu.dynamic_rotate %34 by %c15_i32_65 dim 2 : vector<1x4x16xf32>, i32 -> vector<1x4x16xf32>
    %cst_66 = arith.constant 0.000000e+00 : f32
    %485 = vector.broadcast %cst_66 : f32 to vector<1x4x16xf32>
    %486 = arith.select %18, %484, %485 : vector<1x4x16xi1>, vector<1x4x16xf32>
    %c32 = arith.constant 32 : index
    %487 = memref.load %arg2[%c32] : memref<338xf32, #tpu.memory_space<smem>>
    %488 = vector.broadcast %487 : f32 to vector<1x4x16xf32>
    %489 = arith.mulf %488, %486 : vector<1x4x16xf32>
    %490 = arith.addf %471, %489 : vector<1x4x16xf32>
    %c68 = arith.constant 68 : index
    %491 = memref.load %arg2[%c68] : memref<338xf32, #tpu.memory_space<smem>>
    %492 = vector.broadcast %491 : f32 to vector<1x4x16xf32>
    %493 = arith.mulf %492, %486 : vector<1x4x16xf32>
    %494 = arith.addf %475, %493 : vector<1x4x16xf32>
    %c104 = arith.constant 104 : index
    %495 = memref.load %arg2[%c104] : memref<338xf32, #tpu.memory_space<smem>>
    %496 = vector.broadcast %495 : f32 to vector<1x4x16xf32>
    %497 = arith.mulf %496, %486 : vector<1x4x16xf32>
    %498 = arith.addf %479, %497 : vector<1x4x16xf32>
    %c140 = arith.constant 140 : index
    %499 = memref.load %arg2[%c140] : memref<338xf32, #tpu.memory_space<smem>>
    %500 = vector.broadcast %499 : f32 to vector<1x4x16xf32>
    %501 = arith.mulf %500, %486 : vector<1x4x16xf32>
    %502 = arith.addf %483, %501 : vector<1x4x16xf32>
    %c3_i32_67 = arith.constant 3 : i32
    %503 = tpu.dynamic_rotate %31 by %c3_i32_67 dim 1 : vector<1x4x16xf32>, i32 -> vector<1x4x16xf32>
    %c1_i32_68 = arith.constant 1 : i32
    %504 = tpu.dynamic_rotate %503 by %c1_i32_68 dim 2 : vector<1x4x16xf32>, i32 -> vector<1x4x16xf32>
    %cst_69 = arith.constant 0.000000e+00 : f32
    %505 = vector.broadcast %cst_69 : f32 to vector<1x4x16xf32>
    %506 = arith.select %23, %504, %505 : vector<1x4x16xi1>, vector<1x4x16xf32>
    %c6 = arith.constant 6 : index
    %507 = memref.load %arg2[%c6] : memref<338xf32, #tpu.memory_space<smem>>
    %508 = vector.broadcast %507 : f32 to vector<1x4x16xf32>
    %509 = arith.mulf %508, %506 : vector<1x4x16xf32>
    %510 = arith.addf %490, %509 : vector<1x4x16xf32>
    %c42 = arith.constant 42 : index
    %511 = memref.load %arg2[%c42] : memref<338xf32, #tpu.memory_space<smem>>
    %512 = vector.broadcast %511 : f32 to vector<1x4x16xf32>
    %513 = arith.mulf %512, %506 : vector<1x4x16xf32>
    %514 = arith.addf %494, %513 : vector<1x4x16xf32>
    %c78 = arith.constant 78 : index
    %515 = memref.load %arg2[%c78] : memref<338xf32, #tpu.memory_space<smem>>
    %516 = vector.broadcast %515 : f32 to vector<1x4x16xf32>
    %517 = arith.mulf %516, %506 : vector<1x4x16xf32>
    %518 = arith.addf %498, %517 : vector<1x4x16xf32>
    %c114 = arith.constant 114 : index
    %519 = memref.load %arg2[%c114] : memref<338xf32, #tpu.memory_space<smem>>
    %520 = vector.broadcast %519 : f32 to vector<1x4x16xf32>
    %521 = arith.mulf %520, %506 : vector<1x4x16xf32>
    %522 = arith.addf %502, %521 : vector<1x4x16xf32>
    %c3_i32_70 = arith.constant 3 : i32
    %523 = tpu.dynamic_rotate %34 by %c3_i32_70 dim 1 : vector<1x4x16xf32>, i32 -> vector<1x4x16xf32>
    %c1_i32_71 = arith.constant 1 : i32
    %524 = tpu.dynamic_rotate %523 by %c1_i32_71 dim 2 : vector<1x4x16xf32>, i32 -> vector<1x4x16xf32>
    %cst_72 = arith.constant 0.000000e+00 : f32
    %525 = vector.broadcast %cst_72 : f32 to vector<1x4x16xf32>
    %526 = arith.select %23, %524, %525 : vector<1x4x16xi1>, vector<1x4x16xf32>
    %c15 = arith.constant 15 : index
    %527 = memref.load %arg2[%c15] : memref<338xf32, #tpu.memory_space<smem>>
    %528 = vector.broadcast %527 : f32 to vector<1x4x16xf32>
    %529 = arith.mulf %528, %526 : vector<1x4x16xf32>
    %530 = arith.addf %510, %529 : vector<1x4x16xf32>
    %c51 = arith.constant 51 : index
    %531 = memref.load %arg2[%c51] : memref<338xf32, #tpu.memory_space<smem>>
    %532 = vector.broadcast %531 : f32 to vector<1x4x16xf32>
    %533 = arith.mulf %532, %526 : vector<1x4x16xf32>
    %534 = arith.addf %514, %533 : vector<1x4x16xf32>
    %c87 = arith.constant 87 : index
    %535 = memref.load %arg2[%c87] : memref<338xf32, #tpu.memory_space<smem>>
    %536 = vector.broadcast %535 : f32 to vector<1x4x16xf32>
    %537 = arith.mulf %536, %526 : vector<1x4x16xf32>
    %538 = arith.addf %518, %537 : vector<1x4x16xf32>
    %c123 = arith.constant 123 : index
    %539 = memref.load %arg2[%c123] : memref<338xf32, #tpu.memory_space<smem>>
    %540 = vector.broadcast %539 : f32 to vector<1x4x16xf32>
    %541 = arith.mulf %540, %526 : vector<1x4x16xf32>
    %542 = arith.addf %522, %541 : vector<1x4x16xf32>
    %c3_i32_73 = arith.constant 3 : i32
    %543 = tpu.dynamic_rotate %31 by %c3_i32_73 dim 1 : vector<1x4x16xf32>, i32 -> vector<1x4x16xf32>
    %c1_i32_74 = arith.constant 1 : i32
    %544 = tpu.dynamic_rotate %543 by %c1_i32_74 dim 2 : vector<1x4x16xf32>, i32 -> vector<1x4x16xf32>
    %cst_75 = arith.constant 0.000000e+00 : f32
    %545 = vector.broadcast %cst_75 : f32 to vector<1x4x16xf32>
    %546 = arith.select %23, %544, %545 : vector<1x4x16xi1>, vector<1x4x16xf32>
    %c24 = arith.constant 24 : index
    %547 = memref.load %arg2[%c24] : memref<338xf32, #tpu.memory_space<smem>>
    %548 = vector.broadcast %547 : f32 to vector<1x4x16xf32>
    %549 = arith.mulf %548, %546 : vector<1x4x16xf32>
    %550 = arith.addf %530, %549 : vector<1x4x16xf32>
    %c60 = arith.constant 60 : index
    %551 = memref.load %arg2[%c60] : memref<338xf32, #tpu.memory_space<smem>>
    %552 = vector.broadcast %551 : f32 to vector<1x4x16xf32>
    %553 = arith.mulf %552, %546 : vector<1x4x16xf32>
    %554 = arith.addf %534, %553 : vector<1x4x16xf32>
    %c96 = arith.constant 96 : index
    %555 = memref.load %arg2[%c96] : memref<338xf32, #tpu.memory_space<smem>>
    %556 = vector.broadcast %555 : f32 to vector<1x4x16xf32>
    %557 = arith.mulf %556, %546 : vector<1x4x16xf32>
    %558 = arith.addf %538, %557 : vector<1x4x16xf32>
    %c132 = arith.constant 132 : index
    %559 = memref.load %arg2[%c132] : memref<338xf32, #tpu.memory_space<smem>>
    %560 = vector.broadcast %559 : f32 to vector<1x4x16xf32>
    %561 = arith.mulf %560, %546 : vector<1x4x16xf32>
    %562 = arith.addf %542, %561 : vector<1x4x16xf32>
    %c3_i32_76 = arith.constant 3 : i32
    %563 = tpu.dynamic_rotate %34 by %c3_i32_76 dim 1 : vector<1x4x16xf32>, i32 -> vector<1x4x16xf32>
    %c1_i32_77 = arith.constant 1 : i32
    %564 = tpu.dynamic_rotate %563 by %c1_i32_77 dim 2 : vector<1x4x16xf32>, i32 -> vector<1x4x16xf32>
    %cst_78 = arith.constant 0.000000e+00 : f32
    %565 = vector.broadcast %cst_78 : f32 to vector<1x4x16xf32>
    %566 = arith.select %23, %564, %565 : vector<1x4x16xi1>, vector<1x4x16xf32>
    %c33 = arith.constant 33 : index
    %567 = memref.load %arg2[%c33] : memref<338xf32, #tpu.memory_space<smem>>
    %568 = vector.broadcast %567 : f32 to vector<1x4x16xf32>
    %569 = arith.mulf %568, %566 : vector<1x4x16xf32>
    %570 = arith.addf %550, %569 : vector<1x4x16xf32>
    %c69 = arith.constant 69 : index
    %571 = memref.load %arg2[%c69] : memref<338xf32, #tpu.memory_space<smem>>
    %572 = vector.broadcast %571 : f32 to vector<1x4x16xf32>
    %573 = arith.mulf %572, %566 : vector<1x4x16xf32>
    %574 = arith.addf %554, %573 : vector<1x4x16xf32>
    %c105 = arith.constant 105 : index
    %575 = memref.load %arg2[%c105] : memref<338xf32, #tpu.memory_space<smem>>
    %576 = vector.broadcast %575 : f32 to vector<1x4x16xf32>
    %577 = arith.mulf %576, %566 : vector<1x4x16xf32>
    %578 = arith.addf %558, %577 : vector<1x4x16xf32>
    %c141 = arith.constant 141 : index
    %579 = memref.load %arg2[%c141] : memref<338xf32, #tpu.memory_space<smem>>
    %580 = vector.broadcast %579 : f32 to vector<1x4x16xf32>
    %581 = arith.mulf %580, %566 : vector<1x4x16xf32>
    %582 = arith.addf %562, %581 : vector<1x4x16xf32>
    %c3_i32_79 = arith.constant 3 : i32
    %583 = tpu.dynamic_rotate %31 by %c3_i32_79 dim 1 : vector<1x4x16xf32>, i32 -> vector<1x4x16xf32>
    %cst_80 = arith.constant 0.000000e+00 : f32
    %584 = vector.broadcast %cst_80 : f32 to vector<1x4x16xf32>
    %585 = arith.select %25, %583, %584 : vector<1x4x16xi1>, vector<1x4x16xf32>
    %c7 = arith.constant 7 : index
    %586 = memref.load %arg2[%c7] : memref<338xf32, #tpu.memory_space<smem>>
    %587 = vector.broadcast %586 : f32 to vector<1x4x16xf32>
    %588 = arith.mulf %587, %585 : vector<1x4x16xf32>
    %589 = arith.addf %570, %588 : vector<1x4x16xf32>
    %c43 = arith.constant 43 : index
    %590 = memref.load %arg2[%c43] : memref<338xf32, #tpu.memory_space<smem>>
    %591 = vector.broadcast %590 : f32 to vector<1x4x16xf32>
    %592 = arith.mulf %591, %585 : vector<1x4x16xf32>
    %593 = arith.addf %574, %592 : vector<1x4x16xf32>
    %c79 = arith.constant 79 : index
    %594 = memref.load %arg2[%c79] : memref<338xf32, #tpu.memory_space<smem>>
    %595 = vector.broadcast %594 : f32 to vector<1x4x16xf32>
    %596 = arith.mulf %595, %585 : vector<1x4x16xf32>
    %597 = arith.addf %578, %596 : vector<1x4x16xf32>
    %c115 = arith.constant 115 : index
    %598 = memref.load %arg2[%c115] : memref<338xf32, #tpu.memory_space<smem>>
    %599 = vector.broadcast %598 : f32 to vector<1x4x16xf32>
    %600 = arith.mulf %599, %585 : vector<1x4x16xf32>
    %601 = arith.addf %582, %600 : vector<1x4x16xf32>
    %c3_i32_81 = arith.constant 3 : i32
    %602 = tpu.dynamic_rotate %34 by %c3_i32_81 dim 1 : vector<1x4x16xf32>, i32 -> vector<1x4x16xf32>
    %cst_82 = arith.constant 0.000000e+00 : f32
    %603 = vector.broadcast %cst_82 : f32 to vector<1x4x16xf32>
    %604 = arith.select %25, %602, %603 : vector<1x4x16xi1>, vector<1x4x16xf32>
    %c16 = arith.constant 16 : index
    %605 = memref.load %arg2[%c16] : memref<338xf32, #tpu.memory_space<smem>>
    %606 = vector.broadcast %605 : f32 to vector<1x4x16xf32>
    %607 = arith.mulf %606, %604 : vector<1x4x16xf32>
    %608 = arith.addf %589, %607 : vector<1x4x16xf32>
    %c52 = arith.constant 52 : index
    %609 = memref.load %arg2[%c52] : memref<338xf32, #tpu.memory_space<smem>>
    %610 = vector.broadcast %609 : f32 to vector<1x4x16xf32>
    %611 = arith.mulf %610, %604 : vector<1x4x16xf32>
    %612 = arith.addf %593, %611 : vector<1x4x16xf32>
    %c88 = arith.constant 88 : index
    %613 = memref.load %arg2[%c88] : memref<338xf32, #tpu.memory_space<smem>>
    %614 = vector.broadcast %613 : f32 to vector<1x4x16xf32>
    %615 = arith.mulf %614, %604 : vector<1x4x16xf32>
    %616 = arith.addf %597, %615 : vector<1x4x16xf32>
    %c124 = arith.constant 124 : index
    %617 = memref.load %arg2[%c124] : memref<338xf32, #tpu.memory_space<smem>>
    %618 = vector.broadcast %617 : f32 to vector<1x4x16xf32>
    %619 = arith.mulf %618, %604 : vector<1x4x16xf32>
    %620 = arith.addf %601, %619 : vector<1x4x16xf32>
    %c3_i32_83 = arith.constant 3 : i32
    %621 = tpu.dynamic_rotate %31 by %c3_i32_83 dim 1 : vector<1x4x16xf32>, i32 -> vector<1x4x16xf32>
    %cst_84 = arith.constant 0.000000e+00 : f32
    %622 = vector.broadcast %cst_84 : f32 to vector<1x4x16xf32>
    %623 = arith.select %25, %621, %622 : vector<1x4x16xi1>, vector<1x4x16xf32>
    %c25 = arith.constant 25 : index
    %624 = memref.load %arg2[%c25] : memref<338xf32, #tpu.memory_space<smem>>
    %625 = vector.broadcast %624 : f32 to vector<1x4x16xf32>
    %626 = arith.mulf %625, %623 : vector<1x4x16xf32>
    %627 = arith.addf %608, %626 : vector<1x4x16xf32>
    %c61 = arith.constant 61 : index
    %628 = memref.load %arg2[%c61] : memref<338xf32, #tpu.memory_space<smem>>
    %629 = vector.broadcast %628 : f32 to vector<1x4x16xf32>
    %630 = arith.mulf %629, %623 : vector<1x4x16xf32>
    %631 = arith.addf %612, %630 : vector<1x4x16xf32>
    %c97 = arith.constant 97 : index
    %632 = memref.load %arg2[%c97] : memref<338xf32, #tpu.memory_space<smem>>
    %633 = vector.broadcast %632 : f32 to vector<1x4x16xf32>
    %634 = arith.mulf %633, %623 : vector<1x4x16xf32>
    %635 = arith.addf %616, %634 : vector<1x4x16xf32>
    %c133 = arith.constant 133 : index
    %636 = memref.load %arg2[%c133] : memref<338xf32, #tpu.memory_space<smem>>
    %637 = vector.broadcast %636 : f32 to vector<1x4x16xf32>
    %638 = arith.mulf %637, %623 : vector<1x4x16xf32>
    %639 = arith.addf %620, %638 : vector<1x4x16xf32>
    %c3_i32_85 = arith.constant 3 : i32
    %640 = tpu.dynamic_rotate %34 by %c3_i32_85 dim 1 : vector<1x4x16xf32>, i32 -> vector<1x4x16xf32>
    %cst_86 = arith.constant 0.000000e+00 : f32
    %641 = vector.broadcast %cst_86 : f32 to vector<1x4x16xf32>
    %642 = arith.select %25, %640, %641 : vector<1x4x16xi1>, vector<1x4x16xf32>
    %c34 = arith.constant 34 : index
    %643 = memref.load %arg2[%c34] : memref<338xf32, #tpu.memory_space<smem>>
    %644 = vector.broadcast %643 : f32 to vector<1x4x16xf32>
    %645 = arith.mulf %644, %642 : vector<1x4x16xf32>
    %646 = arith.addf %627, %645 : vector<1x4x16xf32>
    %c70 = arith.constant 70 : index
    %647 = memref.load %arg2[%c70] : memref<338xf32, #tpu.memory_space<smem>>
    %648 = vector.broadcast %647 : f32 to vector<1x4x16xf32>
    %649 = arith.mulf %648, %642 : vector<1x4x16xf32>
    %650 = arith.addf %631, %649 : vector<1x4x16xf32>
    %c106 = arith.constant 106 : index
    %651 = memref.load %arg2[%c106] : memref<338xf32, #tpu.memory_space<smem>>
    %652 = vector.broadcast %651 : f32 to vector<1x4x16xf32>
    %653 = arith.mulf %652, %642 : vector<1x4x16xf32>
    %654 = arith.addf %635, %653 : vector<1x4x16xf32>
    %c142 = arith.constant 142 : index
    %655 = memref.load %arg2[%c142] : memref<338xf32, #tpu.memory_space<smem>>
    %656 = vector.broadcast %655 : f32 to vector<1x4x16xf32>
    %657 = arith.mulf %656, %642 : vector<1x4x16xf32>
    %658 = arith.addf %639, %657 : vector<1x4x16xf32>
    %c3_i32_87 = arith.constant 3 : i32
    %659 = tpu.dynamic_rotate %31 by %c3_i32_87 dim 1 : vector<1x4x16xf32>, i32 -> vector<1x4x16xf32>
    %c15_i32_88 = arith.constant 15 : i32
    %660 = tpu.dynamic_rotate %659 by %c15_i32_88 dim 2 : vector<1x4x16xf32>, i32 -> vector<1x4x16xf32>
    %cst_89 = arith.constant 0.000000e+00 : f32
    %661 = vector.broadcast %cst_89 : f32 to vector<1x4x16xf32>
    %662 = arith.select %30, %660, %661 : vector<1x4x16xi1>, vector<1x4x16xf32>
    %c8 = arith.constant 8 : index
    %663 = memref.load %arg2[%c8] : memref<338xf32, #tpu.memory_space<smem>>
    %664 = vector.broadcast %663 : f32 to vector<1x4x16xf32>
    %665 = arith.mulf %664, %662 : vector<1x4x16xf32>
    %666 = arith.addf %646, %665 : vector<1x4x16xf32>
    %c44 = arith.constant 44 : index
    %667 = memref.load %arg2[%c44] : memref<338xf32, #tpu.memory_space<smem>>
    %668 = vector.broadcast %667 : f32 to vector<1x4x16xf32>
    %669 = arith.mulf %668, %662 : vector<1x4x16xf32>
    %670 = arith.addf %650, %669 : vector<1x4x16xf32>
    %c80 = arith.constant 80 : index
    %671 = memref.load %arg2[%c80] : memref<338xf32, #tpu.memory_space<smem>>
    %672 = vector.broadcast %671 : f32 to vector<1x4x16xf32>
    %673 = arith.mulf %672, %662 : vector<1x4x16xf32>
    %674 = arith.addf %654, %673 : vector<1x4x16xf32>
    %c116 = arith.constant 116 : index
    %675 = memref.load %arg2[%c116] : memref<338xf32, #tpu.memory_space<smem>>
    %676 = vector.broadcast %675 : f32 to vector<1x4x16xf32>
    %677 = arith.mulf %676, %662 : vector<1x4x16xf32>
    %678 = arith.addf %658, %677 : vector<1x4x16xf32>
    %c3_i32_90 = arith.constant 3 : i32
    %679 = tpu.dynamic_rotate %34 by %c3_i32_90 dim 1 : vector<1x4x16xf32>, i32 -> vector<1x4x16xf32>
    %c15_i32_91 = arith.constant 15 : i32
    %680 = tpu.dynamic_rotate %679 by %c15_i32_91 dim 2 : vector<1x4x16xf32>, i32 -> vector<1x4x16xf32>
    %cst_92 = arith.constant 0.000000e+00 : f32
    %681 = vector.broadcast %cst_92 : f32 to vector<1x4x16xf32>
    %682 = arith.select %30, %680, %681 : vector<1x4x16xi1>, vector<1x4x16xf32>
    %c17 = arith.constant 17 : index
    %683 = memref.load %arg2[%c17] : memref<338xf32, #tpu.memory_space<smem>>
    %684 = vector.broadcast %683 : f32 to vector<1x4x16xf32>
    %685 = arith.mulf %684, %682 : vector<1x4x16xf32>
    %686 = arith.addf %666, %685 : vector<1x4x16xf32>
    %c53 = arith.constant 53 : index
    %687 = memref.load %arg2[%c53] : memref<338xf32, #tpu.memory_space<smem>>
    %688 = vector.broadcast %687 : f32 to vector<1x4x16xf32>
    %689 = arith.mulf %688, %682 : vector<1x4x16xf32>
    %690 = arith.addf %670, %689 : vector<1x4x16xf32>
    %c89 = arith.constant 89 : index
    %691 = memref.load %arg2[%c89] : memref<338xf32, #tpu.memory_space<smem>>
    %692 = vector.broadcast %691 : f32 to vector<1x4x16xf32>
    %693 = arith.mulf %692, %682 : vector<1x4x16xf32>
    %694 = arith.addf %674, %693 : vector<1x4x16xf32>
    %c125 = arith.constant 125 : index
    %695 = memref.load %arg2[%c125] : memref<338xf32, #tpu.memory_space<smem>>
    %696 = vector.broadcast %695 : f32 to vector<1x4x16xf32>
    %697 = arith.mulf %696, %682 : vector<1x4x16xf32>
    %698 = arith.addf %678, %697 : vector<1x4x16xf32>
    %c3_i32_93 = arith.constant 3 : i32
    %699 = tpu.dynamic_rotate %31 by %c3_i32_93 dim 1 : vector<1x4x16xf32>, i32 -> vector<1x4x16xf32>
    %c15_i32_94 = arith.constant 15 : i32
    %700 = tpu.dynamic_rotate %699 by %c15_i32_94 dim 2 : vector<1x4x16xf32>, i32 -> vector<1x4x16xf32>
    %cst_95 = arith.constant 0.000000e+00 : f32
    %701 = vector.broadcast %cst_95 : f32 to vector<1x4x16xf32>
    %702 = arith.select %30, %700, %701 : vector<1x4x16xi1>, vector<1x4x16xf32>
    %c26 = arith.constant 26 : index
    %703 = memref.load %arg2[%c26] : memref<338xf32, #tpu.memory_space<smem>>
    %704 = vector.broadcast %703 : f32 to vector<1x4x16xf32>
    %705 = arith.mulf %704, %702 : vector<1x4x16xf32>
    %706 = arith.addf %686, %705 : vector<1x4x16xf32>
    %c62 = arith.constant 62 : index
    %707 = memref.load %arg2[%c62] : memref<338xf32, #tpu.memory_space<smem>>
    %708 = vector.broadcast %707 : f32 to vector<1x4x16xf32>
    %709 = arith.mulf %708, %702 : vector<1x4x16xf32>
    %710 = arith.addf %690, %709 : vector<1x4x16xf32>
    %c98 = arith.constant 98 : index
    %711 = memref.load %arg2[%c98] : memref<338xf32, #tpu.memory_space<smem>>
    %712 = vector.broadcast %711 : f32 to vector<1x4x16xf32>
    %713 = arith.mulf %712, %702 : vector<1x4x16xf32>
    %714 = arith.addf %694, %713 : vector<1x4x16xf32>
    %c134 = arith.constant 134 : index
    %715 = memref.load %arg2[%c134] : memref<338xf32, #tpu.memory_space<smem>>
    %716 = vector.broadcast %715 : f32 to vector<1x4x16xf32>
    %717 = arith.mulf %716, %702 : vector<1x4x16xf32>
    %718 = arith.addf %698, %717 : vector<1x4x16xf32>
    %c3_i32_96 = arith.constant 3 : i32
    %719 = tpu.dynamic_rotate %34 by %c3_i32_96 dim 1 : vector<1x4x16xf32>, i32 -> vector<1x4x16xf32>
    %c15_i32_97 = arith.constant 15 : i32
    %720 = tpu.dynamic_rotate %719 by %c15_i32_97 dim 2 : vector<1x4x16xf32>, i32 -> vector<1x4x16xf32>
    %cst_98 = arith.constant 0.000000e+00 : f32
    %721 = vector.broadcast %cst_98 : f32 to vector<1x4x16xf32>
    %722 = arith.select %30, %720, %721 : vector<1x4x16xi1>, vector<1x4x16xf32>
    %c35 = arith.constant 35 : index
    %723 = memref.load %arg2[%c35] : memref<338xf32, #tpu.memory_space<smem>>
    %724 = vector.broadcast %723 : f32 to vector<1x4x16xf32>
    %725 = arith.mulf %724, %722 : vector<1x4x16xf32>
    %726 = arith.addf %706, %725 : vector<1x4x16xf32>
    %c71 = arith.constant 71 : index
    %727 = memref.load %arg2[%c71] : memref<338xf32, #tpu.memory_space<smem>>
    %728 = vector.broadcast %727 : f32 to vector<1x4x16xf32>
    %729 = arith.mulf %728, %722 : vector<1x4x16xf32>
    %730 = arith.addf %710, %729 : vector<1x4x16xf32>
    %c107 = arith.constant 107 : index
    %731 = memref.load %arg2[%c107] : memref<338xf32, #tpu.memory_space<smem>>
    %732 = vector.broadcast %731 : f32 to vector<1x4x16xf32>
    %733 = arith.mulf %732, %722 : vector<1x4x16xf32>
    %734 = arith.addf %714, %733 : vector<1x4x16xf32>
    %c143 = arith.constant 143 : index
    %735 = memref.load %arg2[%c143] : memref<338xf32, #tpu.memory_space<smem>>
    %736 = vector.broadcast %735 : f32 to vector<1x4x16xf32>
    %737 = arith.mulf %736, %722 : vector<1x4x16xf32>
    %738 = arith.addf %718, %737 : vector<1x4x16xf32>
    %cst_99 = arith.constant dense<0.000000e+00> : vector<1xf32>
    %739 = vector.multi_reduction <add>, %726, %cst_99 [1, 2] : vector<1x4x16xf32> to vector<1xf32>
    %740 = vector.shape_cast %739 : vector<1xf32> to vector<1x1x1xf32>
    %cst_100 = arith.constant 6.400000e+01 : f32
    %741 = vector.broadcast %cst_100 : f32 to vector<1x1x1xf32>
    %742 = arith.divf %740, %741 : vector<1x1x1xf32>
    %743 = vector.broadcast %742 : vector<1x1x1xf32> to vector<1x4x16xf32>
    %744 = arith.subf %726, %743 : vector<1x4x16xf32>
    %745 = vector.broadcast %742 : vector<1x1x1xf32> to vector<1x4x16xf32>
    %746 = arith.subf %726, %745 : vector<1x4x16xf32>
    %747 = arith.mulf %744, %746 : vector<1x4x16xf32>
    %cst_101 = arith.constant dense<0.000000e+00> : vector<1xf32>
    %748 = vector.multi_reduction <add>, %747, %cst_101 [1, 2] : vector<1x4x16xf32> to vector<1xf32>
    %749 = vector.shape_cast %748 : vector<1xf32> to vector<1x1x1xf32>
    %cst_102 = arith.constant 6.400000e+01 : f32
    %750 = vector.broadcast %cst_102 : f32 to vector<1x1x1xf32>
    %751 = arith.divf %749, %750 : vector<1x1x1xf32>
    %752 = vector.broadcast %742 : vector<1x1x1xf32> to vector<1x4x16xf32>
    %753 = arith.subf %726, %752 : vector<1x4x16xf32>
    %cst_103 = arith.constant 9.99999974E-6 : f32
    %754 = vector.broadcast %cst_103 : f32 to vector<1x1x1xf32>
    %755 = arith.addf %751, %754 : vector<1x1x1xf32>
    %756 = math.rsqrt %755 : vector<1x1x1xf32>
    %757 = vector.broadcast %756 : vector<1x1x1xf32> to vector<1x4x16xf32>
    %758 = arith.mulf %753, %757 : vector<1x4x16xf32>
    %c316 = arith.constant 316 : index
    %759 = memref.load %arg2[%c316] : memref<338xf32, #tpu.memory_space<smem>>
    %760 = vector.broadcast %759 : f32 to vector<1x4x16xf32>
    %761 = arith.mulf %758, %760 : vector<1x4x16xf32>
    %c318 = arith.constant 318 : index
    %762 = memref.load %arg2[%c318] : memref<338xf32, #tpu.memory_space<smem>>
    %763 = vector.broadcast %762 : f32 to vector<1x4x16xf32>
    %764 = arith.addf %761, %763 : vector<1x4x16xf32>
    %cst_104 = arith.constant dense<0.000000e+00> : vector<1xf32>
    %765 = vector.multi_reduction <add>, %730, %cst_104 [1, 2] : vector<1x4x16xf32> to vector<1xf32>
    %766 = vector.shape_cast %765 : vector<1xf32> to vector<1x1x1xf32>
    %cst_105 = arith.constant 6.400000e+01 : f32
    %767 = vector.broadcast %cst_105 : f32 to vector<1x1x1xf32>
    %768 = arith.divf %766, %767 : vector<1x1x1xf32>
    %769 = vector.broadcast %768 : vector<1x1x1xf32> to vector<1x4x16xf32>
    %770 = arith.subf %730, %769 : vector<1x4x16xf32>
    %771 = vector.broadcast %768 : vector<1x1x1xf32> to vector<1x4x16xf32>
    %772 = arith.subf %730, %771 : vector<1x4x16xf32>
    %773 = arith.mulf %770, %772 : vector<1x4x16xf32>
    %cst_106 = arith.constant dense<0.000000e+00> : vector<1xf32>
    %774 = vector.multi_reduction <add>, %773, %cst_106 [1, 2] : vector<1x4x16xf32> to vector<1xf32>
    %775 = vector.shape_cast %774 : vector<1xf32> to vector<1x1x1xf32>
    %cst_107 = arith.constant 6.400000e+01 : f32
    %776 = vector.broadcast %cst_107 : f32 to vector<1x1x1xf32>
    %777 = arith.divf %775, %776 : vector<1x1x1xf32>
    %778 = vector.broadcast %768 : vector<1x1x1xf32> to vector<1x4x16xf32>
    %779 = arith.subf %730, %778 : vector<1x4x16xf32>
    %cst_108 = arith.constant 9.99999974E-6 : f32
    %780 = vector.broadcast %cst_108 : f32 to vector<1x1x1xf32>
    %781 = arith.addf %777, %780 : vector<1x1x1xf32>
    %782 = math.rsqrt %781 : vector<1x1x1xf32>
    %783 = vector.broadcast %782 : vector<1x1x1xf32> to vector<1x4x16xf32>
    %784 = arith.mulf %779, %783 : vector<1x4x16xf32>
    %c317 = arith.constant 317 : index
    %785 = memref.load %arg2[%c317] : memref<338xf32, #tpu.memory_space<smem>>
    %786 = vector.broadcast %785 : f32 to vector<1x4x16xf32>
    %787 = arith.mulf %784, %786 : vector<1x4x16xf32>
    %c319 = arith.constant 319 : index
    %788 = memref.load %arg2[%c319] : memref<338xf32, #tpu.memory_space<smem>>
    %789 = vector.broadcast %788 : f32 to vector<1x4x16xf32>
    %790 = arith.addf %787, %789 : vector<1x4x16xf32>
    %cst_109 = arith.constant 0.000000e+00 : f32
    %791 = vector.broadcast %cst_109 : f32 to vector<1x4x16xf32>
    %792 = arith.cmpf ogt, %764, %791 : vector<1x4x16xf32>
    %cst_110 = arith.constant 2.000000e-01 : f32
    %793 = vector.broadcast %cst_110 : f32 to vector<1x4x16xf32>
    %794 = arith.mulf %793, %764 : vector<1x4x16xf32>
    %795 = arith.select %792, %764, %794 : vector<1x4x16xi1>, vector<1x4x16xf32>
    %cst_111 = arith.constant 0.000000e+00 : f32
    %796 = vector.broadcast %cst_111 : f32 to vector<1x4x16xf32>
    %797 = arith.cmpf ogt, %790, %796 : vector<1x4x16xf32>
    %cst_112 = arith.constant 2.000000e-01 : f32
    %798 = vector.broadcast %cst_112 : f32 to vector<1x4x16xf32>
    %799 = arith.mulf %798, %790 : vector<1x4x16xf32>
    %800 = arith.select %797, %790, %799 : vector<1x4x16xi1>, vector<1x4x16xf32>
    %cst_113 = arith.constant 0.000000e+00 : f32
    %801 = vector.broadcast %cst_113 : f32 to vector<1x4x16xf32>
    %802 = arith.cmpf ogt, %734, %801 : vector<1x4x16xf32>
    %cst_114 = arith.constant 2.000000e-01 : f32
    %803 = vector.broadcast %cst_114 : f32 to vector<1x4x16xf32>
    %804 = arith.mulf %803, %734 : vector<1x4x16xf32>
    %805 = arith.select %802, %734, %804 : vector<1x4x16xi1>, vector<1x4x16xf32>
    %cst_115 = arith.constant 0.000000e+00 : f32
    %806 = vector.broadcast %cst_115 : f32 to vector<1x4x16xf32>
    %807 = arith.cmpf ogt, %738, %806 : vector<1x4x16xf32>
    %cst_116 = arith.constant 2.000000e-01 : f32
    %808 = vector.broadcast %cst_116 : f32 to vector<1x4x16xf32>
    %809 = arith.mulf %808, %738 : vector<1x4x16xf32>
    %810 = arith.select %807, %738, %809 : vector<1x4x16xi1>, vector<1x4x16xf32>
    %cst_117 = arith.constant 0.000000e+00 : f32
    %811 = vector.broadcast %cst_117 : f32 to vector<1x4x16xf32>
    %c292 = arith.constant 292 : index
    %812 = memref.load %arg2[%c292] : memref<338xf32, #tpu.memory_space<smem>>
    %813 = vector.broadcast %812 : f32 to vector<1x4x16xf32>
    %814 = arith.addf %811, %813 : vector<1x4x16xf32>
    %cst_118 = arith.constant 0.000000e+00 : f32
    %815 = vector.broadcast %cst_118 : f32 to vector<1x4x16xf32>
    %c293 = arith.constant 293 : index
    %816 = memref.load %arg2[%c293] : memref<338xf32, #tpu.memory_space<smem>>
    %817 = vector.broadcast %816 : f32 to vector<1x4x16xf32>
    %818 = arith.addf %815, %817 : vector<1x4x16xf32>
    %cst_119 = arith.constant 0.000000e+00 : f32
    %819 = vector.broadcast %cst_119 : f32 to vector<1x4x16xf32>
    %c294 = arith.constant 294 : index
    %820 = memref.load %arg2[%c294] : memref<338xf32, #tpu.memory_space<smem>>
    %821 = vector.broadcast %820 : f32 to vector<1x4x16xf32>
    %822 = arith.addf %819, %821 : vector<1x4x16xf32>
    %cst_120 = arith.constant 0.000000e+00 : f32
    %823 = vector.broadcast %cst_120 : f32 to vector<1x4x16xf32>
    %c295 = arith.constant 295 : index
    %824 = memref.load %arg2[%c295] : memref<338xf32, #tpu.memory_space<smem>>
    %825 = vector.broadcast %824 : f32 to vector<1x4x16xf32>
    %826 = arith.addf %823, %825 : vector<1x4x16xf32>
    %c1_i32_121 = arith.constant 1 : i32
    %827 = tpu.dynamic_rotate %795 by %c1_i32_121 dim 1 : vector<1x4x16xf32>, i32 -> vector<1x4x16xf32>
    %c1_i32_122 = arith.constant 1 : i32
    %828 = tpu.dynamic_rotate %827 by %c1_i32_122 dim 2 : vector<1x4x16xf32>, i32 -> vector<1x4x16xf32>
    %cst_123 = arith.constant 0.000000e+00 : f32
    %829 = vector.broadcast %cst_123 : f32 to vector<1x4x16xf32>
    %830 = arith.select %7, %828, %829 : vector<1x4x16xi1>, vector<1x4x16xf32>
    %c148 = arith.constant 148 : index
    %831 = memref.load %arg2[%c148] : memref<338xf32, #tpu.memory_space<smem>>
    %832 = vector.broadcast %831 : f32 to vector<1x4x16xf32>
    %833 = arith.mulf %832, %830 : vector<1x4x16xf32>
    %834 = arith.addf %814, %833 : vector<1x4x16xf32>
    %c184 = arith.constant 184 : index
    %835 = memref.load %arg2[%c184] : memref<338xf32, #tpu.memory_space<smem>>
    %836 = vector.broadcast %835 : f32 to vector<1x4x16xf32>
    %837 = arith.mulf %836, %830 : vector<1x4x16xf32>
    %838 = arith.addf %818, %837 : vector<1x4x16xf32>
    %c220 = arith.constant 220 : index
    %839 = memref.load %arg2[%c220] : memref<338xf32, #tpu.memory_space<smem>>
    %840 = vector.broadcast %839 : f32 to vector<1x4x16xf32>
    %841 = arith.mulf %840, %830 : vector<1x4x16xf32>
    %842 = arith.addf %822, %841 : vector<1x4x16xf32>
    %c256 = arith.constant 256 : index
    %843 = memref.load %arg2[%c256] : memref<338xf32, #tpu.memory_space<smem>>
    %844 = vector.broadcast %843 : f32 to vector<1x4x16xf32>
    %845 = arith.mulf %844, %830 : vector<1x4x16xf32>
    %846 = arith.addf %826, %845 : vector<1x4x16xf32>
    %c1_i32_124 = arith.constant 1 : i32
    %847 = tpu.dynamic_rotate %800 by %c1_i32_124 dim 1 : vector<1x4x16xf32>, i32 -> vector<1x4x16xf32>
    %c1_i32_125 = arith.constant 1 : i32
    %848 = tpu.dynamic_rotate %847 by %c1_i32_125 dim 2 : vector<1x4x16xf32>, i32 -> vector<1x4x16xf32>
    %cst_126 = arith.constant 0.000000e+00 : f32
    %849 = vector.broadcast %cst_126 : f32 to vector<1x4x16xf32>
    %850 = arith.select %7, %848, %849 : vector<1x4x16xi1>, vector<1x4x16xf32>
    %c157 = arith.constant 157 : index
    %851 = memref.load %arg2[%c157] : memref<338xf32, #tpu.memory_space<smem>>
    %852 = vector.broadcast %851 : f32 to vector<1x4x16xf32>
    %853 = arith.mulf %852, %850 : vector<1x4x16xf32>
    %854 = arith.addf %834, %853 : vector<1x4x16xf32>
    %c193 = arith.constant 193 : index
    %855 = memref.load %arg2[%c193] : memref<338xf32, #tpu.memory_space<smem>>
    %856 = vector.broadcast %855 : f32 to vector<1x4x16xf32>
    %857 = arith.mulf %856, %850 : vector<1x4x16xf32>
    %858 = arith.addf %838, %857 : vector<1x4x16xf32>
    %c229 = arith.constant 229 : index
    %859 = memref.load %arg2[%c229] : memref<338xf32, #tpu.memory_space<smem>>
    %860 = vector.broadcast %859 : f32 to vector<1x4x16xf32>
    %861 = arith.mulf %860, %850 : vector<1x4x16xf32>
    %862 = arith.addf %842, %861 : vector<1x4x16xf32>
    %c265 = arith.constant 265 : index
    %863 = memref.load %arg2[%c265] : memref<338xf32, #tpu.memory_space<smem>>
    %864 = vector.broadcast %863 : f32 to vector<1x4x16xf32>
    %865 = arith.mulf %864, %850 : vector<1x4x16xf32>
    %866 = arith.addf %846, %865 : vector<1x4x16xf32>
    %c1_i32_127 = arith.constant 1 : i32
    %867 = tpu.dynamic_rotate %805 by %c1_i32_127 dim 1 : vector<1x4x16xf32>, i32 -> vector<1x4x16xf32>
    %c1_i32_128 = arith.constant 1 : i32
    %868 = tpu.dynamic_rotate %867 by %c1_i32_128 dim 2 : vector<1x4x16xf32>, i32 -> vector<1x4x16xf32>
    %cst_129 = arith.constant 0.000000e+00 : f32
    %869 = vector.broadcast %cst_129 : f32 to vector<1x4x16xf32>
    %870 = arith.select %7, %868, %869 : vector<1x4x16xi1>, vector<1x4x16xf32>
    %c166 = arith.constant 166 : index
    %871 = memref.load %arg2[%c166] : memref<338xf32, #tpu.memory_space<smem>>
    %872 = vector.broadcast %871 : f32 to vector<1x4x16xf32>
    %873 = arith.mulf %872, %870 : vector<1x4x16xf32>
    %874 = arith.addf %854, %873 : vector<1x4x16xf32>
    %c202 = arith.constant 202 : index
    %875 = memref.load %arg2[%c202] : memref<338xf32, #tpu.memory_space<smem>>
    %876 = vector.broadcast %875 : f32 to vector<1x4x16xf32>
    %877 = arith.mulf %876, %870 : vector<1x4x16xf32>
    %878 = arith.addf %858, %877 : vector<1x4x16xf32>
    %c238 = arith.constant 238 : index
    %879 = memref.load %arg2[%c238] : memref<338xf32, #tpu.memory_space<smem>>
    %880 = vector.broadcast %879 : f32 to vector<1x4x16xf32>
    %881 = arith.mulf %880, %870 : vector<1x4x16xf32>
    %882 = arith.addf %862, %881 : vector<1x4x16xf32>
    %c274 = arith.constant 274 : index
    %883 = memref.load %arg2[%c274] : memref<338xf32, #tpu.memory_space<smem>>
    %884 = vector.broadcast %883 : f32 to vector<1x4x16xf32>
    %885 = arith.mulf %884, %870 : vector<1x4x16xf32>
    %886 = arith.addf %866, %885 : vector<1x4x16xf32>
    %c1_i32_130 = arith.constant 1 : i32
    %887 = tpu.dynamic_rotate %810 by %c1_i32_130 dim 1 : vector<1x4x16xf32>, i32 -> vector<1x4x16xf32>
    %c1_i32_131 = arith.constant 1 : i32
    %888 = tpu.dynamic_rotate %887 by %c1_i32_131 dim 2 : vector<1x4x16xf32>, i32 -> vector<1x4x16xf32>
    %cst_132 = arith.constant 0.000000e+00 : f32
    %889 = vector.broadcast %cst_132 : f32 to vector<1x4x16xf32>
    %890 = arith.select %7, %888, %889 : vector<1x4x16xi1>, vector<1x4x16xf32>
    %c175 = arith.constant 175 : index
    %891 = memref.load %arg2[%c175] : memref<338xf32, #tpu.memory_space<smem>>
    %892 = vector.broadcast %891 : f32 to vector<1x4x16xf32>
    %893 = arith.mulf %892, %890 : vector<1x4x16xf32>
    %894 = arith.addf %874, %893 : vector<1x4x16xf32>
    %c211 = arith.constant 211 : index
    %895 = memref.load %arg2[%c211] : memref<338xf32, #tpu.memory_space<smem>>
    %896 = vector.broadcast %895 : f32 to vector<1x4x16xf32>
    %897 = arith.mulf %896, %890 : vector<1x4x16xf32>
    %898 = arith.addf %878, %897 : vector<1x4x16xf32>
    %c247 = arith.constant 247 : index
    %899 = memref.load %arg2[%c247] : memref<338xf32, #tpu.memory_space<smem>>
    %900 = vector.broadcast %899 : f32 to vector<1x4x16xf32>
    %901 = arith.mulf %900, %890 : vector<1x4x16xf32>
    %902 = arith.addf %882, %901 : vector<1x4x16xf32>
    %c283 = arith.constant 283 : index
    %903 = memref.load %arg2[%c283] : memref<338xf32, #tpu.memory_space<smem>>
    %904 = vector.broadcast %903 : f32 to vector<1x4x16xf32>
    %905 = arith.mulf %904, %890 : vector<1x4x16xf32>
    %906 = arith.addf %886, %905 : vector<1x4x16xf32>
    %c1_i32_133 = arith.constant 1 : i32
    %907 = tpu.dynamic_rotate %795 by %c1_i32_133 dim 1 : vector<1x4x16xf32>, i32 -> vector<1x4x16xf32>
    %cst_134 = arith.constant 0.000000e+00 : f32
    %908 = vector.broadcast %cst_134 : f32 to vector<1x4x16xf32>
    %909 = arith.select %9, %907, %908 : vector<1x4x16xi1>, vector<1x4x16xf32>
    %c149 = arith.constant 149 : index
    %910 = memref.load %arg2[%c149] : memref<338xf32, #tpu.memory_space<smem>>
    %911 = vector.broadcast %910 : f32 to vector<1x4x16xf32>
    %912 = arith.mulf %911, %909 : vector<1x4x16xf32>
    %913 = arith.addf %894, %912 : vector<1x4x16xf32>
    %c185 = arith.constant 185 : index
    %914 = memref.load %arg2[%c185] : memref<338xf32, #tpu.memory_space<smem>>
    %915 = vector.broadcast %914 : f32 to vector<1x4x16xf32>
    %916 = arith.mulf %915, %909 : vector<1x4x16xf32>
    %917 = arith.addf %898, %916 : vector<1x4x16xf32>
    %c221 = arith.constant 221 : index
    %918 = memref.load %arg2[%c221] : memref<338xf32, #tpu.memory_space<smem>>
    %919 = vector.broadcast %918 : f32 to vector<1x4x16xf32>
    %920 = arith.mulf %919, %909 : vector<1x4x16xf32>
    %921 = arith.addf %902, %920 : vector<1x4x16xf32>
    %c257 = arith.constant 257 : index
    %922 = memref.load %arg2[%c257] : memref<338xf32, #tpu.memory_space<smem>>
    %923 = vector.broadcast %922 : f32 to vector<1x4x16xf32>
    %924 = arith.mulf %923, %909 : vector<1x4x16xf32>
    %925 = arith.addf %906, %924 : vector<1x4x16xf32>
    %c1_i32_135 = arith.constant 1 : i32
    %926 = tpu.dynamic_rotate %800 by %c1_i32_135 dim 1 : vector<1x4x16xf32>, i32 -> vector<1x4x16xf32>
    %cst_136 = arith.constant 0.000000e+00 : f32
    %927 = vector.broadcast %cst_136 : f32 to vector<1x4x16xf32>
    %928 = arith.select %9, %926, %927 : vector<1x4x16xi1>, vector<1x4x16xf32>
    %c158 = arith.constant 158 : index
    %929 = memref.load %arg2[%c158] : memref<338xf32, #tpu.memory_space<smem>>
    %930 = vector.broadcast %929 : f32 to vector<1x4x16xf32>
    %931 = arith.mulf %930, %928 : vector<1x4x16xf32>
    %932 = arith.addf %913, %931 : vector<1x4x16xf32>
    %c194 = arith.constant 194 : index
    %933 = memref.load %arg2[%c194] : memref<338xf32, #tpu.memory_space<smem>>
    %934 = vector.broadcast %933 : f32 to vector<1x4x16xf32>
    %935 = arith.mulf %934, %928 : vector<1x4x16xf32>
    %936 = arith.addf %917, %935 : vector<1x4x16xf32>
    %c230 = arith.constant 230 : index
    %937 = memref.load %arg2[%c230] : memref<338xf32, #tpu.memory_space<smem>>
    %938 = vector.broadcast %937 : f32 to vector<1x4x16xf32>
    %939 = arith.mulf %938, %928 : vector<1x4x16xf32>
    %940 = arith.addf %921, %939 : vector<1x4x16xf32>
    %c266 = arith.constant 266 : index
    %941 = memref.load %arg2[%c266] : memref<338xf32, #tpu.memory_space<smem>>
    %942 = vector.broadcast %941 : f32 to vector<1x4x16xf32>
    %943 = arith.mulf %942, %928 : vector<1x4x16xf32>
    %944 = arith.addf %925, %943 : vector<1x4x16xf32>
    %c1_i32_137 = arith.constant 1 : i32
    %945 = tpu.dynamic_rotate %805 by %c1_i32_137 dim 1 : vector<1x4x16xf32>, i32 -> vector<1x4x16xf32>
    %cst_138 = arith.constant 0.000000e+00 : f32
    %946 = vector.broadcast %cst_138 : f32 to vector<1x4x16xf32>
    %947 = arith.select %9, %945, %946 : vector<1x4x16xi1>, vector<1x4x16xf32>
    %c167 = arith.constant 167 : index
    %948 = memref.load %arg2[%c167] : memref<338xf32, #tpu.memory_space<smem>>
    %949 = vector.broadcast %948 : f32 to vector<1x4x16xf32>
    %950 = arith.mulf %949, %947 : vector<1x4x16xf32>
    %951 = arith.addf %932, %950 : vector<1x4x16xf32>
    %c203 = arith.constant 203 : index
    %952 = memref.load %arg2[%c203] : memref<338xf32, #tpu.memory_space<smem>>
    %953 = vector.broadcast %952 : f32 to vector<1x4x16xf32>
    %954 = arith.mulf %953, %947 : vector<1x4x16xf32>
    %955 = arith.addf %936, %954 : vector<1x4x16xf32>
    %c239 = arith.constant 239 : index
    %956 = memref.load %arg2[%c239] : memref<338xf32, #tpu.memory_space<smem>>
    %957 = vector.broadcast %956 : f32 to vector<1x4x16xf32>
    %958 = arith.mulf %957, %947 : vector<1x4x16xf32>
    %959 = arith.addf %940, %958 : vector<1x4x16xf32>
    %c275 = arith.constant 275 : index
    %960 = memref.load %arg2[%c275] : memref<338xf32, #tpu.memory_space<smem>>
    %961 = vector.broadcast %960 : f32 to vector<1x4x16xf32>
    %962 = arith.mulf %961, %947 : vector<1x4x16xf32>
    %963 = arith.addf %944, %962 : vector<1x4x16xf32>
    %c1_i32_139 = arith.constant 1 : i32
    %964 = tpu.dynamic_rotate %810 by %c1_i32_139 dim 1 : vector<1x4x16xf32>, i32 -> vector<1x4x16xf32>
    %cst_140 = arith.constant 0.000000e+00 : f32
    %965 = vector.broadcast %cst_140 : f32 to vector<1x4x16xf32>
    %966 = arith.select %9, %964, %965 : vector<1x4x16xi1>, vector<1x4x16xf32>
    %c176 = arith.constant 176 : index
    %967 = memref.load %arg2[%c176] : memref<338xf32, #tpu.memory_space<smem>>
    %968 = vector.broadcast %967 : f32 to vector<1x4x16xf32>
    %969 = arith.mulf %968, %966 : vector<1x4x16xf32>
    %970 = arith.addf %951, %969 : vector<1x4x16xf32>
    %c212 = arith.constant 212 : index
    %971 = memref.load %arg2[%c212] : memref<338xf32, #tpu.memory_space<smem>>
    %972 = vector.broadcast %971 : f32 to vector<1x4x16xf32>
    %973 = arith.mulf %972, %966 : vector<1x4x16xf32>
    %974 = arith.addf %955, %973 : vector<1x4x16xf32>
    %c248 = arith.constant 248 : index
    %975 = memref.load %arg2[%c248] : memref<338xf32, #tpu.memory_space<smem>>
    %976 = vector.broadcast %975 : f32 to vector<1x4x16xf32>
    %977 = arith.mulf %976, %966 : vector<1x4x16xf32>
    %978 = arith.addf %959, %977 : vector<1x4x16xf32>
    %c284 = arith.constant 284 : index
    %979 = memref.load %arg2[%c284] : memref<338xf32, #tpu.memory_space<smem>>
    %980 = vector.broadcast %979 : f32 to vector<1x4x16xf32>
    %981 = arith.mulf %980, %966 : vector<1x4x16xf32>
    %982 = arith.addf %963, %981 : vector<1x4x16xf32>
    %c1_i32_141 = arith.constant 1 : i32
    %983 = tpu.dynamic_rotate %795 by %c1_i32_141 dim 1 : vector<1x4x16xf32>, i32 -> vector<1x4x16xf32>
    %c15_i32_142 = arith.constant 15 : i32
    %984 = tpu.dynamic_rotate %983 by %c15_i32_142 dim 2 : vector<1x4x16xf32>, i32 -> vector<1x4x16xf32>
    %cst_143 = arith.constant 0.000000e+00 : f32
    %985 = vector.broadcast %cst_143 : f32 to vector<1x4x16xf32>
    %986 = arith.select %14, %984, %985 : vector<1x4x16xi1>, vector<1x4x16xf32>
    %c150 = arith.constant 150 : index
    %987 = memref.load %arg2[%c150] : memref<338xf32, #tpu.memory_space<smem>>
    %988 = vector.broadcast %987 : f32 to vector<1x4x16xf32>
    %989 = arith.mulf %988, %986 : vector<1x4x16xf32>
    %990 = arith.addf %970, %989 : vector<1x4x16xf32>
    %c186 = arith.constant 186 : index
    %991 = memref.load %arg2[%c186] : memref<338xf32, #tpu.memory_space<smem>>
    %992 = vector.broadcast %991 : f32 to vector<1x4x16xf32>
    %993 = arith.mulf %992, %986 : vector<1x4x16xf32>
    %994 = arith.addf %974, %993 : vector<1x4x16xf32>
    %c222 = arith.constant 222 : index
    %995 = memref.load %arg2[%c222] : memref<338xf32, #tpu.memory_space<smem>>
    %996 = vector.broadcast %995 : f32 to vector<1x4x16xf32>
    %997 = arith.mulf %996, %986 : vector<1x4x16xf32>
    %998 = arith.addf %978, %997 : vector<1x4x16xf32>
    %c258 = arith.constant 258 : index
    %999 = memref.load %arg2[%c258] : memref<338xf32, #tpu.memory_space<smem>>
    %1000 = vector.broadcast %999 : f32 to vector<1x4x16xf32>
    %1001 = arith.mulf %1000, %986 : vector<1x4x16xf32>
    %1002 = arith.addf %982, %1001 : vector<1x4x16xf32>
    %c1_i32_144 = arith.constant 1 : i32
    %1003 = tpu.dynamic_rotate %800 by %c1_i32_144 dim 1 : vector<1x4x16xf32>, i32 -> vector<1x4x16xf32>
    %c15_i32_145 = arith.constant 15 : i32
    %1004 = tpu.dynamic_rotate %1003 by %c15_i32_145 dim 2 : vector<1x4x16xf32>, i32 -> vector<1x4x16xf32>
    %cst_146 = arith.constant 0.000000e+00 : f32
    %1005 = vector.broadcast %cst_146 : f32 to vector<1x4x16xf32>
    %1006 = arith.select %14, %1004, %1005 : vector<1x4x16xi1>, vector<1x4x16xf32>
    %c159 = arith.constant 159 : index
    %1007 = memref.load %arg2[%c159] : memref<338xf32, #tpu.memory_space<smem>>
    %1008 = vector.broadcast %1007 : f32 to vector<1x4x16xf32>
    %1009 = arith.mulf %1008, %1006 : vector<1x4x16xf32>
    %1010 = arith.addf %990, %1009 : vector<1x4x16xf32>
    %c195 = arith.constant 195 : index
    %1011 = memref.load %arg2[%c195] : memref<338xf32, #tpu.memory_space<smem>>
    %1012 = vector.broadcast %1011 : f32 to vector<1x4x16xf32>
    %1013 = arith.mulf %1012, %1006 : vector<1x4x16xf32>
    %1014 = arith.addf %994, %1013 : vector<1x4x16xf32>
    %c231 = arith.constant 231 : index
    %1015 = memref.load %arg2[%c231] : memref<338xf32, #tpu.memory_space<smem>>
    %1016 = vector.broadcast %1015 : f32 to vector<1x4x16xf32>
    %1017 = arith.mulf %1016, %1006 : vector<1x4x16xf32>
    %1018 = arith.addf %998, %1017 : vector<1x4x16xf32>
    %c267 = arith.constant 267 : index
    %1019 = memref.load %arg2[%c267] : memref<338xf32, #tpu.memory_space<smem>>
    %1020 = vector.broadcast %1019 : f32 to vector<1x4x16xf32>
    %1021 = arith.mulf %1020, %1006 : vector<1x4x16xf32>
    %1022 = arith.addf %1002, %1021 : vector<1x4x16xf32>
    %c1_i32_147 = arith.constant 1 : i32
    %1023 = tpu.dynamic_rotate %805 by %c1_i32_147 dim 1 : vector<1x4x16xf32>, i32 -> vector<1x4x16xf32>
    %c15_i32_148 = arith.constant 15 : i32
    %1024 = tpu.dynamic_rotate %1023 by %c15_i32_148 dim 2 : vector<1x4x16xf32>, i32 -> vector<1x4x16xf32>
    %cst_149 = arith.constant 0.000000e+00 : f32
    %1025 = vector.broadcast %cst_149 : f32 to vector<1x4x16xf32>
    %1026 = arith.select %14, %1024, %1025 : vector<1x4x16xi1>, vector<1x4x16xf32>
    %c168 = arith.constant 168 : index
    %1027 = memref.load %arg2[%c168] : memref<338xf32, #tpu.memory_space<smem>>
    %1028 = vector.broadcast %1027 : f32 to vector<1x4x16xf32>
    %1029 = arith.mulf %1028, %1026 : vector<1x4x16xf32>
    %1030 = arith.addf %1010, %1029 : vector<1x4x16xf32>
    %c204 = arith.constant 204 : index
    %1031 = memref.load %arg2[%c204] : memref<338xf32, #tpu.memory_space<smem>>
    %1032 = vector.broadcast %1031 : f32 to vector<1x4x16xf32>
    %1033 = arith.mulf %1032, %1026 : vector<1x4x16xf32>
    %1034 = arith.addf %1014, %1033 : vector<1x4x16xf32>
    %c240 = arith.constant 240 : index
    %1035 = memref.load %arg2[%c240] : memref<338xf32, #tpu.memory_space<smem>>
    %1036 = vector.broadcast %1035 : f32 to vector<1x4x16xf32>
    %1037 = arith.mulf %1036, %1026 : vector<1x4x16xf32>
    %1038 = arith.addf %1018, %1037 : vector<1x4x16xf32>
    %c276 = arith.constant 276 : index
    %1039 = memref.load %arg2[%c276] : memref<338xf32, #tpu.memory_space<smem>>
    %1040 = vector.broadcast %1039 : f32 to vector<1x4x16xf32>
    %1041 = arith.mulf %1040, %1026 : vector<1x4x16xf32>
    %1042 = arith.addf %1022, %1041 : vector<1x4x16xf32>
    %c1_i32_150 = arith.constant 1 : i32
    %1043 = tpu.dynamic_rotate %810 by %c1_i32_150 dim 1 : vector<1x4x16xf32>, i32 -> vector<1x4x16xf32>
    %c15_i32_151 = arith.constant 15 : i32
    %1044 = tpu.dynamic_rotate %1043 by %c15_i32_151 dim 2 : vector<1x4x16xf32>, i32 -> vector<1x4x16xf32>
    %cst_152 = arith.constant 0.000000e+00 : f32
    %1045 = vector.broadcast %cst_152 : f32 to vector<1x4x16xf32>
    %1046 = arith.select %14, %1044, %1045 : vector<1x4x16xi1>, vector<1x4x16xf32>
    %c177 = arith.constant 177 : index
    %1047 = memref.load %arg2[%c177] : memref<338xf32, #tpu.memory_space<smem>>
    %1048 = vector.broadcast %1047 : f32 to vector<1x4x16xf32>
    %1049 = arith.mulf %1048, %1046 : vector<1x4x16xf32>
    %1050 = arith.addf %1030, %1049 : vector<1x4x16xf32>
    %c213 = arith.constant 213 : index
    %1051 = memref.load %arg2[%c213] : memref<338xf32, #tpu.memory_space<smem>>
    %1052 = vector.broadcast %1051 : f32 to vector<1x4x16xf32>
    %1053 = arith.mulf %1052, %1046 : vector<1x4x16xf32>
    %1054 = arith.addf %1034, %1053 : vector<1x4x16xf32>
    %c249 = arith.constant 249 : index
    %1055 = memref.load %arg2[%c249] : memref<338xf32, #tpu.memory_space<smem>>
    %1056 = vector.broadcast %1055 : f32 to vector<1x4x16xf32>
    %1057 = arith.mulf %1056, %1046 : vector<1x4x16xf32>
    %1058 = arith.addf %1038, %1057 : vector<1x4x16xf32>
    %c285 = arith.constant 285 : index
    %1059 = memref.load %arg2[%c285] : memref<338xf32, #tpu.memory_space<smem>>
    %1060 = vector.broadcast %1059 : f32 to vector<1x4x16xf32>
    %1061 = arith.mulf %1060, %1046 : vector<1x4x16xf32>
    %1062 = arith.addf %1042, %1061 : vector<1x4x16xf32>
    %c1_i32_153 = arith.constant 1 : i32
    %1063 = tpu.dynamic_rotate %795 by %c1_i32_153 dim 2 : vector<1x4x16xf32>, i32 -> vector<1x4x16xf32>
    %cst_154 = arith.constant 0.000000e+00 : f32
    %1064 = vector.broadcast %cst_154 : f32 to vector<1x4x16xf32>
    %1065 = arith.select %16, %1063, %1064 : vector<1x4x16xi1>, vector<1x4x16xf32>
    %c151 = arith.constant 151 : index
    %1066 = memref.load %arg2[%c151] : memref<338xf32, #tpu.memory_space<smem>>
    %1067 = vector.broadcast %1066 : f32 to vector<1x4x16xf32>
    %1068 = arith.mulf %1067, %1065 : vector<1x4x16xf32>
    %1069 = arith.addf %1050, %1068 : vector<1x4x16xf32>
    %c187 = arith.constant 187 : index
    %1070 = memref.load %arg2[%c187] : memref<338xf32, #tpu.memory_space<smem>>
    %1071 = vector.broadcast %1070 : f32 to vector<1x4x16xf32>
    %1072 = arith.mulf %1071, %1065 : vector<1x4x16xf32>
    %1073 = arith.addf %1054, %1072 : vector<1x4x16xf32>
    %c223 = arith.constant 223 : index
    %1074 = memref.load %arg2[%c223] : memref<338xf32, #tpu.memory_space<smem>>
    %1075 = vector.broadcast %1074 : f32 to vector<1x4x16xf32>
    %1076 = arith.mulf %1075, %1065 : vector<1x4x16xf32>
    %1077 = arith.addf %1058, %1076 : vector<1x4x16xf32>
    %c259 = arith.constant 259 : index
    %1078 = memref.load %arg2[%c259] : memref<338xf32, #tpu.memory_space<smem>>
    %1079 = vector.broadcast %1078 : f32 to vector<1x4x16xf32>
    %1080 = arith.mulf %1079, %1065 : vector<1x4x16xf32>
    %1081 = arith.addf %1062, %1080 : vector<1x4x16xf32>
    %c1_i32_155 = arith.constant 1 : i32
    %1082 = tpu.dynamic_rotate %800 by %c1_i32_155 dim 2 : vector<1x4x16xf32>, i32 -> vector<1x4x16xf32>
    %cst_156 = arith.constant 0.000000e+00 : f32
    %1083 = vector.broadcast %cst_156 : f32 to vector<1x4x16xf32>
    %1084 = arith.select %16, %1082, %1083 : vector<1x4x16xi1>, vector<1x4x16xf32>
    %c160 = arith.constant 160 : index
    %1085 = memref.load %arg2[%c160] : memref<338xf32, #tpu.memory_space<smem>>
    %1086 = vector.broadcast %1085 : f32 to vector<1x4x16xf32>
    %1087 = arith.mulf %1086, %1084 : vector<1x4x16xf32>
    %1088 = arith.addf %1069, %1087 : vector<1x4x16xf32>
    %c196 = arith.constant 196 : index
    %1089 = memref.load %arg2[%c196] : memref<338xf32, #tpu.memory_space<smem>>
    %1090 = vector.broadcast %1089 : f32 to vector<1x4x16xf32>
    %1091 = arith.mulf %1090, %1084 : vector<1x4x16xf32>
    %1092 = arith.addf %1073, %1091 : vector<1x4x16xf32>
    %c232 = arith.constant 232 : index
    %1093 = memref.load %arg2[%c232] : memref<338xf32, #tpu.memory_space<smem>>
    %1094 = vector.broadcast %1093 : f32 to vector<1x4x16xf32>
    %1095 = arith.mulf %1094, %1084 : vector<1x4x16xf32>
    %1096 = arith.addf %1077, %1095 : vector<1x4x16xf32>
    %c268 = arith.constant 268 : index
    %1097 = memref.load %arg2[%c268] : memref<338xf32, #tpu.memory_space<smem>>
    %1098 = vector.broadcast %1097 : f32 to vector<1x4x16xf32>
    %1099 = arith.mulf %1098, %1084 : vector<1x4x16xf32>
    %1100 = arith.addf %1081, %1099 : vector<1x4x16xf32>
    %c1_i32_157 = arith.constant 1 : i32
    %1101 = tpu.dynamic_rotate %805 by %c1_i32_157 dim 2 : vector<1x4x16xf32>, i32 -> vector<1x4x16xf32>
    %cst_158 = arith.constant 0.000000e+00 : f32
    %1102 = vector.broadcast %cst_158 : f32 to vector<1x4x16xf32>
    %1103 = arith.select %16, %1101, %1102 : vector<1x4x16xi1>, vector<1x4x16xf32>
    %c169 = arith.constant 169 : index
    %1104 = memref.load %arg2[%c169] : memref<338xf32, #tpu.memory_space<smem>>
    %1105 = vector.broadcast %1104 : f32 to vector<1x4x16xf32>
    %1106 = arith.mulf %1105, %1103 : vector<1x4x16xf32>
    %1107 = arith.addf %1088, %1106 : vector<1x4x16xf32>
    %c205 = arith.constant 205 : index
    %1108 = memref.load %arg2[%c205] : memref<338xf32, #tpu.memory_space<smem>>
    %1109 = vector.broadcast %1108 : f32 to vector<1x4x16xf32>
    %1110 = arith.mulf %1109, %1103 : vector<1x4x16xf32>
    %1111 = arith.addf %1092, %1110 : vector<1x4x16xf32>
    %c241 = arith.constant 241 : index
    %1112 = memref.load %arg2[%c241] : memref<338xf32, #tpu.memory_space<smem>>
    %1113 = vector.broadcast %1112 : f32 to vector<1x4x16xf32>
    %1114 = arith.mulf %1113, %1103 : vector<1x4x16xf32>
    %1115 = arith.addf %1096, %1114 : vector<1x4x16xf32>
    %c277 = arith.constant 277 : index
    %1116 = memref.load %arg2[%c277] : memref<338xf32, #tpu.memory_space<smem>>
    %1117 = vector.broadcast %1116 : f32 to vector<1x4x16xf32>
    %1118 = arith.mulf %1117, %1103 : vector<1x4x16xf32>
    %1119 = arith.addf %1100, %1118 : vector<1x4x16xf32>
    %c1_i32_159 = arith.constant 1 : i32
    %1120 = tpu.dynamic_rotate %810 by %c1_i32_159 dim 2 : vector<1x4x16xf32>, i32 -> vector<1x4x16xf32>
    %cst_160 = arith.constant 0.000000e+00 : f32
    %1121 = vector.broadcast %cst_160 : f32 to vector<1x4x16xf32>
    %1122 = arith.select %16, %1120, %1121 : vector<1x4x16xi1>, vector<1x4x16xf32>
    %c178 = arith.constant 178 : index
    %1123 = memref.load %arg2[%c178] : memref<338xf32, #tpu.memory_space<smem>>
    %1124 = vector.broadcast %1123 : f32 to vector<1x4x16xf32>
    %1125 = arith.mulf %1124, %1122 : vector<1x4x16xf32>
    %1126 = arith.addf %1107, %1125 : vector<1x4x16xf32>
    %c214 = arith.constant 214 : index
    %1127 = memref.load %arg2[%c214] : memref<338xf32, #tpu.memory_space<smem>>
    %1128 = vector.broadcast %1127 : f32 to vector<1x4x16xf32>
    %1129 = arith.mulf %1128, %1122 : vector<1x4x16xf32>
    %1130 = arith.addf %1111, %1129 : vector<1x4x16xf32>
    %c250 = arith.constant 250 : index
    %1131 = memref.load %arg2[%c250] : memref<338xf32, #tpu.memory_space<smem>>
    %1132 = vector.broadcast %1131 : f32 to vector<1x4x16xf32>
    %1133 = arith.mulf %1132, %1122 : vector<1x4x16xf32>
    %1134 = arith.addf %1115, %1133 : vector<1x4x16xf32>
    %c286 = arith.constant 286 : index
    %1135 = memref.load %arg2[%c286] : memref<338xf32, #tpu.memory_space<smem>>
    %1136 = vector.broadcast %1135 : f32 to vector<1x4x16xf32>
    %1137 = arith.mulf %1136, %1122 : vector<1x4x16xf32>
    %1138 = arith.addf %1119, %1137 : vector<1x4x16xf32>
    %c152 = arith.constant 152 : index
    %1139 = memref.load %arg2[%c152] : memref<338xf32, #tpu.memory_space<smem>>
    %1140 = vector.broadcast %1139 : f32 to vector<1x4x16xf32>
    %1141 = arith.mulf %1140, %795 : vector<1x4x16xf32>
    %1142 = arith.addf %1126, %1141 : vector<1x4x16xf32>
    %c188 = arith.constant 188 : index
    %1143 = memref.load %arg2[%c188] : memref<338xf32, #tpu.memory_space<smem>>
    %1144 = vector.broadcast %1143 : f32 to vector<1x4x16xf32>
    %1145 = arith.mulf %1144, %795 : vector<1x4x16xf32>
    %1146 = arith.addf %1130, %1145 : vector<1x4x16xf32>
    %c224 = arith.constant 224 : index
    %1147 = memref.load %arg2[%c224] : memref<338xf32, #tpu.memory_space<smem>>
    %1148 = vector.broadcast %1147 : f32 to vector<1x4x16xf32>
    %1149 = arith.mulf %1148, %795 : vector<1x4x16xf32>
    %1150 = arith.addf %1134, %1149 : vector<1x4x16xf32>
    %c260 = arith.constant 260 : index
    %1151 = memref.load %arg2[%c260] : memref<338xf32, #tpu.memory_space<smem>>
    %1152 = vector.broadcast %1151 : f32 to vector<1x4x16xf32>
    %1153 = arith.mulf %1152, %795 : vector<1x4x16xf32>
    %1154 = arith.addf %1138, %1153 : vector<1x4x16xf32>
    %c161 = arith.constant 161 : index
    %1155 = memref.load %arg2[%c161] : memref<338xf32, #tpu.memory_space<smem>>
    %1156 = vector.broadcast %1155 : f32 to vector<1x4x16xf32>
    %1157 = arith.mulf %1156, %800 : vector<1x4x16xf32>
    %1158 = arith.addf %1142, %1157 : vector<1x4x16xf32>
    %c197 = arith.constant 197 : index
    %1159 = memref.load %arg2[%c197] : memref<338xf32, #tpu.memory_space<smem>>
    %1160 = vector.broadcast %1159 : f32 to vector<1x4x16xf32>
    %1161 = arith.mulf %1160, %800 : vector<1x4x16xf32>
    %1162 = arith.addf %1146, %1161 : vector<1x4x16xf32>
    %c233 = arith.constant 233 : index
    %1163 = memref.load %arg2[%c233] : memref<338xf32, #tpu.memory_space<smem>>
    %1164 = vector.broadcast %1163 : f32 to vector<1x4x16xf32>
    %1165 = arith.mulf %1164, %800 : vector<1x4x16xf32>
    %1166 = arith.addf %1150, %1165 : vector<1x4x16xf32>
    %c269 = arith.constant 269 : index
    %1167 = memref.load %arg2[%c269] : memref<338xf32, #tpu.memory_space<smem>>
    %1168 = vector.broadcast %1167 : f32 to vector<1x4x16xf32>
    %1169 = arith.mulf %1168, %800 : vector<1x4x16xf32>
    %1170 = arith.addf %1154, %1169 : vector<1x4x16xf32>
    %c170 = arith.constant 170 : index
    %1171 = memref.load %arg2[%c170] : memref<338xf32, #tpu.memory_space<smem>>
    %1172 = vector.broadcast %1171 : f32 to vector<1x4x16xf32>
    %1173 = arith.mulf %1172, %805 : vector<1x4x16xf32>
    %1174 = arith.addf %1158, %1173 : vector<1x4x16xf32>
    %c206 = arith.constant 206 : index
    %1175 = memref.load %arg2[%c206] : memref<338xf32, #tpu.memory_space<smem>>
    %1176 = vector.broadcast %1175 : f32 to vector<1x4x16xf32>
    %1177 = arith.mulf %1176, %805 : vector<1x4x16xf32>
    %1178 = arith.addf %1162, %1177 : vector<1x4x16xf32>
    %c242 = arith.constant 242 : index
    %1179 = memref.load %arg2[%c242] : memref<338xf32, #tpu.memory_space<smem>>
    %1180 = vector.broadcast %1179 : f32 to vector<1x4x16xf32>
    %1181 = arith.mulf %1180, %805 : vector<1x4x16xf32>
    %1182 = arith.addf %1166, %1181 : vector<1x4x16xf32>
    %c278 = arith.constant 278 : index
    %1183 = memref.load %arg2[%c278] : memref<338xf32, #tpu.memory_space<smem>>
    %1184 = vector.broadcast %1183 : f32 to vector<1x4x16xf32>
    %1185 = arith.mulf %1184, %805 : vector<1x4x16xf32>
    %1186 = arith.addf %1170, %1185 : vector<1x4x16xf32>
    %c179 = arith.constant 179 : index
    %1187 = memref.load %arg2[%c179] : memref<338xf32, #tpu.memory_space<smem>>
    %1188 = vector.broadcast %1187 : f32 to vector<1x4x16xf32>
    %1189 = arith.mulf %1188, %810 : vector<1x4x16xf32>
    %1190 = arith.addf %1174, %1189 : vector<1x4x16xf32>
    %c215 = arith.constant 215 : index
    %1191 = memref.load %arg2[%c215] : memref<338xf32, #tpu.memory_space<smem>>
    %1192 = vector.broadcast %1191 : f32 to vector<1x4x16xf32>
    %1193 = arith.mulf %1192, %810 : vector<1x4x16xf32>
    %1194 = arith.addf %1178, %1193 : vector<1x4x16xf32>
    %c251 = arith.constant 251 : index
    %1195 = memref.load %arg2[%c251] : memref<338xf32, #tpu.memory_space<smem>>
    %1196 = vector.broadcast %1195 : f32 to vector<1x4x16xf32>
    %1197 = arith.mulf %1196, %810 : vector<1x4x16xf32>
    %1198 = arith.addf %1182, %1197 : vector<1x4x16xf32>
    %c287 = arith.constant 287 : index
    %1199 = memref.load %arg2[%c287] : memref<338xf32, #tpu.memory_space<smem>>
    %1200 = vector.broadcast %1199 : f32 to vector<1x4x16xf32>
    %1201 = arith.mulf %1200, %810 : vector<1x4x16xf32>
    %1202 = arith.addf %1186, %1201 : vector<1x4x16xf32>
    %c15_i32_161 = arith.constant 15 : i32
    %1203 = tpu.dynamic_rotate %795 by %c15_i32_161 dim 2 : vector<1x4x16xf32>, i32 -> vector<1x4x16xf32>
    %cst_162 = arith.constant 0.000000e+00 : f32
    %1204 = vector.broadcast %cst_162 : f32 to vector<1x4x16xf32>
    %1205 = arith.select %18, %1203, %1204 : vector<1x4x16xi1>, vector<1x4x16xf32>
    %c153 = arith.constant 153 : index
    %1206 = memref.load %arg2[%c153] : memref<338xf32, #tpu.memory_space<smem>>
    %1207 = vector.broadcast %1206 : f32 to vector<1x4x16xf32>
    %1208 = arith.mulf %1207, %1205 : vector<1x4x16xf32>
    %1209 = arith.addf %1190, %1208 : vector<1x4x16xf32>
    %c189 = arith.constant 189 : index
    %1210 = memref.load %arg2[%c189] : memref<338xf32, #tpu.memory_space<smem>>
    %1211 = vector.broadcast %1210 : f32 to vector<1x4x16xf32>
    %1212 = arith.mulf %1211, %1205 : vector<1x4x16xf32>
    %1213 = arith.addf %1194, %1212 : vector<1x4x16xf32>
    %c225 = arith.constant 225 : index
    %1214 = memref.load %arg2[%c225] : memref<338xf32, #tpu.memory_space<smem>>
    %1215 = vector.broadcast %1214 : f32 to vector<1x4x16xf32>
    %1216 = arith.mulf %1215, %1205 : vector<1x4x16xf32>
    %1217 = arith.addf %1198, %1216 : vector<1x4x16xf32>
    %c261 = arith.constant 261 : index
    %1218 = memref.load %arg2[%c261] : memref<338xf32, #tpu.memory_space<smem>>
    %1219 = vector.broadcast %1218 : f32 to vector<1x4x16xf32>
    %1220 = arith.mulf %1219, %1205 : vector<1x4x16xf32>
    %1221 = arith.addf %1202, %1220 : vector<1x4x16xf32>
    %c15_i32_163 = arith.constant 15 : i32
    %1222 = tpu.dynamic_rotate %800 by %c15_i32_163 dim 2 : vector<1x4x16xf32>, i32 -> vector<1x4x16xf32>
    %cst_164 = arith.constant 0.000000e+00 : f32
    %1223 = vector.broadcast %cst_164 : f32 to vector<1x4x16xf32>
    %1224 = arith.select %18, %1222, %1223 : vector<1x4x16xi1>, vector<1x4x16xf32>
    %c162 = arith.constant 162 : index
    %1225 = memref.load %arg2[%c162] : memref<338xf32, #tpu.memory_space<smem>>
    %1226 = vector.broadcast %1225 : f32 to vector<1x4x16xf32>
    %1227 = arith.mulf %1226, %1224 : vector<1x4x16xf32>
    %1228 = arith.addf %1209, %1227 : vector<1x4x16xf32>
    %c198 = arith.constant 198 : index
    %1229 = memref.load %arg2[%c198] : memref<338xf32, #tpu.memory_space<smem>>
    %1230 = vector.broadcast %1229 : f32 to vector<1x4x16xf32>
    %1231 = arith.mulf %1230, %1224 : vector<1x4x16xf32>
    %1232 = arith.addf %1213, %1231 : vector<1x4x16xf32>
    %c234 = arith.constant 234 : index
    %1233 = memref.load %arg2[%c234] : memref<338xf32, #tpu.memory_space<smem>>
    %1234 = vector.broadcast %1233 : f32 to vector<1x4x16xf32>
    %1235 = arith.mulf %1234, %1224 : vector<1x4x16xf32>
    %1236 = arith.addf %1217, %1235 : vector<1x4x16xf32>
    %c270 = arith.constant 270 : index
    %1237 = memref.load %arg2[%c270] : memref<338xf32, #tpu.memory_space<smem>>
    %1238 = vector.broadcast %1237 : f32 to vector<1x4x16xf32>
    %1239 = arith.mulf %1238, %1224 : vector<1x4x16xf32>
    %1240 = arith.addf %1221, %1239 : vector<1x4x16xf32>
    %c15_i32_165 = arith.constant 15 : i32
    %1241 = tpu.dynamic_rotate %805 by %c15_i32_165 dim 2 : vector<1x4x16xf32>, i32 -> vector<1x4x16xf32>
    %cst_166 = arith.constant 0.000000e+00 : f32
    %1242 = vector.broadcast %cst_166 : f32 to vector<1x4x16xf32>
    %1243 = arith.select %18, %1241, %1242 : vector<1x4x16xi1>, vector<1x4x16xf32>
    %c171 = arith.constant 171 : index
    %1244 = memref.load %arg2[%c171] : memref<338xf32, #tpu.memory_space<smem>>
    %1245 = vector.broadcast %1244 : f32 to vector<1x4x16xf32>
    %1246 = arith.mulf %1245, %1243 : vector<1x4x16xf32>
    %1247 = arith.addf %1228, %1246 : vector<1x4x16xf32>
    %c207 = arith.constant 207 : index
    %1248 = memref.load %arg2[%c207] : memref<338xf32, #tpu.memory_space<smem>>
    %1249 = vector.broadcast %1248 : f32 to vector<1x4x16xf32>
    %1250 = arith.mulf %1249, %1243 : vector<1x4x16xf32>
    %1251 = arith.addf %1232, %1250 : vector<1x4x16xf32>
    %c243 = arith.constant 243 : index
    %1252 = memref.load %arg2[%c243] : memref<338xf32, #tpu.memory_space<smem>>
    %1253 = vector.broadcast %1252 : f32 to vector<1x4x16xf32>
    %1254 = arith.mulf %1253, %1243 : vector<1x4x16xf32>
    %1255 = arith.addf %1236, %1254 : vector<1x4x16xf32>
    %c279 = arith.constant 279 : index
    %1256 = memref.load %arg2[%c279] : memref<338xf32, #tpu.memory_space<smem>>
    %1257 = vector.broadcast %1256 : f32 to vector<1x4x16xf32>
    %1258 = arith.mulf %1257, %1243 : vector<1x4x16xf32>
    %1259 = arith.addf %1240, %1258 : vector<1x4x16xf32>
    %c15_i32_167 = arith.constant 15 : i32
    %1260 = tpu.dynamic_rotate %810 by %c15_i32_167 dim 2 : vector<1x4x16xf32>, i32 -> vector<1x4x16xf32>
    %cst_168 = arith.constant 0.000000e+00 : f32
    %1261 = vector.broadcast %cst_168 : f32 to vector<1x4x16xf32>
    %1262 = arith.select %18, %1260, %1261 : vector<1x4x16xi1>, vector<1x4x16xf32>
    %c180 = arith.constant 180 : index
    %1263 = memref.load %arg2[%c180] : memref<338xf32, #tpu.memory_space<smem>>
    %1264 = vector.broadcast %1263 : f32 to vector<1x4x16xf32>
    %1265 = arith.mulf %1264, %1262 : vector<1x4x16xf32>
    %1266 = arith.addf %1247, %1265 : vector<1x4x16xf32>
    %c216 = arith.constant 216 : index
    %1267 = memref.load %arg2[%c216] : memref<338xf32, #tpu.memory_space<smem>>
    %1268 = vector.broadcast %1267 : f32 to vector<1x4x16xf32>
    %1269 = arith.mulf %1268, %1262 : vector<1x4x16xf32>
    %1270 = arith.addf %1251, %1269 : vector<1x4x16xf32>
    %c252 = arith.constant 252 : index
    %1271 = memref.load %arg2[%c252] : memref<338xf32, #tpu.memory_space<smem>>
    %1272 = vector.broadcast %1271 : f32 to vector<1x4x16xf32>
    %1273 = arith.mulf %1272, %1262 : vector<1x4x16xf32>
    %1274 = arith.addf %1255, %1273 : vector<1x4x16xf32>
    %c288 = arith.constant 288 : index
    %1275 = memref.load %arg2[%c288] : memref<338xf32, #tpu.memory_space<smem>>
    %1276 = vector.broadcast %1275 : f32 to vector<1x4x16xf32>
    %1277 = arith.mulf %1276, %1262 : vector<1x4x16xf32>
    %1278 = arith.addf %1259, %1277 : vector<1x4x16xf32>
    %c3_i32_169 = arith.constant 3 : i32
    %1279 = tpu.dynamic_rotate %795 by %c3_i32_169 dim 1 : vector<1x4x16xf32>, i32 -> vector<1x4x16xf32>
    %c1_i32_170 = arith.constant 1 : i32
    %1280 = tpu.dynamic_rotate %1279 by %c1_i32_170 dim 2 : vector<1x4x16xf32>, i32 -> vector<1x4x16xf32>
    %cst_171 = arith.constant 0.000000e+00 : f32
    %1281 = vector.broadcast %cst_171 : f32 to vector<1x4x16xf32>
    %1282 = arith.select %23, %1280, %1281 : vector<1x4x16xi1>, vector<1x4x16xf32>
    %c154 = arith.constant 154 : index
    %1283 = memref.load %arg2[%c154] : memref<338xf32, #tpu.memory_space<smem>>
    %1284 = vector.broadcast %1283 : f32 to vector<1x4x16xf32>
    %1285 = arith.mulf %1284, %1282 : vector<1x4x16xf32>
    %1286 = arith.addf %1266, %1285 : vector<1x4x16xf32>
    %c190 = arith.constant 190 : index
    %1287 = memref.load %arg2[%c190] : memref<338xf32, #tpu.memory_space<smem>>
    %1288 = vector.broadcast %1287 : f32 to vector<1x4x16xf32>
    %1289 = arith.mulf %1288, %1282 : vector<1x4x16xf32>
    %1290 = arith.addf %1270, %1289 : vector<1x4x16xf32>
    %c226 = arith.constant 226 : index
    %1291 = memref.load %arg2[%c226] : memref<338xf32, #tpu.memory_space<smem>>
    %1292 = vector.broadcast %1291 : f32 to vector<1x4x16xf32>
    %1293 = arith.mulf %1292, %1282 : vector<1x4x16xf32>
    %1294 = arith.addf %1274, %1293 : vector<1x4x16xf32>
    %c262 = arith.constant 262 : index
    %1295 = memref.load %arg2[%c262] : memref<338xf32, #tpu.memory_space<smem>>
    %1296 = vector.broadcast %1295 : f32 to vector<1x4x16xf32>
    %1297 = arith.mulf %1296, %1282 : vector<1x4x16xf32>
    %1298 = arith.addf %1278, %1297 : vector<1x4x16xf32>
    %c3_i32_172 = arith.constant 3 : i32
    %1299 = tpu.dynamic_rotate %800 by %c3_i32_172 dim 1 : vector<1x4x16xf32>, i32 -> vector<1x4x16xf32>
    %c1_i32_173 = arith.constant 1 : i32
    %1300 = tpu.dynamic_rotate %1299 by %c1_i32_173 dim 2 : vector<1x4x16xf32>, i32 -> vector<1x4x16xf32>
    %cst_174 = arith.constant 0.000000e+00 : f32
    %1301 = vector.broadcast %cst_174 : f32 to vector<1x4x16xf32>
    %1302 = arith.select %23, %1300, %1301 : vector<1x4x16xi1>, vector<1x4x16xf32>
    %c163 = arith.constant 163 : index
    %1303 = memref.load %arg2[%c163] : memref<338xf32, #tpu.memory_space<smem>>
    %1304 = vector.broadcast %1303 : f32 to vector<1x4x16xf32>
    %1305 = arith.mulf %1304, %1302 : vector<1x4x16xf32>
    %1306 = arith.addf %1286, %1305 : vector<1x4x16xf32>
    %c199 = arith.constant 199 : index
    %1307 = memref.load %arg2[%c199] : memref<338xf32, #tpu.memory_space<smem>>
    %1308 = vector.broadcast %1307 : f32 to vector<1x4x16xf32>
    %1309 = arith.mulf %1308, %1302 : vector<1x4x16xf32>
    %1310 = arith.addf %1290, %1309 : vector<1x4x16xf32>
    %c235 = arith.constant 235 : index
    %1311 = memref.load %arg2[%c235] : memref<338xf32, #tpu.memory_space<smem>>
    %1312 = vector.broadcast %1311 : f32 to vector<1x4x16xf32>
    %1313 = arith.mulf %1312, %1302 : vector<1x4x16xf32>
    %1314 = arith.addf %1294, %1313 : vector<1x4x16xf32>
    %c271 = arith.constant 271 : index
    %1315 = memref.load %arg2[%c271] : memref<338xf32, #tpu.memory_space<smem>>
    %1316 = vector.broadcast %1315 : f32 to vector<1x4x16xf32>
    %1317 = arith.mulf %1316, %1302 : vector<1x4x16xf32>
    %1318 = arith.addf %1298, %1317 : vector<1x4x16xf32>
    %c3_i32_175 = arith.constant 3 : i32
    %1319 = tpu.dynamic_rotate %805 by %c3_i32_175 dim 1 : vector<1x4x16xf32>, i32 -> vector<1x4x16xf32>
    %c1_i32_176 = arith.constant 1 : i32
    %1320 = tpu.dynamic_rotate %1319 by %c1_i32_176 dim 2 : vector<1x4x16xf32>, i32 -> vector<1x4x16xf32>
    %cst_177 = arith.constant 0.000000e+00 : f32
    %1321 = vector.broadcast %cst_177 : f32 to vector<1x4x16xf32>
    %1322 = arith.select %23, %1320, %1321 : vector<1x4x16xi1>, vector<1x4x16xf32>
    %c172 = arith.constant 172 : index
    %1323 = memref.load %arg2[%c172] : memref<338xf32, #tpu.memory_space<smem>>
    %1324 = vector.broadcast %1323 : f32 to vector<1x4x16xf32>
    %1325 = arith.mulf %1324, %1322 : vector<1x4x16xf32>
    %1326 = arith.addf %1306, %1325 : vector<1x4x16xf32>
    %c208 = arith.constant 208 : index
    %1327 = memref.load %arg2[%c208] : memref<338xf32, #tpu.memory_space<smem>>
    %1328 = vector.broadcast %1327 : f32 to vector<1x4x16xf32>
    %1329 = arith.mulf %1328, %1322 : vector<1x4x16xf32>
    %1330 = arith.addf %1310, %1329 : vector<1x4x16xf32>
    %c244 = arith.constant 244 : index
    %1331 = memref.load %arg2[%c244] : memref<338xf32, #tpu.memory_space<smem>>
    %1332 = vector.broadcast %1331 : f32 to vector<1x4x16xf32>
    %1333 = arith.mulf %1332, %1322 : vector<1x4x16xf32>
    %1334 = arith.addf %1314, %1333 : vector<1x4x16xf32>
    %c280 = arith.constant 280 : index
    %1335 = memref.load %arg2[%c280] : memref<338xf32, #tpu.memory_space<smem>>
    %1336 = vector.broadcast %1335 : f32 to vector<1x4x16xf32>
    %1337 = arith.mulf %1336, %1322 : vector<1x4x16xf32>
    %1338 = arith.addf %1318, %1337 : vector<1x4x16xf32>
    %c3_i32_178 = arith.constant 3 : i32
    %1339 = tpu.dynamic_rotate %810 by %c3_i32_178 dim 1 : vector<1x4x16xf32>, i32 -> vector<1x4x16xf32>
    %c1_i32_179 = arith.constant 1 : i32
    %1340 = tpu.dynamic_rotate %1339 by %c1_i32_179 dim 2 : vector<1x4x16xf32>, i32 -> vector<1x4x16xf32>
    %cst_180 = arith.constant 0.000000e+00 : f32
    %1341 = vector.broadcast %cst_180 : f32 to vector<1x4x16xf32>
    %1342 = arith.select %23, %1340, %1341 : vector<1x4x16xi1>, vector<1x4x16xf32>
    %c181 = arith.constant 181 : index
    %1343 = memref.load %arg2[%c181] : memref<338xf32, #tpu.memory_space<smem>>
    %1344 = vector.broadcast %1343 : f32 to vector<1x4x16xf32>
    %1345 = arith.mulf %1344, %1342 : vector<1x4x16xf32>
    %1346 = arith.addf %1326, %1345 : vector<1x4x16xf32>
    %c217 = arith.constant 217 : index
    %1347 = memref.load %arg2[%c217] : memref<338xf32, #tpu.memory_space<smem>>
    %1348 = vector.broadcast %1347 : f32 to vector<1x4x16xf32>
    %1349 = arith.mulf %1348, %1342 : vector<1x4x16xf32>
    %1350 = arith.addf %1330, %1349 : vector<1x4x16xf32>
    %c253 = arith.constant 253 : index
    %1351 = memref.load %arg2[%c253] : memref<338xf32, #tpu.memory_space<smem>>
    %1352 = vector.broadcast %1351 : f32 to vector<1x4x16xf32>
    %1353 = arith.mulf %1352, %1342 : vector<1x4x16xf32>
    %1354 = arith.addf %1334, %1353 : vector<1x4x16xf32>
    %c289 = arith.constant 289 : index
    %1355 = memref.load %arg2[%c289] : memref<338xf32, #tpu.memory_space<smem>>
    %1356 = vector.broadcast %1355 : f32 to vector<1x4x16xf32>
    %1357 = arith.mulf %1356, %1342 : vector<1x4x16xf32>
    %1358 = arith.addf %1338, %1357 : vector<1x4x16xf32>
    %c3_i32_181 = arith.constant 3 : i32
    %1359 = tpu.dynamic_rotate %795 by %c3_i32_181 dim 1 : vector<1x4x16xf32>, i32 -> vector<1x4x16xf32>
    %cst_182 = arith.constant 0.000000e+00 : f32
    %1360 = vector.broadcast %cst_182 : f32 to vector<1x4x16xf32>
    %1361 = arith.select %25, %1359, %1360 : vector<1x4x16xi1>, vector<1x4x16xf32>
    %c155 = arith.constant 155 : index
    %1362 = memref.load %arg2[%c155] : memref<338xf32, #tpu.memory_space<smem>>
    %1363 = vector.broadcast %1362 : f32 to vector<1x4x16xf32>
    %1364 = arith.mulf %1363, %1361 : vector<1x4x16xf32>
    %1365 = arith.addf %1346, %1364 : vector<1x4x16xf32>
    %c191 = arith.constant 191 : index
    %1366 = memref.load %arg2[%c191] : memref<338xf32, #tpu.memory_space<smem>>
    %1367 = vector.broadcast %1366 : f32 to vector<1x4x16xf32>
    %1368 = arith.mulf %1367, %1361 : vector<1x4x16xf32>
    %1369 = arith.addf %1350, %1368 : vector<1x4x16xf32>
    %c227 = arith.constant 227 : index
    %1370 = memref.load %arg2[%c227] : memref<338xf32, #tpu.memory_space<smem>>
    %1371 = vector.broadcast %1370 : f32 to vector<1x4x16xf32>
    %1372 = arith.mulf %1371, %1361 : vector<1x4x16xf32>
    %1373 = arith.addf %1354, %1372 : vector<1x4x16xf32>
    %c263 = arith.constant 263 : index
    %1374 = memref.load %arg2[%c263] : memref<338xf32, #tpu.memory_space<smem>>
    %1375 = vector.broadcast %1374 : f32 to vector<1x4x16xf32>
    %1376 = arith.mulf %1375, %1361 : vector<1x4x16xf32>
    %1377 = arith.addf %1358, %1376 : vector<1x4x16xf32>
    %c3_i32_183 = arith.constant 3 : i32
    %1378 = tpu.dynamic_rotate %800 by %c3_i32_183 dim 1 : vector<1x4x16xf32>, i32 -> vector<1x4x16xf32>
    %cst_184 = arith.constant 0.000000e+00 : f32
    %1379 = vector.broadcast %cst_184 : f32 to vector<1x4x16xf32>
    %1380 = arith.select %25, %1378, %1379 : vector<1x4x16xi1>, vector<1x4x16xf32>
    %c164 = arith.constant 164 : index
    %1381 = memref.load %arg2[%c164] : memref<338xf32, #tpu.memory_space<smem>>
    %1382 = vector.broadcast %1381 : f32 to vector<1x4x16xf32>
    %1383 = arith.mulf %1382, %1380 : vector<1x4x16xf32>
    %1384 = arith.addf %1365, %1383 : vector<1x4x16xf32>
    %c200 = arith.constant 200 : index
    %1385 = memref.load %arg2[%c200] : memref<338xf32, #tpu.memory_space<smem>>
    %1386 = vector.broadcast %1385 : f32 to vector<1x4x16xf32>
    %1387 = arith.mulf %1386, %1380 : vector<1x4x16xf32>
    %1388 = arith.addf %1369, %1387 : vector<1x4x16xf32>
    %c236 = arith.constant 236 : index
    %1389 = memref.load %arg2[%c236] : memref<338xf32, #tpu.memory_space<smem>>
    %1390 = vector.broadcast %1389 : f32 to vector<1x4x16xf32>
    %1391 = arith.mulf %1390, %1380 : vector<1x4x16xf32>
    %1392 = arith.addf %1373, %1391 : vector<1x4x16xf32>
    %c272 = arith.constant 272 : index
    %1393 = memref.load %arg2[%c272] : memref<338xf32, #tpu.memory_space<smem>>
    %1394 = vector.broadcast %1393 : f32 to vector<1x4x16xf32>
    %1395 = arith.mulf %1394, %1380 : vector<1x4x16xf32>
    %1396 = arith.addf %1377, %1395 : vector<1x4x16xf32>
    %c3_i32_185 = arith.constant 3 : i32
    %1397 = tpu.dynamic_rotate %805 by %c3_i32_185 dim 1 : vector<1x4x16xf32>, i32 -> vector<1x4x16xf32>
    %cst_186 = arith.constant 0.000000e+00 : f32
    %1398 = vector.broadcast %cst_186 : f32 to vector<1x4x16xf32>
    %1399 = arith.select %25, %1397, %1398 : vector<1x4x16xi1>, vector<1x4x16xf32>
    %c173 = arith.constant 173 : index
    %1400 = memref.load %arg2[%c173] : memref<338xf32, #tpu.memory_space<smem>>
    %1401 = vector.broadcast %1400 : f32 to vector<1x4x16xf32>
    %1402 = arith.mulf %1401, %1399 : vector<1x4x16xf32>
    %1403 = arith.addf %1384, %1402 : vector<1x4x16xf32>
    %c209 = arith.constant 209 : index
    %1404 = memref.load %arg2[%c209] : memref<338xf32, #tpu.memory_space<smem>>
    %1405 = vector.broadcast %1404 : f32 to vector<1x4x16xf32>
    %1406 = arith.mulf %1405, %1399 : vector<1x4x16xf32>
    %1407 = arith.addf %1388, %1406 : vector<1x4x16xf32>
    %c245 = arith.constant 245 : index
    %1408 = memref.load %arg2[%c245] : memref<338xf32, #tpu.memory_space<smem>>
    %1409 = vector.broadcast %1408 : f32 to vector<1x4x16xf32>
    %1410 = arith.mulf %1409, %1399 : vector<1x4x16xf32>
    %1411 = arith.addf %1392, %1410 : vector<1x4x16xf32>
    %c281 = arith.constant 281 : index
    %1412 = memref.load %arg2[%c281] : memref<338xf32, #tpu.memory_space<smem>>
    %1413 = vector.broadcast %1412 : f32 to vector<1x4x16xf32>
    %1414 = arith.mulf %1413, %1399 : vector<1x4x16xf32>
    %1415 = arith.addf %1396, %1414 : vector<1x4x16xf32>
    %c3_i32_187 = arith.constant 3 : i32
    %1416 = tpu.dynamic_rotate %810 by %c3_i32_187 dim 1 : vector<1x4x16xf32>, i32 -> vector<1x4x16xf32>
    %cst_188 = arith.constant 0.000000e+00 : f32
    %1417 = vector.broadcast %cst_188 : f32 to vector<1x4x16xf32>
    %1418 = arith.select %25, %1416, %1417 : vector<1x4x16xi1>, vector<1x4x16xf32>
    %c182 = arith.constant 182 : index
    %1419 = memref.load %arg2[%c182] : memref<338xf32, #tpu.memory_space<smem>>
    %1420 = vector.broadcast %1419 : f32 to vector<1x4x16xf32>
    %1421 = arith.mulf %1420, %1418 : vector<1x4x16xf32>
    %1422 = arith.addf %1403, %1421 : vector<1x4x16xf32>
    %c218 = arith.constant 218 : index
    %1423 = memref.load %arg2[%c218] : memref<338xf32, #tpu.memory_space<smem>>
    %1424 = vector.broadcast %1423 : f32 to vector<1x4x16xf32>
    %1425 = arith.mulf %1424, %1418 : vector<1x4x16xf32>
    %1426 = arith.addf %1407, %1425 : vector<1x4x16xf32>
    %c254 = arith.constant 254 : index
    %1427 = memref.load %arg2[%c254] : memref<338xf32, #tpu.memory_space<smem>>
    %1428 = vector.broadcast %1427 : f32 to vector<1x4x16xf32>
    %1429 = arith.mulf %1428, %1418 : vector<1x4x16xf32>
    %1430 = arith.addf %1411, %1429 : vector<1x4x16xf32>
    %c290 = arith.constant 290 : index
    %1431 = memref.load %arg2[%c290] : memref<338xf32, #tpu.memory_space<smem>>
    %1432 = vector.broadcast %1431 : f32 to vector<1x4x16xf32>
    %1433 = arith.mulf %1432, %1418 : vector<1x4x16xf32>
    %1434 = arith.addf %1415, %1433 : vector<1x4x16xf32>
    %c3_i32_189 = arith.constant 3 : i32
    %1435 = tpu.dynamic_rotate %795 by %c3_i32_189 dim 1 : vector<1x4x16xf32>, i32 -> vector<1x4x16xf32>
    %c15_i32_190 = arith.constant 15 : i32
    %1436 = tpu.dynamic_rotate %1435 by %c15_i32_190 dim 2 : vector<1x4x16xf32>, i32 -> vector<1x4x16xf32>
    %cst_191 = arith.constant 0.000000e+00 : f32
    %1437 = vector.broadcast %cst_191 : f32 to vector<1x4x16xf32>
    %1438 = arith.select %30, %1436, %1437 : vector<1x4x16xi1>, vector<1x4x16xf32>
    %c156 = arith.constant 156 : index
    %1439 = memref.load %arg2[%c156] : memref<338xf32, #tpu.memory_space<smem>>
    %1440 = vector.broadcast %1439 : f32 to vector<1x4x16xf32>
    %1441 = arith.mulf %1440, %1438 : vector<1x4x16xf32>
    %1442 = arith.addf %1422, %1441 : vector<1x4x16xf32>
    %c192 = arith.constant 192 : index
    %1443 = memref.load %arg2[%c192] : memref<338xf32, #tpu.memory_space<smem>>
    %1444 = vector.broadcast %1443 : f32 to vector<1x4x16xf32>
    %1445 = arith.mulf %1444, %1438 : vector<1x4x16xf32>
    %1446 = arith.addf %1426, %1445 : vector<1x4x16xf32>
    %c228 = arith.constant 228 : index
    %1447 = memref.load %arg2[%c228] : memref<338xf32, #tpu.memory_space<smem>>
    %1448 = vector.broadcast %1447 : f32 to vector<1x4x16xf32>
    %1449 = arith.mulf %1448, %1438 : vector<1x4x16xf32>
    %1450 = arith.addf %1430, %1449 : vector<1x4x16xf32>
    %c264 = arith.constant 264 : index
    %1451 = memref.load %arg2[%c264] : memref<338xf32, #tpu.memory_space<smem>>
    %1452 = vector.broadcast %1451 : f32 to vector<1x4x16xf32>
    %1453 = arith.mulf %1452, %1438 : vector<1x4x16xf32>
    %1454 = arith.addf %1434, %1453 : vector<1x4x16xf32>
    %c3_i32_192 = arith.constant 3 : i32
    %1455 = tpu.dynamic_rotate %800 by %c3_i32_192 dim 1 : vector<1x4x16xf32>, i32 -> vector<1x4x16xf32>
    %c15_i32_193 = arith.constant 15 : i32
    %1456 = tpu.dynamic_rotate %1455 by %c15_i32_193 dim 2 : vector<1x4x16xf32>, i32 -> vector<1x4x16xf32>
    %cst_194 = arith.constant 0.000000e+00 : f32
    %1457 = vector.broadcast %cst_194 : f32 to vector<1x4x16xf32>
    %1458 = arith.select %30, %1456, %1457 : vector<1x4x16xi1>, vector<1x4x16xf32>
    %c165 = arith.constant 165 : index
    %1459 = memref.load %arg2[%c165] : memref<338xf32, #tpu.memory_space<smem>>
    %1460 = vector.broadcast %1459 : f32 to vector<1x4x16xf32>
    %1461 = arith.mulf %1460, %1458 : vector<1x4x16xf32>
    %1462 = arith.addf %1442, %1461 : vector<1x4x16xf32>
    %c201 = arith.constant 201 : index
    %1463 = memref.load %arg2[%c201] : memref<338xf32, #tpu.memory_space<smem>>
    %1464 = vector.broadcast %1463 : f32 to vector<1x4x16xf32>
    %1465 = arith.mulf %1464, %1458 : vector<1x4x16xf32>
    %1466 = arith.addf %1446, %1465 : vector<1x4x16xf32>
    %c237 = arith.constant 237 : index
    %1467 = memref.load %arg2[%c237] : memref<338xf32, #tpu.memory_space<smem>>
    %1468 = vector.broadcast %1467 : f32 to vector<1x4x16xf32>
    %1469 = arith.mulf %1468, %1458 : vector<1x4x16xf32>
    %1470 = arith.addf %1450, %1469 : vector<1x4x16xf32>
    %c273 = arith.constant 273 : index
    %1471 = memref.load %arg2[%c273] : memref<338xf32, #tpu.memory_space<smem>>
    %1472 = vector.broadcast %1471 : f32 to vector<1x4x16xf32>
    %1473 = arith.mulf %1472, %1458 : vector<1x4x16xf32>
    %1474 = arith.addf %1454, %1473 : vector<1x4x16xf32>
    %c3_i32_195 = arith.constant 3 : i32
    %1475 = tpu.dynamic_rotate %805 by %c3_i32_195 dim 1 : vector<1x4x16xf32>, i32 -> vector<1x4x16xf32>
    %c15_i32_196 = arith.constant 15 : i32
    %1476 = tpu.dynamic_rotate %1475 by %c15_i32_196 dim 2 : vector<1x4x16xf32>, i32 -> vector<1x4x16xf32>
    %cst_197 = arith.constant 0.000000e+00 : f32
    %1477 = vector.broadcast %cst_197 : f32 to vector<1x4x16xf32>
    %1478 = arith.select %30, %1476, %1477 : vector<1x4x16xi1>, vector<1x4x16xf32>
    %c174 = arith.constant 174 : index
    %1479 = memref.load %arg2[%c174] : memref<338xf32, #tpu.memory_space<smem>>
    %1480 = vector.broadcast %1479 : f32 to vector<1x4x16xf32>
    %1481 = arith.mulf %1480, %1478 : vector<1x4x16xf32>
    %1482 = arith.addf %1462, %1481 : vector<1x4x16xf32>
    %c210 = arith.constant 210 : index
    %1483 = memref.load %arg2[%c210] : memref<338xf32, #tpu.memory_space<smem>>
    %1484 = vector.broadcast %1483 : f32 to vector<1x4x16xf32>
    %1485 = arith.mulf %1484, %1478 : vector<1x4x16xf32>
    %1486 = arith.addf %1466, %1485 : vector<1x4x16xf32>
    %c246 = arith.constant 246 : index
    %1487 = memref.load %arg2[%c246] : memref<338xf32, #tpu.memory_space<smem>>
    %1488 = vector.broadcast %1487 : f32 to vector<1x4x16xf32>
    %1489 = arith.mulf %1488, %1478 : vector<1x4x16xf32>
    %1490 = arith.addf %1470, %1489 : vector<1x4x16xf32>
    %c282 = arith.constant 282 : index
    %1491 = memref.load %arg2[%c282] : memref<338xf32, #tpu.memory_space<smem>>
    %1492 = vector.broadcast %1491 : f32 to vector<1x4x16xf32>
    %1493 = arith.mulf %1492, %1478 : vector<1x4x16xf32>
    %1494 = arith.addf %1474, %1493 : vector<1x4x16xf32>
    %c3_i32_198 = arith.constant 3 : i32
    %1495 = tpu.dynamic_rotate %810 by %c3_i32_198 dim 1 : vector<1x4x16xf32>, i32 -> vector<1x4x16xf32>
    %c15_i32_199 = arith.constant 15 : i32
    %1496 = tpu.dynamic_rotate %1495 by %c15_i32_199 dim 2 : vector<1x4x16xf32>, i32 -> vector<1x4x16xf32>
    %cst_200 = arith.constant 0.000000e+00 : f32
    %1497 = vector.broadcast %cst_200 : f32 to vector<1x4x16xf32>
    %1498 = arith.select %30, %1496, %1497 : vector<1x4x16xi1>, vector<1x4x16xf32>
    %c183 = arith.constant 183 : index
    %1499 = memref.load %arg2[%c183] : memref<338xf32, #tpu.memory_space<smem>>
    %1500 = vector.broadcast %1499 : f32 to vector<1x4x16xf32>
    %1501 = arith.mulf %1500, %1498 : vector<1x4x16xf32>
    %1502 = arith.addf %1482, %1501 : vector<1x4x16xf32>
    %c219 = arith.constant 219 : index
    %1503 = memref.load %arg2[%c219] : memref<338xf32, #tpu.memory_space<smem>>
    %1504 = vector.broadcast %1503 : f32 to vector<1x4x16xf32>
    %1505 = arith.mulf %1504, %1498 : vector<1x4x16xf32>
    %1506 = arith.addf %1486, %1505 : vector<1x4x16xf32>
    %c255 = arith.constant 255 : index
    %1507 = memref.load %arg2[%c255] : memref<338xf32, #tpu.memory_space<smem>>
    %1508 = vector.broadcast %1507 : f32 to vector<1x4x16xf32>
    %1509 = arith.mulf %1508, %1498 : vector<1x4x16xf32>
    %1510 = arith.addf %1490, %1509 : vector<1x4x16xf32>
    %c291 = arith.constant 291 : index
    %1511 = memref.load %arg2[%c291] : memref<338xf32, #tpu.memory_space<smem>>
    %1512 = vector.broadcast %1511 : f32 to vector<1x4x16xf32>
    %1513 = arith.mulf %1512, %1498 : vector<1x4x16xf32>
    %1514 = arith.addf %1494, %1513 : vector<1x4x16xf32>
    %cst_201 = arith.constant 0.000000e+00 : f32
    %1515 = vector.broadcast %cst_201 : f32 to vector<1x4x16xf32>
    %1516 = arith.cmpf ogt, %1502, %1515 : vector<1x4x16xf32>
    %cst_202 = arith.constant 2.000000e-01 : f32
    %1517 = vector.broadcast %cst_202 : f32 to vector<1x4x16xf32>
    %1518 = arith.mulf %1517, %1502 : vector<1x4x16xf32>
    %1519 = arith.select %1516, %1502, %1518 : vector<1x4x16xi1>, vector<1x4x16xf32>
    %cst_203 = arith.constant 0.000000e+00 : f32
    %1520 = vector.broadcast %cst_203 : f32 to vector<1x4x16xf32>
    %1521 = arith.cmpf ogt, %1506, %1520 : vector<1x4x16xf32>
    %cst_204 = arith.constant 2.000000e-01 : f32
    %1522 = vector.broadcast %cst_204 : f32 to vector<1x4x16xf32>
    %1523 = arith.mulf %1522, %1506 : vector<1x4x16xf32>
    %1524 = arith.select %1521, %1506, %1523 : vector<1x4x16xi1>, vector<1x4x16xf32>
    %cst_205 = arith.constant 0.000000e+00 : f32
    %1525 = vector.broadcast %cst_205 : f32 to vector<1x4x16xf32>
    %1526 = arith.cmpf ogt, %1510, %1525 : vector<1x4x16xf32>
    %cst_206 = arith.constant 2.000000e-01 : f32
    %1527 = vector.broadcast %cst_206 : f32 to vector<1x4x16xf32>
    %1528 = arith.mulf %1527, %1510 : vector<1x4x16xf32>
    %1529 = arith.select %1526, %1510, %1528 : vector<1x4x16xi1>, vector<1x4x16xf32>
    %cst_207 = arith.constant 0.000000e+00 : f32
    %1530 = vector.broadcast %cst_207 : f32 to vector<1x4x16xf32>
    %1531 = arith.cmpf ogt, %1514, %1530 : vector<1x4x16xf32>
    %cst_208 = arith.constant 2.000000e-01 : f32
    %1532 = vector.broadcast %cst_208 : f32 to vector<1x4x16xf32>
    %1533 = arith.mulf %1532, %1514 : vector<1x4x16xf32>
    %1534 = arith.select %1531, %1514, %1533 : vector<1x4x16xi1>, vector<1x4x16xf32>
    %cst_209 = arith.constant 0.000000e+00 : f32
    %1535 = vector.broadcast %cst_209 : f32 to vector<1x4x16xf32>
    %c312 = arith.constant 312 : index
    %1536 = memref.load %arg2[%c312] : memref<338xf32, #tpu.memory_space<smem>>
    %1537 = vector.broadcast %1536 : f32 to vector<1x4x16xf32>
    %1538 = arith.addf %1535, %1537 : vector<1x4x16xf32>
    %c296 = arith.constant 296 : index
    %1539 = memref.load %arg2[%c296] : memref<338xf32, #tpu.memory_space<smem>>
    %1540 = vector.broadcast %1539 : f32 to vector<1x4x16xf32>
    %1541 = arith.mulf %1540, %31 : vector<1x4x16xf32>
    %1542 = arith.addf %1538, %1541 : vector<1x4x16xf32>
    %c297 = arith.constant 297 : index
    %1543 = memref.load %arg2[%c297] : memref<338xf32, #tpu.memory_space<smem>>
    %1544 = vector.broadcast %1543 : f32 to vector<1x4x16xf32>
    %1545 = arith.mulf %1544, %34 : vector<1x4x16xf32>
    %1546 = arith.addf %1542, %1545 : vector<1x4x16xf32>
    %c298 = arith.constant 298 : index
    %1547 = memref.load %arg2[%c298] : memref<338xf32, #tpu.memory_space<smem>>
    %1548 = vector.broadcast %1547 : f32 to vector<1x4x16xf32>
    %1549 = arith.mulf %1548, %31 : vector<1x4x16xf32>
    %1550 = arith.addf %1546, %1549 : vector<1x4x16xf32>
    %c299 = arith.constant 299 : index
    %1551 = memref.load %arg2[%c299] : memref<338xf32, #tpu.memory_space<smem>>
    %1552 = vector.broadcast %1551 : f32 to vector<1x4x16xf32>
    %1553 = arith.mulf %1552, %34 : vector<1x4x16xf32>
    %1554 = arith.addf %1550, %1553 : vector<1x4x16xf32>
    %cst_210 = arith.constant 0.000000e+00 : f32
    %1555 = vector.broadcast %cst_210 : f32 to vector<1x4x16xf32>
    %c313 = arith.constant 313 : index
    %1556 = memref.load %arg2[%c313] : memref<338xf32, #tpu.memory_space<smem>>
    %1557 = vector.broadcast %1556 : f32 to vector<1x4x16xf32>
    %1558 = arith.addf %1555, %1557 : vector<1x4x16xf32>
    %c300 = arith.constant 300 : index
    %1559 = memref.load %arg2[%c300] : memref<338xf32, #tpu.memory_space<smem>>
    %1560 = vector.broadcast %1559 : f32 to vector<1x4x16xf32>
    %1561 = arith.mulf %1560, %31 : vector<1x4x16xf32>
    %1562 = arith.addf %1558, %1561 : vector<1x4x16xf32>
    %c301 = arith.constant 301 : index
    %1563 = memref.load %arg2[%c301] : memref<338xf32, #tpu.memory_space<smem>>
    %1564 = vector.broadcast %1563 : f32 to vector<1x4x16xf32>
    %1565 = arith.mulf %1564, %34 : vector<1x4x16xf32>
    %1566 = arith.addf %1562, %1565 : vector<1x4x16xf32>
    %c302 = arith.constant 302 : index
    %1567 = memref.load %arg2[%c302] : memref<338xf32, #tpu.memory_space<smem>>
    %1568 = vector.broadcast %1567 : f32 to vector<1x4x16xf32>
    %1569 = arith.mulf %1568, %31 : vector<1x4x16xf32>
    %1570 = arith.addf %1566, %1569 : vector<1x4x16xf32>
    %c303 = arith.constant 303 : index
    %1571 = memref.load %arg2[%c303] : memref<338xf32, #tpu.memory_space<smem>>
    %1572 = vector.broadcast %1571 : f32 to vector<1x4x16xf32>
    %1573 = arith.mulf %1572, %34 : vector<1x4x16xf32>
    %1574 = arith.addf %1570, %1573 : vector<1x4x16xf32>
    %cst_211 = arith.constant 0.000000e+00 : f32
    %1575 = vector.broadcast %cst_211 : f32 to vector<1x4x16xf32>
    %c314 = arith.constant 314 : index
    %1576 = memref.load %arg2[%c314] : memref<338xf32, #tpu.memory_space<smem>>
    %1577 = vector.broadcast %1576 : f32 to vector<1x4x16xf32>
    %1578 = arith.addf %1575, %1577 : vector<1x4x16xf32>
    %c304 = arith.constant 304 : index
    %1579 = memref.load %arg2[%c304] : memref<338xf32, #tpu.memory_space<smem>>
    %1580 = vector.broadcast %1579 : f32 to vector<1x4x16xf32>
    %1581 = arith.mulf %1580, %31 : vector<1x4x16xf32>
    %1582 = arith.addf %1578, %1581 : vector<1x4x16xf32>
    %c305 = arith.constant 305 : index
    %1583 = memref.load %arg2[%c305] : memref<338xf32, #tpu.memory_space<smem>>
    %1584 = vector.broadcast %1583 : f32 to vector<1x4x16xf32>
    %1585 = arith.mulf %1584, %34 : vector<1x4x16xf32>
    %1586 = arith.addf %1582, %1585 : vector<1x4x16xf32>
    %c306 = arith.constant 306 : index
    %1587 = memref.load %arg2[%c306] : memref<338xf32, #tpu.memory_space<smem>>
    %1588 = vector.broadcast %1587 : f32 to vector<1x4x16xf32>
    %1589 = arith.mulf %1588, %31 : vector<1x4x16xf32>
    %1590 = arith.addf %1586, %1589 : vector<1x4x16xf32>
    %c307 = arith.constant 307 : index
    %1591 = memref.load %arg2[%c307] : memref<338xf32, #tpu.memory_space<smem>>
    %1592 = vector.broadcast %1591 : f32 to vector<1x4x16xf32>
    %1593 = arith.mulf %1592, %34 : vector<1x4x16xf32>
    %1594 = arith.addf %1590, %1593 : vector<1x4x16xf32>
    %cst_212 = arith.constant 0.000000e+00 : f32
    %1595 = vector.broadcast %cst_212 : f32 to vector<1x4x16xf32>
    %c315 = arith.constant 315 : index
    %1596 = memref.load %arg2[%c315] : memref<338xf32, #tpu.memory_space<smem>>
    %1597 = vector.broadcast %1596 : f32 to vector<1x4x16xf32>
    %1598 = arith.addf %1595, %1597 : vector<1x4x16xf32>
    %c308 = arith.constant 308 : index
    %1599 = memref.load %arg2[%c308] : memref<338xf32, #tpu.memory_space<smem>>
    %1600 = vector.broadcast %1599 : f32 to vector<1x4x16xf32>
    %1601 = arith.mulf %1600, %31 : vector<1x4x16xf32>
    %1602 = arith.addf %1598, %1601 : vector<1x4x16xf32>
    %c309 = arith.constant 309 : index
    %1603 = memref.load %arg2[%c309] : memref<338xf32, #tpu.memory_space<smem>>
    %1604 = vector.broadcast %1603 : f32 to vector<1x4x16xf32>
    %1605 = arith.mulf %1604, %34 : vector<1x4x16xf32>
    %1606 = arith.addf %1602, %1605 : vector<1x4x16xf32>
    %c310 = arith.constant 310 : index
    %1607 = memref.load %arg2[%c310] : memref<338xf32, #tpu.memory_space<smem>>
    %1608 = vector.broadcast %1607 : f32 to vector<1x4x16xf32>
    %1609 = arith.mulf %1608, %31 : vector<1x4x16xf32>
    %1610 = arith.addf %1606, %1609 : vector<1x4x16xf32>
    %c311 = arith.constant 311 : index
    %1611 = memref.load %arg2[%c311] : memref<338xf32, #tpu.memory_space<smem>>
    %1612 = vector.broadcast %1611 : f32 to vector<1x4x16xf32>
    %1613 = arith.mulf %1612, %34 : vector<1x4x16xf32>
    %1614 = arith.addf %1610, %1613 : vector<1x4x16xf32>
    %1615 = arith.addf %1519, %1554 : vector<1x4x16xf32>
    %1616 = arith.addf %1524, %1574 : vector<1x4x16xf32>
    %1617 = arith.addf %1529, %1594 : vector<1x4x16xf32>
    %1618 = arith.addf %1534, %1614 : vector<1x4x16xf32>
    %cst_213 = arith.constant 0.000000e+00 : f32
    %1619 = vector.broadcast %cst_213 : f32 to vector<1x4x16xf32>
    %c1_i32_214 = arith.constant 1 : i32
    %1620 = tpu.dynamic_rotate %1615 by %c1_i32_214 dim 1 : vector<1x4x16xf32>, i32 -> vector<1x4x16xf32>
    %c1_i32_215 = arith.constant 1 : i32
    %1621 = tpu.dynamic_rotate %1620 by %c1_i32_215 dim 2 : vector<1x4x16xf32>, i32 -> vector<1x4x16xf32>
    %cst_216 = arith.constant 0.000000e+00 : f32
    %1622 = vector.broadcast %cst_216 : f32 to vector<1x4x16xf32>
    %1623 = arith.select %7, %1621, %1622 : vector<1x4x16xi1>, vector<1x4x16xf32>
    %c320 = arith.constant 320 : index
    %1624 = memref.load %arg2[%c320] : memref<338xf32, #tpu.memory_space<smem>>
    %1625 = vector.broadcast %1624 : f32 to vector<1x4x16xf32>
    %1626 = arith.mulf %1625, %1623 : vector<1x4x16xf32>
    %1627 = arith.addf %1619, %1626 : vector<1x4x16xf32>
    %c1_i32_217 = arith.constant 1 : i32
    %1628 = tpu.dynamic_rotate %1616 by %c1_i32_217 dim 1 : vector<1x4x16xf32>, i32 -> vector<1x4x16xf32>
    %c1_i32_218 = arith.constant 1 : i32
    %1629 = tpu.dynamic_rotate %1628 by %c1_i32_218 dim 2 : vector<1x4x16xf32>, i32 -> vector<1x4x16xf32>
    %cst_219 = arith.constant 0.000000e+00 : f32
    %1630 = vector.broadcast %cst_219 : f32 to vector<1x4x16xf32>
    %1631 = arith.select %7, %1629, %1630 : vector<1x4x16xi1>, vector<1x4x16xf32>
    %c329 = arith.constant 329 : index
    %1632 = memref.load %arg2[%c329] : memref<338xf32, #tpu.memory_space<smem>>
    %1633 = vector.broadcast %1632 : f32 to vector<1x4x16xf32>
    %1634 = arith.mulf %1633, %1631 : vector<1x4x16xf32>
    %1635 = arith.addf %1627, %1634 : vector<1x4x16xf32>
    %c1_i32_220 = arith.constant 1 : i32
    %1636 = tpu.dynamic_rotate %1615 by %c1_i32_220 dim 1 : vector<1x4x16xf32>, i32 -> vector<1x4x16xf32>
    %cst_221 = arith.constant 0.000000e+00 : f32
    %1637 = vector.broadcast %cst_221 : f32 to vector<1x4x16xf32>
    %1638 = arith.select %9, %1636, %1637 : vector<1x4x16xi1>, vector<1x4x16xf32>
    %c321 = arith.constant 321 : index
    %1639 = memref.load %arg2[%c321] : memref<338xf32, #tpu.memory_space<smem>>
    %1640 = vector.broadcast %1639 : f32 to vector<1x4x16xf32>
    %1641 = arith.mulf %1640, %1638 : vector<1x4x16xf32>
    %1642 = arith.addf %1635, %1641 : vector<1x4x16xf32>
    %c1_i32_222 = arith.constant 1 : i32
    %1643 = tpu.dynamic_rotate %1616 by %c1_i32_222 dim 1 : vector<1x4x16xf32>, i32 -> vector<1x4x16xf32>
    %cst_223 = arith.constant 0.000000e+00 : f32
    %1644 = vector.broadcast %cst_223 : f32 to vector<1x4x16xf32>
    %1645 = arith.select %9, %1643, %1644 : vector<1x4x16xi1>, vector<1x4x16xf32>
    %c330 = arith.constant 330 : index
    %1646 = memref.load %arg2[%c330] : memref<338xf32, #tpu.memory_space<smem>>
    %1647 = vector.broadcast %1646 : f32 to vector<1x4x16xf32>
    %1648 = arith.mulf %1647, %1645 : vector<1x4x16xf32>
    %1649 = arith.addf %1642, %1648 : vector<1x4x16xf32>
    %c1_i32_224 = arith.constant 1 : i32
    %1650 = tpu.dynamic_rotate %1615 by %c1_i32_224 dim 1 : vector<1x4x16xf32>, i32 -> vector<1x4x16xf32>
    %c15_i32_225 = arith.constant 15 : i32
    %1651 = tpu.dynamic_rotate %1650 by %c15_i32_225 dim 2 : vector<1x4x16xf32>, i32 -> vector<1x4x16xf32>
    %cst_226 = arith.constant 0.000000e+00 : f32
    %1652 = vector.broadcast %cst_226 : f32 to vector<1x4x16xf32>
    %1653 = arith.select %14, %1651, %1652 : vector<1x4x16xi1>, vector<1x4x16xf32>
    %c322 = arith.constant 322 : index
    %1654 = memref.load %arg2[%c322] : memref<338xf32, #tpu.memory_space<smem>>
    %1655 = vector.broadcast %1654 : f32 to vector<1x4x16xf32>
    %1656 = arith.mulf %1655, %1653 : vector<1x4x16xf32>
    %1657 = arith.addf %1649, %1656 : vector<1x4x16xf32>
    %c1_i32_227 = arith.constant 1 : i32
    %1658 = tpu.dynamic_rotate %1616 by %c1_i32_227 dim 1 : vector<1x4x16xf32>, i32 -> vector<1x4x16xf32>
    %c15_i32_228 = arith.constant 15 : i32
    %1659 = tpu.dynamic_rotate %1658 by %c15_i32_228 dim 2 : vector<1x4x16xf32>, i32 -> vector<1x4x16xf32>
    %cst_229 = arith.constant 0.000000e+00 : f32
    %1660 = vector.broadcast %cst_229 : f32 to vector<1x4x16xf32>
    %1661 = arith.select %14, %1659, %1660 : vector<1x4x16xi1>, vector<1x4x16xf32>
    %c331 = arith.constant 331 : index
    %1662 = memref.load %arg2[%c331] : memref<338xf32, #tpu.memory_space<smem>>
    %1663 = vector.broadcast %1662 : f32 to vector<1x4x16xf32>
    %1664 = arith.mulf %1663, %1661 : vector<1x4x16xf32>
    %1665 = arith.addf %1657, %1664 : vector<1x4x16xf32>
    %c1_i32_230 = arith.constant 1 : i32
    %1666 = tpu.dynamic_rotate %1615 by %c1_i32_230 dim 2 : vector<1x4x16xf32>, i32 -> vector<1x4x16xf32>
    %cst_231 = arith.constant 0.000000e+00 : f32
    %1667 = vector.broadcast %cst_231 : f32 to vector<1x4x16xf32>
    %1668 = arith.select %16, %1666, %1667 : vector<1x4x16xi1>, vector<1x4x16xf32>
    %c323 = arith.constant 323 : index
    %1669 = memref.load %arg2[%c323] : memref<338xf32, #tpu.memory_space<smem>>
    %1670 = vector.broadcast %1669 : f32 to vector<1x4x16xf32>
    %1671 = arith.mulf %1670, %1668 : vector<1x4x16xf32>
    %1672 = arith.addf %1665, %1671 : vector<1x4x16xf32>
    %c1_i32_232 = arith.constant 1 : i32
    %1673 = tpu.dynamic_rotate %1616 by %c1_i32_232 dim 2 : vector<1x4x16xf32>, i32 -> vector<1x4x16xf32>
    %cst_233 = arith.constant 0.000000e+00 : f32
    %1674 = vector.broadcast %cst_233 : f32 to vector<1x4x16xf32>
    %1675 = arith.select %16, %1673, %1674 : vector<1x4x16xi1>, vector<1x4x16xf32>
    %c332 = arith.constant 332 : index
    %1676 = memref.load %arg2[%c332] : memref<338xf32, #tpu.memory_space<smem>>
    %1677 = vector.broadcast %1676 : f32 to vector<1x4x16xf32>
    %1678 = arith.mulf %1677, %1675 : vector<1x4x16xf32>
    %1679 = arith.addf %1672, %1678 : vector<1x4x16xf32>
    %c324 = arith.constant 324 : index
    %1680 = memref.load %arg2[%c324] : memref<338xf32, #tpu.memory_space<smem>>
    %1681 = vector.broadcast %1680 : f32 to vector<1x4x16xf32>
    %1682 = arith.mulf %1681, %1615 : vector<1x4x16xf32>
    %1683 = arith.addf %1679, %1682 : vector<1x4x16xf32>
    %c333 = arith.constant 333 : index
    %1684 = memref.load %arg2[%c333] : memref<338xf32, #tpu.memory_space<smem>>
    %1685 = vector.broadcast %1684 : f32 to vector<1x4x16xf32>
    %1686 = arith.mulf %1685, %1616 : vector<1x4x16xf32>
    %1687 = arith.addf %1683, %1686 : vector<1x4x16xf32>
    %c15_i32_234 = arith.constant 15 : i32
    %1688 = tpu.dynamic_rotate %1615 by %c15_i32_234 dim 2 : vector<1x4x16xf32>, i32 -> vector<1x4x16xf32>
    %cst_235 = arith.constant 0.000000e+00 : f32
    %1689 = vector.broadcast %cst_235 : f32 to vector<1x4x16xf32>
    %1690 = arith.select %18, %1688, %1689 : vector<1x4x16xi1>, vector<1x4x16xf32>
    %c325 = arith.constant 325 : index
    %1691 = memref.load %arg2[%c325] : memref<338xf32, #tpu.memory_space<smem>>
    %1692 = vector.broadcast %1691 : f32 to vector<1x4x16xf32>
    %1693 = arith.mulf %1692, %1690 : vector<1x4x16xf32>
    %1694 = arith.addf %1687, %1693 : vector<1x4x16xf32>
    %c15_i32_236 = arith.constant 15 : i32
    %1695 = tpu.dynamic_rotate %1616 by %c15_i32_236 dim 2 : vector<1x4x16xf32>, i32 -> vector<1x4x16xf32>
    %cst_237 = arith.constant 0.000000e+00 : f32
    %1696 = vector.broadcast %cst_237 : f32 to vector<1x4x16xf32>
    %1697 = arith.select %18, %1695, %1696 : vector<1x4x16xi1>, vector<1x4x16xf32>
    %c334 = arith.constant 334 : index
    %1698 = memref.load %arg2[%c334] : memref<338xf32, #tpu.memory_space<smem>>
    %1699 = vector.broadcast %1698 : f32 to vector<1x4x16xf32>
    %1700 = arith.mulf %1699, %1697 : vector<1x4x16xf32>
    %1701 = arith.addf %1694, %1700 : vector<1x4x16xf32>
    %c3_i32_238 = arith.constant 3 : i32
    %1702 = tpu.dynamic_rotate %1615 by %c3_i32_238 dim 1 : vector<1x4x16xf32>, i32 -> vector<1x4x16xf32>
    %c1_i32_239 = arith.constant 1 : i32
    %1703 = tpu.dynamic_rotate %1702 by %c1_i32_239 dim 2 : vector<1x4x16xf32>, i32 -> vector<1x4x16xf32>
    %cst_240 = arith.constant 0.000000e+00 : f32
    %1704 = vector.broadcast %cst_240 : f32 to vector<1x4x16xf32>
    %1705 = arith.select %23, %1703, %1704 : vector<1x4x16xi1>, vector<1x4x16xf32>
    %c326 = arith.constant 326 : index
    %1706 = memref.load %arg2[%c326] : memref<338xf32, #tpu.memory_space<smem>>
    %1707 = vector.broadcast %1706 : f32 to vector<1x4x16xf32>
    %1708 = arith.mulf %1707, %1705 : vector<1x4x16xf32>
    %1709 = arith.addf %1701, %1708 : vector<1x4x16xf32>
    %c3_i32_241 = arith.constant 3 : i32
    %1710 = tpu.dynamic_rotate %1616 by %c3_i32_241 dim 1 : vector<1x4x16xf32>, i32 -> vector<1x4x16xf32>
    %c1_i32_242 = arith.constant 1 : i32
    %1711 = tpu.dynamic_rotate %1710 by %c1_i32_242 dim 2 : vector<1x4x16xf32>, i32 -> vector<1x4x16xf32>
    %cst_243 = arith.constant 0.000000e+00 : f32
    %1712 = vector.broadcast %cst_243 : f32 to vector<1x4x16xf32>
    %1713 = arith.select %23, %1711, %1712 : vector<1x4x16xi1>, vector<1x4x16xf32>
    %c335 = arith.constant 335 : index
    %1714 = memref.load %arg2[%c335] : memref<338xf32, #tpu.memory_space<smem>>
    %1715 = vector.broadcast %1714 : f32 to vector<1x4x16xf32>
    %1716 = arith.mulf %1715, %1713 : vector<1x4x16xf32>
    %1717 = arith.addf %1709, %1716 : vector<1x4x16xf32>
    %c3_i32_244 = arith.constant 3 : i32
    %1718 = tpu.dynamic_rotate %1615 by %c3_i32_244 dim 1 : vector<1x4x16xf32>, i32 -> vector<1x4x16xf32>
    %cst_245 = arith.constant 0.000000e+00 : f32
    %1719 = vector.broadcast %cst_245 : f32 to vector<1x4x16xf32>
    %1720 = arith.select %25, %1718, %1719 : vector<1x4x16xi1>, vector<1x4x16xf32>
    %c327 = arith.constant 327 : index
    %1721 = memref.load %arg2[%c327] : memref<338xf32, #tpu.memory_space<smem>>
    %1722 = vector.broadcast %1721 : f32 to vector<1x4x16xf32>
    %1723 = arith.mulf %1722, %1720 : vector<1x4x16xf32>
    %1724 = arith.addf %1717, %1723 : vector<1x4x16xf32>
    %c3_i32_246 = arith.constant 3 : i32
    %1725 = tpu.dynamic_rotate %1616 by %c3_i32_246 dim 1 : vector<1x4x16xf32>, i32 -> vector<1x4x16xf32>
    %cst_247 = arith.constant 0.000000e+00 : f32
    %1726 = vector.broadcast %cst_247 : f32 to vector<1x4x16xf32>
    %1727 = arith.select %25, %1725, %1726 : vector<1x4x16xi1>, vector<1x4x16xf32>
    %c336 = arith.constant 336 : index
    %1728 = memref.load %arg2[%c336] : memref<338xf32, #tpu.memory_space<smem>>
    %1729 = vector.broadcast %1728 : f32 to vector<1x4x16xf32>
    %1730 = arith.mulf %1729, %1727 : vector<1x4x16xf32>
    %1731 = arith.addf %1724, %1730 : vector<1x4x16xf32>
    %c3_i32_248 = arith.constant 3 : i32
    %1732 = tpu.dynamic_rotate %1615 by %c3_i32_248 dim 1 : vector<1x4x16xf32>, i32 -> vector<1x4x16xf32>
    %c15_i32_249 = arith.constant 15 : i32
    %1733 = tpu.dynamic_rotate %1732 by %c15_i32_249 dim 2 : vector<1x4x16xf32>, i32 -> vector<1x4x16xf32>
    %cst_250 = arith.constant 0.000000e+00 : f32
    %1734 = vector.broadcast %cst_250 : f32 to vector<1x4x16xf32>
    %1735 = arith.select %30, %1733, %1734 : vector<1x4x16xi1>, vector<1x4x16xf32>
    %c328 = arith.constant 328 : index
    %1736 = memref.load %arg2[%c328] : memref<338xf32, #tpu.memory_space<smem>>
    %1737 = vector.broadcast %1736 : f32 to vector<1x4x16xf32>
    %1738 = arith.mulf %1737, %1735 : vector<1x4x16xf32>
    %1739 = arith.addf %1731, %1738 : vector<1x4x16xf32>
    %c3_i32_251 = arith.constant 3 : i32
    %1740 = tpu.dynamic_rotate %1616 by %c3_i32_251 dim 1 : vector<1x4x16xf32>, i32 -> vector<1x4x16xf32>
    %c15_i32_252 = arith.constant 15 : i32
    %1741 = tpu.dynamic_rotate %1740 by %c15_i32_252 dim 2 : vector<1x4x16xf32>, i32 -> vector<1x4x16xf32>
    %cst_253 = arith.constant 0.000000e+00 : f32
    %1742 = vector.broadcast %cst_253 : f32 to vector<1x4x16xf32>
    %1743 = arith.select %30, %1741, %1742 : vector<1x4x16xi1>, vector<1x4x16xf32>
    %c337 = arith.constant 337 : index
    %1744 = memref.load %arg2[%c337] : memref<338xf32, #tpu.memory_space<smem>>
    %1745 = vector.broadcast %1744 : f32 to vector<1x4x16xf32>
    %1746 = arith.mulf %1745, %1743 : vector<1x4x16xf32>
    %1747 = arith.addf %1739, %1746 : vector<1x4x16xf32>
    %cst_254 = arith.constant 0.000000e+00 : f32
    %1748 = vector.broadcast %cst_254 : f32 to vector<1x4x16xf32>
    %c1_i32_255 = arith.constant 1 : i32
    %1749 = tpu.dynamic_rotate %1617 by %c1_i32_255 dim 1 : vector<1x4x16xf32>, i32 -> vector<1x4x16xf32>
    %c1_i32_256 = arith.constant 1 : i32
    %1750 = tpu.dynamic_rotate %1749 by %c1_i32_256 dim 2 : vector<1x4x16xf32>, i32 -> vector<1x4x16xf32>
    %cst_257 = arith.constant 0.000000e+00 : f32
    %1751 = vector.broadcast %cst_257 : f32 to vector<1x4x16xf32>
    %1752 = arith.select %7, %1750, %1751 : vector<1x4x16xi1>, vector<1x4x16xf32>
    %c320_258 = arith.constant 320 : index
    %1753 = memref.load %arg2[%c320_258] : memref<338xf32, #tpu.memory_space<smem>>
    %1754 = vector.broadcast %1753 : f32 to vector<1x4x16xf32>
    %1755 = arith.mulf %1754, %1752 : vector<1x4x16xf32>
    %1756 = arith.addf %1748, %1755 : vector<1x4x16xf32>
    %c1_i32_259 = arith.constant 1 : i32
    %1757 = tpu.dynamic_rotate %1618 by %c1_i32_259 dim 1 : vector<1x4x16xf32>, i32 -> vector<1x4x16xf32>
    %c1_i32_260 = arith.constant 1 : i32
    %1758 = tpu.dynamic_rotate %1757 by %c1_i32_260 dim 2 : vector<1x4x16xf32>, i32 -> vector<1x4x16xf32>
    %cst_261 = arith.constant 0.000000e+00 : f32
    %1759 = vector.broadcast %cst_261 : f32 to vector<1x4x16xf32>
    %1760 = arith.select %7, %1758, %1759 : vector<1x4x16xi1>, vector<1x4x16xf32>
    %c329_262 = arith.constant 329 : index
    %1761 = memref.load %arg2[%c329_262] : memref<338xf32, #tpu.memory_space<smem>>
    %1762 = vector.broadcast %1761 : f32 to vector<1x4x16xf32>
    %1763 = arith.mulf %1762, %1760 : vector<1x4x16xf32>
    %1764 = arith.addf %1756, %1763 : vector<1x4x16xf32>
    %c1_i32_263 = arith.constant 1 : i32
    %1765 = tpu.dynamic_rotate %1617 by %c1_i32_263 dim 1 : vector<1x4x16xf32>, i32 -> vector<1x4x16xf32>
    %cst_264 = arith.constant 0.000000e+00 : f32
    %1766 = vector.broadcast %cst_264 : f32 to vector<1x4x16xf32>
    %1767 = arith.select %9, %1765, %1766 : vector<1x4x16xi1>, vector<1x4x16xf32>
    %c321_265 = arith.constant 321 : index
    %1768 = memref.load %arg2[%c321_265] : memref<338xf32, #tpu.memory_space<smem>>
    %1769 = vector.broadcast %1768 : f32 to vector<1x4x16xf32>
    %1770 = arith.mulf %1769, %1767 : vector<1x4x16xf32>
    %1771 = arith.addf %1764, %1770 : vector<1x4x16xf32>
    %c1_i32_266 = arith.constant 1 : i32
    %1772 = tpu.dynamic_rotate %1618 by %c1_i32_266 dim 1 : vector<1x4x16xf32>, i32 -> vector<1x4x16xf32>
    %cst_267 = arith.constant 0.000000e+00 : f32
    %1773 = vector.broadcast %cst_267 : f32 to vector<1x4x16xf32>
    %1774 = arith.select %9, %1772, %1773 : vector<1x4x16xi1>, vector<1x4x16xf32>
    %c330_268 = arith.constant 330 : index
    %1775 = memref.load %arg2[%c330_268] : memref<338xf32, #tpu.memory_space<smem>>
    %1776 = vector.broadcast %1775 : f32 to vector<1x4x16xf32>
    %1777 = arith.mulf %1776, %1774 : vector<1x4x16xf32>
    %1778 = arith.addf %1771, %1777 : vector<1x4x16xf32>
    %c1_i32_269 = arith.constant 1 : i32
    %1779 = tpu.dynamic_rotate %1617 by %c1_i32_269 dim 1 : vector<1x4x16xf32>, i32 -> vector<1x4x16xf32>
    %c15_i32_270 = arith.constant 15 : i32
    %1780 = tpu.dynamic_rotate %1779 by %c15_i32_270 dim 2 : vector<1x4x16xf32>, i32 -> vector<1x4x16xf32>
    %cst_271 = arith.constant 0.000000e+00 : f32
    %1781 = vector.broadcast %cst_271 : f32 to vector<1x4x16xf32>
    %1782 = arith.select %14, %1780, %1781 : vector<1x4x16xi1>, vector<1x4x16xf32>
    %c322_272 = arith.constant 322 : index
    %1783 = memref.load %arg2[%c322_272] : memref<338xf32, #tpu.memory_space<smem>>
    %1784 = vector.broadcast %1783 : f32 to vector<1x4x16xf32>
    %1785 = arith.mulf %1784, %1782 : vector<1x4x16xf32>
    %1786 = arith.addf %1778, %1785 : vector<1x4x16xf32>
    %c1_i32_273 = arith.constant 1 : i32
    %1787 = tpu.dynamic_rotate %1618 by %c1_i32_273 dim 1 : vector<1x4x16xf32>, i32 -> vector<1x4x16xf32>
    %c15_i32_274 = arith.constant 15 : i32
    %1788 = tpu.dynamic_rotate %1787 by %c15_i32_274 dim 2 : vector<1x4x16xf32>, i32 -> vector<1x4x16xf32>
    %cst_275 = arith.constant 0.000000e+00 : f32
    %1789 = vector.broadcast %cst_275 : f32 to vector<1x4x16xf32>
    %1790 = arith.select %14, %1788, %1789 : vector<1x4x16xi1>, vector<1x4x16xf32>
    %c331_276 = arith.constant 331 : index
    %1791 = memref.load %arg2[%c331_276] : memref<338xf32, #tpu.memory_space<smem>>
    %1792 = vector.broadcast %1791 : f32 to vector<1x4x16xf32>
    %1793 = arith.mulf %1792, %1790 : vector<1x4x16xf32>
    %1794 = arith.addf %1786, %1793 : vector<1x4x16xf32>
    %c1_i32_277 = arith.constant 1 : i32
    %1795 = tpu.dynamic_rotate %1617 by %c1_i32_277 dim 2 : vector<1x4x16xf32>, i32 -> vector<1x4x16xf32>
    %cst_278 = arith.constant 0.000000e+00 : f32
    %1796 = vector.broadcast %cst_278 : f32 to vector<1x4x16xf32>
    %1797 = arith.select %16, %1795, %1796 : vector<1x4x16xi1>, vector<1x4x16xf32>
    %c323_279 = arith.constant 323 : index
    %1798 = memref.load %arg2[%c323_279] : memref<338xf32, #tpu.memory_space<smem>>
    %1799 = vector.broadcast %1798 : f32 to vector<1x4x16xf32>
    %1800 = arith.mulf %1799, %1797 : vector<1x4x16xf32>
    %1801 = arith.addf %1794, %1800 : vector<1x4x16xf32>
    %c1_i32_280 = arith.constant 1 : i32
    %1802 = tpu.dynamic_rotate %1618 by %c1_i32_280 dim 2 : vector<1x4x16xf32>, i32 -> vector<1x4x16xf32>
    %cst_281 = arith.constant 0.000000e+00 : f32
    %1803 = vector.broadcast %cst_281 : f32 to vector<1x4x16xf32>
    %1804 = arith.select %16, %1802, %1803 : vector<1x4x16xi1>, vector<1x4x16xf32>
    %c332_282 = arith.constant 332 : index
    %1805 = memref.load %arg2[%c332_282] : memref<338xf32, #tpu.memory_space<smem>>
    %1806 = vector.broadcast %1805 : f32 to vector<1x4x16xf32>
    %1807 = arith.mulf %1806, %1804 : vector<1x4x16xf32>
    %1808 = arith.addf %1801, %1807 : vector<1x4x16xf32>
    %c324_283 = arith.constant 324 : index
    %1809 = memref.load %arg2[%c324_283] : memref<338xf32, #tpu.memory_space<smem>>
    %1810 = vector.broadcast %1809 : f32 to vector<1x4x16xf32>
    %1811 = arith.mulf %1810, %1617 : vector<1x4x16xf32>
    %1812 = arith.addf %1808, %1811 : vector<1x4x16xf32>
    %c333_284 = arith.constant 333 : index
    %1813 = memref.load %arg2[%c333_284] : memref<338xf32, #tpu.memory_space<smem>>
    %1814 = vector.broadcast %1813 : f32 to vector<1x4x16xf32>
    %1815 = arith.mulf %1814, %1618 : vector<1x4x16xf32>
    %1816 = arith.addf %1812, %1815 : vector<1x4x16xf32>
    %c15_i32_285 = arith.constant 15 : i32
    %1817 = tpu.dynamic_rotate %1617 by %c15_i32_285 dim 2 : vector<1x4x16xf32>, i32 -> vector<1x4x16xf32>
    %cst_286 = arith.constant 0.000000e+00 : f32
    %1818 = vector.broadcast %cst_286 : f32 to vector<1x4x16xf32>
    %1819 = arith.select %18, %1817, %1818 : vector<1x4x16xi1>, vector<1x4x16xf32>
    %c325_287 = arith.constant 325 : index
    %1820 = memref.load %arg2[%c325_287] : memref<338xf32, #tpu.memory_space<smem>>
    %1821 = vector.broadcast %1820 : f32 to vector<1x4x16xf32>
    %1822 = arith.mulf %1821, %1819 : vector<1x4x16xf32>
    %1823 = arith.addf %1816, %1822 : vector<1x4x16xf32>
    %c15_i32_288 = arith.constant 15 : i32
    %1824 = tpu.dynamic_rotate %1618 by %c15_i32_288 dim 2 : vector<1x4x16xf32>, i32 -> vector<1x4x16xf32>
    %cst_289 = arith.constant 0.000000e+00 : f32
    %1825 = vector.broadcast %cst_289 : f32 to vector<1x4x16xf32>
    %1826 = arith.select %18, %1824, %1825 : vector<1x4x16xi1>, vector<1x4x16xf32>
    %c334_290 = arith.constant 334 : index
    %1827 = memref.load %arg2[%c334_290] : memref<338xf32, #tpu.memory_space<smem>>
    %1828 = vector.broadcast %1827 : f32 to vector<1x4x16xf32>
    %1829 = arith.mulf %1828, %1826 : vector<1x4x16xf32>
    %1830 = arith.addf %1823, %1829 : vector<1x4x16xf32>
    %c3_i32_291 = arith.constant 3 : i32
    %1831 = tpu.dynamic_rotate %1617 by %c3_i32_291 dim 1 : vector<1x4x16xf32>, i32 -> vector<1x4x16xf32>
    %c1_i32_292 = arith.constant 1 : i32
    %1832 = tpu.dynamic_rotate %1831 by %c1_i32_292 dim 2 : vector<1x4x16xf32>, i32 -> vector<1x4x16xf32>
    %cst_293 = arith.constant 0.000000e+00 : f32
    %1833 = vector.broadcast %cst_293 : f32 to vector<1x4x16xf32>
    %1834 = arith.select %23, %1832, %1833 : vector<1x4x16xi1>, vector<1x4x16xf32>
    %c326_294 = arith.constant 326 : index
    %1835 = memref.load %arg2[%c326_294] : memref<338xf32, #tpu.memory_space<smem>>
    %1836 = vector.broadcast %1835 : f32 to vector<1x4x16xf32>
    %1837 = arith.mulf %1836, %1834 : vector<1x4x16xf32>
    %1838 = arith.addf %1830, %1837 : vector<1x4x16xf32>
    %c3_i32_295 = arith.constant 3 : i32
    %1839 = tpu.dynamic_rotate %1618 by %c3_i32_295 dim 1 : vector<1x4x16xf32>, i32 -> vector<1x4x16xf32>
    %c1_i32_296 = arith.constant 1 : i32
    %1840 = tpu.dynamic_rotate %1839 by %c1_i32_296 dim 2 : vector<1x4x16xf32>, i32 -> vector<1x4x16xf32>
    %cst_297 = arith.constant 0.000000e+00 : f32
    %1841 = vector.broadcast %cst_297 : f32 to vector<1x4x16xf32>
    %1842 = arith.select %23, %1840, %1841 : vector<1x4x16xi1>, vector<1x4x16xf32>
    %c335_298 = arith.constant 335 : index
    %1843 = memref.load %arg2[%c335_298] : memref<338xf32, #tpu.memory_space<smem>>
    %1844 = vector.broadcast %1843 : f32 to vector<1x4x16xf32>
    %1845 = arith.mulf %1844, %1842 : vector<1x4x16xf32>
    %1846 = arith.addf %1838, %1845 : vector<1x4x16xf32>
    %c3_i32_299 = arith.constant 3 : i32
    %1847 = tpu.dynamic_rotate %1617 by %c3_i32_299 dim 1 : vector<1x4x16xf32>, i32 -> vector<1x4x16xf32>
    %cst_300 = arith.constant 0.000000e+00 : f32
    %1848 = vector.broadcast %cst_300 : f32 to vector<1x4x16xf32>
    %1849 = arith.select %25, %1847, %1848 : vector<1x4x16xi1>, vector<1x4x16xf32>
    %c327_301 = arith.constant 327 : index
    %1850 = memref.load %arg2[%c327_301] : memref<338xf32, #tpu.memory_space<smem>>
    %1851 = vector.broadcast %1850 : f32 to vector<1x4x16xf32>
    %1852 = arith.mulf %1851, %1849 : vector<1x4x16xf32>
    %1853 = arith.addf %1846, %1852 : vector<1x4x16xf32>
    %c3_i32_302 = arith.constant 3 : i32
    %1854 = tpu.dynamic_rotate %1618 by %c3_i32_302 dim 1 : vector<1x4x16xf32>, i32 -> vector<1x4x16xf32>
    %cst_303 = arith.constant 0.000000e+00 : f32
    %1855 = vector.broadcast %cst_303 : f32 to vector<1x4x16xf32>
    %1856 = arith.select %25, %1854, %1855 : vector<1x4x16xi1>, vector<1x4x16xf32>
    %c336_304 = arith.constant 336 : index
    %1857 = memref.load %arg2[%c336_304] : memref<338xf32, #tpu.memory_space<smem>>
    %1858 = vector.broadcast %1857 : f32 to vector<1x4x16xf32>
    %1859 = arith.mulf %1858, %1856 : vector<1x4x16xf32>
    %1860 = arith.addf %1853, %1859 : vector<1x4x16xf32>
    %c3_i32_305 = arith.constant 3 : i32
    %1861 = tpu.dynamic_rotate %1617 by %c3_i32_305 dim 1 : vector<1x4x16xf32>, i32 -> vector<1x4x16xf32>
    %c15_i32_306 = arith.constant 15 : i32
    %1862 = tpu.dynamic_rotate %1861 by %c15_i32_306 dim 2 : vector<1x4x16xf32>, i32 -> vector<1x4x16xf32>
    %cst_307 = arith.constant 0.000000e+00 : f32
    %1863 = vector.broadcast %cst_307 : f32 to vector<1x4x16xf32>
    %1864 = arith.select %30, %1862, %1863 : vector<1x4x16xi1>, vector<1x4x16xf32>
    %c328_308 = arith.constant 328 : index
    %1865 = memref.load %arg2[%c328_308] : memref<338xf32, #tpu.memory_space<smem>>
    %1866 = vector.broadcast %1865 : f32 to vector<1x4x16xf32>
    %1867 = arith.mulf %1866, %1864 : vector<1x4x16xf32>
    %1868 = arith.addf %1860, %1867 : vector<1x4x16xf32>
    %c3_i32_309 = arith.constant 3 : i32
    %1869 = tpu.dynamic_rotate %1618 by %c3_i32_309 dim 1 : vector<1x4x16xf32>, i32 -> vector<1x4x16xf32>
    %c15_i32_310 = arith.constant 15 : i32
    %1870 = tpu.dynamic_rotate %1869 by %c15_i32_310 dim 2 : vector<1x4x16xf32>, i32 -> vector<1x4x16xf32>
    %cst_311 = arith.constant 0.000000e+00 : f32
    %1871 = vector.broadcast %cst_311 : f32 to vector<1x4x16xf32>
    %1872 = arith.select %30, %1870, %1871 : vector<1x4x16xi1>, vector<1x4x16xf32>
    %c337_312 = arith.constant 337 : index
    %1873 = memref.load %arg2[%c337_312] : memref<338xf32, #tpu.memory_space<smem>>
    %1874 = vector.broadcast %1873 : f32 to vector<1x4x16xf32>
    %1875 = arith.mulf %1874, %1872 : vector<1x4x16xf32>
    %1876 = arith.addf %1868, %1875 : vector<1x4x16xf32>
    %cst_313 = arith.constant 0.000000e+00 : f32
    %1877 = vector.broadcast %cst_313 : f32 to vector<1x4x16xf32>
    %1878 = arith.subf %1877, %1747 : vector<1x4x16xf32>
    %1879 = math.exp %1878 : vector<1x4x16xf32>
    %cst_314 = arith.constant 1.000000e+00 : f32
    %1880 = vector.broadcast %cst_314 : f32 to vector<1x4x16xf32>
    %1881 = arith.addf %1880, %1879 : vector<1x4x16xf32>
    %cst_315 = arith.constant 1.000000e+00 : f32
    %1882 = vector.broadcast %cst_315 : f32 to vector<1x4x16xf32>
    %1883 = arith.divf %1882, %1881 : vector<1x4x16xf32>
    %cst_316 = arith.constant 0.000000e+00 : f32
    %1884 = vector.broadcast %cst_316 : f32 to vector<1x4x16xf32>
    %1885 = arith.subf %1884, %1876 : vector<1x4x16xf32>
    %1886 = math.exp %1885 : vector<1x4x16xf32>
    %cst_317 = arith.constant 1.000000e+00 : f32
    %1887 = vector.broadcast %cst_317 : f32 to vector<1x4x16xf32>
    %1888 = arith.addf %1887, %1886 : vector<1x4x16xf32>
    %cst_318 = arith.constant 1.000000e+00 : f32
    %1889 = vector.broadcast %cst_318 : f32 to vector<1x4x16xf32>
    %1890 = arith.divf %1889, %1888 : vector<1x4x16xf32>
    %1891 = arith.addf %1883, %1890 : vector<1x4x16xf32>
    %cst_319 = arith.constant 5.000000e-01 : f32
    %1892 = vector.broadcast %cst_319 : f32 to vector<1x4x16xf32>
    %1893 = arith.mulf %1892, %1891 : vector<1x4x16xf32>
    %1894 = vector.shape_cast %1893 : vector<1x4x16xf32> to vector<1x4x1x16xf32>
    %1895 = vector.broadcast %1894 : vector<1x4x1x16xf32> to vector<1x4x16x16xf32>
    %1896 = arith.mulf %0, %1895 : vector<1x4x16x16xf32>
    %c0_320 = arith.constant 0 : index
    %c0_321 = arith.constant 0 : index
    %c0_322 = arith.constant 0 : index
    %c0_323 = arith.constant 0 : index
    %1897 = vector.load %arg3[%c0_320, %c0_321, %c0_322, %c0_323] : memref<1x4x16x16xf32, #tpu.memory_space<vmem>>, vector<1x4x16x16xf32>
    tpu.vector_store %arg3[%c0_320, %c0_321, %c0_322, %c0_323], %1896 {strides = array<i32>} : memref<1x4x16x16xf32, #tpu.memory_space<vmem>>, vector<1x4x16x16xf32>,
    return
  }
  func.func @transform_0(%arg0: i32) -> (i32, i32, i32, i32) {
    %c0_i32 = arith.constant 0 : i32
    %c0_i32_0 = arith.constant 0 : i32
    %c0_i32_1 = arith.constant 0 : i32
    %c0_i32_2 = arith.constant 0 : i32
    return %arg0, %c0_i32, %c0_i32_0, %c0_i32_1 : i32, i32, i32, i32
  }
  func.func @transform_1(%arg0: i32) -> i32 {
    %c0_i32 = arith.constant 0 : i32
    %c0_i32_0 = arith.constant 0 : i32
    return %c0_i32 : i32
  }
  func.func @transform_2(%arg0: i32) -> (i32, i32, i32, i32) {
    %c0_i32 = arith.constant 0 : i32
    %c0_i32_0 = arith.constant 0 : i32
    %c0_i32_1 = arith.constant 0 : i32
    %c0_i32_2 = arith.constant 0 : i32
    return %arg0, %c0_i32, %c0_i32_0, %c0_i32_1 : i32, i32, i32, i32
  }
}

</mosaic_0001>

<bundles_post_ra>
// kernel: tpu_custom_call.1
= control target key start
LH: loop header
LB: loop body
LE: loop exit
PB: predicated region body
PF: predicated region fallthrough
CT: control target
= control target key end

     0   :  { %s6278_s0 = inlined_call_operand.hbm [shape: f32[2,4,16,16], index: 0, kind: input, shape index: {}]   ;;  %s6279_s1 = inlined_call_operand.hbm [shape: f32[338], index: 1, kind: input, shape index: {}]   ;;  %s6280_s2 = inlined_call_operand.hbm [shape: f32[2,4,16,16], index: 2, kind: output, shape index: {}]  }
   0x1   :  { %6500 = sst [smem:[#allocation153_spill]] %s6278_s0 }
   0x2   :  { %6501 = sst [smem:[#allocation154_spill]] %s6279_s1 }
   0x3   :  { %6502 = sst [smem:[#allocation155_spill]] %s6280_s2 }
   0x4   :  { %7 = vsyncpa [#allocation3], 0 }
   0x5   :  { %9 = vsyncpa [#allocation3 + $0x1], 0 }
   0x6   :  { %10 = vsyncpa [#allocation5], 0 }
   0x7   :  { %11 = vsyncpa [#allocation4], 0 }
   0x8   :  { %13 = vsyncpa [#allocation4 + $0x1], 0  ;;  %s3364_s9 = smov 0   ;;  %s3366_s10 = smov 0  }
   0x9   :  { %s3368_s11 = smov 0   ;;  %s3370_s12 = smov 0  }
   0xa LB: > { %6503 = sst [smem:[#allocation11_spill]] %s3324_s9  ;;  %s3385_s13 = sadd.s32 4294967295, %s3336_s12   ;;  %s3336_s12 = sphi %s3370_s12, %s7304_s12   ;;  %s3332_s11 = sphi %s3368_s11, %s7307_s11   ;;  %s3328_s10 = sphi %s3366_s10, %s7306_s10   ;;  %s3324_s9 = sphi %s3364_s9, %s7305_s9  }
   0xb   : > { %6504 = sst [smem:[#allocation12_spill]] %s3328_s10  ;;  %s2783_s14 = sadd.s32 4294967294, %s3336_s12  }
   0xc   : > { %6505 = sst [smem:[#allocation13_spill]] %s3332_s11  ;;  %s3389_s15 = sadd.s32 1, %s3336_s12  }
   0xd   : > { %6506 = sst [smem:[#allocation14_spill]] %s3336_s12  ;;  %s26_s16 = sadd.s32 1, %s3332_s11 }
   0xe   : > { %6507 = sst [smem:[#allocation15_spill]] %s3385_s13  ;;  %s23_s17 = ssub.s32 %s3336_s12, %s3389_s15 }
   0xf   : > { %6508 = sst [smem:[#allocation16_spill]] %s3389_s15  ;;  %p33_p0 = scmp.ne.s32.totalorder %s3332_s11, %s3328_s10 }
  0x10   : > { %p24_p1 = scmp.eq.s32.totalorder %s23_s17, 0  ;;  %p34_p2 = scmp.eq.s32.totalorder %s3336_s12, 0 }
  0x11   : > { %p39_p3 = scmp.ne.s32.totalorder %s3328_s10, %s3324_s9  ;;  %p6281_p4 = scmp.eq.s32.totalorder %s3385_s13, 0 }
  0x12   : > { %s3401_s18 = scalar_select %p24_p1, %s3332_s11, %s26_s16  }
  0x13   : > { %p3403_p5 = por %p34_p2, %p33_p0  ;;  %p3409_p6 = por %p6281_p4, %p39_p3 }
  0x14   : > { %6509 = sst [smem:[#allocation17_spill]] %s3401_s18  ;;  %p84_p7 = scmp.eq.s32.totalorder %s3385_s13, 1 }
  0x15   : > { %s6511_s20 = scalar_select %p3409_p6, 1, 0 }
  0x16   : > { %p90_p8 = scmp.eq.s32.totalorder %s2783_s14, 1  ;;  %p2784_p9 = scmp.ge.s32.totalorder %s3336_s12, 1 }
  0x17   : > { %p97_p10 = scmp.lt.s32.totalorder %s3336_s12, 3  ;;  %p3416_p11 = por %p84_p7, %p33_p0 }
  0x18   : > { %p3420_p12 = por %p90_p8, %p39_p3  ;;  %p3159_p4 = scmp.lt.s32.totalorder %s3336_s12, 2 }
  0x19   : > { %s6512_s21 = scalar_select %p3416_p11, 1, 0 }
  0x1a   : > { %s6514_s22 = scalar_select %p3420_p12, 1, 0 }
  0x1b   : > { %6513 = sst [smem:[#allocation18_spill]] %s6512_s21  ;;  %p3424_p13 = pnand %p2784_p9, %p97_p10 }
  0x1c   : > { %6515 = sst [smem:[#allocation19_spill]] %s6514_s22  ;;  %s119_s24 = sand.u32 1, %s3332_s11  }
  0x1d   : > { %p3146_p2 = pneg %p3424_p13  ;;  %s3136_s25 = sshll.u32 %s3336_s12, 10 }
  0x1e   : > { %p6517_p6 = scmp.eq.s32.totalorder %s3385_s13, 0  ;;  %p3442_p3 = pnand %p3159_p4, %p3403_p5 }
  0x1f   : > { %s2787_s28 = sshll.u32 %s119_s24, 6  ;;  %s6520_s1 = sld [smem:[#allocation154_spill]] }
  0x20   : > { %p3436_p0 = pnand %p3146_p2, %p6517_p6 }
  0x22   : > { %p3225_p6 = pneg %p3436_p0 }
  0x25   : > { %s3223_s3 = scalar_lea.hbm %s6520_s1, 48  ;;  %s3228_s8 = scalar_lea.hbm %s6520_s1, 64 }
  0x26   : > { %p3224_p7 = scmp.ne.s32.totalorder %s6520_s1, %s3223_s3  ;;  %p3229_p4 = scmp.lt.u32.totalorder %s3228_s8, %s3223_s3 }
  0x27   : > { %p3230_p5 = scmp.lt.u32.totalorder %s3223_s3, %s6520_s1 }
  0x28   : > { %p3226_p8 = pnand %p3225_p6, %p3224_p7 }
  0x29   : > { %p3231_p10 = por %p3230_p5, %p3229_p4 }
  0x2a   : > { %p3227_p9 = pneg %p3226_p8 }
  0x2c   : > { %p3232_p2 = pnand %p3231_p10, %p3227_p9 }
  0x2e   : > { %3235 = shalt.err (!%p3232_p2)
}
  0x2f   : > { %s3338_s17 = smov [#allocation6]   ;;  %s6521_s0 = sld [smem:[#allocation153_spill]] }
  0x30   : > { %3149 = dma.hbm_to_smem (!%p3436_p0), %s6520_s1, 48, %s3338_s17, [#allocation5]  }
  0x31   : > { %s123_s3 = scalar_lea.vmem [#allocation2], %s2787_s28  ;;  %s3472_s26 = scalar_lea.sflag [#allocation3], %s119_s24 }
  0x32   : > { %s130_s6 = sshll.u32 %s123_s3, 4  ;;  %p3238_p6 = pneg %p3442_p3  ;;  %s3470_s6 = int_to_ptr.vmem [resolvable:$true] %s130_s6 }
  0x35   : > { %s3468_s5 = scalar_lea.hbm %s6521_s0, %s3136_s25  ;;  %s3241_s14 = scalar_lea.hbm %s6521_s0, 2048 }
  0x36   : > { %s3236_s7 = scalar_lea.hbm %s3468_s5, 1024  ;;  %p3242_p9 = scmp.lt.u32.totalorder %s3468_s5, %s6521_s0 }
  0x37   : > { %p3237_p7 = scmp.ne.s32.totalorder %s3468_s5, %s3236_s7  ;;  %p3243_p4 = scmp.lt.u32.totalorder %s3241_s14, %s3236_s7 }
  0x38   : > { %p3245_p10 = scmp.lt.u32.totalorder %s3236_s7, %s3468_s5 }
  0x39   : > { %p3239_p0 = pnand %p3238_p6, %p3237_p7  ;;  %p3244_p5 = por %p3243_p4, %p3242_p9 }
  0x3b   : > { %p3240_p8 = pneg %p3239_p0  ;;  %p3246_p2 = por %p3245_p10, %p3244_p5 }
  0x3d   : > { %p3247_p1 = pnand %p3246_p2, %p3240_p8 }
  0x3f   : > { %3250 = shalt.err (!%p3247_p1)
}
  0x40   : > { %s3251_s24 = scalar_lea.vmem %s3470_s6, 1024  ;;  %s3339_s28 = smov [#allocation2]  }
  0x41   : > { %p3252_p7 = scmp.ne.s32.totalorder %s3470_s6, %s3251_s24  ;;  %s3256_s19 = sshll.u32 %s3339_s28, 4  ;;  %s3257_s19 = int_to_ptr.vmem [resolvable:$false] %s3256_s19 }
  0x42   : > { %s3258_s29 = scalar_lea.vmem %s3257_s19, 2048  ;;  %p3259_p11 = scmp.lt.s32.totalorder %s3470_s6, %s3257_s19 }
  0x43   : > { %p3254_p0 = pnand %p3252_p7, %p3238_p6  ;;  %p3260_p9 = scmp.lt.s32.totalorder %s3258_s29, %s3251_s24 }
  0x45   : > { %p3255_p12 = pneg %p3254_p0  ;;  %p3261_p4 = por %p3260_p9, %p3259_p11 }
  0x47   : > { %p3262_p5 = pnand %p3261_p4, %p3255_p12 }
  0x49   : > { %3265 = shalt.err (!%p3262_p5)
}
  0x4a   : > { %s3340_s30 = smov 128   ;;  %s3341_s4 = smov 8  }
  0x4b   : > { %3153 = dma.hbm_to_vmem [thread:$0]  (!%p3442_p3), %s3468_s5, 1024, %s3470_s6, %s3472_s26, %s3340_s30, %s3340_s30, %s3341_s4  }
  0x4c   : > { %142 = sbr.rel (%p3424_p13) target bundleno = 1843 (0x733), region = 28 }
  0x53   : > { %s3503_s3 = sand.u32 1, %s3328_s10   ;;  %p6524_p11 = scmp.ne.s32.totalorder %s6511_s20, 0 }
  0x54   : > { %6522 = sst [smem:[#allocation20_spill]] %s3503_s3  ;;  %s6284_s7 = sshll.u32 %s3503_s3, 6 }
  0x55   : > { %s145_s25 = scalar_lea.sflag [#allocation3], %s3503_s3  ;;  %s3509_s8 = scalar_lea.vmem [#allocation2], %s6284_s7 }
  0x56   : > { %6523 = sst [smem:[#allocation21_spill]] %s3509_s8 }
  0x57   : > { %3311 = dma.done.wait (%p6524_p11), %s145_s25, 1024  }
  0x58   : > { %3313 = vsyncadd (%p6524_p11), %s145_s25, 4294966272  ;;  %p6525_p12 = scmp.eq.s32.totalorder %s3385_s13, 0 }
  0x5a   : > { %3315 = dma.done.wait (%p6525_p12), [#allocation5], 48   ;;  %p6526_p13 = pmov %p6525_p12 }
  0x5c   : > { %3317 = vsyncadd (%p6526_p13), [#allocation5], 4294967248 }
  0x5d   : > { %157 = sfence }
  0x5e   : > { %v174_v0 = vld [vmem:[%s3509_s8] sm:$0xff]  ;;  %v175_v1 = vld [vmem:[%s3509_s8 + $0x8] sm:$0xff]  ;;  %v176_v2 = vld [vmem:[%s3509_s8 + $0x10] sm:$0xff]  ;;  %vm6398_vm0 = vcmask 130048   ;;  %vm288_vm1 = vcmask 1041409   ;;  %vm290_vm2 = vcmask 1042434  }
  0x5f   : > { %v177_v3 = vld [vmem:[%s3509_s8 + $0x18] sm:$0xff]  ;;  %v178_v4 = vld [vmem:[%s3509_s8 + $0x20] sm:$0xff]  ;;  %v179_v5 = vld [vmem:[%s3509_s8 + $0x28] sm:$0xff]  ;;  %v195_v6 = vsel %vm6398_vm0, %v174_v0, -inf  ;;  %v196_v7 = vsel %vm6398_vm0, %v175_v1, -inf  ;;  %v204_v8 = vsel %vm6398_vm0, %v176_v2, -inf }
  0x60   : > { %v180_v9 = vld [vmem:[%s3509_s8 + $0x30] sm:$0xff]  ;;  %v181_v10 = vld [vmem:[%s3509_s8 + $0x38] sm:$0xff]  ;;  %v197_v11 = vmax.f32 %v195_v6, %v196_v7  ;;  %v205_v12 = vsel %vm6398_vm0, %v177_v3, -inf  ;;  %v213_v13 = vsel %vm6398_vm0, %v178_v4, -inf  ;;  %v214_v15 = vsel %vm6398_vm0, %v179_v5, -inf  ;;  %s6289_s20 = smov 16  }
  0x61   : > { %v206_v14 = vmax.f32 %v204_v8, %v205_v12  ;;  %v222_v16 = vsel %vm6398_vm0, %v180_v9, -inf  ;;  %v223_v17 = vsel %vm6398_vm0, %v181_v10, -inf  ;;  %v215_v19 = vmax.f32 %v213_v13, %v214_v15  ;;  %s6287_s23 = smov 113   ;;  %s6285_s27 = smov 127  }
  0x62   : > { %v198_v18 = vrot.slane %v197_v11, 4  ;;  %v224_v20 = vmax.f32 %v222_v16, %v223_v17  ;;  %v231_v22 = vsel %vm6398_vm0, %v174_v0, 0.0  ;;  %v232_v26 = vsel %vm6398_vm0, %v175_v1, 0.0  ;;  %s3641_s5 = sld [smem:[#allocation6 + $0x90]]  ;;  %s3643_s6 = sld [smem:[#allocation6 + $0x91]] }
  0x63   : > { %v207_v21 = vrot.slane %v206_v14, 4  ;;  %v216_v24 = vrot.slane %v215_v19, 4  ;;  %v233_v28 = vadd.f32 %v232_v26, %v231_v22  ;;  %v240_v29 = vsel %vm6398_vm0, %v176_v2, 0.0  ;;  %s3645_s26 = sld [smem:[#allocation6 + $0x92]]  ;;  %s3647_s14 = sld [smem:[#allocation6 + $0x93]] }
  0x64   : > { %v199_v23 = vmax.f32 %v197_v11, %v198_v18  ;;  %v225_v25 = vrot.slane %v224_v20, 4  ;;  %v241_v30 = vsel %vm6398_vm0, %v177_v3, 0.0  ;;  %v249_v37 = vsel %vm6398_vm0, %v178_v4, 0.0  ;;  %s3649_s16 = sld [smem:[#allocation6]]  ;;  %s3651_s17 = sld [smem:[#allocation6 + $0x24]] }
  0x65   : > { %v208_v27 = vmax.f32 %v206_v14, %v207_v21  ;;  %v217_v32 = vmax.f32 %v215_v19, %v216_v24  ;;  %v242_v34 = vadd.f32 %v241_v30, %v240_v29  ;;  %v234_v36 = vrot.slane %v233_v28, 4  ;;  %s3653_s24 = sld [smem:[#allocation6 + $0x48]]  ;;  %s3655_s28 = sld [smem:[#allocation6 + $0x6c]] }
  0x66   : > { %v200_v31 = vrot.slane %v199_v23, 2  ;;  %v226_v33 = vmax.f32 %v224_v20, %v225_v25  ;;  %v250_v38 = vsel %vm6398_vm0, %v179_v5, 0.0  ;;  %v258_v46 = vsel %vm6398_vm0, %v180_v9, 0.0  ;;  %s3657_s19 = sld [smem:[#allocation6 + $0x12]]  ;;  %s3659_s29 = sld [smem:[#allocation6 + $0x36]] }
  0x67   : > { %v209_v35 = vrot.slane %v208_v27, 2  ;;  %v218_v40 = vrot.slane %v217_v32, 2  ;;  %v243_v42 = vrot.slane %v242_v34, 4  ;;  %v235_v44 = vadd.f32 %v234_v36, %v233_v28  ;;  %s3661_s30 = sld [smem:[#allocation6 + $0x5a]]  ;;  %s3663_s4 = sld [smem:[#allocation6 + $0x7e]] }
  0x68   : > { %v201_v39 = vmax.f32 %v199_v23, %v200_v31  ;;  %v227_v41 = vrot.slane %v226_v33, 2  ;;  %v251_v45 = vadd.f32 %v250_v38, %v249_v37  ;;  %v259_v54 = vsel %vm6398_vm0, %v181_v10, 0.0  ;;  %6535 = sst [smem:[#allocation30_spill]] %s3641_s5  ;;  %s3665_s25 = sld [smem:[#allocation6 + $0x9]] }
  0x69   : > { %v210_v43 = vmax.f32 %v208_v27, %v209_v35  ;;  %v219_v48 = vmax.f32 %v217_v32, %v218_v40  ;;  %v244_v50 = vadd.f32 %v243_v42, %v242_v34  ;;  %v236_v52 = vrot.slane %v235_v44, 2  ;;  %6536 = sst [smem:[#allocation31_spill]] %s3643_s6  ;;  %s3667_s7 = sld [smem:[#allocation6 + $0x2d]] }
  0x6a   : > { %v202_v47 = vrot.slane %v201_v39, 1  ;;  %v228_v49 = vmax.f32 %v226_v33, %v227_v41  ;;  %v252_v53 = vrot.slane %v251_v45, 4  ;;  %v260_v62 = vadd.f32 %v259_v54, %v258_v46  ;;  %6537 = sst [smem:[#allocation32_spill]] %s3645_s26  ;;  %s3675_s0 = sld [smem:[#allocation6 + $0x3f]] }
  0x6b   : > { %v211_v51 = vrot.slane %v210_v43, 1  ;;  %v220_v56 = vrot.slane %v219_v48, 1  ;;  %v245_v58 = vrot.slane %v244_v50, 2  ;;  %v237_v60 = vadd.f32 %v236_v52, %v235_v44  ;;  %6538 = sst [smem:[#allocation33_spill]] %s3647_s14  ;;  %s3677_s1 = sld [smem:[#allocation6 + $0x63]] }
  0x6c   : > { %v3543_v55 = vmax.f32 %v201_v39, %v202_v47  ;;  %v229_v57 = vrot.slane %v228_v49, 1  ;;  %v253_v61 = vadd.f32 %v252_v53, %v251_v45  ;;  %vm292_vm3 = vcmask 1043459   ;;  %6539 = sst [smem:[#allocation34_spill]] %s3649_s16  ;;  %s3681_s11 = sld [smem:[#allocation6 + $0x1]] }
  0x6d   : > { %v3545_v59 = vmax.f32 %v210_v43, %v211_v51  ;;  %v3547_v63 = vmax.f32 %v219_v48, %v220_v56  ;;  %v246_v1 = vadd.f32 %v245_v58, %v244_v50  ;;  %v238_v3 = vrot.slane %v237_v60, 1  ;;  %6540 = sst [smem:[#allocation35_spill]] %s3651_s17  ;;  %s3679_s18 = sld [smem:[#allocation6 + $0x87]] }
  0x6e   : > { %6527 = vst [vmem:[#allocation22_spill] sm:$0xff] %v3543_v55  ;;  %v3549_v0 = vmax.f32 %v228_v49, %v229_v57  ;;  %v254_v4 = vrot.slane %v253_v61, 2  ;;  %v261_v5 = vrot.slane %v260_v62, 4  ;;  %vm295_vm4 = vcmask 1047556   ;;  %6541 = sst [smem:[#allocation36_spill]] %s3653_s24  ;;  %s3683_s10 = sld [smem:[#allocation6 + $0x25]] }
  0x6f   : > { %6528 = vst [vmem:[#allocation23_spill] sm:$0xff] %v3545_v59  ;;  %6529 = vst [vmem:[#allocation24_spill] sm:$0xff] %v3547_v63  ;;  %v289_v2 = vsel %vm288_vm1, %v3545_v59, %v3543_v55  ;;  %v247_v7 = vrot.slane %v246_v1, 1  ;;  %v239_v9 = vadd.f32 %v238_v3, %v237_v60  ;;  %vm303_vm5 = vcmask 1047680   ;;  %6542 = sst [smem:[#allocation37_spill]] %s3655_s28  ;;  %s3685_s15 = sld [smem:[#allocation6 + $0x49]] }
  0x70   : > { %6530 = vst [vmem:[#allocation25_spill] sm:$0xff] %v3549_v0  ;;  %v291_v6 = vsel %vm290_vm2, %v3547_v63, %v289_v2  ;;  %v255_v10 = vadd.f32 %v254_v4, %v253_v61  ;;  %v262_v11 = vadd.f32 %v261_v5, %v260_v62  ;;  %6543 = sst [smem:[#allocation38_spill]] %s3657_s19  ;;  %v182_v2 = vlaneseq  ;;  %s3687_s12 = sld [smem:[#allocation6 + $0x6d]] }
  0x71   : > { %v3558_v8 = vsel %vm292_vm3, %v3549_v0, %v291_v6  ;;  %v248_v13 = vadd.f32 %v247_v7, %v246_v1  ;;  %v3563_v16 = vmul.f32 0.0625, %v239_v9  ;;  %6544 = sst [smem:[#allocation39_spill]] %s3659_s29  ;;  %s3691_s22 = sld [smem:[#allocation6 + $0xa]]  ;;  %vm1169_vm14 = vcmask 125952  }
  0x72   : > { %v296_v12 = vrot.slane %v3558_v8, 4  ;;  %543 = vrot.lane.b32.xlu1 %v3558_v8, %s6289_s20  ;;  %v256_v14 = vrot.slane %v255_v10, 1  ;;  %v263_v15 = vrot.slane %v262_v11, 2  ;;  %6545 = sst [smem:[#allocation40_spill]] %s3661_s30  ;;  %v3689_v3 = vshrl.u32 %v182_v2, 7  ;;  %s3693_s9 = sld [smem:[#allocation6 + $0x2e]] }
  0x73   : > { %6531 = vst [vmem:[#allocation26_spill] sm:$0xff] %v3563_v16  ;;  %v3567_v18 = vmul.f32 0.0625, %v248_v13  ;;  %6546 = sst [smem:[#allocation41_spill]] %s3663_s4  ;;  %s3695_s21 = sld [smem:[#allocation6 + $0x52]] }
  0x74   : > { %v297_v17 = vsel %vm295_vm4, %v296_v12, %v3558_v8  ;;  %v257_v20 = vadd.f32 %v256_v14, %v255_v10  ;;  %v264_v21 = vadd.f32 %v263_v15, %v262_v11  ;;  %6547 = sst [smem:[#allocation42_spill]] %s3665_s25  ;;  %6558 = vst [vmem:[#allocation53_spill] sm:$0xff] %v3689_v3  ;;  %s3697_s2 = sld [smem:[#allocation6 + $0x76]]  ;;  %vm186_vm6 = vcmp.ge.s32.totalorder %v3689_v3, 1 }
  0x75   : > { %6532 = vst [vmem:[#allocation27_spill] sm:$0xff] %v3567_v18  ;;  %v298_v19 = vrot.slane %v297_v17, 4  ;;  %v335_v25 = vsel %vm288_vm1, %v3567_v18, %v3563_v16  ;;  %6548 = sst [smem:[#allocation43_spill]] %s3667_s7  ;;  %s3699_s3 = sld [smem:[#allocation6 + $0x2]]  ;;  %vm191_vm7 = vcmp.lt.s32.totalorder %v3689_v3, 3 }
  0x76   : > { %v265_v23 = vrot.slane %v264_v21, 1  ;;  %v3571_v24 = vmul.f32 0.0625, %v257_v20  ;;  %6552 = sst [smem:[#allocation47_spill]] %s3675_s0  ;;  %s3701_s13 = sld [smem:[#allocation6 + $0x26]] }
  0x77   : > { %v299_v22 = vsel %vm295_vm4, %v298_v19, %v3558_v8  ;;  %6553 = sst [smem:[#allocation48_spill]] %s3677_s1  ;;  %s3703_s8 = sld [smem:[#allocation6 + $0x4a]]  ;;  %v7027_v3 = vld [vmem:[#allocation25_spill] sm:$0xff] }
  0x78   : > { %6533 = vst [vmem:[#allocation28_spill] sm:$0xff] %v3571_v24  ;;  %v3576_v26 = vrot.slane %v299_v22, 3  ;;  %v266_v27 = vadd.f32 %v265_v23, %v264_v21  ;;  %v336_v28 = vsel %vm290_vm2, %v3571_v24, %v335_v25  ;;  %v3595_v37 = vrot.slane %v299_v22, 1  ;;  %6554 = sst [smem:[#allocation49_spill]] %s3679_s18  ;;  %s3761_s6 = sld [smem:[#allocation6 + $0x7f]] }
  0x79   : > { %6555 = sst [smem:[#allocation50_spill]] %s3683_s10  ;;  %s3705_s10 = sld [smem:[#allocation6 + $0x6e]] }
  0x7a   : > { %304 = vrot.lane.b32.xlu0 %v3576_v26, %s6289_s20  ;;  %v3582_v29 = vmul.f32 0.0625, %v266_v27  ;;  %6556 = sst [smem:[#allocation51_spill]] %s3685_s15  ;;  %v3715_v4 = vsel %vm186_vm6, %v3576_v26, 0.0  ;;  %v3730_v6 = vsel %vm191_vm7, %v3595_v37, 0.0  ;;  %s3767_s14 = sld [smem:[#allocation6 + $0x1c]] }
  0x7b   : > { %6557 = sst [smem:[#allocation52_spill]] %s3687_s12  ;;  %s3708_s12 = sld [smem:[#allocation6 + $0x14]] }
  0x7c   : > { %6534 = vst [vmem:[#allocation29_spill] sm:$0xff] %v3582_v29  ;;  %v337_v30 = vsel %vm292_vm3, %v3582_v29, %v336_v28  ;;  %6559 = sst [smem:[#allocation54_spill]] %s3699_s3  ;;  %s3710_s15 = sld [smem:[#allocation6 + $0x38]] }
  0x7d   : > { %v339_v31 = vrot.slane %v337_v30, 4  ;;  %570 = vrot.lane.b32.xlu1 %v337_v30, %s6289_s20  ;;  %6560 = sst [smem:[#allocation55_spill]] %s3701_s13  ;;  %s3769_s26 = sld [smem:[#allocation6 + $0x40]] }
  0x7e   : > { %6561 = sst [smem:[#allocation56_spill]] %s3703_s8  ;;  %s6571_s5 = sld [smem:[#allocation50_spill]] }
  0x7f   : > { %v340_v32 = vsel %vm295_vm4, %v339_v31, %v337_v30  ;;  %6562 = sst [smem:[#allocation57_spill]] %s3705_s10  ;;  %s3718_s8 = sld [smem:[#allocation6 + $0x5c]]  ;;  %v428_v31 = vstv %s3693_s9 }
  0x80   : > { %v341_v33 = vrot.slane %v340_v32, 4  ;;  %s3720_s10 = sld [smem:[#allocation6 + $0x80]]  ;;  %s3775_s28 = sld [smem:[#allocation6 + $0x64]]  ;;  %v432_v32 = vstv %s3695_s21 }
  0x81   : > { %6563 = sst [smem:[#allocation58_spill]] %s3708_s12  ;;  %s3734_s12 = sld [smem:[#allocation6 + $0x2f]] }
  0x82   : > { %v342_v34 = vsel %vm295_vm4, %v341_v33, %v337_v30  ;;  %6564 = sst [smem:[#allocation59_spill]] %s3710_s15  ;;  %s3732_s15 = sld [smem:[#allocation6 + $0xb]] }
  0x83   : > { %v3589_v35 = vrot.slane %v342_v34, 3  ;;  %v3591_v36 = vrot.slane %v342_v34, 1  ;;  %s6572_s19 = sld [smem:[#allocation51_spill]]  ;;  %s6573_s30 = sld [smem:[#allocation52_spill]] }
  0x84   : > { %s3777_s29 = sld [smem:[#allocation6 + $0x88]]  ;;  %s3783_s4 = sld [smem:[#allocation6 + $0x1d]] }
  0x85   : > { %346 = vrot.lane.b32.xlu0 %v3589_v35, %s6289_s20  ;;  %972 = vrot.lane.b32.xlu1 %v3591_v36, %s6289_s20  ;;  %6565 = sst [smem:[#allocation60_spill]] %s3718_s8  ;;  %v3725_v5 = vsel %vm186_vm6, %v3589_v35, 0.0  ;;  %v3739_v7 = vsel %vm191_vm7, %v3591_v36, 0.0  ;;  %s3745_s8 = sld [smem:[#allocation6 + $0x77]] }
  0x86   : > { %6566 = sst [smem:[#allocation61_spill]] %s3720_s10  ;;  %s3743_s10 = sld [smem:[#allocation6 + $0x53]] }
  0x87   : > { %6568 = sst [smem:[#allocation63_spill]] %s3734_s12  ;;  %s3785_s24 = sld [smem:[#allocation6 + $0x41]] }
  0x88   : > { %6567 = sst [smem:[#allocation62_spill]] %s3732_s15  ;;  %s3751_s12 = sld [smem:[#allocation6 + $0x13]] }
  0x89   : > { %943 = vrot.lane.b32.xlu0 %v3595_v37, %s6289_s20  ;;  %s3753_s15 = sld [smem:[#allocation6 + $0x37]]  ;;  %s3793_s7 = sld [smem:[#allocation6 + $0x89]] }
  0x8a   : > { %6574 = sst [smem:[#allocation50_spill]] %s3783_s4  ;;  %s3799_s9 = sld [smem:[#allocation6 + $0x3]] }
  0x8b   : > { %6570 = sst [smem:[#allocation65_spill]] %s3745_s8  ;;  %s3759_s8 = sld [smem:[#allocation6 + $0x5b]] }
  0x8c   : > { %6569 = sst [smem:[#allocation64_spill]] %s3743_s10  ;;  %s3825_s18 = sld [smem:[#allocation6 + $0x15]] }
  0x8d   : > { %6575 = sst [smem:[#allocation51_spill]] %s3785_s24  ;;  %s3837_s25 = sld [smem:[#allocation6 + $0x5d]] }
  0x8e   : > { %s3847_s21 = sld [smem:[#allocation6 + $0x28]]  ;;  %s3849_s1 = sld [smem:[#allocation6 + $0x4c]] }
  0x8f   : > { %6578 = sst [smem:[#allocation66_spill]] %s3793_s7  ;;  %s3857_s17 = sld [smem:[#allocation6 + $0xc]] }
  0x90   : > { %6580 = sst [smem:[#allocation67_spill]] %s3799_s9  ;;  %s4116_s7 = sld [smem:[#allocation6 + $0x4e]] }
  0x91   : > { %s4124_s24 = sld [smem:[#allocation6 + $0x18]]  ;;  %s4126_s4 = sld [smem:[#allocation6 + $0x3c]] }
  0x92   : > { %6588 = sst [smem:[#allocation71_spill]] %s3825_s18  ;;  %s4094_s18 = sld [smem:[#allocation6 + $0x44]] }
  0x93   : > { %6590 = sst [smem:[#allocation73_spill]] %s3837_s25  ;;  %s4069_s25 = sld [smem:[#allocation6 + $0x83]] }
  0x94   : > { %s4146_s0 = sld [smem:[#allocation6 + $0x33]]  ;;  %s4160_s10 = sld [smem:[#allocation6 + $0x57]] }
  0x95   : > { %6595 = sst [smem:[#allocation75_spill]] %s3857_s17  ;;  %s4110_s17 = sld [smem:[#allocation6 + $0x2a]] }
  0x96   : > { %s4162_s3 = sld [smem:[#allocation6 + $0x7b]]  ;;  %s4174_s13 = sld [smem:[#allocation6 + $0x21]] }
  0x97   : > { %s4176_s9 = sld [smem:[#allocation6 + $0x4f]]  ;;  %s4198_s16 = sld [smem:[#allocation6 + $0x8d]] }
  0x98   : > { %6615 = sst [smem:[#allocation95_spill]] %s4094_s18 }
  0x99   : > { %6609 = sst [smem:[#allocation89_spill]] %s4069_s25  ;;  %s4232_s25 = sld [smem:[#allocation6 + $0x8e]] }
  0x9a   : > { %6621 = sst [smem:[#allocation101_spill]] %s4160_s10  ;;  %s4188_s10 = sld [smem:[#allocation6 + $0x73]] }
  0x9b   : > { %6618 = sst [smem:[#allocation98_spill]] %s4110_s17  ;;  %s6635_s18 = sld [smem:[#allocation36_spill]] }
  0x9c   : > { %6622 = sst [smem:[#allocation102_spill]] %s4162_s3  ;;  %s4186_s3 = sld [smem:[#allocation6 + $0x45]] }
  0x9d   : > { %6623 = sst [smem:[#allocation103_spill]] %s4174_s13  ;;  %s6639_s17 = sld [smem:[#allocation30_spill]] }
  0x9e   : > { %s4196_s13 = sld [smem:[#allocation6 + $0x69]]  ;;  %6626 = sst [smem:[#allocation106_spill]] %s4198_s16 }
  0x9f   : > { %s6656_s16 = sld [smem:[#allocation41_spill]] }
  0xa2   : > { %6624 = sst [smem:[#allocation104_spill]] %s4186_s3  ;;  %s6655_s3 = sld [smem:[#allocation40_spill]] }
  0xe4   : > { %v544_v39 = vpop.permute.xlu1 %543 }
  0xe5   : > { %v545_v41 = vsel %vm303_vm5, %v544_v39, %v3558_v8  ;;  %v415_v39 = vstv %s6572_s19  ;;  %s3863_s19 = sld [smem:[#allocation6 + $0x30]] }
  0xeb   : > { %6596 = sst [smem:[#allocation76_spill]] %s3863_s19  ;;  %s4108_s19 = sld [smem:[#allocation6 + $0x6]] }
  0xec   : > { %v305_v38 = vpop.permute.xlu0 %304 }
  0xed   : > { %v306_v40 = vsel %vm303_vm5, %v305_v38, %v3576_v26  ;;  %v411_v38 = vstv %s6571_s5  ;;  %s3815_s5 = sld [smem:[#allocation6 + $0x4]] }
  0xee   : > { %307 = vrot.lane.b32.xlu0 %v306_v40, %s6289_s20  ;;  %v419_v40 = vstv %s6573_s30  ;;  %s3823_s30 = sld [smem:[#allocation6 + $0x6f]] }
  0xef   : > { %v571_v43 = vpop.permute.xlu1 %570 }
  0xf0   : > { %v572_v45 = vsel %vm303_vm5, %v571_v43, %v337_v30  ;;  %v3810_v43 = vmul.f32 %v432_v32, %v3725_v5  ;;  %v452_v32 = vstv %s3761_s6  ;;  %s3889_s6 = sld [smem:[#allocation6 + $0x66]] }
  0xf2   : > { %546 = vrot.lane.b32.xlu0 %v545_v41, %s6289_s20 }
  0xf4   : > { %6587 = sst [smem:[#allocation70_spill]] %s3823_s30  ;;  %s4132_s30 = sld [smem:[#allocation6 + $0x60]] }
  0xf6   : > { %6601 = sst [smem:[#allocation81_spill]] %s3889_s6  ;;  %s4035_s6 = sld [smem:[#allocation6 + $0x29]] }
  0xf7   : > { %v347_v42 = vpop.permute.xlu0 %346  ;;  %v973_v47 = vpop.permute.xlu1 %972 }
  0xf8   : > { %v348_v44 = vsel %vm303_vm5, %v347_v42, %v3589_v35  ;;  %v974_v49 = vsel %vm303_vm5, %v973_v47, %v3591_v36  ;;  %v3807_v42 = vmul.f32 %v428_v31, %v3725_v5 }
  0xf9   : > { %349 = vrot.lane.b32.xlu1 %v348_v44, %s6289_s20 }
  0xfa   : > { %6619 = sst [smem:[#allocation99_spill]] %s4132_s30 }
  0xfb   : > { %v944_v46 = vpop.permute.xlu0 %943  ;;  %s6644_s30 = sld [smem:[#allocation32_spill]] }
  0xfc   : > { %v945_v48 = vsel %vm303_vm5, %v944_v46, %v3595_v37 }
  0xfd   : > { %573 = vrot.lane.b32.xlu1 %v572_v45, %s6289_s20  ;;  %946 = vrot.lane.b32.xlu0 %v945_v48, %s6289_s20 }
 0x101   : > { %975 = vrot.lane.b32.xlu1 %v974_v49, %s6289_s20  ;;  %s3673_s20 = sld [smem:[#allocation6 + $0x1b]] }
 0x107   : > { %6551 = sst [smem:[#allocation46_spill]] %s3673_s20  ;;  %s3855_s20 = sld [smem:[#allocation6 + $0x81]] }
 0x10d   : > { %6594 = sst [smem:[#allocation74_spill]] %s3855_s20  ;;  %s4061_s20 = sld [smem:[#allocation6 + $0x3b]] }
 0x113   : > { %6608 = sst [smem:[#allocation88_spill]] %s4061_s20  ;;  %s4224_s20 = sld [smem:[#allocation6 + $0x85]] }
 0x160   : > { %v308_v50 = vpop.permute.xlu0 %307 }
 0x161   : > { %v309_v51 = vsel %vm303_vm5, %v308_v50, %v3576_v26  ;;  %v3831_v50 = vmul.f32 %v411_v38, %v3715_v4  ;;  %v630_v38 = vstv %s3815_s5  ;;  %s3927_s5 = sld [smem:[#allocation6 + $0x55]] }
 0x162   : > { %311 = vrot.lane.b32.xlu0 %v309_v51, %s6287_s23  ;;  %v634_v28 = vmul.f32 %v630_v38, %v3549_v0 }
 0x164   : > { %v547_v52 = vpop.permute.xlu0 %546 }
 0x165   : > { %v548_v53 = vsel %vm303_vm5, %v547_v52, %v3558_v8  ;;  %v3741_v8 = vand.u32 127, %v182_v2  ;;  %v464_v2 = vstv %s3775_s28  ;;  %s3911_s28 = sld [smem:[#allocation6 + $0x8a]]  ;;  %v631_v52 = vmul.f32 %v630_v38, %v3543_v55 }
 0x166   : > { %471 = vrot.lane.b32.xlu0 %v309_v51, %s6285_s27 }
 0x167   : > { %vm187_vm8 = vcmp.ge.s32.totalorder %v3741_v8, 1  ;;  %vm189_vm10 = vcmp.lt.s32.totalorder %v3741_v8, 15 }
 0x168   : > { %vm4204_vm9 = vmand %vm186_vm6, %vm187_vm8 }
 0x169   : > { %vm4309_vm11 = vmand %vm186_vm6, %vm189_vm10 }
 0x16a   : > { %550 = vrot.lane.b32.xlu0 %v548_v53, %s6287_s23  ;;  %vm4495_vm12 = vmand %vm191_vm7, %vm187_vm8 }
 0x16b   : > { %v350_v54 = vpop.permute.xlu1 %349  ;;  %6602 = sst [smem:[#allocation82_spill]] %s3911_s28  ;;  %s4005_s28 = sld [smem:[#allocation6 + $0x8b]]  ;;  %vm4611_vm13 = vmand %vm191_vm7, %vm189_vm10 }
 0x16c   : > { %v351_v56 = vsel %vm303_vm5, %v350_v54, %v3589_v35  ;;  %v3843_v54 = vmul.f32 %v419_v40, %v3715_v4 }
 0x16d   : > { %353 = vrot.lane.b32.xlu1 %v351_v56, %s6287_s23 }
 0x16e   : > { %869 = vrot.lane.b32.xlu0 %v548_v53, %s6285_s27  ;;  %v3840_v53 = vmul.f32 %v415_v39, %v3715_v4 }
 0x16f   : > { %v574_v57 = vpop.permute.xlu1 %573  ;;  %v947_v58 = vpop.permute.xlu0 %946 }
 0x170   : > { %v948_v60 = vsel %vm303_vm5, %v947_v58, %v3595_v37  ;;  %v575_v61 = vsel %vm303_vm5, %v574_v57, %v337_v30  ;;  %v424_v30 = vstv %s3691_s22  ;;  %v407_v37 = vstv %s3681_s11  ;;  %s3801_s22 = sld [smem:[#allocation6 + $0x27]]  ;;  %s3865_s11 = sld [smem:[#allocation6 + $0x54]] }
 0x171   : > { %491 = vrot.lane.b32.xlu1 %v351_v56, %s6285_s27  ;;  %v3804_v41 = vmul.f32 %v424_v30, %v3725_v5  ;;  %v3828_v49 = vmul.f32 %v407_v37, %v3715_v4  ;;  %v440_v58 = vstv %s3751_s12  ;;  %v468_v30 = vstv %s3777_s29  ;;  %s3871_s12 = sld [smem:[#allocation6 + $0x78]]  ;;  %s3913_s29 = sld [smem:[#allocation6 + $0x31]] }
 0x172   : > { %950 = vrot.lane.b32.xlu0 %v948_v60, %s6287_s23  ;;  %v3879_v40 = vmul.f32 %v440_v58, %v3715_v4  ;;  %v3895_v58 = vmul.f32 %v464_v2, %v3725_v5 }
 0x173   : > { %v976_v62 = vpop.permute.xlu1 %975 }
 0x174   : > { %v977_v1 = vsel %vm303_vm5, %v976_v62, %v3591_v36  ;;  %v436_v36 = vstv %s3697_s2  ;;  %s3813_s2 = sld [smem:[#allocation6 + $0x4b]]  ;;  %v456_v62 = vstv %s3767_s14  ;;  %s3903_s14 = sld [smem:[#allocation6 + $0xd]] }
 0x175   : > { %577 = vrot.lane.b32.xlu1 %v575_v61, %s6287_s23  ;;  %v3818_v45 = vmul.f32 %v436_v36, %v3725_v5  ;;  %v3876_v39 = vmul.f32 %v456_v62, %v3725_v5 }
 0x176   : > { %1097 = vrot.lane.b32.xlu0 %v948_v60, %s6285_s27  ;;  %6582 = sst [smem:[#allocation68_spill]] %s3801_s22  ;;  %v444_v60 = vstv %s3753_s15  ;;  %s3873_s15 = sld [smem:[#allocation6 + $0x1e]] }
 0x177   : > { %6597 = sst [smem:[#allocation77_spill]] %s3865_s11  ;;  %v3882_v31 = vmul.f32 %v444_v60, %v3715_v4  ;;  %v3898_v60 = vmul.f32 %v468_v30, %v3725_v5  ;;  %v633_v30 = vmul.f32 %v630_v38, %v3547_v63  ;;  %v705_v21 = vstv %s3913_s29  ;;  %s3983_s29 = sld [smem:[#allocation6 + $0x82]] }
 0x178   : > { %6598 = sst [smem:[#allocation78_spill]] %s3871_s12  ;;  %v709_v12 = vmul.f32 %v705_v21, %v3582_v29  ;;  %s4100_s12 = sld [smem:[#allocation6 + $0x68]] }
 0x179   : > { %889 = vrot.lane.b32.xlu1 %v575_v61, %s6285_s27  ;;  %v448_v61 = vstv %s3759_s8  ;;  %s3887_s8 = sld [smem:[#allocation6 + $0x42]]  ;;  %s4102_s11 = sld [smem:[#allocation6 + $0x8c]] }
 0x17a   : > { %6584 = sst [smem:[#allocation69_spill]] %s3813_s2  ;;  %v3885_v37 = vmul.f32 %v448_v61, %v3715_v4  ;;  %v3906_v61 = vmul.f32 %v452_v32, %v3715_v4  ;;  %v632_v4 = vmul.f32 %v630_v38, %v3545_v59  ;;  %v645_v32 = vstv %s3847_s21  ;;  %s3939_s21 = sld [smem:[#allocation6 + $0x16]] }
 0x17b   : > { %v646_v2 = vmul.f32 %v645_v32, %v3543_v55  ;;  %v647_v51 = vmul.f32 %v645_v32, %v3545_v59  ;;  %v690_v34 = vstv %s3903_s14  ;;  %v648_v22 = vmul.f32 %v645_v32, %v3547_v63  ;;  %s3977_s14 = sld [smem:[#allocation6 + $0x5e]]  ;;  %s4134_s2 = sld [smem:[#allocation6 + $0x84]] }
 0x17c   : > { %6599 = sst [smem:[#allocation79_spill]] %s3873_s15  ;;  %v639_v57 = vsel %vm288_vm1, %v632_v4, %v631_v52  ;;  %v691_v44 = vmul.f32 %v690_v34, %v3563_v16  ;;  %v692_v38 = vmul.f32 %v690_v34, %v3567_v18  ;;  %v693_v26 = vmul.f32 %v690_v34, %v3571_v24  ;;  %s4049_s15 = sld [smem:[#allocation6 + $0x71]] }
 0x17d   : > { %979 = vrot.lane.b32.xlu1 %v977_v1, %s6287_s23  ;;  %s3671_s23 = sld [smem:[#allocation6 + $0x75]]  ;;  %v640_v20 = vsel %vm290_vm2, %v633_v30, %v639_v57  ;;  %v649_v57 = vmul.f32 %v645_v32, %v3549_v0  ;;  %v706_v30 = vmul.f32 %v705_v21, %v3563_v16  ;;  %s4144_s22 = sld [smem:[#allocation6 + $0xf]] }
 0x17e   : > { %v699_v23 = vsel %vm288_vm1, %v692_v38, %v691_v44  ;;  %v694_v44 = vmul.f32 %v690_v34, %v3582_v29  ;;  %6616 = sst [smem:[#allocation96_spill]] %s4100_s12 }
 0x17f   : > { %6600 = sst [smem:[#allocation80_spill]] %s3887_s8  ;;  %s4047_s8 = sld [smem:[#allocation6 + $0x4d]] }
 0x180   : > { %v750_v32 = vstv %s3939_s21  ;;  %s3997_s21 = sld [smem:[#allocation6 + $0x67]]  ;;  %6617 = sst [smem:[#allocation97_spill]] %s4102_s11 }
 0x181   : > { %1117 = vrot.lane.b32.xlu1 %v977_v1, %s6285_s27  ;;  %s3669_s27 = sld [smem:[#allocation6 + $0x51]]  ;;  %v460_v1 = vstv %s3769_s26  ;;  %s3901_s26 = sld [smem:[#allocation6 + $0x70]] }
 0x182   : > { %v3892_v62 = vmul.f32 %v460_v1, %v3725_v5  ;;  %v660_v1 = vstv %s3849_s1  ;;  %s3933_s1 = sld [smem:[#allocation6 + $0x79]]  ;;  %v654_v5 = vsel %vm288_vm1, %v647_v51, %v646_v2  ;;  %v707_v51 = vmul.f32 %v705_v21, %v3567_v18  ;;  %6606 = sst [smem:[#allocation86_spill]] %s4049_s15 }
 0x183   : > { %6550 = sst [smem:[#allocation45_spill]] %s3671_s23  ;;  %s3791_s23 = sld [smem:[#allocation6 + $0x65]]  ;;  %v661_v48 = vmul.f32 %v660_v1, %v3543_v55  ;;  %v662_v36 = vmul.f32 %v660_v1, %v3545_v59  ;;  %v663_v47 = vmul.f32 %v660_v1, %v3547_v63  ;;  %v720_v2 = vstv %s3927_s5 }
 0x184   : > { %v664_v46 = vmul.f32 %v660_v1, %v3549_v0  ;;  %s3989_s5 = sld [smem:[#allocation6 + $0x1f]]  ;;  %6620 = sst [smem:[#allocation100_spill]] %s4134_s2 }
 0x185   : > { %v669_v52 = vsel %vm288_vm1, %v662_v36, %v661_v48  ;;  %v3968_v48 = vsel %vm292_vm3, %v634_v28, %v640_v20  ;;  %v655_v36 = vsel %vm290_vm2, %v648_v22, %v654_v5  ;;  %v708_v20 = vmul.f32 %v705_v21, %v3571_v24  ;;  %6605 = sst [smem:[#allocation85_spill]] %s4047_s8  ;;  %s4216_s15 = sld [smem:[#allocation6 + $0x7c]] }
 0x186   : > { %v670_v19 = vsel %vm290_vm2, %v663_v47, %v669_v52  ;;  %v721_v22 = vmul.f32 %v720_v2, %v3563_v16  ;;  %v714_v28 = vsel %vm288_vm1, %v707_v51, %v706_v30  ;;  %v722_v47 = vmul.f32 %v720_v2, %v3567_v18  ;;  %s4222_s8 = sld [smem:[#allocation6 + $0x61]]  ;;  %s6636_s12 = sld [smem:[#allocation37_spill]] }
 0x187   : > { %6549 = sst [smem:[#allocation44_spill]] %s3669_s27  ;;  %v675_v35 = vstv %s3901_s26  ;;  %s3961_s26 = sld [smem:[#allocation6 + $0x3a]]  ;;  %v751_v52 = vmul.f32 %v750_v32, %v3543_v55  ;;  %v4000_v38 = vsel %vm292_vm3, %v649_v57, %v655_v36  ;;  %v700_v51 = vsel %vm290_vm2, %v693_v26, %v699_v23 }
 0x188   : > { %s3835_s27 = sld [smem:[#allocation6 + $0x39]]  ;;  %v676_v4 = vmul.f32 %v675_v35, %v3543_v55  ;;  %v677_v33 = vmul.f32 %v675_v35, %v3545_v59  ;;  %v735_v56 = vstv %s3933_s1  ;;  %v678_v27 = vmul.f32 %v675_v35, %v3547_v63  ;;  %s3991_s1 = sld [smem:[#allocation6 + $0x43]] }
 0x189   : > { %6576 = sst [smem:[#allocation52_spill]] %s3791_s23  ;;  %v736_v1 = vmul.f32 %v735_v56, %v3563_v16  ;;  %v737_v5 = vmul.f32 %v735_v56, %v3567_v18  ;;  %v715_v34 = vsel %vm290_vm2, %v708_v20, %v714_v28  ;;  %v738_v11 = vmul.f32 %v735_v56, %v3571_v24  ;;  %s4118_s23 = sld [smem:[#allocation6 + $0x72]] }
 0x18a   : > { %v684_v25 = vsel %vm288_vm1, %v677_v33, %v676_v4  ;;  %v679_v33 = vmul.f32 %v675_v35, %v3549_v0  ;;  %v752_v4 = vmul.f32 %v750_v32, %v3545_v59  ;;  %v723_v35 = vmul.f32 %v720_v2, %v3571_v24  ;;  %s6643_s2 = sld [smem:[#allocation31_spill]] }
 0x18b   : > { %v685_v30 = vsel %vm290_vm2, %v678_v27, %v684_v25  ;;  %v4012_v9 = vsel %vm292_vm3, %v664_v46, %v670_v19  ;;  %v729_v57 = vsel %vm288_vm1, %v722_v47, %v721_v22  ;;  %v744_v23 = vsel %vm288_vm1, %v737_v5, %v736_v1  ;;  %s6654_s11 = sld [smem:[#allocation39_spill]] }
 0x18c   : > { %v753_v21 = vmul.f32 %v750_v32, %v3547_v63  ;;  %v4018_v25 = vsel %vm292_vm3, %v679_v33, %v685_v30  ;;  %v4021_v26 = vsel %vm292_vm3, %v694_v44, %v700_v51  ;;  %v4024_v27 = vmul.f32 %v720_v2, %v3582_v29 }
 0x18d   : > { %v765_v10 = vstv %s3961_s26  ;;  %6603 = vst [vmem:[#allocation83_spill] sm:$0xff] %v4021_v26  ;;  %v759_v19 = vsel %vm288_vm1, %v752_v4, %v751_v52  ;;  %v4028_v46 = vsel %vm292_vm3, %v709_v12, %v715_v34  ;;  %v780_v22 = vstv %s3977_s14  ;;  %s4033_s26 = sld [smem:[#allocation6 + $0x5]]  ;;  %s4059_s14 = sld [smem:[#allocation6 + $0x17]] }
 0x18e   : > { %6589 = sst [smem:[#allocation72_spill]] %s3835_s27  ;;  %6604 = vst [vmem:[#allocation84_spill] sm:$0xff] %v4028_v46  ;;  %v766_v36 = vmul.f32 %v765_v10, %v3543_v55  ;;  %v767_v20 = vmul.f32 %v765_v10, %v3545_v59  ;;  %v4038_v2 = vsel %vm290_vm2, %v723_v35, %v729_v57  ;;  %v4041_v28 = vmul.f32 %v735_v56, %v3582_v29  ;;  %s4085_s27 = sld [smem:[#allocation6 + $0x7a]] }
 0x18f   : > { %v4044_v47 = vsel %vm290_vm2, %v738_v11, %v744_v23  ;;  %v795_v12 = vstv %s3983_s29  ;;  %v4052_v1 = vmul.f32 %v750_v32, %v3549_v0  ;;  %v4055_v5 = vsel %vm290_vm2, %v753_v21, %v759_v19  ;;  %s4067_s29 = sld [smem:[#allocation6 + $0x5f]] }
 0x190   : > { %v810_v33 = vstv %s3989_s5  ;;  %v825_v44 = vstv %s3991_s1  ;;  %v768_v11 = vmul.f32 %v765_v10, %v3547_v63  ;;  %v781_v56 = vmul.f32 %v780_v22, %v3543_v55  ;;  %s4075_s5 = sld [smem:[#allocation6 + $0xe]]  ;;  %s4077_s1 = sld [smem:[#allocation6 + $0x32]] }
 0x191   : > { %v782_v52 = vmul.f32 %v780_v22, %v3545_v59  ;;  %v840_v4 = vstv %s3997_s21  ;;  %v774_v32 = vsel %vm288_vm1, %v767_v20, %v766_v36  ;;  %v796_v30 = vmul.f32 %v795_v12, %v3543_v55  ;;  %s4083_s21 = sld [smem:[#allocation6 + $0x56]] }
 0x192   : > { %v797_v51 = vmul.f32 %v795_v12, %v3545_v59  ;;  %v855_v34 = vstv %s4005_s28  ;;  %v811_v35 = vmul.f32 %v810_v33, %v3563_v16  ;;  %v812_v57 = vmul.f32 %v810_v33, %v3567_v18  ;;  %s4092_s28 = sld [smem:[#allocation6 + $0x20]] }
 0x193   : > { %6607 = sst [smem:[#allocation87_spill]] %s4059_s14  ;;  %v826_v23 = vmul.f32 %v825_v44, %v3563_v16  ;;  %v827_v21 = vmul.f32 %v825_v44, %v3567_v18  ;;  %v769_v19 = vmul.f32 %v765_v10, %v3549_v0  ;;  %v783_v36 = vmul.f32 %v780_v22, %v3547_v63  ;;  %s4214_s14 = sld [smem:[#allocation6 + $0x58]] }
 0x194   : > { %6613 = sst [smem:[#allocation93_spill]] %s4085_s27  ;;  %v841_v20 = vmul.f32 %v840_v4, %v3563_v16  ;;  %v842_v17 = vmul.f32 %v840_v4, %v3567_v18  ;;  %v789_v15 = vsel %vm288_vm1, %v782_v52, %v781_v56  ;;  %v798_v14 = vmul.f32 %v795_v12, %v3547_v63  ;;  %s6633_s27 = sld [smem:[#allocation102_spill]] }
 0x195   : > { %v856_v13 = vmul.f32 %v855_v34, %v3563_v16  ;;  %v857_v59 = vmul.f32 %v855_v34, %v3567_v18  ;;  %v775_v10 = vsel %vm290_vm2, %v768_v11, %v774_v32  ;;  %v804_v55 = vsel %vm288_vm1, %v797_v51, %v796_v30 }
 0x196   : > { %6610 = sst [smem:[#allocation90_spill]] %s4075_s5  ;;  %v813_v46 = vmul.f32 %v810_v33, %v3571_v24  ;;  %v828_v26 = vmul.f32 %v825_v44, %v3571_v24  ;;  %v784_v56 = vmul.f32 %v780_v22, %v3549_v0  ;;  %v819_v52 = vsel %vm288_vm1, %v812_v57, %v811_v35  ;;  %s6631_s5 = sld [smem:[#allocation34_spill]] }
 0x197   : > { %6611 = sst [smem:[#allocation91_spill]] %s4077_s1  ;;  %v834_v18 = vsel %vm288_vm1, %v827_v21, %v826_v23  ;;  %v843_v16 = vmul.f32 %v840_v4, %v3571_v24  ;;  %v790_v11 = vsel %vm290_vm2, %v783_v36, %v789_v15  ;;  %v799_v32 = vmul.f32 %v795_v12, %v3549_v0  ;;  %s4230_s1 = sld [smem:[#allocation6 + $0x6a]] }
 0x198   : > { %6612 = sst [smem:[#allocation92_spill]] %s4083_s21  ;;  %v849_v30 = vsel %vm288_vm1, %v842_v17, %v841_v20  ;;  %v858_v51 = vmul.f32 %v855_v34, %v3571_v24  ;;  %v805_v22 = vsel %vm290_vm2, %v798_v14, %v804_v55  ;;  %v814_v35 = vmul.f32 %v810_v33, %v3582_v29  ;;  %s6632_s21 = sld [smem:[#allocation101_spill]] }
 0x199   : > { %6614 = sst [smem:[#allocation94_spill]] %s4092_s28  ;;  %v829_v57 = vmul.f32 %v825_v44, %v3582_v29  ;;  %v864_v23 = vsel %vm288_vm1, %v857_v59, %v856_v13  ;;  %v4139_v15 = vsel %vm292_vm3, %v4024_v27, %v4038_v2  ;;  %v820_v17 = vsel %vm290_vm2, %v813_v46, %v819_v52 }
 0x19a   : > { %v835_v12 = vsel %vm290_vm2, %v828_v26, %v834_v18  ;;  %v844_v55 = vmul.f32 %v840_v4, %v3582_v29  ;;  %v4151_v59 = vsel %vm292_vm3, %v4041_v28, %v4044_v47  ;;  %v4156_v13 = vsel %vm292_vm3, %v4052_v1, %v4055_v5  ;;  %s6634_s28 = sld [smem:[#allocation35_spill]] }
 0x19b   : > { %v850_v18 = vsel %vm290_vm2, %v843_v16, %v849_v30  ;;  %v859_v14 = vmul.f32 %v855_v34, %v3582_v29  ;;  %v4165_v26 = vsel %vm292_vm3, %v769_v19, %v775_v10  ;;  %v4168_v27 = vsel %vm292_vm3, %v784_v56, %v790_v11 }
 0x19c   : > { %v4171_v46 = vsel %vm292_vm3, %v799_v32, %v805_v22  ;;  %v865_v16 = vsel %vm290_vm2, %v858_v51, %v864_v23  ;;  %v4179_v2 = vsel %vm292_vm3, %v814_v35, %v820_v17  ;;  %v4182_v28 = vsel %vm292_vm3, %v829_v57, %v835_v12 }
 0x19d   : > { %v4191_v5 = vsel %vm292_vm3, %v844_v55, %v850_v18  ;;  %v6627_v34 = vmov 0  ;;  %v4209_v19 = vsel %vm292_vm3, %v859_v14, %v865_v16  ;;  %v1041_v51 = vstv %s4176_s9  ;;  %s6645_s9 = sld [smem:[#allocation33_spill]] }
 0x19e   : > { %6625 = vst [vmem:[#allocation105_spill] sm:$0xff] %v4191_v5  ;;  %v6628_v34 = vsel %vm4204_vm9, 4294967295, %v6627_v34  ;;  %6630 = vst [vmem:[#allocation108_spill] sm:$0xff] %v4209_v19  ;;  %v6638_v30 = vstv %s6631_s5  ;;  %v1045_v55 = vstv %s4188_s10  ;;  %v6641_v14 = vstv %s6635_s18  ;;  %s6646_s5 = sld [smem:[#allocation42_spill]]  ;;  %s6648_s10 = sld [smem:[#allocation43_spill]] }
 0x19f   : > { %6629 = vst [vmem:[#allocation107_spill] sm:$0xff] %v6628_v34  ;;  %v6642_v35 = vstv %s6636_s12  ;;  %v4264_v12 = vmul.f32 %v1041_v51, %v3730_v6  ;;  %v4267_v17 = vmul.f32 %v1045_v55, %v3730_v6  ;;  %s6650_s18 = sld [smem:[#allocation44_spill]]  ;;  %s6652_s12 = sld [smem:[#allocation38_spill]]  ;;  %v6653_v56 = vstv %s6639_s17 }
 0x1a0   : > { %v6640_v32 = vstv %s6634_s28  ;;  %s6651_s28 = sld [smem:[#allocation45_spill]]  ;;  %v1090_v11 = vstv %s4230_s1  ;;  %v1094_v51 = vstv %s4232_s25  ;;  %v6657_v10 = vstv %s6643_s2  ;;  %s6661_s17 = sld [smem:[#allocation46_spill]] }
 0x1a1   : > { %6647 = vst [vmem:[#allocation109_spill] sm:$0xff] %v4264_v12  ;;  %6649 = vst [vmem:[#allocation110_spill] sm:$0xff] %v4267_v17  ;;  %v6658_v36 = vstv %s6644_s30  ;;  %s6667_s25 = sld [smem:[#allocation49_spill]]  ;;  %v6671_v34 = vstv %s6656_s16  ;;  %s4303_s2 = sld [smem:[#allocation6 + $0x74]] }
 0x1a2   : > { %s6680_s16 = sld [smem:[#allocation55_spill]]  ;;  %s6682_s30 = sld [smem:[#allocation57_spill]] }
 0x1a3   : > { %v6659_v4 = vstv %s6645_s9  ;;  %s6686_s1 = sld [smem:[#allocation59_spill]]  ;;  %s6687_s9 = sld [smem:[#allocation60_spill]] }
 0x1a4   : > { %v6660_v1 = vstv %s6646_s5  ;;  %s6688_s5 = sld [smem:[#allocation61_spill]] }
 0x1a5   : > { %v6664_v29 = vstv %s6650_s18  ;;  %s6693_s18 = sld [smem:[#allocation62_spill]] }
 0x1a6   : > { %v6666_v0 = vstv %s6651_s28  ;;  %s6694_s28 = sld [smem:[#allocation63_spill]] }
 0x1a7   : > { %6672 = sst [smem:[#allocation34_spill]] %s4303_s2  ;;  %v6678_v5 = vstv %s6667_s25  ;;  %s6703_s25 = sld [smem:[#allocation70_spill]] }
 0x1d4   : > { %v312_v21 = vpop.permute.xlu0 %311 }
 0x1d5   : > { %v314_v57 = vsel %vm4204_vm9, %v312_v21, 0.0 }
 0x1d6   : > { %v317_v23 = vmul.f32 %v6638_v30, %v314_v57  ;;  %v321_v18 = vmul.f32 %v6640_v32, %v314_v57  ;;  %v325_v16 = vmul.f32 %v6641_v14, %v314_v57  ;;  %v329_v22 = vmul.f32 %v6642_v35, %v314_v57 }
 0x1d7   : > { %v1058_v32 = vstv %s4214_s14  ;;  %v1062_v14 = vstv %s4216_s15  ;;  %v1074_v35 = vstv %s4222_s8  ;;  %v1078_v30 = vstv %s4224_s20  ;;  %s4285_s15 = sld [smem:[#allocation6 + $0x50]]  ;;  %s6663_s8 = sld [smem:[#allocation47_spill]] }
 0x1d8   : > { %v318_v21 = vadd.f32 %v317_v23, %v6653_v56  ;;  %v322_v20 = vadd.f32 %v321_v18, %v6657_v10  ;;  %v326_v55 = vadd.f32 %v325_v16, %v6658_v36  ;;  %v330_v44 = vadd.f32 %v329_v22, %v6659_v4  ;;  %s6665_s20 = sld [smem:[#allocation48_spill]]  ;;  %s6683_s14 = sld [smem:[#allocation58_spill]] }
 0x1d9   : > { %v6662_v23 = vstv %s6648_s10  ;;  %v6668_v36 = vstv %s6652_s12  ;;  %v6669_v4 = vstv %s6654_s11  ;;  %v6670_v16 = vstv %s6655_s3  ;;  %s6679_s3 = sld [smem:[#allocation54_spill]]  ;;  %s6681_s11 = sld [smem:[#allocation56_spill]] }
 0x1da   : > { %v375_v18 = vmul.f32 %v6668_v36, %v314_v57  ;;  %v379_v22 = vmul.f32 %v6669_v4, %v314_v57  ;;  %v387_v63 = vmul.f32 %v6671_v34, %v314_v57  ;;  %v6675_v36 = vstv %s6661_s17  ;;  %s6689_s10 = sld [smem:[#allocation67_spill]]  ;;  %s6695_s12 = sld [smem:[#allocation64_spill]] }
 0x1db   : > { %s6696_s17 = sld [smem:[#allocation65_spill]] }
 0x1de   : > { %v6677_v34 = vstv %s6665_s20  ;;  %s6702_s20 = sld [smem:[#allocation69_spill]] }
 0x1df   : > { %v354_v52 = vpop.permute.xlu1 %353 }
 0x1e0   : > { %v356_v33 = vsel %vm4204_vm9, %v354_v52, 0.0  ;;  %v383_v52 = vmul.f32 %v6670_v16, %v314_v57  ;;  %v6676_v16 = vstv %s6663_s8  ;;  %s6701_s8 = sld [smem:[#allocation68_spill]] }
 0x1e1   : > { %v359_v56 = vmul.f32 %v6660_v1, %v356_v33  ;;  %v363_v47 = vmul.f32 %v6662_v23, %v356_v33  ;;  %v367_v24 = vmul.f32 %v6664_v29, %v356_v33  ;;  %v371_v10 = vmul.f32 %v6666_v0, %v356_v33  ;;  %v472_v29 = vpop.permute.xlu0 %471 }
 0x1e2   : > { %v391_v4 = vmul.f32 %v6675_v36, %v356_v33  ;;  %v395_v19 = vmul.f32 %v6676_v16, %v356_v33  ;;  %v399_v57 = vmul.f32 %v6677_v34, %v356_v33  ;;  %v4330_v36 = vmul.f32 %v1074_v35, %v3730_v6 }
 0x1e3   : > { %v360_v1 = vadd.f32 %v359_v56, %v318_v21  ;;  %v364_v17 = vadd.f32 %v363_v47, %v322_v20  ;;  %v368_v12 = vadd.f32 %v367_v24, %v326_v55  ;;  %v372_v23 = vadd.f32 %v371_v10, %v330_v44 }
 0x1e4   : > { %v403_v21 = vmul.f32 %v6678_v5, %v356_v33  ;;  %v474_v55 = vsel %vm4309_vm11, %v472_v29, 0.0  ;;  %v4324_v56 = vmul.f32 %v1058_v32, %v3739_v7  ;;  %v4327_v10 = vmul.f32 %v1062_v14, %v3739_v7 }
 0x1e5   : > { %v376_v24 = vadd.f32 %v375_v18, %v360_v1  ;;  %v380_v47 = vadd.f32 %v379_v22, %v364_v17  ;;  %v384_v44 = vadd.f32 %v383_v52, %v368_v12  ;;  %v388_v20 = vadd.f32 %v387_v63, %v372_v23  ;;  %v551_v1 = vpop.permute.xlu0 %550 }
 0x1e6   : > { %v4333_v63 = vmul.f32 %v1078_v30, %v3730_v6  ;;  %v4336_v18 = vmul.f32 %v1090_v11, %v3739_v7  ;;  %v4339_v32 = vmul.f32 %v1094_v51, %v3739_v7  ;;  %v1110_v14 = vstv %s4285_s15  ;;  %v492_v30 = vpop.permute.xlu1 %491  ;;  %s2941_s15 = sld [smem:[#allocation6 + $0x13c]] }
 0x1e7   : > { %v392_v5 = vadd.f32 %v391_v4, %v376_v24  ;;  %v396_v33 = vadd.f32 %v395_v19, %v380_v47  ;;  %v400_v17 = vadd.f32 %v399_v57, %v384_v44  ;;  %v404_v12 = vadd.f32 %v403_v21, %v388_v20 }
 0x1e8   : > { %v6684_v23 = vstv %s6679_s3  ;;  %v6685_v29 = vstv %s6680_s16  ;;  %v4352_v4 = vsel %vm187_vm8, %v551_v1, 0.0  ;;  %v6690_v34 = vstv %s6681_s11  ;;  %s4384_s3 = sld [smem:[#allocation6 + $0x62]]  ;;  %s4386_s16 = sld [smem:[#allocation6 + $0x86]] }
 0x1e9   : > { %v409_v35 = vadd.f32 %v3828_v49, %v392_v5  ;;  %v413_v19 = vadd.f32 %v3831_v50, %v396_v33  ;;  %v417_v22 = vadd.f32 %v3840_v53, %v400_v17  ;;  %v421_v52 = vadd.f32 %v3843_v54, %v404_v12  ;;  %s6708_s11 = sld [smem:[#allocation50_spill]] }
 0x1ea   : > { %v477_v11 = vmul.f32 %v6684_v23, %v474_v55  ;;  %v481_v51 = vmul.f32 %v6685_v29, %v474_v55  ;;  %v1114_v49 = vstv %s4303_s2  ;;  %v485_v57 = vmul.f32 %v6690_v34, %v474_v55  ;;  %s6734_s2 = sld [smem:[#allocation82_spill]] }
 0x1eb   : > { %v426_v50 = vadd.f32 %v3804_v41, %v409_v35  ;;  %v430_v53 = vadd.f32 %v3807_v42, %v413_v19  ;;  %v434_v54 = vadd.f32 %v3810_v43, %v417_v22  ;;  %v438_v16 = vadd.f32 %v3818_v45, %v421_v52 }
 0x1ec   : > { %v6691_v21 = vstv %s6682_s30  ;;  %v6692_v47 = vstv %s6683_s14  ;;  %v494_v20 = vsel %vm4309_vm11, %v492_v30, 0.0  ;;  %v6697_v45 = vstv %s6686_s1  ;;  %s4396_s30 = sld [smem:[#allocation6 + $0x2b]]  ;;  %s6709_s14 = sld [smem:[#allocation51_spill]] }
 0x1ed   : > { %v489_v24 = vmul.f32 %v6691_v21, %v474_v55  ;;  %v513_v44 = vmul.f32 %v6692_v47, %v474_v55  ;;  %v442_v5 = vadd.f32 %v3879_v40, %v426_v50  ;;  %v446_v41 = vadd.f32 %v3882_v31, %v430_v53  ;;  %s4398_s1 = sld [smem:[#allocation6 + $0x34]] }
 0x1ee   : > { %v450_v42 = vadd.f32 %v3885_v37, %v434_v54  ;;  %v454_v43 = vadd.f32 %v3906_v61, %v438_v16  ;;  %v517_v33 = vmul.f32 %v6697_v45, %v474_v55  ;;  %v6698_v17 = vstv %s6687_s9  ;;  %s6710_s9 = sld [smem:[#allocation52_spill]]  ;;  %v578_v16 = vpop.permute.xlu1 %577 }
 0x1ef   : > { %v521_v12 = vmul.f32 %v6698_v17, %v474_v55  ;;  %v6699_v35 = vstv %s6688_s5  ;;  %v6700_v22 = vstv %s6689_s10  ;;  %v458_v30 = vadd.f32 %v3876_v39, %v442_v5  ;;  %s6711_s5 = sld [smem:[#allocation66_spill]]  ;;  %s6715_s10 = sld [smem:[#allocation75_spill]] }
 0x1f0   : > { %v525_v19 = vmul.f32 %v6699_v35, %v474_v55  ;;  %v556_v52 = vmul.f32 %v6700_v22, %v4352_v4  ;;  %v462_v40 = vadd.f32 %v3892_v62, %v446_v41  ;;  %v466_v31 = vadd.f32 %v3895_v58, %v450_v42 }
 0x1f1   : > { %v470_v37 = vadd.f32 %v3898_v60, %v454_v43  ;;  %v6704_v61 = vstv %s6693_s18  ;;  %v6705_v1 = vstv %s6694_s28  ;;  %v6706_v29 = vstv %s6695_s12  ;;  %s6716_s18 = sld [smem:[#allocation76_spill]]  ;;  %s6717_s28 = sld [smem:[#allocation77_spill]] }
 0x1f2   : > { %v497_v55 = vmul.f32 %v6704_v61, %v494_v20  ;;  %v501_v23 = vmul.f32 %v6705_v1, %v494_v20  ;;  %v505_v50 = vmul.f32 %v6706_v29, %v494_v20  ;;  %v6707_v39 = vstv %s6696_s17  ;;  %s6718_s12 = sld [smem:[#allocation78_spill]]  ;;  %s4419_s17 = sld [smem:[#allocation6 + $0x59]] }
 0x1f3   : > { %v509_v53 = vmul.f32 %v6707_v39, %v494_v20  ;;  %v478_v62 = vadd.f32 %v477_v11, %v458_v30  ;;  %v482_v58 = vadd.f32 %v481_v51, %v462_v40  ;;  %v486_v60 = vadd.f32 %v485_v57, %v466_v31 }
 0x1f4   : > { %v490_v54 = vadd.f32 %v489_v24, %v470_v37  ;;  %v6712_v34 = vstv %s6701_s8  ;;  %v6713_v47 = vstv %s6702_s20  ;;  %v6714_v41 = vstv %s6703_s25  ;;  %s4429_s8 = sld [smem:[#allocation6 + $0x7d]]  ;;  %s6727_s20 = sld [smem:[#allocation71_spill]] }
 0x1f5   : > { %v560_v21 = vmul.f32 %v6712_v34, %v4352_v4  ;;  %v564_v5 = vmul.f32 %v6713_v47, %v4352_v4  ;;  %v568_v42 = vmul.f32 %v6714_v41, %v4352_v4  ;;  %v580_v43 = vsel %vm187_vm8, %v578_v16, 0.0  ;;  %s4431_s25 = sld [smem:[#allocation6 + $0x6b]] }
 0x1f6   : > { %v498_v11 = vadd.f32 %v497_v55, %v478_v62  ;;  %v502_v51 = vadd.f32 %v501_v23, %v482_v58  ;;  %v506_v57 = vadd.f32 %v505_v50, %v486_v60  ;;  %v510_v24 = vadd.f32 %v509_v53, %v490_v54 }
 0x1f7   : > { %v6719_v45 = vstv %s6708_s11  ;;  %v6720_v35 = vstv %s6709_s14  ;;  %v6721_v30 = vstv %s6710_s9  ;;  %v6722_v31 = vstv %s6711_s5  ;;  %s6728_s11 = sld [smem:[#allocation72_spill]]  ;;  %s6729_s14 = sld [smem:[#allocation73_spill]] }
 0x1f8   : > { %v529_v17 = vmul.f32 %v6719_v45, %v494_v20  ;;  %v533_v22 = vmul.f32 %v6720_v35, %v494_v20  ;;  %v537_v40 = vmul.f32 %v6721_v30, %v494_v20  ;;  %v541_v37 = vmul.f32 %v6722_v31, %v494_v20  ;;  %s6730_s9 = sld [smem:[#allocation74_spill]]  ;;  %s4435_s5 = sld [smem:[#allocation6 + $0x8f]] }
 0x1f9   : > { %v514_v61 = vadd.f32 %v513_v44, %v498_v11  ;;  %v518_v1 = vadd.f32 %v517_v33, %v502_v51  ;;  %v522_v29 = vadd.f32 %v521_v12, %v506_v57  ;;  %v526_v39 = vadd.f32 %v525_v19, %v510_v24 }
 0x1fa   : > { %v6723_v55 = vstv %s6715_s10  ;;  %v6724_v50 = vstv %s6716_s18  ;;  %v6725_v62 = vstv %s6717_s28  ;;  %v6726_v60 = vstv %s6718_s12  ;;  %s6731_s10 = sld [smem:[#allocation79_spill]]  ;;  %s4439_s18 = sld [smem:[#allocation6 + $0x3d]] }
 0x1fb   : > { %v583_v23 = vmul.f32 %v6723_v55, %v580_v43  ;;  %v587_v53 = vmul.f32 %v6724_v50, %v580_v43  ;;  %v591_v58 = vmul.f32 %v6725_v62, %v580_v43  ;;  %v595_v54 = vmul.f32 %v6726_v60, %v580_v43  ;;  %s6732_s28 = sld [smem:[#allocation80_spill]]  ;;  %s6733_s12 = sld [smem:[#allocation81_spill]] }
 0x1fc   : > { %v530_v44 = vadd.f32 %v529_v17, %v514_v61  ;;  %v534_v20 = vadd.f32 %v533_v22, %v518_v1  ;;  %v538_v33 = vadd.f32 %v537_v40, %v522_v29  ;;  %v542_v12 = vadd.f32 %v541_v37, %v526_v39  ;;  %v870_v37 = vpop.permute.xlu0 %869 }
 0x1fd   : > { %v1146_v19 = vstv %s4384_s3  ;;  %v1150_v16 = vstv %s4386_s16  ;;  %v1037_v34 = vstv %s4396_s30  ;;  %v1054_v47 = vstv %s4398_s1  ;;  %s4453_s30 = sld [smem:[#allocation6 + $0x7]]  ;;  %s6744_s1 = sld [smem:[#allocation86_spill]] }
 0x1fe   : > { %v557_v41 = vadd.f32 %v556_v52, %v530_v44  ;;  %v561_v11 = vadd.f32 %v560_v21, %v534_v20  ;;  %v565_v51 = vadd.f32 %v564_v5, %v538_v33  ;;  %v569_v57 = vadd.f32 %v568_v42, %v542_v12  ;;  %s2942_s3 = sld [smem:[#allocation6 + $0x13e]]  ;;  %s2943_s16 = sld [smem:[#allocation6 + $0x13d]] }
 0x1ff   : > { %v6735_v24 = vstv %s6727_s20  ;;  %v6736_v17 = vstv %s6728_s11  ;;  %v6737_v22 = vstv %s6729_s14  ;;  %v6738_v40 = vstv %s6730_s9  ;;  %s6745_s20 = sld [smem:[#allocation87_spill]]  ;;  %s6746_s11 = sld [smem:[#allocation88_spill]] }
 0x200   : > { %v599_v45 = vmul.f32 %v6735_v24, %v4352_v4  ;;  %v603_v35 = vmul.f32 %v6736_v17, %v4352_v4  ;;  %v607_v30 = vmul.f32 %v6737_v22, %v4352_v4  ;;  %v611_v31 = vmul.f32 %v6738_v40, %v4352_v4  ;;  %s6750_s14 = sld [smem:[#allocation89_spill]]  ;;  %s6752_s9 = sld [smem:[#allocation90_spill]] }
 0x201   : > { %v584_v52 = vadd.f32 %v583_v23, %v557_v41  ;;  %v588_v21 = vadd.f32 %v587_v53, %v561_v11  ;;  %v592_v5 = vadd.f32 %v591_v58, %v565_v51  ;;  %v596_v42 = vadd.f32 %v595_v54, %v569_v57  ;;  %v890_v57 = vpop.permute.xlu1 %889 }
 0x202   : > { %v6739_v61 = vstv %s6731_s10  ;;  %v6740_v29 = vstv %s6732_s28  ;;  %v6741_v55 = vstv %s6733_s12  ;;  %v6742_v62 = vstv %s6734_s2  ;;  %s6743_s2 = sld [smem:[#allocation85_spill]]  ;;  %s6763_s28 = sld [smem:[#allocation94_spill]] }
 0x203   : > { %v615_v1 = vmul.f32 %v6739_v61, %v580_v43  ;;  %v619_v39 = vmul.f32 %v6740_v29, %v580_v43  ;;  %v623_v50 = vmul.f32 %v6741_v55, %v580_v43  ;;  %v627_v60 = vmul.f32 %v6742_v62, %v580_v43  ;;  %s6762_s10 = sld [smem:[#allocation93_spill]]  ;;  %s6767_s12 = sld [smem:[#allocation95_spill]] }
 0x204   : > { %v600_v4 = vadd.f32 %v599_v45, %v584_v52  ;;  %v604_v44 = vadd.f32 %v603_v35, %v588_v21  ;;  %v608_v20 = vadd.f32 %v607_v30, %v592_v5  ;;  %v612_v33 = vadd.f32 %v611_v31, %v596_v42  ;;  %v6749_v42 = vld [vmem:[#allocation83_spill] sm:$0xff] }
 0x205   : > { %v872_v23 = vsel %vm189_vm10, %v870_v37, 0.0  ;;  %v1130_v53 = vstv %s4419_s17  ;;  %v1134_v58 = vstv %s4429_s8  ;;  %v1162_v54 = vstv %s4431_s25  ;;  %s2944_s17 = sld [smem:[#allocation6 + $0x13f]]  ;;  %s6807_s8 = smov 16  }
 0x206   : > { %v616_v12 = vadd.f32 %v615_v1, %v600_v4  ;;  %v620_v41 = vadd.f32 %v619_v39, %v604_v44  ;;  %v624_v11 = vadd.f32 %v623_v50, %v608_v20  ;;  %v628_v51 = vadd.f32 %v627_v60, %v612_v33  ;;  %v951_v33 = vpop.permute.xlu0 %950  ;;  %s6808_s25 = smov 113  }
 0x207   : > { %v1166_v43 = vstv %s4435_s5  ;;  %v4470_v24 = vmul.f32 %v1037_v34, %v3730_v6  ;;  %v4473_v45 = vmul.f32 %v1054_v47, %v3739_v7  ;;  %v1070_v17 = vstv %s4439_s18  ;;  %s6809_s5 = smov 127   ;;  %s4786_s18 = sld [smem:[#allocation6 + $0xaa]] }
 0x208   : > { %v643_v35 = vadd.f32 %v3968_v48, %v616_v12  ;;  %v658_v22 = vadd.f32 %v4000_v38, %v620_v41  ;;  %v673_v30 = vadd.f32 %v4012_v9, %v624_v11  ;;  %v688_v40 = vadd.f32 %v4018_v25, %v628_v51  ;;  %v6751_v48 = vld [vmem:[#allocation84_spill] sm:$0xff] }
 0x209   : > { %v6747_v31 = vstv %s4033_s26  ;;  %v6748_v34 = vstv %s4035_s6  ;;  %v892_v47 = vsel %vm189_vm10, %v890_v57, 0.0  ;;  %v1033_v5 = vstv %s4453_s30  ;;  %s6760_s6 = sld [smem:[#allocation91_spill]]  ;;  %s6761_s26 = sld [smem:[#allocation92_spill]] }
 0x20a   : > { %v875_v52 = vmul.f32 %v6747_v31, %v872_v23  ;;  %v879_v21 = vmul.f32 %v6748_v34, %v872_v23  ;;  %v703_v37 = vadd.f32 %v6749_v42, %v643_v35  ;;  %v718_v61 = vadd.f32 %v6751_v48, %v658_v22  ;;  %s4583_s30 = sld [smem:[#allocation6 + $0x47]] }
 0x20b   : > { %v733_v38 = vadd.f32 %v4139_v15, %v673_v30  ;;  %v748_v9 = vadd.f32 %v4151_v59, %v688_v40  ;;  %v6753_v25 = vmov 0  ;;  %v6756_v1 = vstv %s6743_s2  ;;  %v6768_v30 = vld [vmem:[#allocation105_spill] sm:$0xff]  ;;  %s6769_s2 = sld [smem:[#allocation96_spill]]  ;;  %v6770_v40 = vld [vmem:[#allocation108_spill] sm:$0xff] }
 0x20c   : > { %v6754_v25 = vsel %vm4495_vm12, 4294967295, %v6753_v25  ;;  %v883_v29 = vmul.f32 %v6756_v1, %v872_v23  ;;  %v6757_v39 = vstv %s6744_s1  ;;  %v6758_v50 = vstv %s6745_s20  ;;  %s6771_s1 = sld [smem:[#allocation97_spill]]  ;;  %s4533_s20 = sld [smem:[#allocation6 + $0x10]] }
 0x20d   : > { %6755 = vst [vmem:[#allocation83_spill] sm:$0xff] %v6754_v25  ;;  %v887_v55 = vmul.f32 %v6757_v39, %v872_v23  ;;  %v911_v62 = vmul.f32 %v6758_v50, %v872_v23  ;;  %v6759_v60 = vstv %s6746_s11  ;;  %v763_v15 = vadd.f32 %v4156_v13, %v703_v37  ;;  %s6776_s11 = sld [smem:[#allocation98_spill]]  ;;  %v980_v39 = vpop.permute.xlu1 %979 }
 0x20e   : > { %v915_v4 = vmul.f32 %v6759_v60, %v872_v23  ;;  %v778_v59 = vadd.f32 %v4165_v26, %v718_v61  ;;  %v793_v44 = vadd.f32 %v4168_v27, %v733_v38  ;;  %v808_v20 = vadd.f32 %v4171_v46, %v748_v9 }
 0x20f   : > { %v6764_v12 = vstv %s4067_s29  ;;  %v6765_v11 = vstv %s6750_s14  ;;  %v6766_v57 = vstv %s6752_s9  ;;  %v953_v22 = vsel %vm4495_vm12, %v951_v33, 0.0  ;;  %s4523_s29 = sld [smem:[#allocation6 + $0x46]]  ;;  %s4535_s14 = sld [smem:[#allocation6 + $0x19]] }
 0x210   : > { %v919_v41 = vmul.f32 %v6764_v12, %v872_v23  ;;  %v923_v51 = vmul.f32 %v6765_v11, %v872_v23  ;;  %v895_v35 = vmul.f32 %v6766_v57, %v892_v47  ;;  %v823_v13 = vadd.f32 %v4179_v2, %v763_v15  ;;  %s4563_s9 = sld [smem:[#allocation6 + $0x2c]] }
 0x211   : > { %v838_v26 = vadd.f32 %v4182_v28, %v778_v59  ;;  %v853_v27 = vadd.f32 %v6768_v30, %v793_v44  ;;  %v868_v46 = vadd.f32 %v6770_v40, %v808_v20  ;;  %v6772_v31 = vstv %s6760_s6  ;;  %s6792_s6 = sld [smem:[#allocation106_spill]] }
 0x212   : > { %v899_v23 = vmul.f32 %v6772_v31, %v892_v47  ;;  %v6773_v34 = vstv %s6761_s26  ;;  %v6774_v37 = vstv %s6762_s10  ;;  %v6775_v61 = vstv %s6763_s28  ;;  %s4585_s26 = sld [smem:[#allocation6 + $0x8]]  ;;  %s4587_s10 = sld [smem:[#allocation6 + $0x11]] }
 0x213   : > { %v903_v42 = vmul.f32 %v6773_v34, %v892_v47  ;;  %v907_v48 = vmul.f32 %v6774_v37, %v892_v47  ;;  %v927_v38 = vmul.f32 %v6775_v61, %v892_v47  ;;  %v876_v2 = vadd.f32 %v875_v52, %v823_v13  ;;  %s4788_s28 = sld [smem:[#allocation6 + $0xce]] }
 0x214   : > { %v880_v28 = vadd.f32 %v879_v21, %v838_v26  ;;  %v884_v9 = vadd.f32 %v883_v29, %v853_v27  ;;  %v888_v1 = vadd.f32 %v887_v55, %v868_v46  ;;  %v6777_v50 = vstv %s6767_s12  ;;  %s4790_s12 = sld [smem:[#allocation6 + $0xf2]] }
 0x215   : > { %v931_v60 = vmul.f32 %v6777_v50, %v892_v47  ;;  %v6778_v15 = vstv %s6769_s2  ;;  %v6779_v44 = vstv %s6771_s1  ;;  %v982_v33 = vsel %vm4495_vm12, %v980_v39, 0.0  ;;  %s4792_s2 = sld [smem:[#allocation6 + $0x116]]  ;;  %s4794_s1 = sld [smem:[#allocation6 + $0xb3]] }
 0x216   : > { %v935_v59 = vmul.f32 %v6778_v15, %v892_v47  ;;  %v939_v20 = vmul.f32 %v6779_v44, %v892_v47  ;;  %v896_v12 = vadd.f32 %v895_v35, %v876_v2  ;;  %v900_v52 = vadd.f32 %v899_v23, %v880_v28 }
 0x217   : > { %v904_v11 = vadd.f32 %v903_v42, %v884_v9  ;;  %v908_v21 = vadd.f32 %v907_v48, %v888_v1  ;;  %v6780_v29 = vstv %s4108_s19  ;;  %v6781_v57 = vstv %s6776_s11  ;;  %s6789_s19 = sld [smem:[#allocation100_spill]]  ;;  %s4802_s11 = sld [smem:[#allocation6 + $0xcb]] }
 0x218   : > { %v956_v55 = vmul.f32 %v6780_v29, %v953_v22  ;;  %v960_v13 = vmul.f32 %v6781_v57, %v953_v22  ;;  %v6782_v26 = vstv %s4116_s7  ;;  %v6783_v27 = vstv %s4118_s23  ;;  %s4561_s7 = sld [smem:[#allocation6 + $0x22]]  ;;  %s6788_s23 = sld [smem:[#allocation99_spill]] }
 0x219   : > { %v964_v30 = vmul.f32 %v6782_v26, %v953_v22  ;;  %v968_v40 = vmul.f32 %v6783_v27, %v953_v22  ;;  %v912_v46 = vadd.f32 %v911_v62, %v896_v12  ;;  %v916_v47 = vadd.f32 %v915_v4, %v900_v52 }
 0x21a   : > { %v920_v31 = vadd.f32 %v919_v41, %v904_v11  ;;  %v924_v34 = vadd.f32 %v923_v51, %v908_v21  ;;  %v6784_v37 = vstv %s4144_s22  ;;  %v6785_v23 = vstv %s4146_s0  ;;  %s4566_s22 = sld [smem:[#allocation6 + $0x35]]  ;;  %s4568_s0 = sld [smem:[#allocation6 + $0x3e]] }
 0x21b   : > { %v985_v35 = vmul.f32 %v6784_v37, %v982_v33  ;;  %v989_v42 = vmul.f32 %v6785_v23, %v982_v33  ;;  %v6786_v48 = vstv %s6632_s21  ;;  %v6787_v2 = vstv %s6633_s27  ;;  %s6790_s27 = sld [smem:[#allocation103_spill]]  ;;  %s6791_s21 = sld [smem:[#allocation104_spill]] }
 0x21c   : > { %v993_v61 = vmul.f32 %v6786_v48, %v982_v33  ;;  %v997_v28 = vmul.f32 %v6787_v2, %v982_v33  ;;  %v928_v9 = vadd.f32 %v927_v38, %v912_v46  ;;  %v932_v62 = vadd.f32 %v931_v60, %v916_v47 }
 0x21d   : > { %v936_v4 = vadd.f32 %v935_v59, %v920_v31  ;;  %v940_v41 = vadd.f32 %v939_v20, %v924_v34  ;;  %v1086_v51 = vstv %s4523_s29  ;;  %v1034_v1 = vmul.f32 %v1033_v5, %v3730_v6  ;;  %s4796_s29 = sld [smem:[#allocation6 + $0xa7]] }
 0x21e   : > { %v1050_v39 = vstv %s4533_s20  ;;  %v1066_v50 = vstv %s4535_s14  ;;  %v957_v38 = vadd.f32 %v956_v55, %v928_v9  ;;  %v961_v60 = vadd.f32 %v960_v13, %v932_v62  ;;  %s4798_s20 = sld [smem:[#allocation6 + $0xd7]] }
 0x21f   : > { %v965_v15 = vadd.f32 %v964_v30, %v936_v4  ;;  %v969_v59 = vadd.f32 %v968_v40, %v940_v41  ;;  %v6793_v44 = vstv %s4124_s24  ;;  %v6794_v12 = vstv %s4126_s4  ;;  %s4597_s24 = sld [smem:[#allocation6 + $0x1a]]  ;;  %s4599_s4 = sld [smem:[#allocation6 + $0x23]]  ;;  %v1098_v4 = vpop.permute.xlu0 %1097 }
 0x220   : > { %v1001_v20 = vmul.f32 %v6793_v44, %v953_v22  ;;  %v1005_v52 = vmul.f32 %v6794_v12, %v953_v22  ;;  %v6795_v11 = vstv %s6788_s23  ;;  %v6796_v29 = vstv %s6789_s19  ;;  %v6805_v44 = vld [vmem:[#allocation110_spill] sm:$0xff]  ;;  %v1118_v12 = vpop.permute.xlu1 %1117  ;;  %s4804_s14 = sld [smem:[#allocation6 + $0xef]]  ;;  %s4808_s23 = sld [smem:[#allocation6 + $0xb0]] }
 0x221   : > { %v1009_v21 = vmul.f32 %v6795_v11, %v953_v22  ;;  %v1013_v57 = vmul.f32 %v6796_v29, %v953_v22  ;;  %v986_v5 = vadd.f32 %v985_v35, %v957_v38  ;;  %v990_v55 = vadd.f32 %v989_v42, %v961_v60  ;;  %s4810_s19 = sld [smem:[#allocation6 + $0xd4]] }
 0x222   : > { %v994_v13 = vadd.f32 %v993_v61, %v965_v15  ;;  %v998_v26 = vadd.f32 %v997_v28, %v969_v59  ;;  %v6797_v30 = vstv %s6790_s27  ;;  %v6798_v40 = vstv %s6791_s21  ;;  %v6804_v15 = vld [vmem:[#allocation109_spill] sm:$0xff]  ;;  %s4822_s27 = sld [smem:[#allocation6 + $0x11f]]  ;;  %s4824_s21 = sld [smem:[#allocation6 + $0xad]] }
 0x223   : > { %v1017_v27 = vmul.f32 %v6797_v30, %v982_v33  ;;  %v1021_v46 = vmul.f32 %v6798_v40, %v982_v33  ;;  %v6799_v47 = vstv %s4196_s13  ;;  %v6800_v34 = vstv %s6792_s6  ;;  %s4826_s6 = sld [smem:[#allocation6 + $0xd1]]  ;;  %s4844_s13 = sld [smem:[#allocation6 + $0x98]] }
 0x224   : > { %v1025_v31 = vmul.f32 %v6799_v47, %v982_v33  ;;  %v1029_v22 = vmul.f32 %v6800_v34, %v982_v33  ;;  %v1010_v37 = vadd.f32 %v1009_v21, %v994_v13  ;;  %v1014_v35 = vadd.f32 %v1013_v57, %v998_v26 }
 0x225   : > { %v1006_v23 = vadd.f32 %v1005_v52, %v990_v55  ;;  %v1002_v42 = vadd.f32 %v1001_v20, %v986_v5  ;;  %v1071_v48 = vmul.f32 %v1070_v17, %v3730_v6  ;;  %v1087_v61 = vmul.f32 %v1086_v51, %v3739_v7 }
 0x226   : > { %v1051_v2 = vmul.f32 %v1050_v39, %v3739_v7  ;;  %v1082_v28 = vstv %s4561_s7  ;;  %v1026_v33 = vadd.f32 %v1025_v31, %v1010_v37  ;;  %v1030_v9 = vadd.f32 %v1029_v22, %v1014_v35  ;;  %s4806_s7 = sld [smem:[#allocation6 + $0x113]] }
 0x227   : > { %v6801_v62 = vmov 0  ;;  %v1022_v41 = vadd.f32 %v1021_v46, %v1006_v23  ;;  %v1018_v17 = vadd.f32 %v1017_v27, %v1002_v42  ;;  %v1106_v38 = vstv %s4563_s9  ;;  %s4812_s9 = sld [smem:[#allocation6 + $0xf8]] }
 0x228   : > { %v6802_v62 = vsel %vm4611_vm13, 4294967295, %v6801_v62  ;;  %v1126_v51 = vstv %s4566_s22  ;;  %v1142_v60 = vstv %s4568_s0  ;;  %v1067_v39 = vmul.f32 %v1066_v50, %v3730_v6  ;;  %s4816_s22 = sld [smem:[#allocation6 + $0x11c]]  ;;  %s4818_s0 = sld [smem:[#allocation6 + $0xfb]] }
 0x229   : > { %6803 = vst [vmem:[#allocation84_spill] sm:$0xff] %v6802_v62  ;;  %v1043_v59 = vadd.f32 %v6804_v15, %v1026_v33  ;;  %v1047_v20 = vadd.f32 %v6805_v44, %v1030_v9  ;;  %v1039_v52 = vadd.f32 %v4470_v24, %v1022_v41  ;;  %v1035_v11 = vadd.f32 %v1034_v1, %v1018_v17  ;;  %6812 = sst [smem:[#allocation35_spill]] %s4844_s13  ;;  %s4864_s13 = sld [smem:[#allocation6 + $0x101]] }
 0x22a   : > { %v1100_v21 = vsel %vm4611_vm13, %v1098_v4, 0.0  ;;  %v1158_v29 = vstv %s4583_s30  ;;  %v1083_v57 = vmul.f32 %v1082_v28, %v3739_v7  ;;  %v1102_v5 = vstv %s4585_s26  ;;  %s4828_s30 = sld [smem:[#allocation6 + $0xf5]]  ;;  %s4830_s26 = sld [smem:[#allocation6 + $0x119]] }
 0x22b   : > { %v1060_v6 = vadd.f32 %v4324_v56, %v1043_v59  ;;  %v1064_v50 = vadd.f32 %v4327_v10, %v1047_v20  ;;  %v1056_v55 = vadd.f32 %v4473_v45, %v1039_v52  ;;  %v1052_v13 = vadd.f32 %v1051_v2, %v1035_v11 }
 0x22c   : > { %v1120_v24 = vsel %vm4611_vm13, %v1118_v12, 0.0  ;;  %v1122_v1 = vstv %s4587_s10  ;;  %v1138_v26 = vstv %s4597_s24  ;;  %v1154_v30 = vstv %s4599_s4  ;;  %s4832_s10 = sld [smem:[#allocation6 + $0xb6]]  ;;  %s4838_s24 = sld [smem:[#allocation6 + $0xda]] }
 0x22d   : > { %v1076_v27 = vadd.f32 %v4330_v36, %v1060_v6  ;;  %v1080_v7 = vadd.f32 %v4333_v63, %v1064_v50  ;;  %v1072_v40 = vadd.f32 %v1071_v48, %v1056_v55  ;;  %v1068_v46 = vadd.f32 %v1067_v39, %v1052_v13  ;;  %s4840_s4 = sld [smem:[#allocation6 + $0xfe]] }
 0x22e   : > { %v1111_v56 = vmul.f32 %v1110_v14, %v1100_v21  ;;  %v1115_v10 = vmul.f32 %v1114_v49, %v1100_v21  ;;  %v1107_v45 = vmul.f32 %v1106_v38, %v1100_v21  ;;  %v1103_v47 = vmul.f32 %v1102_v5, %v1100_v21 }
 0x22f   : > { %v1092_v31 = vadd.f32 %v4336_v18, %v1076_v27  ;;  %v1096_v34 = vadd.f32 %v4339_v32, %v1080_v7  ;;  %v1088_v22 = vadd.f32 %v1087_v61, %v1072_v40  ;;  %v1084_v37 = vadd.f32 %v1083_v57, %v1068_v46  ;;  %6820 = sst [smem:[#allocation43_spill]] %s4864_s13  ;;  %s4882_s13 = sld [smem:[#allocation6 + $0x10a]] }
 0x230   : > { %v1131_v36 = vmul.f32 %v1130_v53, %v1120_v24  ;;  %v1135_v63 = vmul.f32 %v1134_v58, %v1120_v24  ;;  %v1127_v35 = vmul.f32 %v1126_v51, %v1120_v24  ;;  %v1123_v14 = vmul.f32 %v1122_v1, %v1120_v24 }
 0x231   : > { %v1112_v23 = vadd.f32 %v1111_v56, %v1092_v31  ;;  %v1116_v42 = vadd.f32 %v1115_v10, %v1096_v34  ;;  %v1108_v49 = vadd.f32 %v1107_v45, %v1088_v22  ;;  %v1104_v48 = vadd.f32 %v1103_v47, %v1084_v37 }
 0x232   : > { %v1147_v2 = vmul.f32 %v1146_v19, %v1100_v21  ;;  %v1151_v18 = vmul.f32 %v1150_v16, %v1100_v21  ;;  %v1143_v28 = vmul.f32 %v1142_v60, %v1100_v21  ;;  %v1139_v32 = vmul.f32 %v1138_v26, %v1100_v21  ;;  %6810 = sst [smem:[#allocation101_spill]] %s4838_s24  ;;  %s4860_s24 = sld [smem:[#allocation6 + $0xdd]] }
 0x233   : > { %v1132_v61 = vadd.f32 %v1131_v36, %v1112_v23  ;;  %v1136_v33 = vadd.f32 %v1135_v63, %v1116_v42  ;;  %v1128_v9 = vadd.f32 %v1127_v35, %v1108_v49  ;;  %v1124_v53 = vadd.f32 %v1123_v14, %v1104_v48  ;;  %6811 = sst [smem:[#allocation102_spill]] %s4840_s4  ;;  %s4858_s4 = sld [smem:[#allocation6 + $0xb9]] }
 0x234   : > { %v1163_v4 = vmul.f32 %v1162_v54, %v1120_v24  ;;  %v1167_v58 = vmul.f32 %v1166_v43, %v1120_v24  ;;  %v1159_v41 = vmul.f32 %v1158_v29, %v1120_v24  ;;  %v1155_v17 = vmul.f32 %v1154_v30, %v1120_v24 }
 0x235   : > { %v1148_v38 = vadd.f32 %v1147_v2, %v1132_v61  ;;  %v1152_v51 = vadd.f32 %v1151_v18, %v1136_v33  ;;  %v1144_v39 = vadd.f32 %v1143_v28, %v1128_v9  ;;  %v1140_v15 = vadd.f32 %v1139_v32, %v1124_v53  ;;  %6826 = sst [smem:[#allocation41_spill]] %s4882_s13  ;;  %s4896_s13 = sld [smem:[#allocation6 + $0xc8]] }
 0x236   : > { %v1197_v33 = vstv %s2941_s15  ;;  %v1200_v53 = vstv %s2942_s3  ;;  %s4846_s15 = sld [smem:[#allocation6 + $0x122]]  ;;  %s4848_s3 = sld [smem:[#allocation6 + $0xbc]] }
 0x237   : > { %v4655_v19 = vadd.f32 %v1163_v4, %v1148_v38  ;;  %v4657_v16 = vadd.f32 %v1167_v58, %v1152_v51  ;;  %v1160_v60 = vadd.f32 %v1159_v41, %v1144_v39  ;;  %v1156_v59 = vadd.f32 %v1155_v17, %v1140_v15 }
 0x238   : > { %v1228_v38 = vstv %s2943_s16  ;;  %v1231_v15 = vstv %s2944_s17  ;;  %s4850_s16 = sld [smem:[#allocation6 + $0xe0]]  ;;  %s4852_s17 = sld [smem:[#allocation6 + $0x95]] }
 0x239   : > { %v1202_v44 = vsel %vm1169_vm14, %v1160_v60, 0.0  ;;  %v1170_v20 = vsel %vm1169_vm14, %v1156_v59, 0.0  ;;  %v1240_v32 = vmul.f32 0.2, %v4655_v19  ;;  %vm1239_vm15 = vcmp.gt.f32.partialorder %v4655_v19, 0.0  ;;  %6818 = sst [smem:[#allocation33_spill]] %s4858_s4 }
 0x23a   : > { %1203 = vadd.xlane.f32.xlu1 %v1202_v44  ;;  %1171 = vadd.xlane.f32.xlu0 %v1170_v20  ;;  %v1243_v58 = vmul.f32 0.2, %v4657_v16  ;;  %6819 = sst [smem:[#allocation42_spill]] %s4860_s24  ;;  %s4876_s4 = sld [smem:[#allocation6 + $0xc2]] }
 0x23b   : > { %v4666_v4 = vsel %vm1239_vm15, %v4655_v19, %v1240_v32  ;;  %s4878_s24 = sld [smem:[#allocation6 + $0xe6]]  ;;  %6832 = sst [smem:[#allocation55_spill]] %s4896_s13 }
 0x23c   : > { %6813 = sst [smem:[#allocation36_spill]] %s4846_s15  ;;  %s4874_s15 = sld [smem:[#allocation6 + $0x10d]] }
 0x23d   : > { %6814 = sst [smem:[#allocation37_spill]] %s4848_s3  ;;  %s4866_s3 = sld [smem:[#allocation6 + $0xa1]] }
 0x23e   : > { %6815 = sst [smem:[#allocation30_spill]] %s4850_s16  ;;  %s4868_s16 = sld [smem:[#allocation6 + $0xc5]] }
 0x23f   : > { %6816 = sst [smem:[#allocation31_spill]] %s4852_s17  ;;  %s4870_s17 = sld [smem:[#allocation6 + $0xe9]] }
 0x240   : > { %6825 = sst [smem:[#allocation40_spill]] %s4876_s4  ;;  %s4892_s4 = sld [smem:[#allocation6 + $0xa4]] }
 0x241   : > { %s4912_s13 = sld [smem:[#allocation6 + $0x127]] }
 0x243   : > { %6821 = sst [smem:[#allocation44_spill]] %s4866_s3  ;;  %s4884_s3 = sld [smem:[#allocation6 + $0x9b]] }
 0x244   : > { %6822 = sst [smem:[#allocation45_spill]] %s4868_s16  ;;  %s4886_s16 = sld [smem:[#allocation6 + $0xbf]] }
 0x245   : > { %6823 = sst [smem:[#allocation38_spill]] %s4870_s17 }
 0x246   : > { %s4888_s17 = sld [smem:[#allocation6 + $0xe3]]  ;;  %6831 = sst [smem:[#allocation54_spill]] %s4892_s4 }
 0x247   : > { %s4906_s4 = sld [smem:[#allocation6 + $0x125]]  ;;  %6837 = sst [smem:[#allocation60_spill]] %s4912_s13 }
 0x248   : > { %s5299_s13 = sld [smem:[#allocation6 + $0xac]] }
 0x249   : > { %6827 = sst [smem:[#allocation46_spill]] %s4884_s3  ;;  %s4898_s3 = sld [smem:[#allocation6 + $0xec]] }
 0x24a   : > { %6828 = sst [smem:[#allocation47_spill]] %s4886_s16  ;;  %s4908_s16 = sld [smem:[#allocation6 + $0x126]] }
 0x24c   : > { %6829 = sst [smem:[#allocation48_spill]] %s4888_s17  ;;  %s4902_s17 = sld [smem:[#allocation6 + $0x124]] }
 0x24d   : > { %6835 = sst [smem:[#allocation58_spill]] %s4906_s4  ;;  %s5229_s4 = sld [smem:[#allocation6 + $0xab]] }
 0x24f   : > { %6833 = sst [smem:[#allocation56_spill]] %s4898_s3 }
 0x250   : > { %6836 = sst [smem:[#allocation59_spill]] %s4908_s16  ;;  %s4914_s3 = sld [smem:[#allocation6 + $0x94]] }
 0x251   : > { %s5267_s16 = sld [smem:[#allocation6 + $0xbe]] }
 0x252   : > { %6834 = sst [smem:[#allocation57_spill]] %s4902_s17 }
 0x256   : > { %6838 = sst [smem:[#allocation61_spill]] %s4914_s3 }
 0x257   : > { %s5333_s3 = sld [smem:[#allocation6 + $0x121]] }
 0x25d   : > { %7015 = sst [smem:[#allocation142_spill]] %s5333_s3  ;;  %s5409_s3 = sld [smem:[#allocation6 + $0x12c]] }
 0x2c7   : > { %v1204_v54 = vpop.xlane.xlu1 %1203  ;;  %v1172_v43 = vpop.xlane.xlu0 %1171 }
 0x2c8   : > { %v1205_v12 = vrot.slane %v1204_v54, 4  ;;  %v1173_v52 = vrot.slane %v1172_v43, 4 }
 0x2ca   : > { %v1206_v11 = vadd.f32 %v1205_v12, %v1204_v54  ;;  %v1174_v21 = vadd.f32 %v1173_v52, %v1172_v43 }
 0x2cc   : > { %v1207_v29 = vrot.slane %v1206_v11, 2  ;;  %v1175_v57 = vrot.slane %v1174_v21, 2 }
 0x2ce   : > { %v1208_v5 = vadd.f32 %v1207_v29, %v1206_v11  ;;  %v1176_v6 = vadd.f32 %v1175_v57, %v1174_v21 }
 0x2d0   : > { %v1209_v50 = vrot.slane %v1208_v5, 1  ;;  %v1177_v55 = vrot.slane %v1176_v6, 1 }
 0x2d2   : > { %v1178_v13 = vadd.f32 %v1177_v55, %v1176_v6  ;;  %v1210_v24 = vadd.f32 %v1209_v50, %v1208_v5 }
 0x2d4   : > { %v1180_v1 = vmul.f32 0.015625, %v1178_v13  ;;  %v1211_v26 = vmul.f32 0.015625, %v1210_v24 }
 0x2d6   : > { %v1181_v30 = vsub.f32 %v1156_v59, %v1180_v1  ;;  %v1212_v27 = vsub.f32 %v1160_v60, %v1211_v26  ;;  %v1325_v60 = vrot.slane %v4666_v4, 4 }
 0x2d8   : > { %v1182_v7 = vmul.f32 %v1181_v30, %v1181_v30  ;;  %v1213_v46 = vmul.f32 %v1212_v27, %v1212_v27  ;;  %v1326_v12 = vsel %vm295_vm4, %v1325_v60, %v4666_v4 }
 0x2d9   : > { %v1327_v57 = vrot.slane %v1326_v12, 4 }
 0x2da   : > { %v1183_v40 = vsel %vm1169_vm14, %v1182_v7, 0.0  ;;  %v1214_v56 = vsel %vm1169_vm14, %v1213_v46, 0.0  ;;  %vm1242_vm14 = vcmp.gt.f32.partialorder %v4657_v16, 0.0 }
 0x2db   : > { %1184 = vadd.xlane.f32.xlu0 %v1183_v40  ;;  %v4672_v59 = vsel %vm1242_vm14, %v4657_v16, %v1243_v58  ;;  %v1328_v24 = vsel %vm295_vm4, %v1327_v57, %v4666_v4 }
 0x2dc   : > { %v1359_v52 = vrot.slane %v4672_v59, 4 }
 0x2de   : > { %v1360_v6 = vsel %vm295_vm4, %v1359_v52, %v4672_v59 }
 0x2df   : > { %1215 = vadd.xlane.f32.xlu0 %v1214_v56  ;;  %v1361_v26 = vrot.slane %v1360_v6, 4 }
 0x2e1   : > { %v1362_v40 = vsel %vm295_vm4, %v1361_v26, %v4672_v59  ;;  %v1682_v26 = vstv %s4786_s18  ;;  %s4924_s18 = sld [smem:[#allocation6 + $0xb8]] }
 0x2e2   : > { %v4709_v46 = vrot.slane %v1362_v40, 3 }
 0x2e7   : > { %6839 = sst [smem:[#allocation67_spill]] %s4924_s18  ;;  %s5237_s18 = sld [smem:[#allocation6 + $0xf3]] }
 0x368   : > { %v1185_v10 = vpop.xlane.xlu0 %1184 }
 0x369   : > { %v1186_v45 = vrot.slane %v1185_v10, 4 }
 0x36b   : > { %v1187_v47 = vadd.f32 %v1186_v45, %v1185_v10  ;;  %v4727_v45 = vrot.slane %v1328_v24, 1 }
 0x36c   : > { %v1216_v31 = vpop.xlane.xlu0 %1215 }
 0x36d   : > { %v1188_v34 = vrot.slane %v1187_v47, 2  ;;  %v1217_v22 = vrot.slane %v1216_v31, 4 }
 0x36f   : > { %v1189_v37 = vadd.f32 %v1188_v34, %v1187_v47  ;;  %v1218_v36 = vadd.f32 %v1217_v22, %v1216_v31  ;;  %v4733_v47 = vrot.slane %v1362_v40, 1  ;;  %v1690_v40 = vstv %s4790_s12  ;;  %s4932_s12 = sld [smem:[#allocation6 + $0x100]] }
 0x371   : > { %v1190_v63 = vrot.slane %v1189_v37, 1  ;;  %v1219_v35 = vrot.slane %v1218_v36, 2 }
 0x373   : > { %v1191_v14 = vadd.f32 %v1190_v63, %v1189_v37  ;;  %v1220_v23 = vadd.f32 %v1219_v35, %v1218_v36 }
 0x375   : > { %v1192_v42 = vmul.f32 0.015625, %v1191_v14  ;;  %v1221_v49 = vrot.slane %v1220_v23, 1  ;;  %6841 = sst [smem:[#allocation63_spill]] %s4932_s12  ;;  %s6847_s12 = sld [smem:[#allocation101_spill]] }
 0x377   : > { %v1193_v48 = vadd.f32 1e-05, %v1192_v42  ;;  %v1222_v2 = vadd.f32 %v1221_v49, %v1220_v23 }
 0x379   : > { %3203 = vrsqrt.f32 %v1193_v48  ;;  %v1223_v18 = vmul.f32 0.015625, %v1222_v2 }
 0x37b   : > { %v1224_v28 = vadd.f32 1e-05, %v1223_v18 }
 0x37d   : > { %3205 = vrsqrt.f32 %v1224_v28 }
 0x383   : > { %v3204_v61 = vpop.eup %3203 }
 0x384   : > { %v1195_v9 = vmul.f32 %v3204_v61, %v1181_v30 }
 0x386   : > { %v1198_v41 = vmul.f32 %v1197_v33, %v1195_v9 }
 0x387   : > { %v3206_v17 = vpop.eup %3205 }
 0x388   : > { %v1201_v51 = vadd.f32 %v1200_v53, %v1198_v41  ;;  %v1226_v39 = vmul.f32 %v3206_v17, %v1212_v27  ;;  %v4699_v27 = vrot.slane %v1328_v24, 3 }
 0x38a   : > { %vm1233_vm0 = vcmp.gt.f32.partialorder %v1201_v51, 0.0  ;;  %v1234_v44 = vmul.f32 0.2, %v1201_v51  ;;  %v1229_v20 = vmul.f32 %v1228_v38, %v1226_v39 }
 0x38c   : > { %v4674_v19 = vsel %vm1233_vm0, %v1201_v51, %v1234_v44  ;;  %v1232_v54 = vadd.f32 %v1231_v15, %v1229_v20 }
 0x38d   : > { %v1257_v43 = vrot.slane %v4674_v19, 4 }
 0x38e   : > { %vm1236_vm15 = vcmp.gt.f32.partialorder %v1232_v54, 0.0  ;;  %v1237_v11 = vmul.f32 0.2, %v1232_v54 }
 0x38f   : > { %v1258_v21 = vsel %vm295_vm4, %v1257_v43, %v4674_v19 }
 0x390   : > { %v4682_v16 = vsel %vm1236_vm15, %v1232_v54, %v1237_v11  ;;  %v1259_v29 = vrot.slane %v1258_v21, 4 }
 0x391   : > { %v1291_v5 = vrot.slane %v4682_v16, 4 }
 0x392   : > { %v1260_v50 = vsel %vm295_vm4, %v1259_v29, %v4674_v19 }
 0x393   : > { %v4689_v55 = vrot.slane %v1260_v50, 3  ;;  %v1292_v13 = vsel %vm295_vm4, %v1291_v5, %v4682_v16  ;;  %v4719_v56 = vrot.slane %v1260_v50, 1 }
 0x394   : > { %v1293_v1 = vrot.slane %v1292_v13, 4 }
 0x395   : > { %1264 = vrot.lane.b32.xlu1 %v4689_v55, %s6807_s8 }
 0x396   : > { %v1294_v30 = vsel %vm295_vm4, %v1293_v1, %v4682_v16 }
 0x397   : > { %v4701_v7 = vrot.slane %v1294_v30, 3  ;;  %v4725_v10 = vrot.slane %v1294_v30, 1  ;;  %v1686_v30 = vstv %s4788_s28  ;;  %s4926_s28 = sld [smem:[#allocation6 + $0xdc]] }
 0x399   : > { %1332 = vrot.lane.b32.xlu1 %v4699_v27, %s6807_s8  ;;  %1298 = vrot.lane.b32.xlu0 %v4701_v7, %s6807_s8 }
 0x39d   : > { %1366 = vrot.lane.b32.xlu1 %v4709_v46, %s6807_s8  ;;  %1541 = vrot.lane.b32.xlu0 %v4674_v19, %s6807_s8  ;;  %6840 = sst [smem:[#allocation62_spill]] %s4926_s28  ;;  %s5275_s28 = sld [smem:[#allocation6 + $0x106]] }
 0x3a1   : > { %1568 = vrot.lane.b32.xlu1 %v4682_v16, %s6807_s8  ;;  %1595 = vrot.lane.b32.xlu0 %v4666_v4, %s6807_s8 }
 0x3a5   : > { %1622 = vrot.lane.b32.xlu1 %v4672_v59, %s6807_s8  ;;  %1795 = vrot.lane.b32.xlu0 %v4719_v56, %s6807_s8 }
 0x3a9   : > { %1824 = vrot.lane.b32.xlu1 %v4725_v10, %s6807_s8  ;;  %1853 = vrot.lane.b32.xlu0 %v4727_v45, %s6807_s8 }
 0x3ad   : > { %1882 = vrot.lane.b32.xlu1 %v4733_v47, %s6807_s8 }
 0x407   : > { %v1265_v31 = vpop.permute.xlu1 %1264 }
 0x408   : > { %v1266_v34 = vsel %vm303_vm5, %v1265_v31, %v4689_v55  ;;  %v1694_v31 = vstv %s4792_s2  ;;  %s4934_s2 = sld [smem:[#allocation6 + $0x9d]] }
 0x409   : > { %1267 = vrot.lane.b32.xlu0 %v1266_v34, %s6807_s8  ;;  %v1698_v34 = vstv %s4794_s1  ;;  %s4938_s1 = sld [smem:[#allocation6 + $0xc1]] }
 0x40b   : > { %v1333_v22 = vpop.permute.xlu1 %1332  ;;  %v1299_v37 = vpop.permute.xlu0 %1298 }
 0x40c   : > { %v1334_v36 = vsel %vm303_vm5, %v1333_v22, %v4699_v27  ;;  %v1300_v63 = vsel %vm303_vm5, %v1299_v37, %v4701_v7  ;;  %v1702_v22 = vstv %s4798_s20  ;;  %s4946_s20 = sld [smem:[#allocation6 + $0x109]] }
 0x40d   : > { %1335 = vrot.lane.b32.xlu0 %v1334_v36, %s6807_s8  ;;  %1301 = vrot.lane.b32.xlu1 %v1300_v63, %s6807_s8  ;;  %v1429_v63 = vstv %s4796_s29  ;;  %s4940_s29 = sld [smem:[#allocation6 + $0xe5]] }
 0x40e   : > { %6842 = sst [smem:[#allocation64_spill]] %s4934_s2  ;;  %s6848_s2 = sld [smem:[#allocation102_spill]] }
 0x40f   : > { %v1367_v35 = vpop.permute.xlu1 %1366  ;;  %v1542_v14 = vpop.permute.xlu0 %1541  ;;  %6843 = sst [smem:[#allocation65_spill]] %s4938_s1  ;;  %s5245_s1 = sld [smem:[#allocation6 + $0xb4]] }
 0x410   : > { %v1368_v23 = vsel %vm303_vm5, %v1367_v35, %v4709_v46  ;;  %v1543_v42 = vsel %vm303_vm5, %v1542_v14, %v4674_v19  ;;  %v1433_v35 = vstv %s4802_s11  ;;  %s4948_s11 = sld [smem:[#allocation6 + $0xa6]] }
 0x411   : > { %1369 = vrot.lane.b32.xlu1 %v1368_v23, %s6807_s8  ;;  %1544 = vrot.lane.b32.xlu0 %v1543_v42, %s6807_s8  ;;  %v1437_v23 = vstv %s4804_s14  ;;  %v1441_v42 = vstv %s4806_s7  ;;  %s4956_s14 = sld [smem:[#allocation6 + $0xca]]  ;;  %s4958_s7 = sld [smem:[#allocation6 + $0xee]] }
 0x412   : > { %6845 = sst [smem:[#allocation69_spill]] %s4946_s20  ;;  %s5364_s20 = sld [smem:[#allocation6 + $0xed]] }
 0x413   : > { %v1569_v49 = vpop.permute.xlu1 %1568  ;;  %v1596_v48 = vpop.permute.xlu0 %1595  ;;  %6844 = sst [smem:[#allocation68_spill]] %s4940_s29  ;;  %s5283_s29 = sld [smem:[#allocation6 + $0xa3]] }
 0x414   : > { %v1570_v2 = vsel %vm303_vm5, %v1569_v49, %v4682_v16  ;;  %v1597_v18 = vsel %vm303_vm5, %v1596_v48, %v4666_v4  ;;  %v1446_v49 = vstv %s4808_s23  ;;  %v1450_v48 = vstv %s4810_s19  ;;  %s6851_s23 = sld [smem:[#allocation36_spill]]  ;;  %s4968_s19 = sld [smem:[#allocation6 + $0x112]] }
 0x415   : > { %1571 = vrot.lane.b32.xlu1 %v1570_v2, %s6807_s8  ;;  %1598 = vrot.lane.b32.xlu0 %v1597_v18, %s6807_s8  ;;  %v1454_v2 = vstv %s4812_s9  ;;  %v1458_v18 = vstv %s4816_s22  ;;  %s4970_s9 = sld [smem:[#allocation6 + $0xaf]]  ;;  %s4974_s22 = sld [smem:[#allocation6 + $0xd3]] }
 0x416   : > { %6846 = sst [smem:[#allocation70_spill]] %s4948_s11  ;;  %s5087_s11 = sld [smem:[#allocation6 + $0x11d]] }
 0x417   : > { %v1623_v28 = vpop.permute.xlu1 %1622  ;;  %v1796_v32 = vpop.permute.xlu0 %1795  ;;  %6849 = sst [smem:[#allocation50_spill]] %s4956_s14  ;;  %s5085_s14 = sld [smem:[#allocation6 + $0xf9]] }
 0x418   : > { %v1624_v61 = vsel %vm303_vm5, %v1623_v28, %v4672_v59  ;;  %v1797_v33 = vsel %vm303_vm5, %v1796_v32, %v4719_v56  ;;  %v1706_v28 = vstv %s4818_s0  ;;  %v1710_v32 = vstv %s4822_s27  ;;  %6850 = sst [smem:[#allocation51_spill]] %s4958_s7  ;;  %s4976_s0 = sld [smem:[#allocation6 + $0xf7]] }
 0x419   : > { %1625 = vrot.lane.b32.xlu1 %v1624_v61, %s6807_s8  ;;  %1798 = vrot.lane.b32.xlu0 %v1797_v33, %s6807_s8  ;;  %v1945_v61 = vstv %s4824_s21  ;;  %v1949_v33 = vstv %s4826_s6  ;;  %s4988_s27 = sld [smem:[#allocation6 + $0x11b]]  ;;  %s4993_s21 = sld [smem:[#allocation6 + $0x96]] }
 0x41a   : > { %6852 = sst [smem:[#allocation52_spill]] %s4968_s19  ;;  %s5009_s6 = sld [smem:[#allocation6 + $0xba]] }
 0x41b   : > { %v1825_v9 = vpop.permute.xlu1 %1824  ;;  %v1854_v53 = vpop.permute.xlu0 %1853  ;;  %6853 = sst [smem:[#allocation66_spill]] %s4970_s9  ;;  %s5070_s9 = sld [smem:[#allocation6 + $0x114]] }
 0x41c   : > { %v1826_v58 = vsel %vm303_vm5, %v1825_v9, %v4725_v10  ;;  %v1855_v41 = vsel %vm303_vm5, %v1854_v53, %v4727_v45  ;;  %v1953_v53 = vstv %s4828_s30  ;;  %6854 = sst [smem:[#allocation75_spill]] %s4974_s22  ;;  %s5011_s30 = sld [smem:[#allocation6 + $0xde]] }
 0x41d   : > { %1827 = vrot.lane.b32.xlu1 %v1826_v58, %s6807_s8  ;;  %1856 = vrot.lane.b32.xlu0 %v1855_v41, %s6807_s8  ;;  %v1957_v58 = vstv %s4830_s26  ;;  %v1962_v41 = vstv %s4832_s10  ;;  %s5027_s26 = sld [smem:[#allocation6 + $0x102]]  ;;  %s5029_s10 = sld [smem:[#allocation6 + $0x9f]] }
 0x41e   : > { %6855 = sst [smem:[#allocation76_spill]] %s4976_s0  ;;  %s5058_s0 = sld [smem:[#allocation6 + $0xcc]] }
 0x41f   : > { %v1883_v17 = vpop.permute.xlu1 %1882  ;;  %6859 = sst [smem:[#allocation77_spill]] %s4988_s27  ;;  %s6882_s27 = sld [smem:[#allocation33_spill]] }
 0x420   : > { %v1884_v38 = vsel %vm303_vm5, %v1883_v17, %v4733_v47  ;;  %v1427_v17 = vsel %vm186_vm6, %v4699_v27, 0.0  ;;  %6860 = sst [smem:[#allocation78_spill]] %s4993_s21  ;;  %s6880_s21 = sld [smem:[#allocation31_spill]] }
 0x421   : > { %1885 = vrot.lane.b32.xlu1 %v1884_v38, %s6807_s8  ;;  %s4854_s8 = sld [smem:[#allocation6 + $0x104]]  ;;  %v1966_v38 = vstv %s6847_s12  ;;  %6864 = sst [smem:[#allocation71_spill]] %s5009_s6 }
 0x422   : > { %6865 = sst [smem:[#allocation72_spill]] %s5011_s30  ;;  %s6870_s12 = sld [smem:[#allocation35_spill]] }
 0x423   : > { %6868 = sst [smem:[#allocation73_spill]] %s5027_s26  ;;  %s5046_s26 = sld [smem:[#allocation6 + $0x10b]] }
 0x424   : > { %6869 = sst [smem:[#allocation74_spill]] %s5029_s10  ;;  %s6875_s10 = sld [smem:[#allocation30_spill]] }
 0x425   : > { %s5048_s30 = sld [smem:[#allocation6 + $0xa8]]  ;;  %6885 = sst [smem:[#allocation85_spill]] %s5058_s0 }
 0x426   : > { %s5060_s22 = sld [smem:[#allocation6 + $0xf0]]  ;;  %6893 = sst [smem:[#allocation87_spill]] %s5070_s9 }
 0x427   : > { %6817 = sst [smem:[#allocation32_spill]] %s4854_s8  ;;  %s4872_s8 = sld [smem:[#allocation6 + $0x9e]] }
 0x428   : > { %s6877_s6 = sld [smem:[#allocation32_spill]]  ;;  %s6894_s19 = sld [smem:[#allocation38_spill]] }
 0x429   : > { %6874 = sst [smem:[#allocation81_spill]] %s5046_s26  ;;  %s6892_s26 = sld [smem:[#allocation45_spill]] }
 0x42a   : > { %s5072_s7 = sld [smem:[#allocation6 + $0xb1]]  ;;  %s6901_s9 = sld [smem:[#allocation46_spill]] }
 0x42b   : > { %6876 = sst [smem:[#allocation82_spill]] %s5048_s30  ;;  %s6891_s30 = sld [smem:[#allocation44_spill]] }
 0x42c   : > { %6887 = sst [smem:[#allocation86_spill]] %s5060_s22  ;;  %s6899_s22 = sld [smem:[#allocation41_spill]] }
 0x42d   : > { %6824 = sst [smem:[#allocation39_spill]] %s4872_s8  ;;  %s4890_s8 = sld [smem:[#allocation6 + $0x107]] }
 0x42e   : > { %s6896_s0 = sld [smem:[#allocation39_spill]]  ;;  %6904 = sst [smem:[#allocation91_spill]] %s5087_s11 }
 0x42f   : > { %6902 = sst [smem:[#allocation90_spill]] %s5085_s14  ;;  %s5101_s14 = sld [smem:[#allocation6 + $0xdf]] }
 0x430   : > { %6895 = sst [smem:[#allocation88_spill]] %s5072_s7  ;;  %s6903_s7 = sld [smem:[#allocation47_spill]] }
 0x431   : > { %s5103_s11 = sld [smem:[#allocation6 + $0x103]]  ;;  %6958 = sst [smem:[#allocation44_spill]] %s5229_s4 }
 0x432   : > { %6964 = sst [smem:[#allocation38_spill]] %s5237_s18  ;;  %s5243_s4 = sld [smem:[#allocation6 + $0x117]] }
 0x433   : > { %6830 = sst [smem:[#allocation49_spill]] %s4890_s8  ;;  %s4904_s8 = sld [smem:[#allocation6 + $0x110]] }
 0x434   : > { %s5251_s18 = sld [smem:[#allocation6 + $0xd8]] }
 0x435   : > { %6912 = sst [smem:[#allocation94_spill]] %s5101_s14  ;;  %s5338_s14 = sld [smem:[#allocation6 + $0x9c]] }
 0x437   : > { %6913 = sst [smem:[#allocation95_spill]] %s5103_s11  ;;  %s5395_s11 = sld [smem:[#allocation6 + $0xdb]] }
 0x438   : > { %6968 = sst [smem:[#allocation39_spill]] %s5243_s4  ;;  %s5293_s4 = sld [smem:[#allocation6 + $0x10f]] }
 0x43a   : > { %6974 = sst [smem:[#allocation41_spill]] %s5251_s18  ;;  %s5362_s18 = sld [smem:[#allocation6 + $0xc9]] }
 0x43d   : > { %7031 = sst [smem:[#allocation146_spill]] %s5395_s11  ;;  %s5456_s11 = sld [smem:[#allocation6 + $0x132]] }
 0x47b   : > { %v1268_v51 = vpop.permute.xlu0 %1267 }
 0x47c   : > { %v1269_v39 = vsel %vm303_vm5, %v1268_v51, %v4689_v55  ;;  %v1970_v51 = vstv %s6848_s2  ;;  %s5042_s2 = sld [smem:[#allocation6 + $0xc3]] }
 0x47d   : > { %1271 = vrot.lane.b32.xlu0 %v1269_v39, %s6808_s25 }
 0x47f   : > { %v1302_v15 = vpop.permute.xlu1 %1301  ;;  %v1336_v60 = vpop.permute.xlu0 %1335 }
 0x480   : > { %v1303_v44 = vsel %vm303_vm5, %v1302_v15, %v4701_v7  ;;  %v1337_v20 = vsel %vm303_vm5, %v1336_v60, %v4699_v27  ;;  %v4982_v15 = vmul.f32 %v1686_v30, %v4666_v4  ;;  %v4985_v27 = vmul.f32 %v1690_v40, %v4666_v4 }
 0x481   : > { %1305 = vrot.lane.b32.xlu1 %v1303_v44, %s6808_s25  ;;  %1339 = vrot.lane.b32.xlu0 %v1337_v20, %s6808_s25  ;;  %v1974_v60 = vstv %s6851_s23  ;;  %s5044_s23 = sld [smem:[#allocation6 + $0xe7]] }
 0x482   : > { %6857 = vst [vmem:[#allocation108_spill] sm:$0xff] %v4982_v15  ;;  %6858 = vst [vmem:[#allocation109_spill] sm:$0xff] %v4985_v27  ;;  %6871 = sst [smem:[#allocation79_spill]] %s5042_s2  ;;  %s6884_s2 = sld [smem:[#allocation42_spill]] }
 0x483   : > { %v1370_v54 = vpop.permute.xlu1 %1369  ;;  %v1545_v12 = vpop.permute.xlu0 %1544 }
 0x484   : > { %v1371_v43 = vsel %vm303_vm5, %v1370_v54, %v4709_v46  ;;  %v1546_v11 = vsel %vm303_vm5, %v1545_v12, %v4674_v19  ;;  %v4999_v54 = vmul.f32 %v1698_v34, %v4672_v59  ;;  %v1943_v12 = vsel %vm191_vm7, %v4727_v45, 0.0 }
 0x485   : > { %1373 = vrot.lane.b32.xlu1 %v1371_v43, %s6808_s25  ;;  %1461 = vrot.lane.b32.xlu0 %v1269_v39, %s6809_s5  ;;  %v4979_v39 = vmul.f32 %v1682_v26, %v4666_v4  ;;  %v1658_v34 = vstv %s6875_s10  ;;  %s5089_s10 = sld [smem:[#allocation6 + $0x97]] }
 0x486   : > { %6862 = vst [vmem:[#allocation111_spill] sm:$0xff] %v4999_v54 }
 0x487   : > { %v1572_v52 = vpop.permute.xlu1 %1571  ;;  %v1599_v21 = vpop.permute.xlu0 %1598  ;;  %6856 = vst [vmem:[#allocation105_spill] sm:$0xff] %v4979_v39  ;;  %6872 = sst [smem:[#allocation80_spill]] %s5044_s23  ;;  %s6886_s23 = sld [smem:[#allocation43_spill]] }
 0x488   : > { %v1573_v29 = vsel %vm303_vm5, %v1572_v52, %v4682_v16  ;;  %v1600_v57 = vsel %vm303_vm5, %v1599_v21, %v4666_v4  ;;  %v5007_v52 = vmul.f32 %v1429_v63, %v1427_v17  ;;  %v5023_v21 = vmul.f32 %v1437_v23, %v1427_v17 }
 0x489   : > { %1481 = vrot.lane.b32.xlu1 %v1303_v44, %s6809_s5  ;;  %1501 = vrot.lane.b32.xlu0 %v1337_v20, %s6809_s5  ;;  %v1444_v44 = vsel %vm186_vm6, %v4709_v46, 0.0  ;;  %v4996_v20 = vmul.f32 %v1694_v31, %v4666_v4  ;;  %v5014_v46 = vmul.f32 %v1706_v28, %v4672_v59  ;;  %v5017_v4 = vmul.f32 %v1710_v32, %v4672_v59 }
 0x48a   : > { %v1399_v63 = vstv %s6882_s27  ;;  %v1666_v23 = vstv %s6891_s30  ;;  %s6909_s27 = sld [smem:[#allocation55_spill]]  ;;  %v1420_v28 = vstv %s4878_s24  ;;  %v1424_v32 = vstv %s6899_s22  ;;  %s5116_s24 = sld [smem:[#allocation6 + $0xe8]] }
 0x48b   : > { %v1626_v5 = vpop.permute.xlu1 %1625  ;;  %v1799_v50 = vpop.permute.xlu0 %1798  ;;  %6861 = vst [vmem:[#allocation110_spill] sm:$0xff] %v4996_v20  ;;  %6866 = vst [vmem:[#allocation113_spill] sm:$0xff] %v5014_v46  ;;  %6906 = sst [smem:[#allocation92_spill]] %s5089_s10  ;;  %s5123_s22 = sld [smem:[#allocation6 + $0xa9]] }
 0x48c   : > { %v1627_v6 = vsel %vm303_vm5, %v1626_v5, %v4672_v59  ;;  %v1800_v24 = vsel %vm303_vm5, %v1799_v50, %v4719_v56  ;;  %6867 = vst [vmem:[#allocation114_spill] sm:$0xff] %v5017_v4  ;;  %v5038_v5 = vmul.f32 %v1454_v2, %v1444_v44  ;;  %v5052_v50 = vmul.f32 %v1949_v33, %v1943_v12  ;;  %s5175_s30 = sld [smem:[#allocation6 + $0xd6]]  ;;  %s5357_s10 = sld [smem:[#allocation6 + $0xa5]] }
 0x48d   : > { %1521 = vrot.lane.b32.xlu1 %v1371_v43, %s6809_s5  ;;  %1548 = vrot.lane.b32.xlu0 %v1546_v11, %s6808_s25  ;;  %v5002_v43 = vmul.f32 %v1702_v22, %v4672_v59  ;;  %v1960_v59 = vsel %vm191_vm7, %v4733_v47, 0.0  ;;  %v1662_v22 = vstv %s6877_s6  ;;  %s6907_s6 = sld [smem:[#allocation49_spill]]  ;;  %v1412_v2 = vstv %s6896_s0  ;;  %s5158_s0 = sld [smem:[#allocation6 + $0xb2]] }
 0x48e   : > { %6879 = vst [vmem:[#allocation116_spill] sm:$0xff] %v5052_v50  ;;  %v5063_v26 = vmul.f32 %v1962_v41, %v1960_v59  ;;  %v5065_v30 = vmul.f32 %v1966_v38, %v1960_v59  ;;  %v5067_v40 = vmul.f32 %v1970_v51, %v1960_v59  ;;  %v1915_v33 = vstv %s6903_s7  ;;  %s5135_s7 = sld [smem:[#allocation6 + $0xcd]]  ;;  %6984 = sst [smem:[#allocation49_spill]] %s5283_s29 }
 0x48f   : > { %v1828_v13 = vpop.permute.xlu1 %1827  ;;  %v1857_v1 = vpop.permute.xlu0 %1856  ;;  %6863 = vst [vmem:[#allocation112_spill] sm:$0xff] %v5002_v43  ;;  %s5378_s29 = sld [smem:[#allocation6 + $0xae]] }
 0x490   : > { %v1829_v37 = vsel %vm303_vm5, %v1828_v13, %v4725_v10  ;;  %v1858_v36 = vsel %vm303_vm5, %v1857_v1, %v4727_v45  ;;  %v5025_v45 = vmul.f32 %v1441_v42, %v1427_v17  ;;  %v5054_v13 = vmul.f32 %v1953_v53, %v1943_v12  ;;  %6888 = vst [vmem:[#allocation119_spill] sm:$0xff] %v5063_v26  ;;  %6916 = sst [smem:[#allocation98_spill]] %s5116_s24  ;;  %s5347_s24 = sld [smem:[#allocation6 + $0xc0]] }
 0x491   : > { %1575 = vrot.lane.b32.xlu1 %v1573_v29, %s6808_s25  ;;  %1602 = vrot.lane.b32.xlu0 %v1600_v57, %s6808_s25  ;;  %v1650_v1 = vstv %s6870_s12  ;;  %6889 = vst [vmem:[#allocation120_spill] sm:$0xff] %v5065_v30  ;;  %6890 = vst [vmem:[#allocation121_spill] sm:$0xff] %v5067_v40  ;;  %s6897_s12 = sld [smem:[#allocation40_spill]]  ;;  %v1670_v42 = vstv %s6892_s26  ;;  %6918 = sst [smem:[#allocation100_spill]] %s5123_s22  ;;  %v7035_v30 = vld [vmem:[#allocation27_spill] sm:$0xff] }
 0x492   : > { %6881 = vst [vmem:[#allocation117_spill] sm:$0xff] %v5054_v13  ;;  %v5126_v51 = vmul.f32 %v1650_v1, %v4674_v19  ;;  %v5146_v1 = vmul.f32 %v1670_v42, %v4682_v16  ;;  %6930 = sst [smem:[#allocation101_spill]] %s5175_s30  ;;  %s5177_s26 = sld [smem:[#allocation6 + $0xfa]] }
 0x493   : > { %v1886_v14 = vpop.permute.xlu1 %1885  ;;  %v1923_v53 = vstv %s6907_s6  ;;  %6927 = sst [smem:[#allocation34_spill]] %s5158_s0  ;;  %s5199_s6 = sld [smem:[#allocation6 + $0xbd]] }
 0x494   : > { %v1887_v9 = vsel %vm303_vm5, %v1886_v14, %v4733_v47  ;;  %v5050_v47 = vmul.f32 %v1945_v61, %v1943_v12  ;;  %v1407_v14 = vstv %s6886_s23  ;;  %s5099_s23 = sld [smem:[#allocation6 + $0xbb]]  ;;  %v1911_v61 = vstv %s6901_s9  ;;  %6921 = sst [smem:[#allocation103_spill]] %s5135_s7  ;;  %6925 = vst [vmem:[#allocation127_spill] sm:$0xff] %v5146_v1 }
 0x495   : > { %1629 = vrot.lane.b32.xlu1 %v1627_v6, %s6808_s25  ;;  %1713 = vrot.lane.b32.xlu0 %v1546_v11, %s6809_s5  ;;  %v5021_v11 = vmul.f32 %v1433_v35, %v1427_v17  ;;  %v1403_v35 = vstv %s6884_s2  ;;  %s6910_s2 = sld [smem:[#allocation56_spill]]  ;;  %v1932_v17 = vstv %s6909_s27  ;;  %s5137_s9 = sld [smem:[#allocation6 + $0xf1]] }
 0x496   : > { %6878 = vst [vmem:[#allocation115_spill] sm:$0xff] %v5050_v47  ;;  %6970 = sst [smem:[#allocation40_spill]] %s5245_s1  ;;  %s5259_s1 = sld [smem:[#allocation6 + $0x120]] }
 0x497   : > { %s5291_s27 = sld [smem:[#allocation6 + $0xeb]]  ;;  %6992 = sst [smem:[#allocation56_spill]] %s5293_s4 }
 0x498   : > { %6931 = sst [smem:[#allocation102_spill]] %s5177_s26  ;;  %s5221_s26 = sld [smem:[#allocation6 + $0xea]] }
 0x499   : > { %1733 = vrot.lane.b32.xlu1 %v1573_v29, %s6809_s5  ;;  %1753 = vrot.lane.b32.xlu0 %v1600_v57, %s6809_s5  ;;  %v5034_v29 = vmul.f32 %v1446_v49, %v1444_v44  ;;  %v5036_v57 = vmul.f32 %v1450_v48, %v1444_v44  ;;  %v1674_v49 = vstv %s6894_s19  ;;  %v1678_v48 = vstv %s4874_s15  ;;  %s5114_s15 = sld [smem:[#allocation6 + $0xc4]]  ;;  %s6991_s30 = sld [smem:[#allocation102_spill]] }
 0x49a   : > { %6911 = sst [smem:[#allocation93_spill]] %s5099_s23  ;;  %s5121_s19 = sld [smem:[#allocation6 + $0x10c]] }
 0x49b   : > { %v1936_v38 = vstv %s6910_s2  ;;  %6922 = sst [smem:[#allocation104_spill]] %s5137_s9  ;;  %s5203_s2 = sld [smem:[#allocation6 + $0x105]] }
 0x49c   : > { %s5227_s9 = sld [smem:[#allocation6 + $0x10e]]  ;;  %s5301_s23 = sld [smem:[#allocation6 + $0xd0]] }
 0x49d   : > { %1773 = vrot.lane.b32.xlu1 %v1627_v6, %s6809_s5  ;;  %1802 = vrot.lane.b32.xlu0 %v1800_v24, %s6808_s25  ;;  %v5040_v6 = vmul.f32 %v1458_v18, %v1444_v44  ;;  %v1416_v18 = vstv %s6897_s12  ;;  %v5132_v44 = vmul.f32 %v1658_v34, %v4674_v19  ;;  %v1410_v34 = vsel %vm186_vm6, %v4701_v7, 0.0  ;;  %s5179_s12 = sld [smem:[#allocation6 + $0x11e]]  ;;  %6990 = sst [smem:[#allocation55_spill]] %s5291_s27 }
 0x49e   : > { %6952 = sst [smem:[#allocation42_spill]] %s5221_s26  ;;  %s5307_s4 = sld [smem:[#allocation6 + $0x138]] }
 0x49f   : > { %6915 = sst [smem:[#allocation97_spill]] %s5114_s15  ;;  %6920 = vst [vmem:[#allocation124_spill] sm:$0xff] %v5132_v44  ;;  %s5235_s26 = sld [smem:[#allocation6 + $0xcf]] }
 0x4a0   : > { %6917 = sst [smem:[#allocation99_spill]] %s5121_s19  ;;  %s5309_s15 = sld [smem:[#allocation6 + $0x129]] }
 0x4a1   : > { %1831 = vrot.lane.b32.xlu1 %v1829_v37, %s6808_s25  ;;  %1860 = vrot.lane.b32.xlu0 %v1858_v36, %s6808_s25  ;;  %6941 = sst [smem:[#allocation32_spill]] %s5203_s2  ;;  %s5253_s2 = sld [smem:[#allocation6 + $0xfc]] }
 0x4a2   : > { %6956 = sst [smem:[#allocation43_spill]] %s5227_s9  ;;  %s5331_s0 = sld [smem:[#allocation6 + $0xfd]] }
 0x4a3   : > { %6932 = sst [smem:[#allocation36_spill]] %s5179_s12  ;;  %s5277_s9 = sld [smem:[#allocation6 + $0x128]] }
 0x4a4   : > { %6998 = sst [smem:[#allocation102_spill]] %s5301_s23  ;;  %s5315_s23 = sld [smem:[#allocation6 + $0xf4]] }
 0x4a5   : > { %1889 = vrot.lane.b32.xlu1 %v1887_v9, %s6808_s25  ;;  %1977 = vrot.lane.b32.xlu0 %v1800_v24, %s6809_s5  ;;  %s6873_s25 = sld [smem:[#allocation37_spill]]  ;;  %v5056_v24 = vmul.f32 %v1957_v58, %v1943_v12  ;;  %v1393_v58 = vsel %vm186_vm6, %v4689_v55, 0.0  ;;  %v1940_v55 = vstv %s4904_s8  ;;  %v5140_v12 = vmul.f32 %v1662_v22, %v4674_v19  ;;  %s5156_s8 = sld [smem:[#allocation6 + $0x115]] }
 0x4a6   : > { %v5164_v22 = vmul.f32 %v1678_v48, %v4682_v16  ;;  %v5171_v42 = vmul.f32 %v1403_v35, %v1393_v58  ;;  %v5173_v7 = vmul.f32 %v1407_v14, %v1393_v58  ;;  %v5191_v35 = vmul.f32 %v1412_v2, %v1410_v34  ;;  %6938 = sst [smem:[#allocation37_spill]] %s5199_s6  ;;  %s5219_s6 = sld [smem:[#allocation6 + $0xc6]] }
 0x4a7   : > { %6883 = vst [vmem:[#allocation118_spill] sm:$0xff] %v5056_v24  ;;  %6923 = vst [vmem:[#allocation125_spill] sm:$0xff] %v5140_v12  ;;  %v5193_v14 = vmul.f32 %v1416_v18, %v1410_v34  ;;  %v5197_v48 = vmul.f32 %v1424_v32, %v1410_v34  ;;  %6962 = sst [smem:[#allocation45_spill]] %s5235_s26  ;;  %s5285_s26 = sld [smem:[#allocation6 + $0xc7]] }
 0x4a8   : > { %6929 = vst [vmem:[#allocation129_spill] sm:$0xff] %v5164_v22  ;;  %6976 = sst [smem:[#allocation46_spill]] %s5253_s2  ;;  %s5317_s7 = sld [smem:[#allocation6 + $0x118]] }
 0x4a9   : > { %1997 = vrot.lane.b32.xlu1 %v1829_v37, %s6809_s5  ;;  %2017 = vrot.lane.b32.xlu0 %v1858_v36, %s6809_s5  ;;  %v5077_v37 = vmul.f32 %v1974_v60, %v1960_v59  ;;  %v1395_v36 = vstv %s6880_s21  ;;  %s6908_s21 = sld [smem:[#allocation54_spill]]  ;;  %v5143_v59 = vmul.f32 %v1666_v23, %v4682_v16  ;;  %v5169_v23 = vmul.f32 %v1399_v63, %v1393_v58  ;;  %s5325_s12 = sld [smem:[#allocation6 + $0xd9]] }
 0x4aa   : > { %7007 = sst [smem:[#allocation138_spill]] %s5315_s23  ;;  %s5341_s27 = sld [smem:[#allocation6 + $0x12a]] }
 0x4ab   : > { %v1654_v31 = vstv %s6873_s25  ;;  %6898 = vst [vmem:[#allocation122_spill] sm:$0xff] %v5077_v37  ;;  %s6905_s25 = sld [smem:[#allocation48_spill]]  ;;  %6924 = vst [vmem:[#allocation126_spill] sm:$0xff] %v5143_v59  ;;  %v5154_v37 = vmul.f32 %v1395_v36, %v1393_v58  ;;  %6926 = sst [smem:[#allocation106_spill]] %s5156_s8 }
 0x4ac   : > { %v5129_v60 = vmul.f32 %v1654_v31, %v4674_v19  ;;  %v1909_v31 = vsel %vm191_vm7, %v4719_v56, 0.0  ;;  %v5161_v19 = vmul.f32 %v1674_v49, %v4682_v16  ;;  %v1926_v56 = vsel %vm191_vm7, %v4725_v10, 0.0  ;;  %6950 = sst [smem:[#allocation33_spill]] %s5219_s6  ;;  %s5261_s8 = sld [smem:[#allocation6 + $0x9a]] }
 0x4ad   : > { %2037 = vrot.lane.b32.xlu1 %v1887_v9, %s6809_s5  ;;  %s5083_s5 = sld [smem:[#allocation6 + $0xd5]]  ;;  %v5183_v16 = vmul.f32 %v1911_v61, %v1909_v31  ;;  %v5185_v36 = vmul.f32 %v1915_v33, %v1909_v31  ;;  %v5189_v63 = vmul.f32 %v1923_v53, %v1909_v31  ;;  %v5195_v49 = vmul.f32 %v1420_v28, %v1410_v34  ;;  %s5269_s6 = sld [smem:[#allocation6 + $0xe2]]  ;;  %v7023_v53 = vld [vmem:[#allocation22_spill] sm:$0xff]  ;;  %v7024_v61 = vld [vmem:[#allocation23_spill] sm:$0xff] }
 0x4ae   : > { %6919 = vst [vmem:[#allocation123_spill] sm:$0xff] %v5129_v60  ;;  %6928 = vst [vmem:[#allocation128_spill] sm:$0xff] %v5161_v19  ;;  %v5209_v18 = vmul.f32 %v1932_v17, %v1926_v56  ;;  %v5211_v28 = vmul.f32 %v1936_v38, %v1926_v56  ;;  %v5213_v32 = vmul.f32 %v1940_v55, %v1926_v56  ;;  %6983 = sst [smem:[#allocation48_spill]] %s5275_s28  ;;  %v2073_v33 = vstv %s5277_s9  ;;  %s7018_s22 = sld [smem:[#allocation55_spill]]  ;;  %v7025_v17 = vld [vmem:[#allocation24_spill] sm:$0xff] }
 0x4af   : > { %v1928_v41 = vstv %s6908_s21  ;;  %6934 = vst [vmem:[#allocation130_spill] sm:$0xff] %v5183_v16  ;;  %6935 = vst [vmem:[#allocation131_spill] sm:$0xff] %v5185_v36  ;;  %s5201_s21 = sld [smem:[#allocation6 + $0xe1]]  ;;  %6986 = sst [smem:[#allocation54_spill]] %s5285_s26  ;;  %v2070_v38 = vstv %s5307_s4  ;;  %v2075_v34 = vmul.f32 %v2073_v33, %v7024_v61  ;;  %v2077_v40 = vmul.f32 %v2073_v33, %v7027_v3 }
 0x4b0   : > { %6937 = vst [vmem:[#allocation133_spill] sm:$0xff] %v5189_v63  ;;  %v5207_v2 = vmul.f32 %v1928_v41, %v1926_v56  ;;  %6945 = vst [vmem:[#allocation135_spill] sm:$0xff] %v5209_v18  ;;  %7009 = sst [smem:[#allocation139_spill]] %s5317_s7  ;;  %s5355_s9 = sld [smem:[#allocation6 + $0x108]]  ;;  %v2076_v56 = vmul.f32 %v2073_v33, %v7025_v17  ;;  %v7032_v41 = vld [vmem:[#allocation26_spill] sm:$0xff]  ;;  %v2093_v50 = vstv %s5341_s27 }
 0x4b1   : > { %v1919_v9 = vstv %s6905_s25  ;;  %s5181_s25 = sld [smem:[#allocation6 + $0x99]]  ;;  %6946 = vst [vmem:[#allocation136_spill] sm:$0xff] %v5211_v28  ;;  %6947 = vst [vmem:[#allocation137_spill] sm:$0xff] %v5213_v32  ;;  %7013 = sst [smem:[#allocation140_spill]] %s5325_s12  ;;  %v2079_v13 = vadd.f32 %v2075_v34, %v2070_v38  ;;  %v2081_v24 = vadd.f32 %v2077_v40, %v2070_v38  ;;  %v7036_v32 = vld [vmem:[#allocation28_spill] sm:$0xff]  ;;  %v2095_v63 = vmul.f32 %v2093_v50, %v7024_v61 }
 0x4b2   : > { %v5187_v10 = vmul.f32 %v1919_v9, %v1909_v31  ;;  %6943 = vst [vmem:[#allocation134_spill] sm:$0xff] %v5207_v2  ;;  %7014 = sst [smem:[#allocation141_spill]] %s5331_s0  ;;  %s7021_s2 = sld [smem:[#allocation102_spill]]  ;;  %v2074_v9 = vmul.f32 %v2073_v33, %v7023_v53  ;;  %v2080_v31 = vadd.f32 %v2076_v56, %v2070_v38  ;;  %v2094_v56 = vmul.f32 %v2093_v50, %v7023_v53 }
 0x4b3   : > { %6900 = sst [smem:[#allocation89_spill]] %s5083_s5  ;;  %s5105_s5 = sld [smem:[#allocation6 + $0xa0]]  ;;  %v2096_v2 = vmul.f32 %v2093_v50, %v7025_v17 }
 0x4b4   : > { %6936 = vst [vmem:[#allocation132_spill] sm:$0xff] %v5187_v10  ;;  %6982 = sst [smem:[#allocation47_spill]] %s5269_s6  ;;  %s5367_s6 = sld [smem:[#allocation6 + $0x111]]  ;;  %v2078_v58 = vadd.f32 %v2074_v9, %v2070_v38  ;;  %v7037_v9 = vld [vmem:[#allocation29_spill] sm:$0xff] }
 0x4b5   : > { %6939 = sst [smem:[#allocation30_spill]] %s5201_s21  ;;  %s7010_s21 = sld [smem:[#allocation39_spill]] }
 0x4b6   : > { %7016 = sst [smem:[#allocation143_spill]] %s5347_s24  ;;  %s5373_s26 = sld [smem:[#allocation6 + $0x12b]] }
 0x4b7   : > { %6933 = sst [smem:[#allocation35_spill]] %s5181_s25  ;;  %s5205_s25 = sld [smem:[#allocation6 + $0xa2]] }
 0x4b8   : > { %s6994_s17 = sld [smem:[#allocation35_spill]]  ;;  %s5380_s28 = sld [smem:[#allocation6 + $0xd2]] }
 0x4b9   : > { %6914 = sst [smem:[#allocation96_spill]] %s5105_s5  ;;  %s5349_s5 = sld [smem:[#allocation6 + $0xe4]] }
 0x4ba   : > { %7003 = sst [smem:[#allocation35_spill]] %s5309_s15  ;;  %s5323_s15 = sld [smem:[#allocation6 + $0xb5]] }
 0x4bb   : > { %s5387_s4 = sld [smem:[#allocation6 + $0xf6]]  ;;  %s5393_s19 = sld [smem:[#allocation6 + $0xb7]] }
 0x4bc   : > { %s5399_s7 = sld [smem:[#allocation6 + $0xff]]  ;;  %s5407_s0 = sld [smem:[#allocation6 + $0x139]]  ;;  %v2103_v26 = vstv %s5373_s26 }
 0x4bd   : > { %6942 = sst [smem:[#allocation31_spill]] %s5205_s25  ;;  %s6988_s25 = sld [smem:[#allocation34_spill]]  ;;  %v2104_v43 = vmul.f32 %v2103_v26, %v7032_v41 }
 0x4be   : > { %6996 = sst [smem:[#allocation34_spill]] %s5299_s13  ;;  %s7017_s13 = sld [smem:[#allocation35_spill]] }
 0x4bf   : > { %7022 = sst [smem:[#allocation35_spill]] %s5364_s20  ;;  %s5415_s12 = sld [smem:[#allocation6 + $0x12d]] }
 0x4c0   : > { %7012 = sst [smem:[#allocation39_spill]] %s5323_s15  ;;  %s5401_s15 = sld [smem:[#allocation6 + $0x123]] }
 0x4c1   : > { %7026 = sst [smem:[#allocation55_spill]] %s5380_s28  ;;  %s5417_s27 = sld [smem:[#allocation6 + $0x12e]] }
 0x4c2   : > { %7028 = sst [smem:[#allocation102_spill]] %s5387_s4  ;;  %s5422_s23 = sld [smem:[#allocation6 + $0x12f]]  ;;  %v2113_v4 = vstv %s5407_s0 }
 0x4c3   : > { %7030 = sst [smem:[#allocation145_spill]] %s5393_s19  ;;  %s5424_s24 = sld [smem:[#allocation6 + $0x130]] }
 0x4c4   : > { %v2083_v55 = vstv %s7017_s13  ;;  %s5389_s13 = sld [smem:[#allocation6 + $0x11a]]  ;;  %7033 = sst [smem:[#allocation147_spill]] %s5399_s7 }
 0x4c5   : > { %v2084_v33 = vmul.f32 %v2083_v55, %v7032_v41  ;;  %v2085_v47 = vmul.f32 %v2083_v55, %v7035_v30  ;;  %v2086_v28 = vmul.f32 %v2083_v55, %v7036_v32  ;;  %v2087_v18 = vmul.f32 %v2083_v55, %v7037_v9  ;;  %s5438_s26 = sld [smem:[#allocation6 + $0x13a]]  ;;  %s5440_s20 = sld [smem:[#allocation6 + $0x131]] }
 0x4c6   : > { %7034 = sst [smem:[#allocation148_spill]] %s5401_s15  ;;  %v2126_v62 = vstv %s5415_s12  ;;  %s7045_s0 = sld [smem:[#allocation67_spill]] }
 0x4c7   : > { %v2088_v55 = vadd.f32 %v2084_v33, %v2078_v58  ;;  %v2089_v40 = vadd.f32 %v2085_v47, %v2079_v13  ;;  %v2090_v10 = vadd.f32 %v2086_v28, %v2080_v31  ;;  %v2091_v38 = vadd.f32 %v2087_v18, %v2081_v24  ;;  %s7046_s12 = sld [smem:[#allocation62_spill]]  ;;  %s7058_s15 = sld [smem:[#allocation60_spill]] }
 0x4c8   : > { %v2097_v58 = vmul.f32 %v2093_v50, %v7027_v3  ;;  %v2105_v50 = vmul.f32 %v2103_v26, %v7035_v30  ;;  %v2106_v13 = vmul.f32 %v2103_v26, %v7036_v32  ;;  %v2107_v24 = vmul.f32 %v2103_v26, %v7037_v9  ;;  %s7062_s7 = sld [smem:[#allocation64_spill]]  ;;  %s7063_s19 = sld [smem:[#allocation65_spill]] }
 0x4c9   : > { %v2098_v46 = vadd.f32 %v2094_v56, %v2088_v55  ;;  %v2099_v18 = vadd.f32 %v2095_v63, %v2089_v40  ;;  %v2100_v28 = vadd.f32 %v2096_v2, %v2090_v10  ;;  %v2116_v55 = vstv %s5409_s3  ;;  %s5477_s3 = sld [smem:[#allocation6 + $0x133]]  ;;  %s7065_s4 = sld [smem:[#allocation69_spill]] }
 0x4ca   : > { %7029 = sst [smem:[#allocation144_spill]] %s5389_s13  ;;  %v2101_v31 = vadd.f32 %v2097_v58, %v2091_v38  ;;  %v2136_v36 = vstv %s5417_s27  ;;  %v2146_v33 = vstv %s5422_s23  ;;  %v2159_v47 = vstv %s5424_s24  ;;  %s5479_s23 = sld [smem:[#allocation6 + $0x134]] }
 0x4cb   : > { %v5451_v16 = vadd.f32 %v2104_v43, %v2098_v46  ;;  %v2117_v54 = vmul.f32 %v2116_v55, %v7023_v53  ;;  %v2118_v26 = vmul.f32 %v2116_v55, %v7024_v61  ;;  %v2119_v10 = vmul.f32 %v2116_v55, %v7025_v17  ;;  %s5495_s24 = sld [smem:[#allocation6 + $0x135]]  ;;  %s7047_s27 = sld [smem:[#allocation63_spill]] }
 0x4cc   : > { %v2120_v63 = vmul.f32 %v2116_v55, %v7027_v3  ;;  %v5462_v2 = vadd.f32 %v2105_v50, %v2099_v18  ;;  %v5464_v40 = vadd.f32 %v2106_v13, %v2100_v28  ;;  %v5466_v43 = vadd.f32 %v2107_v24, %v2101_v31  ;;  %s7064_s13 = sld [smem:[#allocation68_spill]]  ;;  %s7066_s28 = sld [smem:[#allocation70_spill]] }
 0x4cd   : > { %v2127_v46 = vmul.f32 %v2126_v62, %v7032_v41  ;;  %v2128_v38 = vmul.f32 %v2126_v62, %v7035_v30  ;;  %v2129_v58 = vmul.f32 %v2126_v62, %v7036_v32  ;;  %v2160_v34 = vmul.f32 %v2159_v47, %v7023_v53 }
 0x4ce   : > { %7038 = vst [vmem:[#allocation22_spill] sm:$0xff] %v5464_v40  ;;  %7039 = vst [vmem:[#allocation23_spill] sm:$0xff] %v5466_v43  ;;  %v2161_v56 = vmul.f32 %v2159_v47, %v7024_v61  ;;  %v2130_v25 = vmul.f32 %v2126_v62, %v7037_v9  ;;  %v2156_v20 = vstv %s5438_s26  ;;  %v2162_v50 = vmul.f32 %v2159_v47, %v7025_v17  ;;  %s7051_s26 = sld [smem:[#allocation57_spill]] }
 0x4cf   : > { %v2169_v18 = vstv %s5440_s20  ;;  %v2121_v13 = vadd.f32 %v2117_v54, %v2113_v4  ;;  %v2122_v24 = vadd.f32 %v2118_v26, %v2113_v4  ;;  %v2123_v28 = vadd.f32 %v2119_v10, %v2113_v4  ;;  %s5490_s20 = sld [smem:[#allocation6 + $0x13b]] }
 0x4d0   : > { %v2124_v31 = vadd.f32 %v2120_v63, %v2113_v4  ;;  %v2137_v55 = vmul.f32 %v2136_v36, %v7023_v53  ;;  %v2138_v43 = vmul.f32 %v2136_v36, %v7024_v61  ;;  %v2139_v40 = vmul.f32 %v2136_v36, %v7025_v17 }
 0x4d1   : > { %v2163_v62 = vmul.f32 %v2159_v47, %v7027_v3  ;;  %v2164_v27 = vadd.f32 %v2160_v34, %v2156_v20  ;;  %v2165_v15 = vadd.f32 %v2161_v56, %v2156_v20  ;;  %v2170_v39 = vmul.f32 %v2169_v18, %v7032_v41 }
 0x4d2   : > { %v2171_v54 = vmul.f32 %v2169_v18, %v7035_v30  ;;  %v2140_v26 = vmul.f32 %v2136_v36, %v7027_v3  ;;  %v2166_v10 = vadd.f32 %v2162_v50, %v2156_v20  ;;  %v2172_v4 = vmul.f32 %v2169_v18, %v7036_v32 }
 0x4d3   : > { %v2179_v63 = vstv %s5456_s11  ;;  %v2131_v22 = vadd.f32 %v2127_v46, %v2121_v13  ;;  %v2132_v19 = vadd.f32 %v2128_v38, %v2122_v24  ;;  %v2133_v1 = vadd.f32 %v2129_v58, %v2123_v28  ;;  %s7043_s11 = sld [smem:[#allocation61_spill]] }
 0x4d4   : > { %v2134_v59 = vadd.f32 %v2130_v25, %v2124_v31  ;;  %v2147_v34 = vmul.f32 %v2146_v33, %v7032_v41  ;;  %v2148_v47 = vmul.f32 %v2146_v33, %v7035_v30  ;;  %v2167_v56 = vadd.f32 %v2163_v62, %v2156_v20 }
 0x4d5   : > { %v2173_v12 = vmul.f32 %v2169_v18, %v7037_v9  ;;  %v2174_v36 = vadd.f32 %v2170_v39, %v2164_v27  ;;  %v2175_v50 = vadd.f32 %v2171_v54, %v2165_v15  ;;  %v2180_v46 = vmul.f32 %v2179_v63, %v7023_v53 }
 0x4d6   : > { %v2181_v38 = vmul.f32 %v2179_v63, %v7024_v61  ;;  %v2149_v25 = vmul.f32 %v2146_v33, %v7036_v32  ;;  %v2176_v58 = vadd.f32 %v2172_v4, %v2166_v10  ;;  %v2182_v13 = vmul.f32 %v2179_v63, %v7025_v17 }
 0x4d7   : > { %v2189_v24 = vstv %s5477_s3  ;;  %v2141_v28 = vadd.f32 %v2137_v55, %v2131_v22  ;;  %v2142_v31 = vadd.f32 %v2138_v43, %v2132_v19  ;;  %v2143_v44 = vadd.f32 %v2139_v40, %v2133_v1  ;;  %s7054_s3 = sld [smem:[#allocation58_spill]] }
 0x4d8   : > { %v2202_v20 = vstv %s5479_s23  ;;  %v2144_v18 = vadd.f32 %v2140_v26, %v2134_v59  ;;  %v2150_v62 = vmul.f32 %v2146_v33, %v7037_v9  ;;  %v2177_v39 = vadd.f32 %v2173_v12, %v2167_v56  ;;  %s5535_s23 = sld [smem:[#allocation6 + $0x136]] }
 0x4d9   : > { %v2183_v15 = vmul.f32 %v2179_v63, %v7027_v3  ;;  %v2184_v27 = vadd.f32 %v2180_v46, %v2174_v36  ;;  %v2185_v54 = vadd.f32 %v2181_v38, %v2175_v50  ;;  %v2190_v60 = vmul.f32 %v2189_v24, %v7032_v41 }
 0x4da   : > { %v2191_v10 = vmul.f32 %v2189_v24, %v7035_v30  ;;  %v2186_v4 = vadd.f32 %v2182_v13, %v2176_v58  ;;  %v2192_v22 = vmul.f32 %v2189_v24, %v7036_v32  ;;  %v2203_v1 = vmul.f32 %v2202_v20, %v7023_v53 }
 0x4db   : > { %v2204_v19 = vmul.f32 %v2202_v20, %v7024_v61  ;;  %v5510_v59 = vadd.f32 %v2147_v34, %v2141_v28  ;;  %v5512_v33 = vadd.f32 %v2148_v47, %v2142_v31  ;;  %v5514_v12 = vadd.f32 %v2149_v25, %v2143_v44 }
 0x4dc   : > { %v2199_v40 = vstv %s5490_s20  ;;  %v5517_v43 = vadd.f32 %v2150_v62, %v2144_v18  ;;  %v2205_v55 = vmul.f32 %v2202_v20, %v7025_v17  ;;  %v2206_v26 = vmul.f32 %v2202_v20, %v7027_v3  ;;  %s7056_s20 = sld [smem:[#allocation59_spill]] }
 0x4dd   : > { %7040 = vst [vmem:[#allocation24_spill] sm:$0xff] %v5510_v59  ;;  %7041 = vst [vmem:[#allocation25_spill] sm:$0xff] %v5512_v33  ;;  %v2212_v63 = vstv %s5495_s24  ;;  %v5522_v36 = vadd.f32 %v2183_v15, %v2177_v39  ;;  %v5525_v34 = vmul.f32 %v2189_v24, %v7037_v9  ;;  %v5527_v44 = vadd.f32 %v2190_v60, %v2184_v27  ;;  %s5537_s24 = sld [smem:[#allocation6 + $0x137]] }
 0x4de   : > { %7042 = vst [vmem:[#allocation26_spill] sm:$0xff] %v5514_v12  ;;  %7044 = vst [vmem:[#allocation27_spill] sm:$0xff] %v5517_v43  ;;  %v5529_v47 = vadd.f32 %v2191_v10, %v2185_v54  ;;  %v5533_v38 = vadd.f32 %v2192_v22, %v2186_v4  ;;  %v2207_v25 = vadd.f32 %v2203_v1, %v2199_v40  ;;  %v7057_v13 = vstv %s7043_s11  ;;  %s7068_s11 = sld [smem:[#allocation50_spill]] }
 0x4df   : > { %7048 = vst [vmem:[#allocation28_spill] sm:$0xff] %v5522_v36  ;;  %7049 = vst [vmem:[#allocation149_spill] sm:$0xff] %v5525_v34  ;;  %v2208_v58 = vadd.f32 %v2204_v19, %v2199_v40  ;;  %v7059_v24 = vstv %s7045_s0  ;;  %v7060_v31 = vstv %s7046_s12  ;;  %v7061_v18 = vstv %s7047_s27  ;;  %s7070_s0 = sld [smem:[#allocation51_spill]]  ;;  %s7071_s12 = sld [smem:[#allocation52_spill]] }
 0x4e0   : > { %7050 = vst [vmem:[#allocation150_spill] sm:$0xff] %v5527_v44  ;;  %7052 = vst [vmem:[#allocation151_spill] sm:$0xff] %v5529_v47  ;;  %v2209_v39 = vadd.f32 %v2205_v55, %v2199_v40  ;;  %v5547_v15 = vadd.f32 %v2206_v26, %v2199_v40  ;;  %v2213_v27 = vmul.f32 %v2212_v63, %v7032_v41  ;;  %v7067_v10 = vstv %s7051_s26  ;;  %s7083_s27 = sld [smem:[#allocation75_spill]]  ;;  %s7093_s26 = sld [smem:[#allocation73_spill]] }
 0x4e1   : > { %7055 = vst [vmem:[#allocation152_spill] sm:$0xff] %v5533_v38  ;;  %v2214_v54 = vmul.f32 %v2212_v63, %v7035_v30  ;;  %v7069_v22 = vstv %s7054_s3  ;;  %v2215_v55 = vmul.f32 %v2212_v63, %v7036_v32  ;;  %v5557_v40 = vmul.f32 %v2212_v63, %v7037_v9  ;;  %s7094_s3 = sld [smem:[#allocation74_spill]] }
 0x4e2   : > { %v7072_v26 = vstv %s7056_s20  ;;  %v7076_v43 = vstv %s7064_s13  ;;  %v7077_v63 = vstv %s7065_s4  ;;  %v7078_v34 = vstv %s7066_s28  ;;  %s7090_s28 = sld [smem:[#allocation78_spill]]  ;;  %s7091_s4 = sld [smem:[#allocation71_spill]] }
 0x4e3   : > { %s7092_s13 = sld [smem:[#allocation72_spill]] }
 0x4e4   : > { %s7098_s20 = sld [smem:[#allocation80_spill]] }
 0x4ef   : > { %v1272_v56 = vpop.permute.xlu0 %1271 }
 0x4f0   : > { %v1274_v46 = vsel %vm4204_vm9, %v1272_v56, 0.0 }
 0x4f1   : > { %v1277_v60 = vmul.f32 %v7057_v13, %v1274_v46  ;;  %v1281_v28 = vmul.f32 %v7059_v24, %v1274_v46  ;;  %v1285_v20 = vmul.f32 %v7060_v31, %v1274_v46  ;;  %v1289_v62 = vmul.f32 %v7061_v18, %v1274_v46 }
 0x4f2   : > { %v7073_v13 = vstv %s7058_s15  ;;  %v7074_v18 = vstv %s7062_s7  ;;  %s7082_s15 = sld [smem:[#allocation66_spill]]  ;;  %s7084_s7 = sld [smem:[#allocation76_spill]] }
 0x4f3   : > { %v1278_v4 = vadd.f32 %v1277_v60, %v7067_v10  ;;  %v1282_v1 = vadd.f32 %v1281_v28, %v7069_v22  ;;  %v1306_v19 = vpop.permute.xlu1 %1305  ;;  %v1340_v56 = vpop.permute.xlu0 %1339  ;;  %v1286_v46 = vadd.f32 %v1285_v20, %v7072_v26  ;;  %v1290_v24 = vadd.f32 %v1289_v62, %v7073_v13 }
 0x4f4   : > { %v1308_v31 = vsel %vm4204_vm9, %v1306_v19, 0.0  ;;  %v1342_v60 = vsel %vm4204_vm9, %v1340_v56, 0.0  ;;  %v7075_v10 = vstv %s7063_s19  ;;  %v7079_v26 = vstv %s7068_s11  ;;  %s7085_s19 = sld [smem:[#allocation77_spill]]  ;;  %s7103_s11 = sld [smem:[#allocation82_spill]] }
 0x4f5   : > { %v1311_v28 = vmul.f32 %v7074_v18, %v1308_v31  ;;  %v1315_v22 = vmul.f32 %v7075_v10, %v1308_v31  ;;  %v1319_v38 = vmul.f32 %v7076_v43, %v1308_v31  ;;  %v1323_v12 = vmul.f32 %v7077_v63, %v1308_v31 }
 0x4f6   : > { %v1345_v20 = vmul.f32 %v7078_v34, %v1342_v60  ;;  %v1349_v62 = vmul.f32 %v7079_v26, %v1342_v60  ;;  %v7080_v13 = vstv %s7070_s0  ;;  %v7081_v19 = vstv %s7071_s12  ;;  %s7104_s0 = sld [smem:[#allocation85_spill]]  ;;  %s7105_s12 = sld [smem:[#allocation86_spill]] }
 0x4f7   : > { %v1353_v36 = vmul.f32 %v7080_v13, %v1342_v60  ;;  %v1357_v47 = vmul.f32 %v7081_v19, %v1342_v60  ;;  %v1312_v56 = vadd.f32 %v1311_v28, %v1278_v4  ;;  %v1316_v18 = vadd.f32 %v1315_v22, %v1282_v1  ;;  %v1374_v33 = vpop.permute.xlu1 %1373  ;;  %v1462_v43 = vpop.permute.xlu0 %1461 }
 0x4f8   : > { %v1320_v44 = vadd.f32 %v1319_v38, %v1286_v46  ;;  %v1324_v10 = vadd.f32 %v1323_v12, %v1290_v24  ;;  %v1376_v31 = vsel %vm4204_vm9, %v1374_v33, 0.0  ;;  %v5586_v34 = vstv %s5535_s23  ;;  %s7097_s23 = sld [smem:[#allocation79_spill]] }
 0x4f9   : > { %v5589_v63 = vstv %s5537_s24  ;;  %v5594_v60 = vsel %vm288_vm1, %v5462_v2, %v5451_v16  ;;  %v1346_v4 = vadd.f32 %v1345_v20, %v1312_v56  ;;  %v1350_v28 = vadd.f32 %v1349_v62, %v1316_v18  ;;  %s7099_s24 = sld [smem:[#allocation81_spill]] }
 0x4fa   : > { %v1354_v1 = vadd.f32 %v1353_v36, %v1320_v44  ;;  %v1358_v22 = vadd.f32 %v1357_v47, %v1324_v10  ;;  %v7086_v38 = vstv %s7082_s15  ;;  %v7087_v46 = vstv %s7083_s27  ;;  %s7109_s15 = sld [smem:[#allocation87_spill]]  ;;  %s7110_s27 = sld [smem:[#allocation88_spill]] }
 0x4fb   : > { %v1379_v12 = vmul.f32 %v7086_v38, %v1376_v31  ;;  %v1383_v24 = vmul.f32 %v7087_v46, %v1376_v31  ;;  %v7088_v26 = vstv %s7084_s7  ;;  %v7089_v33 = vstv %s7085_s19  ;;  %v1482_v59 = vpop.permute.xlu1 %1481  ;;  %v1502_v9 = vpop.permute.xlu0 %1501  ;;  %s7111_s7 = sld [smem:[#allocation89_spill]]  ;;  %s7112_s19 = sld [smem:[#allocation90_spill]] }
 0x4fc   : > { %v1387_v13 = vmul.f32 %v7088_v26, %v1376_v31  ;;  %v1391_v19 = vmul.f32 %v7089_v33, %v1376_v31  ;;  %v1464_v50 = vsel %vm4309_vm11, %v1462_v43, 0.0  ;;  %v2217_v16 = vadd.f32 %v2213_v27, %v2207_v25 }
 0x4fd   : > { %v5606_v2 = vadd.f32 %v2214_v54, %v2208_v58  ;;  %v2223_v36 = vmul.f32 %v5586_v34, %v7023_v53  ;;  %v1380_v44 = vadd.f32 %v1379_v12, %v1346_v4  ;;  %v1384_v47 = vadd.f32 %v1383_v24, %v1350_v28 }
 0x4fe   : > { %v1388_v20 = vadd.f32 %v1387_v13, %v1354_v1  ;;  %v1392_v62 = vadd.f32 %v1391_v19, %v1358_v22  ;;  %v1484_v56 = vsel %vm4309_vm11, %v1482_v59, 0.0  ;;  %v5612_v18 = vadd.f32 %v2215_v55, %v2209_v39 }
 0x4ff   : > { %v5616_v10 = vmul.f32 %v5586_v34, %v7024_v61  ;;  %v5620_v25 = vmul.f32 %v5586_v34, %v7025_v17  ;;  %v1397_v53 = vadd.f32 %v5154_v37, %v1380_v44  ;;  %v1401_v58 = vadd.f32 %v5169_v23, %v1384_v47  ;;  %v1522_v43 = vpop.permute.xlu1 %1521  ;;  %v1549_v4 = vpop.permute.xlu0 %1548 }
 0x500   : > { %v1405_v27 = vadd.f32 %v5171_v42, %v1388_v20  ;;  %v1409_v59 = vadd.f32 %v5173_v7, %v1392_v62  ;;  %v7095_v39 = vstv %s7090_s28  ;;  %v7096_v55 = vstv %s7091_s4  ;;  %s7116_s28 = sld [smem:[#allocation91_spill]]  ;;  %s7117_s4 = sld [smem:[#allocation92_spill]] }
 0x501   : > { %v1467_v54 = vmul.f32 %v7095_v39, %v1464_v50  ;;  %v1471_v61 = vmul.f32 %v7096_v55, %v1464_v50  ;;  %v5630_v31 = vadd.f32 %v2223_v36, %v2217_v16  ;;  %v5634_v17 = vmul.f32 %v5589_v63, %v7032_v41 }
 0x502   : > { %v1414_v37 = vadd.f32 %v5191_v35, %v1397_v53  ;;  %v1418_v23 = vadd.f32 %v5193_v14, %v1401_v58  ;;  %v1422_v42 = vadd.f32 %v5195_v49, %v1405_v27  ;;  %v1426_v7 = vadd.f32 %v5197_v48, %v1409_v59 }
 0x503   : > { %v7100_v28 = vstv %s7092_s13  ;;  %v7101_v22 = vstv %s7093_s26  ;;  %v7102_v12 = vstv %s7094_s3  ;;  %v1504_v41 = vsel %vm4309_vm11, %v1502_v9, 0.0  ;;  %v1576_v9 = vpop.permute.xlu1 %1575  ;;  %s7118_s13 = sld [smem:[#allocation93_spill]]  ;;  %v1603_v59 = vpop.permute.xlu0 %1602  ;;  %s7122_s26 = sld [smem:[#allocation94_spill]] }
 0x504   : > { %v1475_v1 = vmul.f32 %v7100_v28, %v1464_v50  ;;  %v1479_v38 = vmul.f32 %v7101_v22, %v1464_v50  ;;  %v1487_v46 = vmul.f32 %v7102_v12, %v1484_v56  ;;  %v1431_v35 = vadd.f32 %v5007_v52, %v1414_v37  ;;  %s7124_s3 = sld [smem:[#allocation95_spill]] }
 0x505   : > { %v1435_v14 = vadd.f32 %v5021_v11, %v1418_v23  ;;  %v1439_v49 = vadd.f32 %v5023_v21, %v1422_v42  ;;  %v1443_v48 = vadd.f32 %v5025_v45, %v1426_v7  ;;  %v7106_v24 = vstv %s7097_s23  ;;  %s7128_s23 = sld [smem:[#allocation96_spill]] }
 0x506   : > { %v1491_v26 = vmul.f32 %v7106_v24, %v1484_v56  ;;  %v7107_v13 = vstv %s7098_s20  ;;  %v7108_v33 = vstv %s7099_s24  ;;  %v1524_v16 = vsel %vm4309_vm11, %v1522_v43, 0.0  ;;  %s7129_s20 = sld [smem:[#allocation97_spill]]  ;;  %s7130_s24 = sld [smem:[#allocation98_spill]] }
 0x507   : > { %v1495_v50 = vmul.f32 %v7107_v13, %v1484_v56  ;;  %v1499_v19 = vmul.f32 %v7108_v33, %v1484_v56  ;;  %v1448_v52 = vadd.f32 %v5034_v29, %v1431_v35  ;;  %v1452_v11 = vadd.f32 %v5036_v57, %v1435_v14 }
 0x508   : > { %v1456_v21 = vadd.f32 %v5038_v5, %v1439_v49  ;;  %v1460_v45 = vadd.f32 %v5040_v6, %v1443_v48  ;;  %v7113_v36 = vstv %s7103_s11  ;;  %v7114_v47 = vstv %s7104_s0  ;;  %s7131_s11 = sld [smem:[#allocation99_spill]]  ;;  %s7134_s0 = sld [smem:[#allocation100_spill]] }
 0x509   : > { %v1507_v44 = vmul.f32 %v7113_v36, %v1504_v41  ;;  %v1511_v20 = vmul.f32 %v7114_v47, %v1504_v41  ;;  %v7115_v62 = vstv %s7105_s12  ;;  %v1551_v53 = vsel %vm187_vm8, %v1549_v4, 0.0  ;;  %s7135_s12 = sld [smem:[#allocation103_spill]] }
 0x50a   : > { %v1515_v56 = vmul.f32 %v7115_v62, %v1504_v41  ;;  %v1468_v58 = vadd.f32 %v1467_v54, %v1448_v52  ;;  %v1472_v29 = vadd.f32 %v1471_v61, %v1452_v11  ;;  %v1476_v27 = vadd.f32 %v1475_v1, %v1456_v21  ;;  %v1630_v54 = vpop.permute.xlu1 %1629 }
 0x50b   : > { %v1480_v57 = vadd.f32 %v1479_v38, %v1460_v45  ;;  %v7119_v5 = vstv %s7109_s15  ;;  %v7120_v6 = vstv %s7110_s27  ;;  %v7121_v43 = vstv %s7111_s7  ;;  %s7136_s15 = sld [smem:[#allocation104_spill]]  ;;  %s7137_s27 = sld [smem:[#allocation106_spill]]  ;;  %v1714_v45 = vpop.permute.xlu0 %1713 }
 0x50c   : > { %v1519_v39 = vmul.f32 %v7119_v5, %v1504_v41  ;;  %v1527_v55 = vmul.f32 %v7120_v6, %v1524_v16  ;;  %v1531_v37 = vmul.f32 %v7121_v43, %v1524_v16  ;;  %v7123_v23 = vstv %s7112_s19  ;;  %s7142_s7 = sld [smem:[#allocation101_spill]]  ;;  %s7143_s19 = sld [smem:[#allocation36_spill]] }
 0x50d   : > { %v1535_v42 = vmul.f32 %v7123_v23, %v1524_v16  ;;  %v1488_v7 = vadd.f32 %v1487_v46, %v1468_v58  ;;  %v1492_v28 = vadd.f32 %v1491_v26, %v1472_v29  ;;  %v1496_v4 = vadd.f32 %v1495_v50, %v1476_v27 }
 0x50e   : > { %v1500_v22 = vadd.f32 %v1499_v19, %v1480_v57  ;;  %v7125_v12 = vstv %s7116_s28  ;;  %v7126_v1 = vstv %s7117_s4  ;;  %v7127_v35 = vstv %s7118_s13  ;;  %v1734_v5 = vpop.permute.xlu1 %1733  ;;  %s7154_s28 = sld [smem:[#allocation32_spill]]  ;;  %s7160_s4 = sld [smem:[#allocation31_spill]] }
 0x50f   : > { %v1539_v61 = vmul.f32 %v7125_v12, %v1524_v16  ;;  %v1554_v38 = vmul.f32 %v7126_v1, %v1551_v53  ;;  %v1558_v41 = vmul.f32 %v7127_v35, %v1551_v53  ;;  %v1578_v14 = vsel %vm187_vm8, %v1576_v9, 0.0  ;;  %s7162_s13 = sld [smem:[#allocation33_spill]] }
 0x510   : > { %v1508_v49 = vadd.f32 %v1507_v44, %v1488_v7  ;;  %v1512_v48 = vadd.f32 %v1511_v20, %v1492_v28  ;;  %v1516_v46 = vadd.f32 %v1515_v56, %v1496_v4  ;;  %v1520_v24 = vadd.f32 %v1519_v39, %v1500_v22 }
 0x511   : > { %v7132_v26 = vstv %s7122_s26  ;;  %v7133_v50 = vstv %s7124_s3  ;;  %v1605_v19 = vsel %vm187_vm8, %v1603_v59, 0.0  ;;  %v1632_v16 = vsel %vm187_vm8, %v1630_v54, 0.0  ;;  %s7164_s26 = sld [smem:[#allocation42_spill]]  ;;  %s7170_s3 = sld [smem:[#allocation44_spill]] }
 0x512   : > { %v1562_v13 = vmul.f32 %v7132_v26, %v1551_v53  ;;  %v1566_v33 = vmul.f32 %v7133_v50, %v1551_v53  ;;  %v1528_v52 = vadd.f32 %v1527_v55, %v1508_v49  ;;  %v1532_v9 = vadd.f32 %v1531_v37, %v1512_v48 }
 0x513   : > { %v1536_v11 = vadd.f32 %v1535_v42, %v1516_v46  ;;  %v1540_v21 = vadd.f32 %v1539_v61, %v1520_v24  ;;  %v7138_v36 = vstv %s7128_s23  ;;  %v7139_v47 = vstv %s7129_s20  ;;  %s7172_s23 = sld [smem:[#allocation45_spill]]  ;;  %s7174_s20 = sld [smem:[#allocation38_spill]] }
 0x514   : > { %v1581_v44 = vmul.f32 %v7138_v36, %v1578_v14  ;;  %v1585_v20 = vmul.f32 %v7139_v47, %v1578_v14  ;;  %v7140_v62 = vstv %s7130_s24  ;;  %v7141_v53 = vstv %s7131_s11  ;;  %v1774_v36 = vpop.permute.xlu1 %1773  ;;  %v7157_v47 = vld [vmem:[#allocation125_spill] sm:$0xff]  ;;  %s7180_s24 = sld [smem:[#allocation40_spill]]  ;;  %s7182_s11 = sld [smem:[#allocation41_spill]] }
 0x515   : > { %v1589_v56 = vmul.f32 %v7140_v62, %v1578_v14  ;;  %v1593_v58 = vmul.f32 %v7141_v53, %v1578_v14  ;;  %v1555_v29 = vadd.f32 %v1554_v38, %v1528_v52  ;;  %v1559_v27 = vadd.f32 %v1558_v41, %v1532_v9 }
 0x516   : > { %v1563_v57 = vadd.f32 %v1562_v13, %v1536_v11  ;;  %v1567_v59 = vadd.f32 %v1566_v33, %v1540_v21  ;;  %v7144_v39 = vstv %s7134_s0  ;;  %v7145_v55 = vstv %s7135_s12  ;;  %v1754_v13 = vpop.permute.xlu0 %1753  ;;  %s7184_s0 = sld [smem:[#allocation46_spill]]  ;;  %s7196_s12 = sld [smem:[#allocation47_spill]] }
 0x517   : > { %v1608_v6 = vmul.f32 %v7144_v39, %v1605_v19  ;;  %v1612_v43 = vmul.f32 %v7145_v55, %v1605_v19  ;;  %v7146_v37 = vstv %s7136_s15  ;;  %v7147_v42 = vstv %s7137_s27  ;;  %s7197_s15 = sld [smem:[#allocation48_spill]]  ;;  %s7200_s27 = sld [smem:[#allocation49_spill]] }
 0x518   : > { %v1616_v23 = vmul.f32 %v7146_v37, %v1605_v19  ;;  %v1620_v7 = vmul.f32 %v7147_v42, %v1605_v19  ;;  %v1582_v28 = vadd.f32 %v1581_v44, %v1555_v29  ;;  %v1586_v4 = vadd.f32 %v1585_v20, %v1559_v27  ;;  %v7165_v29 = vld [vmem:[#allocation128_spill] sm:$0xff]  ;;  %v7171_v42 = vld [vmem:[#allocation105_spill] sm:$0xff] }
 0x519   : > { %v1590_v22 = vadd.f32 %v1589_v56, %v1563_v57  ;;  %v1594_v54 = vadd.f32 %v1593_v58, %v1567_v59  ;;  %v7148_v12 = vstv %s6988_s25  ;;  %v7149_v1 = vstv %s7142_s7  ;;  %s7153_s25 = sld [smem:[#allocation30_spill]]  ;;  %v7166_v57 = vld [vmem:[#allocation129_spill] sm:$0xff]  ;;  %s7203_s7 = sld [smem:[#allocation56_spill]] }
 0x51a   : > { %v1635_v61 = vmul.f32 %v7148_v12, %v1632_v16  ;;  %v1639_v38 = vmul.f32 %v7149_v1, %v1632_v16  ;;  %v7150_v35 = vstv %s6991_s30  ;;  %v7151_v14 = vstv %s7143_s19  ;;  %s7152_s30 = sld [smem:[#allocation37_spill]]  ;;  %v1803_v39 = vpop.permute.xlu0 %1802  ;;  %v7176_v12 = vld [vmem:[#allocation110_spill] sm:$0xff]  ;;  %v1832_v1 = vpop.permute.xlu1 %1831  ;;  %s7211_s19 = sld [smem:[#allocation39_spill]] }
 0x51b   : > { %v1643_v41 = vmul.f32 %v7150_v35, %v1632_v16  ;;  %v1647_v49 = vmul.f32 %v7151_v14, %v1632_v16  ;;  %v1609_v48 = vadd.f32 %v1608_v6, %v1582_v28  ;;  %v1613_v46 = vadd.f32 %v1612_v43, %v1586_v4  ;;  %v7173_v28 = vld [vmem:[#allocation108_spill] sm:$0xff] }
 0x51c   : > { %v1617_v24 = vadd.f32 %v1616_v23, %v1590_v22  ;;  %v1621_v26 = vadd.f32 %v1620_v7, %v1594_v54  ;;  %v1716_v50 = vsel %vm189_vm10, %v1714_v45, 0.0  ;;  %v5724_v33 = vadd.f32 %v5557_v40, %v5547_v15  ;;  %v7175_v22 = vld [vmem:[#allocation109_spill] sm:$0xff] }
 0x51d   : > { %v2228_v19 = vadd.f32 %v5616_v10, %v5606_v2  ;;  %v2234_v16 = vmul.f32 %v5589_v63, %v7035_v30  ;;  %v1636_v52 = vadd.f32 %v1635_v61, %v1609_v48  ;;  %v1640_v9 = vadd.f32 %v1639_v38, %v1613_v46  ;;  %v7155_v10 = vld [vmem:[#allocation123_spill] sm:$0xff] }
 0x51e   : > { %v1644_v11 = vadd.f32 %v1643_v41, %v1617_v24  ;;  %v1648_v21 = vadd.f32 %v1647_v49, %v1621_v26  ;;  %v5732_v45 = vmul.f32 %v5586_v34, %v7027_v3  ;;  %v5736_v15 = vadd.f32 %v5620_v25, %v5612_v18  ;;  %v7156_v3 = vld [vmem:[#allocation124_spill] sm:$0xff]  ;;  %v7183_v26 = vld [vmem:[#allocation111_spill] sm:$0xff] }
 0x51f   : > { %v5740_v40 = vmul.f32 %v5589_v63, %v7036_v32  ;;  %v5744_v30 = vadd.f32 %v5634_v17, %v5630_v31  ;;  %v1652_v2 = vadd.f32 %v5126_v51, %v1636_v52  ;;  %v1656_v44 = vadd.f32 %v7155_v10, %v1640_v9  ;;  %v7161_v31 = vld [vmem:[#allocation126_spill] sm:$0xff]  ;;  %v7163_v51 = vld [vmem:[#allocation127_spill] sm:$0xff] }
 0x520   : > { %v1660_v34 = vadd.f32 %v7156_v3, %v1644_v11  ;;  %v1664_v20 = vadd.f32 %v7157_v47, %v1648_v21  ;;  %v7158_v18 = vstv %s6994_s17  ;;  %v7159_v62 = vstv %s7152_s30  ;;  %s7169_s17 = sld [smem:[#allocation43_spill]]  ;;  %v7187_v9 = vld [vmem:[#allocation114_spill] sm:$0xff]  ;;  %s7213_s30 = sld [smem:[#allocation140_spill]] }
 0x521   : > { %v1719_v25 = vmul.f32 %v7158_v18, %v1716_v50  ;;  %v1723_v56 = vmul.f32 %v7159_v62, %v1716_v50  ;;  %v1736_v32 = vsel %vm189_vm10, %v1734_v5, 0.0  ;;  %v5756_v53 = vadd.f32 %v2234_v16, %v2228_v19  ;;  %v7186_v16 = vld [vmem:[#allocation113_spill] sm:$0xff] }
 0x522   : > { %v1668_v17 = vadd.f32 %v7161_v31, %v1652_v2  ;;  %v1672_v58 = vadd.f32 %v7163_v51, %v1656_v44  ;;  %v1676_v27 = vadd.f32 %v7165_v29, %v1660_v34  ;;  %v1680_v59 = vadd.f32 %v7166_v57, %v1664_v20 }
 0x523   : > { %v7167_v6 = vstv %s7153_s25  ;;  %v7168_v43 = vstv %s7154_s28  ;;  %v1756_v5 = vsel %vm189_vm10, %v1754_v13, 0.0  ;;  %v1776_v23 = vsel %vm189_vm10, %v1774_v36, 0.0  ;;  %s7215_s25 = sld [smem:[#allocation141_spill]]  ;;  %s7216_s28 = sld [smem:[#allocation142_spill]] }
 0x524   : > { %v1727_v55 = vmul.f32 %v7167_v6, %v1716_v50  ;;  %v1731_v37 = vmul.f32 %v7168_v43, %v1716_v50  ;;  %v1684_v7 = vadd.f32 %v7171_v42, %v1668_v17  ;;  %v1688_v4 = vadd.f32 %v7173_v28, %v1672_v58  ;;  %v7185_v50 = vld [vmem:[#allocation112_spill] sm:$0xff] }
 0x525   : > { %v1692_v54 = vadd.f32 %v7175_v22, %v1676_v27  ;;  %v1696_v61 = vadd.f32 %v7176_v12, %v1680_v59  ;;  %v7177_v38 = vstv %s7160_s4  ;;  %v7178_v41 = vstv %s7162_s13  ;;  %s7255_s4 = sld [smem:[#allocation102_spill]]  ;;  %s7257_s13 = sld [smem:[#allocation144_spill]] }
 0x526   : > { %v1739_v35 = vmul.f32 %v7177_v38, %v1736_v32  ;;  %v1743_v14 = vmul.f32 %v7178_v41, %v1736_v32  ;;  %v7179_v49 = vstv %s7164_s26  ;;  %v1805_v24 = vsel %vm4495_vm12, %v1803_v39, 0.0  ;;  %s7267_s26 = sld [smem:[#allocation147_spill]] }
 0x527   : > { %v1747_v48 = vmul.f32 %v7179_v49, %v1736_v32  ;;  %v1700_v13 = vadd.f32 %v7183_v26, %v1684_v7  ;;  %v1704_v19 = vadd.f32 %v7185_v50, %v1688_v4  ;;  %v1708_v52 = vadd.f32 %v7186_v16, %v1692_v54  ;;  %v1861_v7 = vpop.permute.xlu0 %1860 }
 0x528   : > { %v1712_v11 = vadd.f32 %v7187_v9, %v1696_v61  ;;  %v7188_v21 = vstv %s7169_s17  ;;  %v7189_v2 = vstv %s7170_s3  ;;  %v7190_v44 = vstv %s7172_s23  ;;  %s7268_s17 = sld [smem:[#allocation148_spill]]  ;;  %s3113_s3 = sld [smem:[#allocation6 + $0x140]] }
 0x529   : > { %v1751_v36 = vmul.f32 %v7188_v21, %v1736_v32  ;;  %v1759_v10 = vmul.f32 %v7189_v2, %v1756_v5  ;;  %v1763_v3 = vmul.f32 %v7190_v44, %v1756_v5  ;;  %v7191_v34 = vstv %s7174_s20  ;;  %s6084_s23 = sld [smem:[#allocation6 + $0x141]]  ;;  %s6086_s20 = sld [smem:[#allocation6 + $0x14a]] }
 0x52a   : > { %v1767_v47 = vmul.f32 %v7191_v34, %v1756_v5  ;;  %v1720_v20 = vadd.f32 %v1719_v25, %v1700_v13  ;;  %v1724_v18 = vadd.f32 %v1723_v56, %v1704_v19  ;;  %v1728_v62 = vadd.f32 %v1727_v55, %v1708_v52  ;;  %v1890_v25 = vpop.permute.xlu1 %1889 }
 0x52b   : > { %v1732_v31 = vadd.f32 %v1731_v37, %v1712_v11  ;;  %v7192_v17 = vstv %s7010_s21  ;;  %v7193_v58 = vstv %s7180_s24  ;;  %v7194_v27 = vstv %s7182_s11  ;;  %s7202_s21 = sld [smem:[#allocation54_spill]]  ;;  %s6098_s11 = sld [smem:[#allocation6 + $0x14b]] }
 0x52c   : > { %v1771_v51 = vmul.f32 %v7192_v17, %v1756_v5  ;;  %v1779_v29 = vmul.f32 %v7193_v58, %v1776_v23  ;;  %v1783_v57 = vmul.f32 %v7194_v27, %v1776_v23  ;;  %v7195_v32 = vstv %s7184_s0  ;;  %s6088_s24 = sld [smem:[#allocation6 + $0x142]]  ;;  %s6100_s0 = sld [smem:[#allocation6 + $0x143]] }
 0x52d   : > { %v1787_v59 = vmul.f32 %v7195_v32, %v1776_v23  ;;  %v1740_v39 = vadd.f32 %v1739_v35, %v1720_v20  ;;  %v1744_v6 = vadd.f32 %v1743_v14, %v1724_v18  ;;  %v1748_v43 = vadd.f32 %v1747_v48, %v1728_v62 }
 0x52e   : > { %v1752_v42 = vadd.f32 %v1751_v36, %v1732_v31  ;;  %v7198_v28 = vstv %s5259_s1  ;;  %v7199_v55 = vstv %s5261_s8  ;;  %v7201_v5 = vstv %s5267_s16  ;;  %s7206_s1 = sld [smem:[#allocation34_spill]]  ;;  %s7207_s16 = sld [smem:[#allocation138_spill]] }
 0x52f   : > { %v1791_v56 = vmul.f32 %v7198_v28, %v1776_v23  ;;  %v1808_v37 = vmul.f32 %v7199_v55, %v1805_v24  ;;  %v1812_v4 = vmul.f32 %v7201_v5, %v1805_v24  ;;  %v1834_v22 = vsel %vm4495_vm12, %v1832_v1, 0.0  ;;  %s7208_s8 = sld [smem:[#allocation139_spill]]  ;;  %v1978_v5 = vpop.permute.xlu0 %1977 }
 0x530   : > { %v1760_v54 = vadd.f32 %v1759_v10, %v1740_v39  ;;  %v1764_v12 = vadd.f32 %v1763_v3, %v1744_v6  ;;  %v1768_v61 = vadd.f32 %v1767_v47, %v1748_v43  ;;  %v1772_v38 = vadd.f32 %v1771_v51, %v1752_v42 }
 0x531   : > { %v7204_v35 = vstv %s7196_s12  ;;  %v7205_v14 = vstv %s7197_s15  ;;  %v1863_v49 = vsel %vm4495_vm12, %v1861_v7, 0.0  ;;  %v1892_v48 = vsel %vm4495_vm12, %v1890_v25, 0.0  ;;  %s6109_s12 = sld [smem:[#allocation6 + $0x14c]] }
 0x532   : > { %v1816_v41 = vmul.f32 %v7204_v35, %v1805_v24  ;;  %v1820_v23 = vmul.f32 %v7205_v14, %v1805_v24  ;;  %v1780_v1 = vadd.f32 %v1779_v29, %v1760_v54  ;;  %v1784_v26 = vadd.f32 %v1783_v57, %v1764_v12  ;;  %v7225_v54 = vld [vmem:[#allocation29_spill] sm:$0xff]  ;;  %v7229_v14 = vld [vmem:[#allocation151_spill] sm:$0xff]  ;;  %s6123_s15 = sld [smem:[#allocation6 + $0x144]] }
 0x533   : > { %v1788_v13 = vadd.f32 %v1787_v59, %v1768_v61  ;;  %v1792_v50 = vadd.f32 %v1791_v56, %v1772_v38  ;;  %v7209_v19 = vstv %s7200_s27  ;;  %v7210_v52 = vstv %s7202_s21  ;;  %v7226_v61 = vld [vmem:[#allocation24_spill] sm:$0xff]  ;;  %v7227_v38 = vld [vmem:[#allocation25_spill] sm:$0xff]  ;;  %s6126_s27 = sld [smem:[#allocation6 + $0x14d]] }
 0x534   : > { %v1837_v16 = vmul.f32 %v7209_v19, %v1834_v22  ;;  %v1841_v9 = vmul.f32 %v7210_v52, %v1834_v22  ;;  %v7212_v11 = vstv %s7018_s22  ;;  %v7214_v21 = vstv %s7203_s7  ;;  %v7231_v19 = vld [vmem:[#allocation28_spill] sm:$0xff]  ;;  %v7233_v52 = vld [vmem:[#allocation130_spill] sm:$0xff]  ;;  %s7234_s22 = sld [smem:[#allocation143_spill]]  ;;  %s6137_s21 = sld [smem:[#allocation6 + $0x145]] }
 0x535   : > { %v1845_v24 = vmul.f32 %v7212_v11, %v1834_v22  ;;  %v1849_v36 = vmul.f32 %v7214_v21, %v1834_v22  ;;  %v1809_v2 = vadd.f32 %v1808_v37, %v1780_v1  ;;  %v1813_v10 = vadd.f32 %v1812_v4, %v1784_v26  ;;  %v1998_v4 = vpop.permute.xlu1 %1997  ;;  %v7235_v11 = vld [vmem:[#allocation131_spill] sm:$0xff]  ;;  %v7236_v21 = vld [vmem:[#allocation132_spill] sm:$0xff]  ;;  %s6144_s7 = sld [smem:[#allocation6 + $0x14e]] }
 0x536   : > { %v1817_v44 = vadd.f32 %v1816_v41, %v1788_v13  ;;  %v1821_v3 = vadd.f32 %v1820_v23, %v1792_v50  ;;  %v7217_v34 = vstv %s7206_s1  ;;  %v7218_v20 = vstv %s7021_s2  ;;  %v7228_v41 = vld [vmem:[#allocation150_spill] sm:$0xff]  ;;  %s7247_s2 = sld [smem:[#allocation35_spill]]  ;;  %s6147_s1 = sld [smem:[#allocation6 + $0x146]] }
 0x537   : > { %v1866_v47 = vmul.f32 %v7217_v34, %v1863_v49  ;;  %v1870_v18 = vmul.f32 %v7218_v20, %v1863_v49  ;;  %v7219_v62 = vstv %s7207_s16  ;;  %v7220_v17 = vstv %s7208_s8  ;;  %s6150_s16 = sld [smem:[#allocation6 + $0x14f]] }
 0x538   : > { %v1874_v31 = vmul.f32 %v7219_v62, %v1863_v49  ;;  %v1878_v51 = vmul.f32 %v7220_v17, %v1863_v49  ;;  %v1838_v58 = vadd.f32 %v1837_v16, %v1809_v2  ;;  %v1842_v29 = vadd.f32 %v1841_v9, %v1813_v10  ;;  %v7237_v2 = vld [vmem:[#allocation133_spill] sm:$0xff]  ;;  %s6152_s8 = sld [smem:[#allocation6 + $0x147]] }
 0x539   : > { %v1846_v27 = vadd.f32 %v1845_v24, %v1817_v44  ;;  %v1850_v57 = vadd.f32 %v1849_v36, %v1821_v3  ;;  %v7221_v32 = vstv %s7211_s19  ;;  %v7222_v39 = vstv %s7213_s30  ;;  %v7238_v3 = vld [vmem:[#allocation22_spill] sm:$0xff]  ;;  %s6168_s19 = sld [smem:[#allocation6 + $0x150]] }
 0x53a   : > { %v1895_v59 = vmul.f32 %v7221_v32, %v1892_v48  ;;  %v1899_v6 = vmul.f32 %v7222_v39, %v1892_v48  ;;  %v7223_v43 = vstv %s7215_s25  ;;  %v7224_v7 = vstv %s7216_s28  ;;  %s6175_s30 = sld [smem:[#allocation6 + $0x148]]  ;;  %s6179_s25 = sld [smem:[#allocation6 + $0x151]] }
 0x53b   : > { %v1903_v42 = vmul.f32 %v7223_v43, %v1892_v48  ;;  %v1907_v25 = vmul.f32 %v7224_v7, %v1892_v48  ;;  %v1867_v28 = vadd.f32 %v1866_v47, %v1838_v58  ;;  %v1871_v56 = vadd.f32 %v1870_v18, %v1842_v29  ;;  %v7240_v47 = vld [vmem:[#allocation152_spill] sm:$0xff]  ;;  %v7242_v18 = vld [vmem:[#allocation135_spill] sm:$0xff]  ;;  %v2018_v29 = vpop.permute.xlu0 %2017  ;;  %v7249_v7 = vld [vmem:[#allocation116_spill] sm:$0xff]  ;;  %s7284_s28 = sld [smem:[#allocation21_spill]] }
 0x53c   : > { %v1875_v55 = vadd.f32 %v1874_v31, %v1846_v27  ;;  %v1879_v37 = vadd.f32 %v1878_v51, %v1850_v57  ;;  %v2230_v22 = vadd.f32 %v5732_v45, %v5724_v33  ;;  %v2236_v12 = vmul.f32 %v5589_v63, %v7225_v54  ;;  %v7232_v33 = vld [vmem:[#allocation149_spill] sm:$0xff]  ;;  %v7243_v31 = vld [vmem:[#allocation136_spill] sm:$0xff]  ;;  %v7244_v51 = vld [vmem:[#allocation137_spill] sm:$0xff]  ;;  %v2038_v27 = vpop.permute.xlu1 %2037 }
 0x53d   : > { %v2254_v35 = vsel %vm288_vm1, %v7227_v38, %v7226_v61  ;;  %v2263_v23 = vsel %vm288_vm1, %v7229_v14, %v7228_v41  ;;  %v1896_v49 = vadd.f32 %v1895_v59, %v1867_v28  ;;  %v1900_v48 = vadd.f32 %v1899_v6, %v1871_v56  ;;  %v7248_v43 = vld [vmem:[#allocation115_spill] sm:$0xff]  ;;  %v7250_v28 = vld [vmem:[#allocation117_spill] sm:$0xff]  ;;  %v7258_v41 = vld [vmem:[#allocation120_spill] sm:$0xff] }
 0x53e   : > { %v1904_v1 = vadd.f32 %v1903_v42, %v1875_v55  ;;  %v1908_v26 = vadd.f32 %v1907_v25, %v1879_v37  ;;  %v1980_v50 = vsel %vm4611_vm13, %v1978_v5, 0.0  ;;  %v5856_v45 = vadd.f32 %v7232_v33, %v7231_v19  ;;  %v7251_v55 = vld [vmem:[#allocation118_spill] sm:$0xff]  ;;  %v7256_v38 = vld [vmem:[#allocation119_spill] sm:$0xff] }
 0x53f   : > { %v2239_v63 = vadd.f32 %v5740_v40, %v5736_v15  ;;  %v2272_v16 = vsel %vm288_vm1, %v5756_v53, %v5744_v30  ;;  %v1913_v9 = vadd.f32 %v7233_v52, %v1896_v49  ;;  %v1917_v24 = vadd.f32 %v7235_v11, %v1900_v48  ;;  %v7239_v15 = vld [vmem:[#allocation26_spill] sm:$0xff]  ;;  %v7241_v53 = vld [vmem:[#allocation134_spill] sm:$0xff] }
 0x540   : > { %v1921_v36 = vadd.f32 %v7236_v21, %v1904_v1  ;;  %v1925_v10 = vadd.f32 %v7237_v2, %v1908_v26  ;;  %v2240_v44 = vadd.f32 %v2236_v12, %v2230_v22  ;;  %v2246_v34 = vsel %vm290_vm2, %v7238_v3, %v5594_v60  ;;  %v7260_v48 = vld [vmem:[#allocation122_spill] sm:$0xff] }
 0x541   : > { %v2255_v40 = vsel %vm290_vm2, %v7239_v15, %v2254_v35  ;;  %v2264_v30 = vsel %vm290_vm2, %v7240_v47, %v2263_v23  ;;  %v1930_v20 = vadd.f32 %v7241_v53, %v1913_v9  ;;  %v1934_v62 = vadd.f32 %v7242_v18, %v1917_v24  ;;  %v7259_v23 = vld [vmem:[#allocation121_spill] sm:$0xff] }
 0x542   : > { %v1938_v17 = vadd.f32 %v7243_v31, %v1921_v36  ;;  %v1942_v58 = vadd.f32 %v7244_v51, %v1925_v10  ;;  %v7245_v57 = vstv %s5338_s14  ;;  %v7246_v32 = vstv %s7234_s22  ;;  %s7254_s14 = sld [smem:[#allocation55_spill]]  ;;  %s7285_s22 = sld [smem:[#allocation15_spill]] }
 0x543   : > { %v1983_v60 = vmul.f32 %v7245_v57, %v1980_v50  ;;  %v1987_v59 = vmul.f32 %v7246_v32, %v1980_v50  ;;  %v2000_v39 = vsel %vm4611_vm13, %v1998_v4, 0.0  ;;  %v2273_v6 = vsel %vm290_vm2, %v2239_v63, %v2272_v16 }
 0x544   : > { %v1947_v42 = vadd.f32 %v7248_v43, %v1930_v20  ;;  %v1951_v25 = vadd.f32 %v7249_v7, %v1934_v62  ;;  %v1955_v56 = vadd.f32 %v7250_v28, %v1938_v17  ;;  %v1959_v37 = vadd.f32 %v7251_v55, %v1942_v58 }
 0x545   : > { %v7252_v5 = vstv %s5349_s5  ;;  %v7253_v54 = vstv %s5355_s9  ;;  %v2020_v4 = vsel %vm4611_vm13, %v2018_v29, 0.0  ;;  %v2040_v61 = vsel %vm4611_vm13, %v2038_v27, 0.0  ;;  %s7263_s5 = sld [smem:[#allocation145_spill]]  ;;  %s7265_s9 = sld [smem:[#allocation146_spill]] }
 0x546   : > { %v1991_v22 = vmul.f32 %v7252_v5, %v1980_v50  ;;  %v1995_v12 = vmul.f32 %v7253_v54, %v1980_v50  ;;  %v1964_v35 = vadd.f32 %v7256_v38, %v1947_v42  ;;  %v1968_v14 = vadd.f32 %v7258_v41, %v1951_v25  ;;  %v7277_v5 = vld [vmem:[#allocation23_spill] sm:$0xff] }
 0x547   : > { %v1972_v49 = vadd.f32 %v7259_v23, %v1955_v56  ;;  %v1976_v1 = vadd.f32 %v7260_v48, %v1959_v37  ;;  %v7261_v26 = vstv %s5357_s10  ;;  %v7262_v50 = vstv %s5362_s18  ;;  %v7278_v54 = vld [vmem:[#allocation27_spill] sm:$0xff]  ;;  %s7279_s18 = smov 16   ;;  %s7281_s10 = smov 127  }
 0x548   : > { %v2003_v19 = vmul.f32 %v7261_v26, %v2000_v39  ;;  %v2007_v33 = vmul.f32 %v7262_v50, %v2000_v39  ;;  %v7264_v63 = vstv %s7247_s2  ;;  %v7266_v52 = vstv %s5367_s6  ;;  %s3114_s6 = sld [smem:[#allocation6 + $0x149]] }
 0x549   : > { %v2011_v16 = vmul.f32 %v7264_v63, %v2000_v39  ;;  %v2015_v9 = vmul.f32 %v7266_v52, %v2000_v39  ;;  %v1984_v11 = vadd.f32 %v1983_v60, %v1964_v35  ;;  %v1988_v24 = vadd.f32 %v1987_v59, %v1968_v14  ;;  %s7286_s2 = sld [smem:[#allocation20_spill]] }
 0x54a   : > { %v1992_v21 = vadd.f32 %v1991_v22, %v1972_v49  ;;  %v1996_v36 = vadd.f32 %v1995_v12, %v1976_v1  ;;  %v7269_v2 = vstv %s5378_s29  ;;  %v7270_v3 = vstv %s7254_s14  ;;  %s7280_s29 = smov 113   ;;  %s3137_s14 = sshll.u32 %s7285_s22, 10 }
 0x54b   : > { %v2023_v10 = vmul.f32 %v7269_v2, %v2020_v4  ;;  %v2027_v15 = vmul.f32 %v7270_v3, %v2020_v4  ;;  %v7271_v47 = vstv %s7255_s4  ;;  %v7272_v20 = vstv %s7257_s13 }
 0x54c   : > { %v2031_v53 = vmul.f32 %v7271_v47, %v2020_v4  ;;  %v2035_v18 = vmul.f32 %v7272_v20, %v2020_v4  ;;  %v2004_v62 = vadd.f32 %v2003_v19, %v1984_v11  ;;  %v2008_v31 = vadd.f32 %v2007_v33, %v1988_v24 }
 0x54d   : > { %v2012_v17 = vadd.f32 %v2011_v16, %v1992_v21  ;;  %v2016_v51 = vadd.f32 %v2015_v9, %v1996_v36  ;;  %v7273_v58 = vstv %s7263_s5  ;;  %v7274_v27 = vstv %s7265_s9 }
 0x54e   : > { %v2043_v29 = vmul.f32 %v7273_v58, %v2040_v61  ;;  %v2047_v57 = vmul.f32 %v7274_v27, %v2040_v61  ;;  %v7275_v60 = vstv %s7267_s26  ;;  %v7276_v59 = vstv %s7268_s17  ;;  %s7290_s17 = sld [smem:[#allocation155_spill]] }
 0x54f   : > { %v2051_v32 = vmul.f32 %v7275_v60, %v2040_v61  ;;  %v2055_v39 = vmul.f32 %v7276_v59, %v2040_v61  ;;  %v2024_v43 = vadd.f32 %v2023_v10, %v2004_v62  ;;  %v2028_v42 = vadd.f32 %v2027_v15, %v2008_v31  ;;  %s7287_s4 = sshll.u32 %s7286_s2, 6 }
 0x550   : > { %v2032_v7 = vadd.f32 %v2031_v53, %v2012_v17  ;;  %v2036_v25 = vadd.f32 %v2035_v18, %v2016_v51  ;;  %v2247_v22 = vsel %vm292_vm3, %v7277_v5, %v2246_v34  ;;  %v2256_v12 = vsel %vm292_vm3, %v7278_v54, %v2255_v40  ;;  %s173_s13 = scalar_lea.vmem [#allocation7], %s7287_s4 }
 0x551   : > { %v2044_v28 = vadd.f32 %v2043_v29, %v2024_v43  ;;  %v2048_v56 = vadd.f32 %v2047_v57, %v2028_v42  ;;  %v2265_v4 = vsel %vm292_vm3, %v5856_v45, %v2264_v30  ;;  %v2274_v38 = vsel %vm292_vm3, %v2240_v44, %v2273_v6  ;;  %s2698_s5 = sshll.u32 %s173_s13, 4  ;;  %s6226_s5 = int_to_ptr.vmem [resolvable:$true] %s2698_s5 }
 0x552   : > { %v2052_v55 = vadd.f32 %v2051_v32, %v2032_v7  ;;  %v2056_v37 = vadd.f32 %v2055_v39, %v2036_v25  ;;  %v3345_v13 = vmov 1966171168   ;;  %vm7288_vm3 = vcmask 130048  }
 0x553   : > { %vm2057_vm0 = vcmp.gt.f32.partialorder %v2044_v28, 0.0  ;;  %v2058_v61 = vmul.f32 0.2, %v2044_v28  ;;  %vm2060_vm1 = vcmp.gt.f32.partialorder %v2048_v56, 0.0  ;;  %v2061_v35 = vmul.f32 0.2, %v2048_v56 }
 0x554   : > { %vm2063_vm2 = vcmp.gt.f32.partialorder %v2052_v55, 0.0  ;;  %v2064_v41 = vmul.f32 0.2, %v2052_v55  ;;  %vm2066_vm14 = vcmp.gt.f32.partialorder %v2056_v37, 0.0  ;;  %v2067_v14 = vmul.f32 0.2, %v2056_v37 }
 0x555   : > { %v2059_v23 = vsel %vm2057_vm0, %v2044_v28, %v2058_v61  ;;  %v2062_v49 = vsel %vm2060_vm1, %v2048_v56, %v2061_v35 }
 0x556   : > { %v2065_v48 = vsel %vm2063_vm2, %v2052_v55, %v2064_v41  ;;  %v2068_v34 = vsel %vm2066_vm14, %v2056_v37, %v2067_v14  ;;  %v5932_v1 = vadd.f32 %v2247_v22, %v2059_v23  ;;  %v5934_v40 = vadd.f32 %v2256_v12, %v2062_v49 }
 0x557   : > { %v5936_v26 = vadd.f32 %v2265_v4, %v2065_v48  ;;  %v5938_v45 = vadd.f32 %v2274_v38, %v2068_v34 }
 0x558   : > { %v2299_v44 = vrot.slane %v5934_v40, 4  ;;  %v2277_v30 = vrot.slane %v5932_v1, 4 }
 0x559   : > { %v2481_v6 = vrot.slane %v5938_v45, 4  ;;  %v2461_v19 = vrot.slane %v5936_v26, 4 }
 0x55a   : > { %v2300_v50 = vsel %vm295_vm4, %v2299_v44, %v5934_v40  ;;  %v2278_v33 = vsel %vm295_vm4, %v2277_v30, %v5932_v1 }
 0x55b   : > { %v2301_v63 = vrot.slane %v2300_v50, 4  ;;  %v2279_v16 = vrot.slane %v2278_v33, 4  ;;  %v2482_v52 = vsel %vm295_vm4, %v2481_v6, %v5938_v45  ;;  %v2462_v9 = vsel %vm295_vm4, %v2461_v19, %v5936_v26 }
 0x55c   : > { %v2483_v11 = vrot.slane %v2482_v52, 4  ;;  %v2463_v24 = vrot.slane %v2462_v9, 4 }
 0x55d   : > { %v2302_v21 = vsel %vm295_vm4, %v2301_v63, %v5934_v40  ;;  %v2280_v36 = vsel %vm295_vm4, %v2279_v16, %v5932_v1 }
 0x55e   : > { %v5956_v2 = vrot.slane %v2302_v21, 3  ;;  %v5958_v10 = vrot.slane %v2280_v36, 3  ;;  %v2484_v3 = vsel %vm295_vm4, %v2483_v11, %v5938_v45  ;;  %v2464_v15 = vsel %vm295_vm4, %v2463_v24, %v5936_v26  ;;  %vm7289_vm4 = vmmov %vm7288_vm3 }
 0x55f   : > { %v5968_v47 = vrot.slane %v2484_v3, 3  ;;  %v5970_v53 = vrot.slane %v2464_v15, 3  ;;  %v5984_v20 = vrot.slane %v2464_v15, 1  ;;  %v5986_v18 = vrot.slane %v2280_v36, 1 }
 0x560   : > { %2306 = vrot.lane.b32.xlu1 %v5956_v2, %s7279_s18  ;;  %2284 = vrot.lane.b32.xlu0 %v5958_v10, %s7279_s18  ;;  %v5992_v62 = vrot.slane %v2484_v3, 1  ;;  %v5994_v31 = vrot.slane %v2302_v21, 1 }
 0x564   : > { %2488 = vrot.lane.b32.xlu1 %v5968_v47, %s7279_s18  ;;  %2468 = vrot.lane.b32.xlu0 %v5970_v53, %s7279_s18 }
 0x568   : > { %2519 = vrot.lane.b32.xlu1 %v5936_v26, %s7279_s18  ;;  %2347 = vrot.lane.b32.xlu0 %v5932_v1, %s7279_s18 }
 0x56c   : > { %2532 = vrot.lane.b32.xlu1 %v5938_v45, %s7279_s18  ;;  %2362 = vrot.lane.b32.xlu0 %v5934_v40, %s7279_s18 }
 0x570   : > { %2563 = vrot.lane.b32.xlu1 %v5984_v20, %s7279_s18  ;;  %2403 = vrot.lane.b32.xlu0 %v5986_v18, %s7279_s18 }
 0x574   : > { %2578 = vrot.lane.b32.xlu1 %v5992_v62, %s7279_s18  ;;  %2420 = vrot.lane.b32.xlu0 %v5994_v31, %s7279_s18 }
 0x5d2   : > { %v2307_v17 = vpop.permute.xlu1 %2306  ;;  %v2285_v51 = vpop.permute.xlu0 %2284 }
 0x5d3   : > { %v2308_v58 = vsel %vm303_vm5, %v2307_v17, %v5956_v2  ;;  %v2286_v29 = vsel %vm303_vm5, %v2285_v51, %v5958_v10 }
 0x5d4   : > { %2309 = vrot.lane.b32.xlu1 %v2308_v58, %s7279_s18  ;;  %2287 = vrot.lane.b32.xlu0 %v2286_v29, %s7279_s18 }
 0x5d6   : > { %v2489_v27 = vpop.permute.xlu1 %2488  ;;  %v2469_v57 = vpop.permute.xlu0 %2468 }
 0x5d7   : > { %v2490_v60 = vsel %vm303_vm5, %v2489_v27, %v5968_v47  ;;  %v2470_v32 = vsel %vm303_vm5, %v2469_v57, %v5970_v53  ;;  %v2318_v27 = vstv %s3114_s6  ;;  %v2296_v57 = vstv %s3113_s3  ;;  %s3266_s6 = scalar_lea.vmem %s6226_s5, 1024  ;;  %s3346_s3 = smov [#allocation7]  }
 0x5d8   : > { %2491 = vrot.lane.b32.xlu1 %v2490_v60, %s7279_s18  ;;  %2471 = vrot.lane.b32.xlu0 %v2470_v32, %s7279_s18  ;;  %p3267_p1 = scmp.ne.s32.totalorder %s6226_s5, %s3266_s6 }
 0x5da   : > { %v2520_v59 = vpop.permute.xlu1 %2519  ;;  %v2348_v39 = vpop.permute.xlu0 %2347 }
 0x5db   : > { %v2521_v43 = vsel %vm303_vm5, %v2520_v59, %v5936_v26  ;;  %v2349_v42 = vsel %vm303_vm5, %v2348_v39, %v5932_v1 }
 0x5dc   : > { %2522 = vrot.lane.b32.xlu1 %v2521_v43, %s7279_s18  ;;  %2350 = vrot.lane.b32.xlu0 %v2349_v42, %s7279_s18 }
 0x5de   : > { %v2533_v7 = vpop.permute.xlu1 %2532  ;;  %v2363_v25 = vpop.permute.xlu0 %2362 }
 0x5df   : > { %v2534_v28 = vsel %vm303_vm5, %v2533_v7, %v5938_v45  ;;  %v2364_v56 = vsel %vm303_vm5, %v2363_v25, %v5934_v40  ;;  %v2323_v25 = vstv %s6084_s23  ;;  %s3270_s23 = sshll.u32 %s3346_s3, 4  ;;  %s3271_s23 = int_to_ptr.vmem [resolvable:$false] %s3270_s23 }
 0x5e0   : > { %2535 = vrot.lane.b32.xlu1 %v2534_v28, %s7279_s18  ;;  %2365 = vrot.lane.b32.xlu0 %v2364_v56, %s7279_s18  ;;  %v7283_v28 = vld [vmem:[#allocation53_spill] sm:$0xff]  ;;  %v2321_v56 = vsel %vm186_vm6, %v5958_v10, 0.0  ;;  %p3273_p10 = scmp.lt.s32.totalorder %s6226_s5, %s3271_s23 }
 0x5e2   : > { %v2564_v55 = vpop.permute.xlu1 %2563  ;;  %v2404_v37 = vpop.permute.xlu0 %2403 }
 0x5e3   : > { %v2565_v5 = vsel %vm303_vm5, %v2564_v55, %v5984_v20  ;;  %v2405_v22 = vsel %vm303_vm5, %v2404_v37, %v5986_v18 }
 0x5e4   : > { %2566 = vrot.lane.b32.xlu1 %v2565_v5, %s7279_s18  ;;  %2406 = vrot.lane.b32.xlu0 %v2405_v22, %s7279_s18 }
 0x5e6   : > { %v2579_v54 = vpop.permute.xlu1 %2578  ;;  %v2421_v12 = vpop.permute.xlu0 %2420 }
 0x5e7   : > { %v2580_v4 = vsel %vm303_vm5, %v2579_v54, %v5992_v62  ;;  %v2422_v38 = vsel %vm303_vm5, %v2421_v12, %v5994_v31  ;;  %v2501_v54 = vsel %vm186_vm6, %v5970_v53, 0.0 }
 0x5e8   : > { %2581 = vrot.lane.b32.xlu1 %v2580_v4, %s7279_s18  ;;  %2423 = vrot.lane.b32.xlu0 %v2422_v38, %s7279_s18  ;;  %v2324_v4 = vmul.f32 %v2323_v25, %v2321_v56  ;;  %s7291_s18 = sld [smem:[#allocation18_spill]] }
 0x5ee   : > { %p7298_p3 = scmp.ne.s32.totalorder %s7291_s18, 0 }
 0x5f0   : > { %p3268_p6 = pnand %p3267_p1, %p7298_p3 }
 0x5f2   : > { %p3269_p8 = pneg %p3268_p6 }
 0x646   : > { %v2310_v61 = vpop.permute.xlu1 %2309  ;;  %v2288_v35 = vpop.permute.xlu0 %2287 }
 0x647   : > { %v2311_v50 = vsel %vm303_vm5, %v2310_v61, %v5956_v2  ;;  %v2289_v33 = vsel %vm303_vm5, %v2288_v35, %v5958_v10  ;;  %v2328_v61 = vstv %s6086_s20  ;;  %v2336_v35 = vstv %s6088_s24  ;;  %s3272_s20 = scalar_lea.vmem %s3271_s23, 2048 }
 0x648   : > { %p3274_p2 = scmp.lt.s32.totalorder %s3272_s20, %s3266_s6 }
 0x64a   : > { %v2492_v41 = vpop.permute.xlu1 %2491  ;;  %v2472_v14 = vpop.permute.xlu0 %2471  ;;  %p3275_p7 = por %p3274_p2, %p3273_p10 }
 0x64b   : > { %v2493_v63 = vsel %vm303_vm5, %v2492_v41, %v5968_v47  ;;  %v2473_v16 = vsel %vm303_vm5, %v2472_v14, %v5970_v53  ;;  %v2504_v41 = vsel %vm186_vm6, %v5968_v47, 0.0  ;;  %v2326_v53 = vsel %vm186_vm6, %v5956_v2, 0.0  ;;  %vm7293_vm6 = vmmov %vm7288_vm3 }
 0x64c   : > { %v2505_v47 = vmul.f32 %v2504_v41, %v2328_v61  ;;  %v2359_v2 = vstv %s6100_s0  ;;  %p3276_p0 = pnand %p3275_p7, %p3269_p8 }
 0x64e   : > { %v2523_v23 = vpop.permute.xlu1 %2522  ;;  %v2351_v49 = vpop.permute.xlu0 %2350 }
 0x64f   : > { %v2524_v48 = vsel %vm303_vm5, %v2523_v23, %v5936_v26  ;;  %v2352_v34 = vsel %vm303_vm5, %v2351_v49, %v5932_v1  ;;  %v2502_v23 = vmul.f32 %v2501_v54, %v2323_v25  ;;  %v2378_v25 = vstv %s6123_s15 }
 0x650   : > { %2526 = vrot.lane.b32.xlu1 %v2524_v48, %s7280_s29  ;;  %2354 = vrot.lane.b32.xlu0 %v2352_v34, %s7280_s29  ;;  %v2545_v54 = vmul.f32 %v2378_v25, %v5936_v26 }
 0x652   : > { %v2536_v44 = vpop.permute.xlu1 %2535  ;;  %v2366_v30 = vpop.permute.xlu0 %2365 }
 0x653   : > { %v2537_v6 = vsel %vm303_vm5, %v2536_v44, %v5938_v45  ;;  %v2367_v19 = vsel %vm303_vm5, %v2366_v30, %v5934_v40 }
 0x654   : > { %2539 = vrot.lane.b32.xlu1 %v2537_v6, %s7280_s29  ;;  %2369 = vrot.lane.b32.xlu0 %v2367_v19, %s7280_s29 }
 0x656   : > { %v2567_v52 = vpop.permute.xlu1 %2566  ;;  %v2407_v9 = vpop.permute.xlu0 %2406 }
 0x657   : > { %v2568_v11 = vsel %vm303_vm5, %v2567_v52, %v5984_v20  ;;  %v2408_v24 = vsel %vm303_vm5, %v2407_v9, %v5986_v18 }
 0x658   : > { %2313 = vrot.lane.b32.xlu1 %v2311_v50, %s7280_s29  ;;  %2291 = vrot.lane.b32.xlu0 %v2289_v33, %s7280_s29 }
 0x65a   : > { %v2582_v21 = vpop.permute.xlu1 %2581  ;;  %v2424_v36 = vpop.permute.xlu0 %2423 }
 0x65b   : > { %v2583_v3 = vsel %vm303_vm5, %v2582_v21, %v5992_v62  ;;  %v2425_v15 = vsel %vm303_vm5, %v2424_v36, %v5994_v31  ;;  %vm7292_vm5 = vmmov %vm7288_vm3 }
 0x65c   : > { %2495 = vrot.lane.b32.xlu1 %v2493_v63, %s7280_s29  ;;  %2475 = vrot.lane.b32.xlu0 %v2473_v16, %s7280_s29 }
 0x660   : > { %2507 = vrot.lane.b32.xlu1 %v2473_v16, %s7281_s10  ;;  %2331 = vrot.lane.b32.xlu0 %v2289_v33, %s7281_s10  ;;  %v2344_v33 = vstv %s6098_s11 }
 0x664   : > { %2513 = vrot.lane.b32.xlu1 %v2493_v63, %s7281_s10  ;;  %2339 = vrot.lane.b32.xlu0 %v2311_v50, %s7281_s10 }
 0x668   : > { %2549 = vrot.lane.b32.xlu1 %v2524_v48, %s7281_s10  ;;  %2385 = vrot.lane.b32.xlu0 %v2352_v34, %s7281_s10 }
 0x66c   : > { %2555 = vrot.lane.b32.xlu1 %v2537_v6, %s7281_s10  ;;  %2393 = vrot.lane.b32.xlu0 %v2367_v19, %s7281_s10  ;;  %v2329_v19 = vmul.f32 %v2328_v61, %v2326_v53 }
 0x670   : > { %2570 = vrot.lane.b32.xlu1 %v2568_v11, %s7280_s29  ;;  %2410 = vrot.lane.b32.xlu0 %v2408_v24, %s7280_s29 }
 0x674   : > { %2585 = vrot.lane.b32.xlu1 %v2583_v3, %s7280_s29  ;;  %2427 = vrot.lane.b32.xlu0 %v2425_v15, %s7280_s29  ;;  %s6224_s29 = scalar_lea.hbm %s7290_s17, %s3137_s14 }
 0x678   : > { %2597 = vrot.lane.b32.xlu1 %v2568_v11, %s7281_s10  ;;  %2445 = vrot.lane.b32.xlu0 %v2408_v24, %s7281_s10 }
 0x67c   : > { %2603 = vrot.lane.b32.xlu1 %v2583_v3, %s7281_s10  ;;  %2453 = vrot.lane.b32.xlu0 %v2425_v15, %s7281_s10  ;;  %s2685_s10 = scalar_lea.sflag [#allocation4], %s7286_s2 }
 0x6c2   : > { %v2527_v17 = vpop.permute.xlu1 %2526  ;;  %v2355_v51 = vpop.permute.xlu0 %2354 }
 0x6c3   : > { %v2529_v24 = vsel %vm187_vm8, %v2527_v17, 0.0  ;;  %v2357_v21 = vsel %vm187_vm8, %v2355_v51, 0.0 }
 0x6c4   : > { %v2530_v59 = vmul.f32 %v2529_v24, %v2359_v2  ;;  %v2360_v0 = vmul.f32 %v2359_v2, %v2357_v21 }
 0x6c6   : > { %v2540_v58 = vpop.permute.xlu1 %2539  ;;  %v2370_v29 = vpop.permute.xlu0 %2369 }
 0x6c7   : > { %v2542_v17 = vsel %vm187_vm8, %v2540_v58, 0.0  ;;  %v2372_v51 = vsel %vm187_vm8, %v2370_v29, 0.0  ;;  %v2382_v58 = vstv %s6126_s27  ;;  %vm7295_vm8 = vmmov %vm7288_vm3 }
 0x6c8   : > { %v2547_v41 = vmul.f32 %v2382_v58, %v5938_v45 }
 0x6ca   : > { %v2314_v60 = vpop.permute.xlu1 %2313  ;;  %v2292_v32 = vpop.permute.xlu0 %2291 }
 0x6cb   : > { %v2316_v39 = vsel %vm4204_vm9, %v2314_v60, 0.0  ;;  %v2294_v43 = vsel %vm4204_vm9, %v2292_v32, 0.0  ;;  %v2374_v32 = vstv %s6109_s12 }
 0x6cc   : > { %v2319_v42 = vmul.f32 %v2318_v27, %v2316_v39  ;;  %v2297_v7 = vmul.f32 %v2296_v57, %v2294_v43  ;;  %v2543_v56 = vmul.f32 %v2542_v17, %v2374_v32 }
 0x6ce   : > { %v2320_v55 = vadd.f32 %v2319_v42, %v2297_v7  ;;  %v2496_v37 = vpop.permute.xlu1 %2495  ;;  %v2476_v5 = vpop.permute.xlu0 %2475 }
 0x6cf   : > { %v2498_v22 = vsel %vm4204_vm9, %v2496_v37, 0.0  ;;  %v2478_v12 = vsel %vm4204_vm9, %v2476_v5, 0.0  ;;  %vm7296_vm9 = vmmov %vm7288_vm3 }
 0x6d0   : > { %v2499_v38 = vmul.f32 %v2498_v22, %v2318_v27  ;;  %v2479_v10 = vmul.f32 %v2478_v12, %v2296_v57  ;;  %v2325_v14 = vadd.f32 %v2324_v4, %v2320_v55  ;;  %v2375_v55 = vmul.f32 %v2374_v32, %v2372_v51 }
 0x6d1   : > { %v2379_v12 = vmul.f32 %v2378_v25, %v5932_v1  ;;  %v2450_v25 = vstv %s6175_s30 }
 0x6d2   : > { %v2500_v49 = vadd.f32 %v2499_v38, %v2479_v10  ;;  %v2508_v48 = vpop.permute.xlu1 %2507  ;;  %v2332_v34 = vpop.permute.xlu0 %2331  ;;  %v2330_v52 = vadd.f32 %v2329_v19, %v2325_v14  ;;  %v2390_v10 = vstv %s6137_s21  ;;  %v2383_v14 = vmul.f32 %v2382_v58, %v5934_v40 }
 0x6d3   : > { %v2510_v44 = vsel %vm4309_vm11, %v2508_v48, 0.0  ;;  %v2334_v30 = vsel %vm4309_vm11, %v2332_v34, 0.0 }
 0x6d4   : > { %v2503_v6 = vadd.f32 %v2502_v23, %v2500_v49  ;;  %v2337_v50 = vmul.f32 %v2336_v35, %v2334_v30  ;;  %v2511_v16 = vmul.f32 %v2510_v44, %v2336_v35  ;;  %v2398_v49 = vstv %s6144_s7 }
 0x6d6   : > { %v2506_v63 = vadd.f32 %v2505_v47, %v2503_v6  ;;  %v2514_v9 = vpop.permute.xlu1 %2513  ;;  %v2340_v11 = vpop.permute.xlu0 %2339  ;;  %v2338_v27 = vadd.f32 %v2337_v50, %v2330_v52  ;;  %v2415_v47 = vstv %s6147_s1 }
 0x6d7   : > { %v2516_v36 = vsel %vm4309_vm11, %v2514_v9, 0.0  ;;  %v2342_v3 = vsel %vm4309_vm11, %v2340_v11, 0.0 }
 0x6d8   : > { %v2512_v15 = vadd.f32 %v2511_v16, %v2506_v63  ;;  %v2517_v57 = vmul.f32 %v2516_v36, %v2344_v33  ;;  %v2345_v60 = vmul.f32 %v2344_v33, %v2342_v3  ;;  %v2432_v63 = vstv %s6150_s16 }
 0x6d9   : > { %v2437_v16 = vstv %s6152_s8  ;;  %v2591_v3 = vsel %vm191_vm7, %v5984_v20, 0.0  ;;  %v2594_v20 = vsel %vm191_vm7, %v5992_v62, 0.0 }
 0x6da   : > { %v2518_v39 = vadd.f32 %v2517_v57, %v2512_v15  ;;  %v2346_v43 = vadd.f32 %v2345_v60, %v2338_v27  ;;  %v2550_v42 = vpop.permute.xlu1 %2549  ;;  %v2386_v7 = vpop.permute.xlu0 %2385  ;;  %v2435_v27 = vsel %vm191_vm7, %v5986_v18, 0.0 }
 0x6db   : > { %v2552_v61 = vsel %vm189_vm10, %v2550_v42, 0.0  ;;  %v2388_v35 = vsel %vm189_vm10, %v2386_v7, 0.0  ;;  %v2438_v18 = vmul.f32 %v2437_v16, %v2435_v27  ;;  %v3215_v27 = vld [vmem:[%s7284_s28] sm:$0xff] }
 0x6dc   : > { %v2531_v37 = vadd.f32 %v2530_v59, %v2518_v39  ;;  %v2361_v5 = vadd.f32 %v2360_v0, %v2346_v43  ;;  %v2553_v34 = vmul.f32 %v2552_v61, %v2390_v10  ;;  %v2391_v30 = vmul.f32 %v2390_v10, %v2388_v35 }
 0x6dd   : > { %v2442_v59 = vstv %s6168_s19  ;;  %v2440_v0 = vsel %vm191_vm7, %v5994_v31, 0.0  ;;  %v2592_v39 = vmul.f32 %v2591_v3, %v2437_v16  ;;  %vm7294_vm7 = vmmov %vm7288_vm3 }
 0x6de   : > { %v2544_v29 = vadd.f32 %v2543_v56, %v2531_v37  ;;  %v2376_v22 = vadd.f32 %v2375_v55, %v2361_v5  ;;  %v2556_v4 = vpop.permute.xlu1 %2555  ;;  %v2394_v38 = vpop.permute.xlu0 %2393  ;;  %v2595_v62 = vmul.f32 %v2594_v20, %v2442_v59  ;;  %v2443_v58 = vmul.f32 %v2442_v59, %v2440_v0  ;;  %v3218_v59 = vld [vmem:[%s7284_s28 + $0x18] sm:$0xff]  ;;  %v3219_v0 = vld [vmem:[%s7284_s28 + $0x20] sm:$0xff] }
 0x6df   : > { %v2558_v1 = vsel %vm189_vm10, %v2556_v4, 0.0  ;;  %v2396_v26 = vsel %vm189_vm10, %v2394_v38, 0.0  ;;  %vm7297_vm10 = vmmov %vm7288_vm3 }
 0x6e0   : > { %v2546_v53 = vadd.f32 %v2545_v54, %v2544_v29  ;;  %v2380_v23 = vadd.f32 %v2379_v12, %v2376_v22  ;;  %v2559_v33 = vmul.f32 %v2558_v1, %v2398_v49  ;;  %v2399_v2 = vmul.f32 %v2398_v49, %v2396_v26 }
 0x6e1   : > { %v2458_v29 = vstv %s6179_s25 }
 0x6e2   : > { %v2548_v48 = vadd.f32 %v2547_v41, %v2546_v53  ;;  %v2384_v44 = vadd.f32 %v2383_v14, %v2380_v23  ;;  %v2571_v45 = vpop.permute.xlu1 %2570  ;;  %v2411_v6 = vpop.permute.xlu0 %2410 }
 0x6e3   : > { %v2573_v40 = vsel %vm4495_vm12, %v2571_v45, 0.0  ;;  %v2413_v19 = vsel %vm4495_vm12, %v2411_v6, 0.0 }
 0x6e4   : > { %v2554_v8 = vadd.f32 %v2553_v34, %v2548_v48  ;;  %v2392_v50 = vadd.f32 %v2391_v30, %v2384_v44  ;;  %v2574_v11 = vmul.f32 %v2573_v40, %v2415_v47  ;;  %v2416_v24 = vmul.f32 %v2415_v47, %v2413_v19 }
 0x6e5   : > { %v2625_v47 = vunpack.c.l.s4 %v3345_v13 }
 0x6e6   : > { %v2560_v52 = vadd.f32 %v2559_v33, %v2554_v8  ;;  %v2400_v9 = vadd.f32 %v2399_v2, %v2392_v50  ;;  %v2586_v21 = vpop.permute.xlu1 %2585  ;;  %v2428_v36 = vpop.permute.xlu0 %2427 }
 0x6e7   : > { %v2588_v15 = vsel %vm4495_vm12, %v2586_v21, 0.0  ;;  %v2430_v57 = vsel %vm4495_vm12, %v2428_v36, 0.0  ;;  %v2626_v40 = vunpack.c.0.s8 %v2625_v47 }
 0x6e8   : > { %v2575_v60 = vadd.f32 %v2574_v11, %v2560_v52  ;;  %v2417_v32 = vadd.f32 %v2416_v24, %v2400_v9  ;;  %v2589_v17 = vmul.f32 %v2588_v15, %v2432_v63  ;;  %v2433_v51 = vmul.f32 %v2432_v63, %v2430_v57 }
 0x6e9   : > { %v2629_v50 = vsub.s32 %v2626_v40, %v7283_v28  ;;  %v2650_v63 = vsub.s32 0, %v7283_v28  ;;  %v3216_v28 = vld [vmem:[%s7284_s28 + $0x8] sm:$0xff] }
 0x6ea   : > { %v2590_v43 = vadd.f32 %v2589_v17, %v2575_v60  ;;  %v2434_v42 = vadd.f32 %v2433_v51, %v2417_v32  ;;  %v2598_v46 = vpop.permute.xlu1 %2597  ;;  %v2446_v7 = vpop.permute.xlu0 %2445  ;;  %v3217_v17 = vld [vmem:[%s7284_s28 + $0x10] sm:$0xff] }
 0x6eb   : > { %v2600_v56 = vsel %vm4611_vm13, %v2598_v46, 0.0  ;;  %v2448_v55 = vsel %vm4611_vm13, %v2446_v7, 0.0  ;;  %v3222_v7 = vld [vmem:[%s7284_s28 + $0x38] sm:$0xff] }
 0x6ec   : > { %v2593_v37 = vadd.f32 %v2592_v39, %v2590_v43  ;;  %v2439_v5 = vadd.f32 %v2438_v18, %v2434_v42  ;;  %v2601_v31 = vmul.f32 %v2600_v56, %v2450_v25  ;;  %v2451_v12 = vmul.f32 %v2450_v25, %v2448_v55  ;;  %v3220_v43 = vld [vmem:[%s7284_s28 + $0x28] sm:$0xff]  ;;  %v3221_v42 = vld [vmem:[%s7284_s28 + $0x30] sm:$0xff] }
 0x6ee   : > { %v2596_v22 = vadd.f32 %v2595_v62, %v2593_v37  ;;  %v2444_v54 = vadd.f32 %v2443_v58, %v2439_v5  ;;  %v2604_v4 = vpop.permute.xlu1 %2603  ;;  %v2454_v38 = vpop.permute.xlu0 %2453 }
 0x6ef   : > { %v2606_v10 = vsel %vm4611_vm13, %v2604_v4, 0.0  ;;  %v2456_v61 = vsel %vm4611_vm13, %v2454_v38, 0.0 }
 0x6f0   : > { %v2602_v35 = vadd.f32 %v2601_v31, %v2596_v22  ;;  %v2452_v41 = vadd.f32 %v2451_v12, %v2444_v54  ;;  %v2607_v53 = vmul.f32 %v2606_v10, %v2458_v29  ;;  %v2459_v14 = vmul.f32 %v2458_v29, %v2456_v61 }
 0x6f2   : > { %v2608_v23 = vadd.f32 %v2607_v53, %v2602_v35  ;;  %v2460_v49 = vadd.f32 %v2459_v14, %v2452_v41 }
 0x6f4   : > { %v2615_v1 = vsub.f32 0.0, %v2608_v23  ;;  %v2609_v26 = vsub.f32 0.0, %v2460_v49 }
 0x6f6   : > { %v2616_v48 = vmul.f32 1.442695, %v2615_v1  ;;  %v2610_v34 = vmul.f32 1.442695, %v2609_v26 }
 0x6f8   : > { %3207 = vpow2.f32 %v2616_v48 }
 0x6f9   : > { %3209 = vpow2.f32 %v2610_v34 }
 0x702   : > { %v3208_v44 = vpop.eup %3207 }
 0x703   : > { %v3210_v30 = vpop.eup %3209  ;;  %v2618_v45 = vadd.f32 1.0, %v3208_v44 }
 0x704   : > { %v2612_v6 = vadd.f32 1.0, %v3210_v30 }
 0x705   : > { %3211 = vrcp.f32 %v2618_v45 }
 0x706   : > { %3213 = vrcp.f32 %v2612_v6 }
 0x70f   : > { %v3212_v19 = vpop.eup %3211 }
 0x710   : > { %v3214_v8 = vpop.eup %3213 }
 0x711   : > { %v2621_v33 = vadd.f32 %v3214_v8, %v3212_v19 }
 0x713   : > { %v2622_v2 = vmul.f32 0.5, %v2621_v33 }
 0x715   : > { %v2630_v16 = vrot.slane %v2622_v2, %v2629_v50 }
 0x717   : > { %v2631_v52 = vcombine.high %v2630_v16, %v2630_v16  ;;  %v2638_v9 = vrot.slane %v2630_v16, %v2629_v50 }
 0x719   : > { %v2645_v11 = vrot.slane %v2631_v52, %v2629_v50  ;;  %v2646_v24 = vcombine.high %v2638_v9, %v2638_v9  ;;  %v2651_v21 = vrot.slane %v2638_v9, %v2650_v63 }
 0x71b   : > { %v2647_v36 = vcombine.high %v2645_v11, %v2645_v11  ;;  %v2655_v3 = vrot.slane %v2645_v11, %v2650_v63  ;;  %v2659_v15 = vrot.slane %v2646_v24, %v2650_v63  ;;  %v2668_v57 = vmul.f32 %v3215_v27, %v2651_v21 }
 0x71c   : > { %v2669_v60 = vmul.f32 %v3216_v28, %v2651_v21 }
 0x71d   : > { %v2663_v32 = vrot.slane %v2647_v36, %v2650_v63  ;;  %v2670_v51 = vmul.f32 %v3217_v17, %v2655_v3  ;;  %v2671_v20 = vmul.f32 %v3218_v59, %v2655_v3  ;;  %v2672_v39 = vmul.f32 %v3219_v0, %v2659_v15  ;;  %2676 = vst.msk [vmem:[%s173_s13] sm:$0xff] %vm7288_vm3, %v2668_v57 }
 0x71e   : > { %v2673_v18 = vmul.f32 %v3220_v43, %v2659_v15  ;;  %2677 = vst.msk [vmem:[%s173_s13 + $0x8] sm:$0xff] %vm7289_vm4, %v2669_v60 }
 0x71f   : > { %v2674_v46 = vmul.f32 %v3221_v42, %v2663_v32  ;;  %v2675_v25 = vmul.f32 %v3222_v7, %v2663_v32  ;;  %2678 = vst.msk [vmem:[%s173_s13 + $0x10] sm:$0xff] %vm7292_vm5, %v2670_v51 }
 0x720   : > { %2679 = vst.msk [vmem:[%s173_s13 + $0x18] sm:$0xff] %vm7293_vm6, %v2671_v20 }
 0x721   : > { %2680 = vst.msk [vmem:[%s173_s13 + $0x20] sm:$0xff] %vm7294_vm7, %v2672_v39 }
 0x722   : > { %2681 = vst.msk [vmem:[%s173_s13 + $0x28] sm:$0xff] %vm7295_vm8, %v2673_v18 }
 0x723   : > { %2682 = vst.msk [vmem:[%s173_s13 + $0x30] sm:$0xff] %vm7296_vm9, %v2674_v46 }
 0x724   : > { %2683 = vst.msk [vmem:[%s173_s13 + $0x38] sm:$0xff] %vm7297_vm10, %v2675_v25 }
 0x725   : > { %3279 = shalt.err (!%p3276_p0)
}
 0x726   : > { %s3280_s24 = scalar_lea.hbm %s6224_s29, 1024  ;;  %s3284_s12 = scalar_lea.hbm %s7290_s17, 2048 }
 0x727   : > { %p3281_p9 = scmp.ne.s32.totalorder %s6224_s29, %s3280_s24  ;;  %p3285_p11 = scmp.lt.u32.totalorder %s6224_s29, %s7290_s17 }
 0x728   : > { %p3286_p12 = scmp.lt.u32.totalorder %s3284_s12, %s3280_s24  ;;  %p3288_p1 = scmp.lt.u32.totalorder %s3280_s24, %s6224_s29 }
 0x729   : > { %p3282_p4 = pnand %p3281_p9, %p7298_p3 }
 0x72a   : > { %p3287_p13 = por %p3286_p12, %p3285_p11 }
 0x72b   : > { %p3283_p5 = pneg %p3282_p4 }
 0x72c   : > { %p3289_p6 = por %p3288_p1, %p3287_p13 }
 0x72e   : > { %p3290_p8 = pnand %p3289_p6, %p3283_p5 }
 0x730   : > { %3293 = shalt.err (!%p3290_p8)
}
 0x731   : > { %s3347_s21 = smov 128   ;;  %s3348_s7 = smov 8  }
 0x732   : > { %3144 = dma.vmem_to_hbm [thread:$0]  (%p7298_p3), %s6226_s5, 1024, %s6224_s29, %s2685_s10, %s3347_s21, %s3347_s21, %s3348_s7  }
 0x733 PF: > { %s7299_s1 = sld [smem:[#allocation11_spill]]  ;;  %s7300_s16 = sld [smem:[#allocation19_spill]] }
 0x734   : > { %s7301_s8 = sld [smem:[#allocation14_spill]] }
 0x739   : > { %s2713_s19 = sand.u32 1, %s7299_s1   ;;  %p7302_p10 = scmp.ne.s32.totalorder %s7300_s16, 0 }
 0x73a   : > { %p7303_p2 = scmp.ge.s32.totalorder %s7301_s8, 2  ;;  %s2714_s30 = scalar_lea.sflag [#allocation4], %s2713_s19 }
 0x73c   : > { %p3155_p7 = pnand %p7303_p2, %p7302_p10 }
 0x73e   : > { %3319 = dma.done.wait (!%p3155_p7), %s2714_s30, 1024  }
 0x73f   : > { %3321 = vsyncadd (!%p3155_p7), %s2714_s30, 4294966272  ;;  %s7304_s12 = sld [smem:[#allocation16_spill]]  ;;  %s7305_s9 = sld [smem:[#allocation12_spill]] }
 0x740   : > { %s7306_s10 = sld [smem:[#allocation13_spill]]  ;;  %s7307_s11 = sld [smem:[#allocation17_spill]] }
 0x745   : > { %p16_p0 = scmp.ge.s32.totalorder %s7304_s12, 4  }
 0x747   :  { %18 = sbr.rel (!%p16_p0) target bundleno = 10 (0xa), region = 78 }
 0x74e   :  { %2719 = vsyncpa [#allocation3], 1 }
 0x74f   :  { %2721 = vsyncpa [#allocation3 + $0x1], 1 }
 0x750   :  { %2722 = vsyncpa [#allocation4], 1 }
 0x751   :  { %2724 = vsyncpa [#allocation4 + $0x1], 1 }
 0x752   :  { %2725 = vsyncpa [#allocation5], 1 }
 0x753   :  { %2727 = vsyncpa [#allocation5 + $0x1], 1 }

</bundles_post_ra>
